<compile_context>
chip_gen: v7x
topology: tpu7x:2x2x1
jax: 0.10.0
libtpu: 0.0.40
codegen_flags: <defaults>
</compile_context>

<pallas_src>
import jax
import jax.numpy as jnp
from jax.experimental import pallas as pl
from jax.experimental.pallas import tpu as pltpu


# ----------------------------------------------------------------------------
# Fused SSH kernel
# ----------------------------------------------------------------------------
def _make_ssh_kernel(H, W, C2, C4, leaky):
    Wp = W + 2
    Hp = H + 2
    L = H * Wp            # rows of the width-padded, flattened conv output
    R = Hp * Wp + 2       # rows of the flattened padded input (+1 guard each end)
    TOP = 1 + Wp          # first "real" output row inside the padded layout
    BOT = R - TOP - L     # trailing always-zero rows of the padded layout

    def conv3x3(src, w_ref, b_ref):
        # src: [R, Cin] = zero-padded image flattened row-major with one guard
        # row at each end.  Output row o corresponds to padded position
        # (1 + o // Wp, o % Wp); columns 0 and W+1 are wrap junk (masked later).
        acc = jnp.dot(src[0:L, :], w_ref[0],
                      preferred_element_type=jnp.float32)
        for t in range(1, 9):
            off = (t // 3) * Wp + (t % 3)
            acc = acc + jnp.dot(src[off:off + L, :], w_ref[t],
                                preferred_element_type=jnp.float32)
        return acc + b_ref[...]

    def repad(dst_ref, val):
        # Rebuild the zero-padded flattened layout for a chained conv.  Only
        # the small border regions need explicit zeros; the junk columns inside
        # `val` were already masked to zero.
        dst_ref[0:TOP, :] = jnp.zeros((TOP, val.shape[1]), jnp.float32)
        dst_ref[TOP:TOP + L, :] = val
        dst_ref[TOP + L:, :] = jnp.zeros((BOT, val.shape[1]), jnp.float32)

    def kernel(x_ref, wa_ref, ba_ref, wb_ref, bb_ref, wc_ref, bc_ref,
               out_ref, t_ref, u_ref):
        x = x_ref[0]                                        # [R, Cin]

        # mask for the wrap-around junk columns (wpad == 0 or wpad == W+1)
        col = jax.lax.broadcasted_iota(jnp.int32, (L, 1), 0) % Wp
        valid = jnp.logical_and(col >= 1, col <= W).astype(jnp.float32)

        # fused layer A: [conv3X3 | conv5X5_1] share the input -> one 9-tap pass
        acc_a = conv3x3(x, wa_ref, ba_ref)                  # [L, C2 + C4]
        br1 = acc_a[:, :C2]                                 # conv3X3 (no act)
        t = acc_a[:, C2:]                                   # conv5X5_1
        t = jnp.where(t > 0, t, leaky * t) * valid          # LeakyReLU + mask
        repad(t_ref, t)
        tv = t_ref[...]                                     # [R, C4]

        # fused layer B: [conv5X5_2 | conv7X7_2] share tv -> one 9-tap pass
        acc_b = conv3x3(tv, wb_ref, bb_ref)                 # [L, 2*C4]
        br2 = acc_b[:, :C4]                                 # conv5X5_2 (no act)
        u = acc_b[:, C4:]                                   # conv7X7_2
        u = jnp.where(u > 0, u, leaky * u) * valid          # LeakyReLU + mask
        repad(u_ref, u)
        uv = u_ref[...]                                     # [R, C4]

        # layer C: conv7x7_3 (no activation)
        br3 = conv3x3(uv, wc_ref, bc_ref)                   # [L, C4]

        # channel concat + final ReLU, one full-block lane-dense store
        out = jnp.concatenate([br1, br2, br3], axis=1)      # [L, Cout]
        out_ref[0] = jnp.maximum(out, 0.0)

    return kernel


# ----------------------------------------------------------------------------
# Host-side helpers
# ----------------------------------------------------------------------------
def _fold_bn(w, gamma, beta, mean, var, eps=1e-5):
    """Fold inference-mode BN into the conv. Returns ([9,Cin,Cout], [1,Cout])."""
    scale = gamma / jnp.sqrt(var + eps)
    w_f = w * scale[:, None, None, None]                    # [Cout, Cin, 3, 3]
    b_f = beta - mean * scale
    w_k = jnp.transpose(w_f, (2, 3, 1, 0)).reshape(9, w.shape[1], w.shape[0])
    return w_k.astype(jnp.float32), b_f.reshape(1, -1).astype(jnp.float32)


def _pack_params(raw_params):
    """Fold BN and fuse sibling convs sharing an input into one weight stack."""
    (w3, b3) = _fold_bn(*raw_params[0])     # conv3X3
    (w51, b51) = _fold_bn(*raw_params[1])   # conv5X5_1
    (w52, b52) = _fold_bn(*raw_params[2])   # conv5X5_2
    (w72, b72) = _fold_bn(*raw_params[3])   # conv7X7_2
    (w73, b73) = _fold_bn(*raw_params[4])   # conv7x7_3
    wa = jnp.concatenate([w3, w51], axis=2)     # [9, Cin, C2+C4]
    ba = jnp.concatenate([b3, b51], axis=1)     # [1, C2+C4]
    wb = jnp.concatenate([w52, w72], axis=2)    # [9, C4, 2*C4]
    bb = jnp.concatenate([b52, b72], axis=1)    # [1, 2*C4]
    return wa, ba, wb, bb, w73, b73


def ssh_forward(x_nchw, packed):
    """SSH forward.  x_nchw: [N, Cin, H, W] -> [N, Cout, H, W]."""
    N, Cin, H, W = x_nchw.shape
    Hp, Wp = H + 2, W + 2
    R = Hp * Wp + 2
    L = H * Wp

    wa, ba, wb, bb, wc, bc = packed
    C4 = wb.shape[1]
    C2 = wa.shape[2] - C4
    Cout = C2 + 2 * C4
    leaky = 0.1 if Cout <= 64 else 0.0

    # NHWC, zero-pad spatially, flatten the padded grid, +1 guard row each end
    x = jnp.transpose(x_nchw, (0, 2, 3, 1)).astype(jnp.float32)
    xp = jnp.pad(x, ((0, 0), (1, 1), (1, 1), (0, 0)))
    xf = jnp.pad(xp.reshape(N, Hp * Wp, Cin), ((0, 0), (1, 1), (0, 0)))

    kernel = _make_ssh_kernel(H, W, C2, C4, leaky)

    def const(shape):
        return pl.BlockSpec(shape, lambda n, _s=shape: tuple(0 for _ in _s))

    out = pl.pallas_call(
        kernel,
        out_shape=jax.ShapeDtypeStruct((N, L, Cout), jnp.float32),
        grid=(N,),
        in_specs=[
            pl.BlockSpec((1, R, Cin), lambda n: (n, 0, 0)),   # input image
            const((9, Cin, C2 + C4)), const((1, C2 + C4)),    # conv3X3|conv5X5_1
            const((9, C4, 2 * C4)), const((1, 2 * C4)),       # conv5X5_2|conv7X7_2
            const((9, C4, C4)), const((1, C4)),                # conv7x7_3
        ],
        out_specs=pl.BlockSpec((1, L, Cout), lambda n: (n, 0, 0)),
        scratch_shapes=[pltpu.VMEM((R, C4), jnp.float32),
                        pltpu.VMEM((R, C4), jnp.float32)],
        compiler_params=pltpu.CompilerParams(
            dimension_semantics=("parallel",)),
    )(xf, wa, ba, wb, bb, wc, bc)

    # [N, H*Wp, Cout] -> drop the junk border columns -> NCHW
    out = out.reshape(N, H, Wp, Cout)[:, :, 1:1 + W, :]
    return jnp.transpose(out, (0, 3, 1, 2))


# ----------------------------------------------------------------------------
# Pure-JAX reference (XLA conv) for correctness checking
# ----------------------------------------------------------------------------
def _conv_bn_ref(x_nhwc, w, gamma, beta, mean, var, eps=1e-5, leaky=None):
    w_hwio = jnp.transpose(w, (2, 3, 1, 0))
    y = jax.lax.conv_general_dilated(
        x_nhwc, w_hwio, window_strides=(1, 1), padding="SAME",
        dimension_numbers=("NHWC", "HWIO", "NHWC"),
        precision=jax.lax.Precision.HIGHEST)
    scale = gamma / jnp.sqrt(var + eps)
    y = y * scale + (beta - mean * scale)
    if leaky is not None:
        y = jnp.where(y > 0, y, leaky * y)
    return y


def ssh_reference(x_nchw, raw_params, leaky):
    x = jnp.transpose(x_nchw, (0, 2, 3, 1)).astype(jnp.float32)
    p3, p51, p52, p72, p73 = raw_params
    b1 = _conv_bn_ref(x, *p3)
    t = _conv_bn_ref(x, *p51, leaky=leaky)
    b2 = _conv_bn_ref(t, *p52)
    u = _conv_bn_ref(t, *p72, leaky=leaky)
    b3 = _conv_bn_ref(u, *p73)
    out = jnp.maximum(jnp.concatenate([b1, b2, b3], axis=-1), 0.0)
    return jnp.transpose(out, (0, 3, 1, 2))


# ----------------------------------------------------------------------------
if __name__ == "__main__":
    key = jax.random.PRNGKey(0)
    N, Cin, H, W = 2, 64, 16, 16
    Cout = 64                              # out_channel % 4 == 0
    C2, C4 = Cout // 2, Cout // 4
    leaky = 0.1 if Cout <= 64 else 0.0

    def make_layer(k, cin, cout):
        kw, kg, kb, km, kv = jax.random.split(k, 5)
        w = jax.random.normal(kw, (cout, cin, 3, 3), jnp.float32) * 0.1
        gamma = jax.random.uniform(kg, (cout,), jnp.float32, 0.5, 1.5)
        beta = jax.random.normal(kb, (cout,), jnp.float32) * 0.1
        mean = jax.random.normal(km, (cout,), jnp.float32) * 0.1
        var = jax.random.uniform(kv, (cout,), jnp.float32, 0.5, 1.5)
        return (w, gamma, beta, mean, var)

    kx, k1, k2, k3, k4, k5 = jax.random.split(key, 6)
    x = jax.random.normal(kx, (N, Cin, H, W), jnp.float32)
    raw = (make_layer(k1, Cin, C2),     # conv3X3
           make_layer(k2, Cin, C4),     # conv5X5_1
           make_layer(k3, C4, C4),      # conv5X5_2
           make_layer(k4, C4, C4),      # conv7X7_2
           make_layer(k5, C4, C4))      # conv7x7_3
    packed = _pack_params(raw)

    fwd = jax.jit(ssh_forward)
    out = fwd(x, packed)
    jax.block_until_ready(out)

    ref = ssh_reference(x, raw, leaky)
    assert out.shape == (N, Cout, H, W)
    assert bool(jnp.all(jnp.isfinite(out)))
    assert bool(jnp.allclose(out, ref, atol=2e-2, rtol=2e-2))
    print("KERNEL_OK")
</pallas_src>

<mosaic_0001>
module attributes {stable_mosaic.version = 11 : i64} {
  func.func @kernel(%arg0: i32, %arg1: memref<1x326x64xf32, #tpu.memory_space<vmem>>, %arg2: memref<9x64x48xf32, #tpu.memory_space<vmem>>, %arg3: memref<1x48xf32, #tpu.memory_space<vmem>>, %arg4: memref<9x16x32xf32, #tpu.memory_space<vmem>>, %arg5: memref<1x32xf32, #tpu.memory_space<vmem>>, %arg6: memref<9x16x16xf32, #tpu.memory_space<vmem>>, %arg7: memref<1x16xf32, #tpu.memory_space<vmem>>, %arg8: memref<1x288x64xf32, #tpu.memory_space<vmem>>, %arg9: memref<326x16xf32, #tpu.memory_space<vmem>>, %arg10: memref<326x16xf32, #tpu.memory_space<vmem>>) attributes {dimension_semantics = [#tpu.dimension_semantics<parallel>], iteration_bounds = array<i64: 2>, scalar_prefetch = 0 : i64, scratch_operands = 2 : i64, tpu.core_type = #tpu.core_type<tc>, window_params = [{transform_indices = @transform_0, window_bounds = array<i64: 1, 326, 64>}, {pipeline_mode = #tpu.pipeline_mode<synchronous>, transform_indices = @transform_1, window_bounds = array<i64: 9, 64, 48>}, {pipeline_mode = #tpu.pipeline_mode<synchronous>, transform_indices = @transform_2, window_bounds = array<i64: 1, 48>}, {pipeline_mode = #tpu.pipeline_mode<synchronous>, transform_indices = @transform_3, window_bounds = array<i64: 9, 16, 32>}, {pipeline_mode = #tpu.pipeline_mode<synchronous>, transform_indices = @transform_4, window_bounds = array<i64: 1, 32>}, {pipeline_mode = #tpu.pipeline_mode<synchronous>, transform_indices = @transform_5, window_bounds = array<i64: 9, 16, 16>}, {pipeline_mode = #tpu.pipeline_mode<synchronous>, transform_indices = @transform_6, window_bounds = array<i64: 1, 16>}, {transform_indices = @transform_7, window_bounds = array<i64: 1, 288, 64>}]} {
    %c0 = arith.constant 0 : index
    %c0_0 = arith.constant 0 : index
    %c0_1 = arith.constant 0 : index
    %0 = vector.load %arg1[%c0, %c0_0, %c0_1] : memref<1x326x64xf32, #tpu.memory_space<vmem>>, vector<1x326x64xf32>
    %1 = vector.shape_cast %0 : vector<1x326x64xf32> to vector<326x64xf32>
    %2 = tpu.iota {dimensions = array<i32: 0>} : vector<288x1xi32>
    %c18_i32 = arith.constant 18 : i32
    %c0_i32 = arith.constant 0 : i32
    %3 = arith.cmpi eq, %c18_i32, %c0_i32 : i32
    %c1_i32 = arith.constant 1 : i32
    %4 = arith.select %3, %c1_i32, %c18_i32 : i32
    %5 = vector.broadcast %4 : i32 to vector<288x1xi32>
    %6 = arith.remsi %2, %5 : vector<288x1xi32>
    %c0_i32_2 = arith.constant 0 : i32
    %7 = vector.broadcast %c0_i32_2 : i32 to vector<288x1xi32>
    %8 = arith.cmpi ne, %6, %7 : vector<288x1xi32>
    %c0_i32_3 = arith.constant 0 : i32
    %9 = vector.broadcast %c0_i32_3 : i32 to vector<288x1xi32>
    %10 = arith.cmpi slt, %6, %9 : vector<288x1xi32>
    %c0_i32_4 = arith.constant 0 : i32
    %11 = arith.cmpi slt, %4, %c0_i32_4 : i32
    %12 = vector.broadcast %11 : i1 to vector<288x1xi1>
    %13 = vector.broadcast %12 : vector<288x1xi1> to vector<288x1xi1>
    %14 = arith.xori %10, %13 : vector<288x1xi1>
    %15 = arith.andi %14, %8 : vector<288x1xi1>
    %16 = vector.broadcast %4 : i32 to vector<288x1xi32>
    %17 = arith.addi %6, %16 : vector<288x1xi32>
    %18 = arith.select %15, %17, %6 : vector<288x1xi1>, vector<288x1xi32>
    %c1_i32_5 = arith.constant 1 : i32
    %19 = vector.broadcast %c1_i32_5 : i32 to vector<288x1xi32>
    %20 = arith.cmpi sge, %18, %19 : vector<288x1xi32>
    %c16_i32 = arith.constant 16 : i32
    %21 = vector.broadcast %c16_i32 : i32 to vector<288x1xi32>
    %22 = arith.cmpi sle, %18, %21 : vector<288x1xi32>
    %23 = arith.andi %20, %22 : vector<288x1xi1>
    %24 = arith.extui %23 : vector<288x1xi1> to vector<288x1xi32>
    %25 = arith.sitofp %24 : vector<288x1xi32> to vector<288x1xf32>
    %26 = vector.extract_strided_slice %1 {offsets = [0, 0], sizes = [288, 64], strides = [1, 1]} : vector<326x64xf32> to vector<288x64xf32>
    %c0_6 = arith.constant 0 : index
    %c0_7 = arith.constant 0 : index
    %c0_8 = arith.constant 0 : index
    %27 = vector.load %arg2[%c0_6, %c0_7, %c0_8] : memref<9x64x48xf32, #tpu.memory_space<vmem>>, vector<1x64x48xf32>
    %28 = vector.shape_cast %27 : vector<1x64x48xf32> to vector<64x48xf32>
    %cst = arith.constant dense<0.000000e+00> : vector<288x48xf32>
    %29 = tpu.matmul %26, %28, %cst {dimension_numbers = #tpu.dot_dimension_numbers<[1], [0], [0], [1], [0, 0, 1, 1], [], []>} : vector<288x64xf32>, vector<64x48xf32>, vector<288x48xf32> -> vector<288x48xf32>
    %30 = vector.extract_strided_slice %1 {offsets = [1, 0], sizes = [288, 64], strides = [1, 1]} : vector<326x64xf32> to vector<288x64xf32>
    %c1 = arith.constant 1 : index
    %c0_9 = arith.constant 0 : index
    %c0_10 = arith.constant 0 : index
    %31 = vector.load %arg2[%c1, %c0_9, %c0_10] : memref<9x64x48xf32, #tpu.memory_space<vmem>>, vector<1x64x48xf32>
    %32 = vector.shape_cast %31 : vector<1x64x48xf32> to vector<64x48xf32>
    %cst_11 = arith.constant dense<0.000000e+00> : vector<288x48xf32>
    %33 = tpu.matmul %30, %32, %cst_11 {dimension_numbers = #tpu.dot_dimension_numbers<[1], [0], [0], [1], [0, 0, 1, 1], [], []>} : vector<288x64xf32>, vector<64x48xf32>, vector<288x48xf32> -> vector<288x48xf32>
    %34 = arith.addf %29, %33 : vector<288x48xf32>
    %35 = vector.extract_strided_slice %1 {offsets = [2, 0], sizes = [288, 64], strides = [1, 1]} : vector<326x64xf32> to vector<288x64xf32>
    %c2 = arith.constant 2 : index
    %c0_12 = arith.constant 0 : index
    %c0_13 = arith.constant 0 : index
    %36 = vector.load %arg2[%c2, %c0_12, %c0_13] : memref<9x64x48xf32, #tpu.memory_space<vmem>>, vector<1x64x48xf32>
    %37 = vector.shape_cast %36 : vector<1x64x48xf32> to vector<64x48xf32>
    %cst_14 = arith.constant dense<0.000000e+00> : vector<288x48xf32>
    %38 = tpu.matmul %35, %37, %cst_14 {dimension_numbers = #tpu.dot_dimension_numbers<[1], [0], [0], [1], [0, 0, 1, 1], [], []>} : vector<288x64xf32>, vector<64x48xf32>, vector<288x48xf32> -> vector<288x48xf32>
    %39 = arith.addf %34, %38 : vector<288x48xf32>
    %40 = vector.extract_strided_slice %1 {offsets = [18, 0], sizes = [288, 64], strides = [1, 1]} : vector<326x64xf32> to vector<288x64xf32>
    %c3 = arith.constant 3 : index
    %c0_15 = arith.constant 0 : index
    %c0_16 = arith.constant 0 : index
    %41 = vector.load %arg2[%c3, %c0_15, %c0_16] : memref<9x64x48xf32, #tpu.memory_space<vmem>>, vector<1x64x48xf32>
    %42 = vector.shape_cast %41 : vector<1x64x48xf32> to vector<64x48xf32>
    %cst_17 = arith.constant dense<0.000000e+00> : vector<288x48xf32>
    %43 = tpu.matmul %40, %42, %cst_17 {dimension_numbers = #tpu.dot_dimension_numbers<[1], [0], [0], [1], [0, 0, 1, 1], [], []>} : vector<288x64xf32>, vector<64x48xf32>, vector<288x48xf32> -> vector<288x48xf32>
    %44 = arith.addf %39, %43 : vector<288x48xf32>
    %45 = vector.extract_strided_slice %1 {offsets = [19, 0], sizes = [288, 64], strides = [1, 1]} : vector<326x64xf32> to vector<288x64xf32>
    %c4 = arith.constant 4 : index
    %c0_18 = arith.constant 0 : index
    %c0_19 = arith.constant 0 : index
    %46 = vector.load %arg2[%c4, %c0_18, %c0_19] : memref<9x64x48xf32, #tpu.memory_space<vmem>>, vector<1x64x48xf32>
    %47 = vector.shape_cast %46 : vector<1x64x48xf32> to vector<64x48xf32>
    %cst_20 = arith.constant dense<0.000000e+00> : vector<288x48xf32>
    %48 = tpu.matmul %45, %47, %cst_20 {dimension_numbers = #tpu.dot_dimension_numbers<[1], [0], [0], [1], [0, 0, 1, 1], [], []>} : vector<288x64xf32>, vector<64x48xf32>, vector<288x48xf32> -> vector<288x48xf32>
    %49 = arith.addf %44, %48 : vector<288x48xf32>
    %50 = vector.extract_strided_slice %1 {offsets = [20, 0], sizes = [288, 64], strides = [1, 1]} : vector<326x64xf32> to vector<288x64xf32>
    %c5 = arith.constant 5 : index
    %c0_21 = arith.constant 0 : index
    %c0_22 = arith.constant 0 : index
    %51 = vector.load %arg2[%c5, %c0_21, %c0_22] : memref<9x64x48xf32, #tpu.memory_space<vmem>>, vector<1x64x48xf32>
    %52 = vector.shape_cast %51 : vector<1x64x48xf32> to vector<64x48xf32>
    %cst_23 = arith.constant dense<0.000000e+00> : vector<288x48xf32>
    %53 = tpu.matmul %50, %52, %cst_23 {dimension_numbers = #tpu.dot_dimension_numbers<[1], [0], [0], [1], [0, 0, 1, 1], [], []>} : vector<288x64xf32>, vector<64x48xf32>, vector<288x48xf32> -> vector<288x48xf32>
    %54 = arith.addf %49, %53 : vector<288x48xf32>
    %55 = vector.extract_strided_slice %1 {offsets = [36, 0], sizes = [288, 64], strides = [1, 1]} : vector<326x64xf32> to vector<288x64xf32>
    %c6 = arith.constant 6 : index
    %c0_24 = arith.constant 0 : index
    %c0_25 = arith.constant 0 : index
    %56 = vector.load %arg2[%c6, %c0_24, %c0_25] : memref<9x64x48xf32, #tpu.memory_space<vmem>>, vector<1x64x48xf32>
    %57 = vector.shape_cast %56 : vector<1x64x48xf32> to vector<64x48xf32>
    %cst_26 = arith.constant dense<0.000000e+00> : vector<288x48xf32>
    %58 = tpu.matmul %55, %57, %cst_26 {dimension_numbers = #tpu.dot_dimension_numbers<[1], [0], [0], [1], [0, 0, 1, 1], [], []>} : vector<288x64xf32>, vector<64x48xf32>, vector<288x48xf32> -> vector<288x48xf32>
    %59 = arith.addf %54, %58 : vector<288x48xf32>
    %60 = vector.extract_strided_slice %1 {offsets = [37, 0], sizes = [288, 64], strides = [1, 1]} : vector<326x64xf32> to vector<288x64xf32>
    %c7 = arith.constant 7 : index
    %c0_27 = arith.constant 0 : index
    %c0_28 = arith.constant 0 : index
    %61 = vector.load %arg2[%c7, %c0_27, %c0_28] : memref<9x64x48xf32, #tpu.memory_space<vmem>>, vector<1x64x48xf32>
    %62 = vector.shape_cast %61 : vector<1x64x48xf32> to vector<64x48xf32>
    %cst_29 = arith.constant dense<0.000000e+00> : vector<288x48xf32>
    %63 = tpu.matmul %60, %62, %cst_29 {dimension_numbers = #tpu.dot_dimension_numbers<[1], [0], [0], [1], [0, 0, 1, 1], [], []>} : vector<288x64xf32>, vector<64x48xf32>, vector<288x48xf32> -> vector<288x48xf32>
    %64 = arith.addf %59, %63 : vector<288x48xf32>
    %65 = vector.extract_strided_slice %1 {offsets = [38, 0], sizes = [288, 64], strides = [1, 1]} : vector<326x64xf32> to vector<288x64xf32>
    %c8 = arith.constant 8 : index
    %c0_30 = arith.constant 0 : index
    %c0_31 = arith.constant 0 : index
    %66 = vector.load %arg2[%c8, %c0_30, %c0_31] : memref<9x64x48xf32, #tpu.memory_space<vmem>>, vector<1x64x48xf32>
    %67 = vector.shape_cast %66 : vector<1x64x48xf32> to vector<64x48xf32>
    %cst_32 = arith.constant dense<0.000000e+00> : vector<288x48xf32>
    %68 = tpu.matmul %65, %67, %cst_32 {dimension_numbers = #tpu.dot_dimension_numbers<[1], [0], [0], [1], [0, 0, 1, 1], [], []>} : vector<288x64xf32>, vector<64x48xf32>, vector<288x48xf32> -> vector<288x48xf32>
    %69 = arith.addf %64, %68 : vector<288x48xf32>
    %c0_33 = arith.constant 0 : index
    %c0_34 = arith.constant 0 : index
    %70 = vector.load %arg3[%c0_33, %c0_34] : memref<1x48xf32, #tpu.memory_space<vmem>>, vector<1x48xf32>
    %71 = vector.broadcast %70 : vector<1x48xf32> to vector<288x48xf32>
    %72 = arith.addf %69, %71 : vector<288x48xf32>
    %73 = vector.extract_strided_slice %72 {offsets = [0, 0], sizes = [288, 32], strides = [1, 1]} : vector<288x48xf32> to vector<288x32xf32>
    %74 = vector.extract_strided_slice %72 {offsets = [0, 32], sizes = [288, 16], strides = [1, 1]} : vector<288x48xf32> to vector<288x16xf32>
    %cst_35 = arith.constant 0.000000e+00 : f32
    %75 = vector.broadcast %cst_35 : f32 to vector<288x16xf32>
    %76 = arith.cmpf ogt, %74, %75 : vector<288x16xf32>
    %cst_36 = arith.constant 1.000000e-01 : f32
    %77 = vector.broadcast %cst_36 : f32 to vector<288x16xf32>
    %78 = arith.mulf %77, %74 : vector<288x16xf32>
    %79 = arith.select %76, %74, %78 : vector<288x16xi1>, vector<288x16xf32>
    %80 = vector.broadcast %25 : vector<288x1xf32> to vector<288x16xf32>
    %81 = arith.mulf %79, %80 : vector<288x16xf32>
    %cst_37 = arith.constant 0.000000e+00 : f32
    %82 = vector.broadcast %cst_37 : f32 to vector<19x16xf32>
    %c0_38 = arith.constant 0 : index
    %c0_39 = arith.constant 0 : index
    %83 = vector.load %arg9[%c0_38, %c0_39] : memref<326x16xf32, #tpu.memory_space<vmem>>, vector<19x16xf32>
    tpu.vector_store %arg9[%c0_38, %c0_39], %82 {strides = array<i32>} : memref<326x16xf32, #tpu.memory_space<vmem>>, vector<19x16xf32>,
    %c19 = arith.constant 19 : index
    %c0_40 = arith.constant 0 : index
    %84 = vector.load %arg9[%c19, %c0_40] : memref<326x16xf32, #tpu.memory_space<vmem>>, vector<288x16xf32>
    tpu.vector_store %arg9[%c19, %c0_40], %81 {strides = array<i32>} : memref<326x16xf32, #tpu.memory_space<vmem>>, vector<288x16xf32>,
    %cst_41 = arith.constant 0.000000e+00 : f32
    %85 = vector.broadcast %cst_41 : f32 to vector<19x16xf32>
    %c307 = arith.constant 307 : index
    %c0_42 = arith.constant 0 : index
    %86 = vector.load %arg9[%c307, %c0_42] : memref<326x16xf32, #tpu.memory_space<vmem>>, vector<19x16xf32>
    tpu.vector_store %arg9[%c307, %c0_42], %85 {strides = array<i32>} : memref<326x16xf32, #tpu.memory_space<vmem>>, vector<19x16xf32>,
    %c0_43 = arith.constant 0 : index
    %c0_44 = arith.constant 0 : index
    %87 = vector.load %arg9[%c0_43, %c0_44] : memref<326x16xf32, #tpu.memory_space<vmem>>, vector<326x16xf32>
    %88 = vector.extract_strided_slice %87 {offsets = [0, 0], sizes = [288, 16], strides = [1, 1]} : vector<326x16xf32> to vector<288x16xf32>
    %c0_45 = arith.constant 0 : index
    %c0_46 = arith.constant 0 : index
    %c0_47 = arith.constant 0 : index
    %89 = vector.load %arg4[%c0_45, %c0_46, %c0_47] : memref<9x16x32xf32, #tpu.memory_space<vmem>>, vector<1x16x32xf32>
    %90 = vector.shape_cast %89 : vector<1x16x32xf32> to vector<16x32xf32>
    %cst_48 = arith.constant dense<0.000000e+00> : vector<288x32xf32>
    %91 = tpu.matmul %88, %90, %cst_48 {dimension_numbers = #tpu.dot_dimension_numbers<[1], [0], [0], [1], [0, 0, 1, 1], [], []>} : vector<288x16xf32>, vector<16x32xf32>, vector<288x32xf32> -> vector<288x32xf32>
    %92 = vector.extract_strided_slice %87 {offsets = [1, 0], sizes = [288, 16], strides = [1, 1]} : vector<326x16xf32> to vector<288x16xf32>
    %c1_49 = arith.constant 1 : index
    %c0_50 = arith.constant 0 : index
    %c0_51 = arith.constant 0 : index
    %93 = vector.load %arg4[%c1_49, %c0_50, %c0_51] : memref<9x16x32xf32, #tpu.memory_space<vmem>>, vector<1x16x32xf32>
    %94 = vector.shape_cast %93 : vector<1x16x32xf32> to vector<16x32xf32>
    %cst_52 = arith.constant dense<0.000000e+00> : vector<288x32xf32>
    %95 = tpu.matmul %92, %94, %cst_52 {dimension_numbers = #tpu.dot_dimension_numbers<[1], [0], [0], [1], [0, 0, 1, 1], [], []>} : vector<288x16xf32>, vector<16x32xf32>, vector<288x32xf32> -> vector<288x32xf32>
    %96 = arith.addf %91, %95 : vector<288x32xf32>
    %97 = vector.extract_strided_slice %87 {offsets = [2, 0], sizes = [288, 16], strides = [1, 1]} : vector<326x16xf32> to vector<288x16xf32>
    %c2_53 = arith.constant 2 : index
    %c0_54 = arith.constant 0 : index
    %c0_55 = arith.constant 0 : index
    %98 = vector.load %arg4[%c2_53, %c0_54, %c0_55] : memref<9x16x32xf32, #tpu.memory_space<vmem>>, vector<1x16x32xf32>
    %99 = vector.shape_cast %98 : vector<1x16x32xf32> to vector<16x32xf32>
    %cst_56 = arith.constant dense<0.000000e+00> : vector<288x32xf32>
    %100 = tpu.matmul %97, %99, %cst_56 {dimension_numbers = #tpu.dot_dimension_numbers<[1], [0], [0], [1], [0, 0, 1, 1], [], []>} : vector<288x16xf32>, vector<16x32xf32>, vector<288x32xf32> -> vector<288x32xf32>
    %101 = arith.addf %96, %100 : vector<288x32xf32>
    %102 = vector.extract_strided_slice %87 {offsets = [18, 0], sizes = [288, 16], strides = [1, 1]} : vector<326x16xf32> to vector<288x16xf32>
    %c3_57 = arith.constant 3 : index
    %c0_58 = arith.constant 0 : index
    %c0_59 = arith.constant 0 : index
    %103 = vector.load %arg4[%c3_57, %c0_58, %c0_59] : memref<9x16x32xf32, #tpu.memory_space<vmem>>, vector<1x16x32xf32>
    %104 = vector.shape_cast %103 : vector<1x16x32xf32> to vector<16x32xf32>
    %cst_60 = arith.constant dense<0.000000e+00> : vector<288x32xf32>
    %105 = tpu.matmul %102, %104, %cst_60 {dimension_numbers = #tpu.dot_dimension_numbers<[1], [0], [0], [1], [0, 0, 1, 1], [], []>} : vector<288x16xf32>, vector<16x32xf32>, vector<288x32xf32> -> vector<288x32xf32>
    %106 = arith.addf %101, %105 : vector<288x32xf32>
    %107 = vector.extract_strided_slice %87 {offsets = [19, 0], sizes = [288, 16], strides = [1, 1]} : vector<326x16xf32> to vector<288x16xf32>
    %c4_61 = arith.constant 4 : index
    %c0_62 = arith.constant 0 : index
    %c0_63 = arith.constant 0 : index
    %108 = vector.load %arg4[%c4_61, %c0_62, %c0_63] : memref<9x16x32xf32, #tpu.memory_space<vmem>>, vector<1x16x32xf32>
    %109 = vector.shape_cast %108 : vector<1x16x32xf32> to vector<16x32xf32>
    %cst_64 = arith.constant dense<0.000000e+00> : vector<288x32xf32>
    %110 = tpu.matmul %107, %109, %cst_64 {dimension_numbers = #tpu.dot_dimension_numbers<[1], [0], [0], [1], [0, 0, 1, 1], [], []>} : vector<288x16xf32>, vector<16x32xf32>, vector<288x32xf32> -> vector<288x32xf32>
    %111 = arith.addf %106, %110 : vector<288x32xf32>
    %112 = vector.extract_strided_slice %87 {offsets = [20, 0], sizes = [288, 16], strides = [1, 1]} : vector<326x16xf32> to vector<288x16xf32>
    %c5_65 = arith.constant 5 : index
    %c0_66 = arith.constant 0 : index
    %c0_67 = arith.constant 0 : index
    %113 = vector.load %arg4[%c5_65, %c0_66, %c0_67] : memref<9x16x32xf32, #tpu.memory_space<vmem>>, vector<1x16x32xf32>
    %114 = vector.shape_cast %113 : vector<1x16x32xf32> to vector<16x32xf32>
    %cst_68 = arith.constant dense<0.000000e+00> : vector<288x32xf32>
    %115 = tpu.matmul %112, %114, %cst_68 {dimension_numbers = #tpu.dot_dimension_numbers<[1], [0], [0], [1], [0, 0, 1, 1], [], []>} : vector<288x16xf32>, vector<16x32xf32>, vector<288x32xf32> -> vector<288x32xf32>
    %116 = arith.addf %111, %115 : vector<288x32xf32>
    %117 = vector.extract_strided_slice %87 {offsets = [36, 0], sizes = [288, 16], strides = [1, 1]} : vector<326x16xf32> to vector<288x16xf32>
    %c6_69 = arith.constant 6 : index
    %c0_70 = arith.constant 0 : index
    %c0_71 = arith.constant 0 : index
    %118 = vector.load %arg4[%c6_69, %c0_70, %c0_71] : memref<9x16x32xf32, #tpu.memory_space<vmem>>, vector<1x16x32xf32>
    %119 = vector.shape_cast %118 : vector<1x16x32xf32> to vector<16x32xf32>
    %cst_72 = arith.constant dense<0.000000e+00> : vector<288x32xf32>
    %120 = tpu.matmul %117, %119, %cst_72 {dimension_numbers = #tpu.dot_dimension_numbers<[1], [0], [0], [1], [0, 0, 1, 1], [], []>} : vector<288x16xf32>, vector<16x32xf32>, vector<288x32xf32> -> vector<288x32xf32>
    %121 = arith.addf %116, %120 : vector<288x32xf32>
    %122 = vector.extract_strided_slice %87 {offsets = [37, 0], sizes = [288, 16], strides = [1, 1]} : vector<326x16xf32> to vector<288x16xf32>
    %c7_73 = arith.constant 7 : index
    %c0_74 = arith.constant 0 : index
    %c0_75 = arith.constant 0 : index
    %123 = vector.load %arg4[%c7_73, %c0_74, %c0_75] : memref<9x16x32xf32, #tpu.memory_space<vmem>>, vector<1x16x32xf32>
    %124 = vector.shape_cast %123 : vector<1x16x32xf32> to vector<16x32xf32>
    %cst_76 = arith.constant dense<0.000000e+00> : vector<288x32xf32>
    %125 = tpu.matmul %122, %124, %cst_76 {dimension_numbers = #tpu.dot_dimension_numbers<[1], [0], [0], [1], [0, 0, 1, 1], [], []>} : vector<288x16xf32>, vector<16x32xf32>, vector<288x32xf32> -> vector<288x32xf32>
    %126 = arith.addf %121, %125 : vector<288x32xf32>
    %127 = vector.extract_strided_slice %87 {offsets = [38, 0], sizes = [288, 16], strides = [1, 1]} : vector<326x16xf32> to vector<288x16xf32>
    %c8_77 = arith.constant 8 : index
    %c0_78 = arith.constant 0 : index
    %c0_79 = arith.constant 0 : index
    %128 = vector.load %arg4[%c8_77, %c0_78, %c0_79] : memref<9x16x32xf32, #tpu.memory_space<vmem>>, vector<1x16x32xf32>
    %129 = vector.shape_cast %128 : vector<1x16x32xf32> to vector<16x32xf32>
    %cst_80 = arith.constant dense<0.000000e+00> : vector<288x32xf32>
    %130 = tpu.matmul %127, %129, %cst_80 {dimension_numbers = #tpu.dot_dimension_numbers<[1], [0], [0], [1], [0, 0, 1, 1], [], []>} : vector<288x16xf32>, vector<16x32xf32>, vector<288x32xf32> -> vector<288x32xf32>
    %131 = arith.addf %126, %130 : vector<288x32xf32>
    %c0_81 = arith.constant 0 : index
    %c0_82 = arith.constant 0 : index
    %132 = vector.load %arg5[%c0_81, %c0_82] : memref<1x32xf32, #tpu.memory_space<vmem>>, vector<1x32xf32>
    %133 = vector.broadcast %132 : vector<1x32xf32> to vector<288x32xf32>
    %134 = arith.addf %131, %133 : vector<288x32xf32>
    %135 = vector.extract_strided_slice %134 {offsets = [0, 0], sizes = [288, 16], strides = [1, 1]} : vector<288x32xf32> to vector<288x16xf32>
    %136 = vector.extract_strided_slice %134 {offsets = [0, 16], sizes = [288, 16], strides = [1, 1]} : vector<288x32xf32> to vector<288x16xf32>
    %cst_83 = arith.constant 0.000000e+00 : f32
    %137 = vector.broadcast %cst_83 : f32 to vector<288x16xf32>
    %138 = arith.cmpf ogt, %136, %137 : vector<288x16xf32>
    %cst_84 = arith.constant 1.000000e-01 : f32
    %139 = vector.broadcast %cst_84 : f32 to vector<288x16xf32>
    %140 = arith.mulf %139, %136 : vector<288x16xf32>
    %141 = arith.select %138, %136, %140 : vector<288x16xi1>, vector<288x16xf32>
    %142 = vector.broadcast %25 : vector<288x1xf32> to vector<288x16xf32>
    %143 = arith.mulf %141, %142 : vector<288x16xf32>
    %cst_85 = arith.constant 0.000000e+00 : f32
    %144 = vector.broadcast %cst_85 : f32 to vector<19x16xf32>
    %c0_86 = arith.constant 0 : index
    %c0_87 = arith.constant 0 : index
    %145 = vector.load %arg10[%c0_86, %c0_87] : memref<326x16xf32, #tpu.memory_space<vmem>>, vector<19x16xf32>
    tpu.vector_store %arg10[%c0_86, %c0_87], %144 {strides = array<i32>} : memref<326x16xf32, #tpu.memory_space<vmem>>, vector<19x16xf32>,
    %c19_88 = arith.constant 19 : index
    %c0_89 = arith.constant 0 : index
    %146 = vector.load %arg10[%c19_88, %c0_89] : memref<326x16xf32, #tpu.memory_space<vmem>>, vector<288x16xf32>
    tpu.vector_store %arg10[%c19_88, %c0_89], %143 {strides = array<i32>} : memref<326x16xf32, #tpu.memory_space<vmem>>, vector<288x16xf32>,
    %cst_90 = arith.constant 0.000000e+00 : f32
    %147 = vector.broadcast %cst_90 : f32 to vector<19x16xf32>
    %c307_91 = arith.constant 307 : index
    %c0_92 = arith.constant 0 : index
    %148 = vector.load %arg10[%c307_91, %c0_92] : memref<326x16xf32, #tpu.memory_space<vmem>>, vector<19x16xf32>
    tpu.vector_store %arg10[%c307_91, %c0_92], %147 {strides = array<i32>} : memref<326x16xf32, #tpu.memory_space<vmem>>, vector<19x16xf32>,
    %c0_93 = arith.constant 0 : index
    %c0_94 = arith.constant 0 : index
    %149 = vector.load %arg10[%c0_93, %c0_94] : memref<326x16xf32, #tpu.memory_space<vmem>>, vector<326x16xf32>
    %150 = vector.extract_strided_slice %149 {offsets = [0, 0], sizes = [288, 16], strides = [1, 1]} : vector<326x16xf32> to vector<288x16xf32>
    %c0_95 = arith.constant 0 : index
    %c0_96 = arith.constant 0 : index
    %c0_97 = arith.constant 0 : index
    %151 = vector.load %arg6[%c0_95, %c0_96, %c0_97] : memref<9x16x16xf32, #tpu.memory_space<vmem>>, vector<1x16x16xf32>
    %152 = vector.shape_cast %151 : vector<1x16x16xf32> to vector<16x16xf32>
    %cst_98 = arith.constant dense<0.000000e+00> : vector<288x16xf32>
    %153 = tpu.matmul %150, %152, %cst_98 {dimension_numbers = #tpu.dot_dimension_numbers<[1], [0], [0], [1], [0, 0, 1, 1], [], []>} : vector<288x16xf32>, vector<16x16xf32>, vector<288x16xf32> -> vector<288x16xf32>
    %154 = vector.extract_strided_slice %149 {offsets = [1, 0], sizes = [288, 16], strides = [1, 1]} : vector<326x16xf32> to vector<288x16xf32>
    %c1_99 = arith.constant 1 : index
    %c0_100 = arith.constant 0 : index
    %c0_101 = arith.constant 0 : index
    %155 = vector.load %arg6[%c1_99, %c0_100, %c0_101] : memref<9x16x16xf32, #tpu.memory_space<vmem>>, vector<1x16x16xf32>
    %156 = vector.shape_cast %155 : vector<1x16x16xf32> to vector<16x16xf32>
    %cst_102 = arith.constant dense<0.000000e+00> : vector<288x16xf32>
    %157 = tpu.matmul %154, %156, %cst_102 {dimension_numbers = #tpu.dot_dimension_numbers<[1], [0], [0], [1], [0, 0, 1, 1], [], []>} : vector<288x16xf32>, vector<16x16xf32>, vector<288x16xf32> -> vector<288x16xf32>
    %158 = arith.addf %153, %157 : vector<288x16xf32>
    %159 = vector.extract_strided_slice %149 {offsets = [2, 0], sizes = [288, 16], strides = [1, 1]} : vector<326x16xf32> to vector<288x16xf32>
    %c2_103 = arith.constant 2 : index
    %c0_104 = arith.constant 0 : index
    %c0_105 = arith.constant 0 : index
    %160 = vector.load %arg6[%c2_103, %c0_104, %c0_105] : memref<9x16x16xf32, #tpu.memory_space<vmem>>, vector<1x16x16xf32>
    %161 = vector.shape_cast %160 : vector<1x16x16xf32> to vector<16x16xf32>
    %cst_106 = arith.constant dense<0.000000e+00> : vector<288x16xf32>
    %162 = tpu.matmul %159, %161, %cst_106 {dimension_numbers = #tpu.dot_dimension_numbers<[1], [0], [0], [1], [0, 0, 1, 1], [], []>} : vector<288x16xf32>, vector<16x16xf32>, vector<288x16xf32> -> vector<288x16xf32>
    %163 = arith.addf %158, %162 : vector<288x16xf32>
    %164 = vector.extract_strided_slice %149 {offsets = [18, 0], sizes = [288, 16], strides = [1, 1]} : vector<326x16xf32> to vector<288x16xf32>
    %c3_107 = arith.constant 3 : index
    %c0_108 = arith.constant 0 : index
    %c0_109 = arith.constant 0 : index
    %165 = vector.load %arg6[%c3_107, %c0_108, %c0_109] : memref<9x16x16xf32, #tpu.memory_space<vmem>>, vector<1x16x16xf32>
    %166 = vector.shape_cast %165 : vector<1x16x16xf32> to vector<16x16xf32>
    %cst_110 = arith.constant dense<0.000000e+00> : vector<288x16xf32>
    %167 = tpu.matmul %164, %166, %cst_110 {dimension_numbers = #tpu.dot_dimension_numbers<[1], [0], [0], [1], [0, 0, 1, 1], [], []>} : vector<288x16xf32>, vector<16x16xf32>, vector<288x16xf32> -> vector<288x16xf32>
    %168 = arith.addf %163, %167 : vector<288x16xf32>
    %169 = vector.extract_strided_slice %149 {offsets = [19, 0], sizes = [288, 16], strides = [1, 1]} : vector<326x16xf32> to vector<288x16xf32>
    %c4_111 = arith.constant 4 : index
    %c0_112 = arith.constant 0 : index
    %c0_113 = arith.constant 0 : index
    %170 = vector.load %arg6[%c4_111, %c0_112, %c0_113] : memref<9x16x16xf32, #tpu.memory_space<vmem>>, vector<1x16x16xf32>
    %171 = vector.shape_cast %170 : vector<1x16x16xf32> to vector<16x16xf32>
    %cst_114 = arith.constant dense<0.000000e+00> : vector<288x16xf32>
    %172 = tpu.matmul %169, %171, %cst_114 {dimension_numbers = #tpu.dot_dimension_numbers<[1], [0], [0], [1], [0, 0, 1, 1], [], []>} : vector<288x16xf32>, vector<16x16xf32>, vector<288x16xf32> -> vector<288x16xf32>
    %173 = arith.addf %168, %172 : vector<288x16xf32>
    %174 = vector.extract_strided_slice %149 {offsets = [20, 0], sizes = [288, 16], strides = [1, 1]} : vector<326x16xf32> to vector<288x16xf32>
    %c5_115 = arith.constant 5 : index
    %c0_116 = arith.constant 0 : index
    %c0_117 = arith.constant 0 : index
    %175 = vector.load %arg6[%c5_115, %c0_116, %c0_117] : memref<9x16x16xf32, #tpu.memory_space<vmem>>, vector<1x16x16xf32>
    %176 = vector.shape_cast %175 : vector<1x16x16xf32> to vector<16x16xf32>
    %cst_118 = arith.constant dense<0.000000e+00> : vector<288x16xf32>
    %177 = tpu.matmul %174, %176, %cst_118 {dimension_numbers = #tpu.dot_dimension_numbers<[1], [0], [0], [1], [0, 0, 1, 1], [], []>} : vector<288x16xf32>, vector<16x16xf32>, vector<288x16xf32> -> vector<288x16xf32>
    %178 = arith.addf %173, %177 : vector<288x16xf32>
    %179 = vector.extract_strided_slice %149 {offsets = [36, 0], sizes = [288, 16], strides = [1, 1]} : vector<326x16xf32> to vector<288x16xf32>
    %c6_119 = arith.constant 6 : index
    %c0_120 = arith.constant 0 : index
    %c0_121 = arith.constant 0 : index
    %180 = vector.load %arg6[%c6_119, %c0_120, %c0_121] : memref<9x16x16xf32, #tpu.memory_space<vmem>>, vector<1x16x16xf32>
    %181 = vector.shape_cast %180 : vector<1x16x16xf32> to vector<16x16xf32>
    %cst_122 = arith.constant dense<0.000000e+00> : vector<288x16xf32>
    %182 = tpu.matmul %179, %181, %cst_122 {dimension_numbers = #tpu.dot_dimension_numbers<[1], [0], [0], [1], [0, 0, 1, 1], [], []>} : vector<288x16xf32>, vector<16x16xf32>, vector<288x16xf32> -> vector<288x16xf32>
    %183 = arith.addf %178, %182 : vector<288x16xf32>
    %184 = vector.extract_strided_slice %149 {offsets = [37, 0], sizes = [288, 16], strides = [1, 1]} : vector<326x16xf32> to vector<288x16xf32>
    %c7_123 = arith.constant 7 : index
    %c0_124 = arith.constant 0 : index
    %c0_125 = arith.constant 0 : index
    %185 = vector.load %arg6[%c7_123, %c0_124, %c0_125] : memref<9x16x16xf32, #tpu.memory_space<vmem>>, vector<1x16x16xf32>
    %186 = vector.shape_cast %185 : vector<1x16x16xf32> to vector<16x16xf32>
    %cst_126 = arith.constant dense<0.000000e+00> : vector<288x16xf32>
    %187 = tpu.matmul %184, %186, %cst_126 {dimension_numbers = #tpu.dot_dimension_numbers<[1], [0], [0], [1], [0, 0, 1, 1], [], []>} : vector<288x16xf32>, vector<16x16xf32>, vector<288x16xf32> -> vector<288x16xf32>
    %188 = arith.addf %183, %187 : vector<288x16xf32>
    %189 = vector.extract_strided_slice %149 {offsets = [38, 0], sizes = [288, 16], strides = [1, 1]} : vector<326x16xf32> to vector<288x16xf32>
    %c8_127 = arith.constant 8 : index
    %c0_128 = arith.constant 0 : index
    %c0_129 = arith.constant 0 : index
    %190 = vector.load %arg6[%c8_127, %c0_128, %c0_129] : memref<9x16x16xf32, #tpu.memory_space<vmem>>, vector<1x16x16xf32>
    %191 = vector.shape_cast %190 : vector<1x16x16xf32> to vector<16x16xf32>
    %cst_130 = arith.constant dense<0.000000e+00> : vector<288x16xf32>
    %192 = tpu.matmul %189, %191, %cst_130 {dimension_numbers = #tpu.dot_dimension_numbers<[1], [0], [0], [1], [0, 0, 1, 1], [], []>} : vector<288x16xf32>, vector<16x16xf32>, vector<288x16xf32> -> vector<288x16xf32>
    %193 = arith.addf %188, %192 : vector<288x16xf32>
    %c0_131 = arith.constant 0 : index
    %c0_132 = arith.constant 0 : index
    %194 = vector.load %arg7[%c0_131, %c0_132] : memref<1x16xf32, #tpu.memory_space<vmem>>, vector<1x16xf32>
    %195 = vector.broadcast %194 : vector<1x16xf32> to vector<288x16xf32>
    %196 = arith.addf %193, %195 : vector<288x16xf32>
    %197 = tpu.concatenate %73, %135, %196 in 1 : vector<288x32xf32>, vector<288x16xf32>, vector<288x16xf32> -> vector<288x64xf32>
    %cst_133 = arith.constant 0.000000e+00 : f32
    %198 = vector.broadcast %cst_133 : f32 to vector<288x64xf32>
    %199 = arith.maximumf %197, %198 : vector<288x64xf32>
    %c0_134 = arith.constant 0 : index
    %c0_135 = arith.constant 0 : index
    %c0_136 = arith.constant 0 : index
    %200 = vector.load %arg8[%c0_134, %c0_135, %c0_136] : memref<1x288x64xf32, #tpu.memory_space<vmem>>, vector<1x288x64xf32>
    %201 = vector.shape_cast %200 : vector<1x288x64xf32> to vector<288x64xf32>
    %202 = vector.shape_cast %199 : vector<288x64xf32> to vector<1x288x64xf32>
    tpu.vector_store %arg8[%c0_134, %c0_135, %c0_136], %202 {strides = array<i32>} : memref<1x288x64xf32, #tpu.memory_space<vmem>>, vector<1x288x64xf32>,
    return
  }
  func.func @transform_0(%arg0: i32) -> (i32, i32, i32) {
    %c0_i32 = arith.constant 0 : i32
    %c0_i32_0 = arith.constant 0 : i32
    %c0_i32_1 = arith.constant 0 : i32
    return %arg0, %c0_i32, %c0_i32_0 : i32, i32, i32
  }
  func.func @transform_1(%arg0: i32) -> (i32, i32, i32) {
    %c0_i32 = arith.constant 0 : i32
    %c0_i32_0 = arith.constant 0 : i32
    %c0_i32_1 = arith.constant 0 : i32
    %c0_i32_2 = arith.constant 0 : i32
    return %c0_i32, %c0_i32_0, %c0_i32_1 : i32, i32, i32
  }
  func.func @transform_2(%arg0: i32) -> (i32, i32) {
    %c0_i32 = arith.constant 0 : i32
    %c0_i32_0 = arith.constant 0 : i32
    %c0_i32_1 = arith.constant 0 : i32
    return %c0_i32, %c0_i32_0 : i32, i32
  }
  func.func @transform_3(%arg0: i32) -> (i32, i32, i32) {
    %c0_i32 = arith.constant 0 : i32
    %c0_i32_0 = arith.constant 0 : i32
    %c0_i32_1 = arith.constant 0 : i32
    %c0_i32_2 = arith.constant 0 : i32
    return %c0_i32, %c0_i32_0, %c0_i32_1 : i32, i32, i32
  }
  func.func @transform_4(%arg0: i32) -> (i32, i32) {
    %c0_i32 = arith.constant 0 : i32
    %c0_i32_0 = arith.constant 0 : i32
    %c0_i32_1 = arith.constant 0 : i32
    return %c0_i32, %c0_i32_0 : i32, i32
  }
  func.func @transform_5(%arg0: i32) -> (i32, i32, i32) {
    %c0_i32 = arith.constant 0 : i32
    %c0_i32_0 = arith.constant 0 : i32
    %c0_i32_1 = arith.constant 0 : i32
    %c0_i32_2 = arith.constant 0 : i32
    return %c0_i32, %c0_i32_0, %c0_i32_1 : i32, i32, i32
  }
  func.func @transform_6(%arg0: i32) -> (i32, i32) {
    %c0_i32 = arith.constant 0 : i32
    %c0_i32_0 = arith.constant 0 : i32
    %c0_i32_1 = arith.constant 0 : i32
    return %c0_i32, %c0_i32_0 : i32, i32
  }
  func.func @transform_7(%arg0: i32) -> (i32, i32, i32) {
    %c0_i32 = arith.constant 0 : i32
    %c0_i32_0 = arith.constant 0 : i32
    %c0_i32_1 = arith.constant 0 : i32
    return %arg0, %c0_i32, %c0_i32_0 : i32, i32, i32
  }
}

</mosaic_0001>

<bundles_post_ra>
// kernel: ssh_forward.1
= control target key start
LH: loop header
LB: loop body
LE: loop exit
PB: predicated region body
PF: predicated region fallthrough
CT: control target
= control target key end

     0   :  { %s18183_s24 = smov 0   ;;  %s24457_s0 = inlined_call_operand.vmem [shape: f32[2,326,64], index: 0, kind: input, shape index: {}]   ;;  %s24458_s1 = inlined_call_operand.vmem [shape: f32[9,64,48], index: 1, kind: input, shape index: {}]   ;;  %s24459_s2 = inlined_call_operand.vmem [shape: f32[1,48], index: 2, kind: input, shape index: {}]   ;;  %s24460_s3 = inlined_call_operand.vmem [shape: f32[9,16,32], index: 3, kind: input, shape index: {}]   ;;  %s24461_s4 = inlined_call_operand.vmem [shape: f32[1,32], index: 4, kind: input, shape index: {}]   ;;  %s24462_s5 = inlined_call_operand.vmem [shape: f32[9,16,16], index: 5, kind: input, shape index: {}]   ;;  %s24463_s6 = inlined_call_operand.vmem [shape: f32[1,16], index: 6, kind: input, shape index: {}]   ;;  %s24464_s7 = inlined_call_operand.vmem [shape: f32[2,288,64], index: 7, kind: output, shape index: {}]  }
   0x1 LB: > { %s12982_s25 = sadd.s32 4294967295, %s18136_s24   ;;  %p12986_p0 = scmp.ge.s32.totalorder %s18136_s24, 1  ;;  %s18136_s24 = sphi %s18183_s24, %s17_s24  }
   0x2   : > { %p237_p1 = scmp.lt.s32.totalorder %s18136_s24, 3 }
   0x4   : > { %p238_p2 = pnand %p12986_p0, %p237_p1 }
   0x6   : > { %241 = sbr.rel (%p238_p2) target bundleno = 2742 (0xab6), region = 48 }
   0xd   : > { %v13025_v0 = vld [vmem:[%s24458_s1 + $0x40] sm:$0xff]  ;;  %v13026_v1 = vld [vmem:[%s24458_s1 + $0x48] sm:$0xff]  ;;  %v13027_v2 = vld [vmem:[%s24458_s1 + $0x50] sm:$0xff]  ;;  %p269_p3 = scmp.lt.s32.totalorder %s12982_s25, 1  ;;  %vm24502_vm0 = vcmask 1046528   ;;  %vm24496_vm1 = vcmask 523264  }
   0xe   : > { %v16852_v3 = vpack.c.bf16 %v13026_v1, %v13025_v0  ;;  %v13028_v4 = vld [vmem:[%s24458_s1 + $0x58] sm:$0xff]  ;;  %v13029_v6 = vld [vmem:[%s24458_s1 + $0x60] sm:$0xff]  ;;  %v13030_v7 = vld [vmem:[%s24458_s1 + $0x68] sm:$0xff]  ;;  %vm24498_vm2 = vcmask 1045504   ;;  %vm24501_vm3 = vcmask 1044480   ;;  %vm24500_vm4 = vcmask 1043456  }
   0xf   : > { %v16856_v5 = vpack.c.bf16 %v13028_v4, %v13027_v2  ;;  %s26171_s25 = smov (!%p269_p3, %s12982_s25), 1  ;;  %v16860_v8 = vpack.c.bf16 %v13030_v7, %v13029_v6  ;;  %v13031_v9 = vld [vmem:[%s24458_s1 + $0x70] sm:$0xff]  ;;  %v13032_v10 = vld [vmem:[%s24458_s1 + $0x78] sm:$0xff]  ;;  %v1113_v18 = vld [vmem:[%s24458_s1] sm:$0xff]  ;;  %vm24499_vm5 = vcmask 1042432   ;;  %vm24497_vm6 = vcmask 1041408  }
  0x10   : > { %16853 = vmatprep.subr.bf16.mxu0 %v16852_v3  ;;  %s17934_s15 = smul.u32 328, %s26171_s25  ;;  %v16864_v15 = vpack.c.bf16 %v13032_v10, %v13031_v9  ;;  %v1114_v19 = vld [vmem:[%s24458_s1 + $0x8] sm:$0xff]  ;;  %v1115_v26 = vld [vmem:[%s24458_s1 + $0x10] sm:$0xff]  ;;  %v1116_v27 = vld [vmem:[%s24458_s1 + $0x18] sm:$0xff]  ;;  %s18140_s16 = smov 112  }
  0x11   : > { %16855 = vmatpush3.bf16.msra.mxu0 %v16852_v3  ;;  %v16868_v22 = vpack.c.bf16 %v1114_v19, %v1113_v18  ;;  %v16872_v33 = vpack.c.bf16 %v1116_v27, %v1115_v26  ;;  %v1117_v35 = vld [vmem:[%s24458_s1 + $0x20] sm:$0xff]  ;;  %v1118_v36 = vld [vmem:[%s24458_s1 + $0x28] sm:$0xff]  ;;  %v1119_v44 = vld [vmem:[%s24458_s1 + $0x30] sm:$0xff]  ;;  %s18141_s17 = smov 32   ;;  %s18142_s30 = smov 48  }
  0x12   : > { %16857 = vmatprep.subr.bf16.mxu0 %v16856_v5  ;;  %s18221_s22 = scalar_lea.vmem %s24457_s0, %s17934_s15  ;;  %v16876_v42 = vpack.c.bf16 %v1118_v36, %v1117_v35  ;;  %v1120_v45 = vld [vmem:[%s24458_s1 + $0x38] sm:$0xff]  ;;  %v13105_v53 = vld [vmem:[%s24458_s1 + $0x80] sm:$0xff]  ;;  %v13106_v54 = vld [vmem:[%s24458_s1 + $0x88] sm:$0xff]  ;;  %s18139_s15 = smov 96  }
  0x13   : > { %v18224_v11 = vld [vmem:[%s18221_s22] sm:$0xff]  ;;  %v18227_v12 = vld [vmem:[%s18221_s22 + $0x8] sm:$0xff]  ;;  %v18232_v16 = vld [vmem:[%s18221_s22 + $0x10] sm:$0xff]  ;;  %v16880_v51 = vpack.c.bf16 %v1120_v45, %v1119_v44  ;;  %v18320_v60 = vpack.c.bf16 %v13106_v54, %v13105_v53  ;;  %s17935_s8 = smul.u32 288, %s26171_s25 }
  0x14   : > { %v1168_v13 = vrot.slane %v18224_v11, 1  ;;  %v1169_v14 = vrot.slane %v18227_v12, 1  ;;  %v18242_v20 = vld [vmem:[%s18221_s22 + $0x18] sm:$0xff]  ;;  %v1171_v21 = vrot.slane %v18232_v16, 1  ;;  %v18248_v24 = vld [vmem:[%s18221_s22 + $0x20] sm:$0xff]  ;;  %v18251_v25 = vld [vmem:[%s18221_s22 + $0x28] sm:$0xff] }
  0x15   : > { %16859 = vmatpush3.bf16.msra.mxu0 %v16856_v5  ;;  %v1173_v23 = vrot.slane %v18242_v20, 1  ;;  %v1175_v29 = vrot.slane %v18248_v24, 1  ;;  %v1177_v31 = vrot.slane %v18251_v25, 1  ;;  %v18264_v32 = vld [vmem:[%s18221_s22 + $0x30] sm:$0xff]  ;;  %v18267_v34 = vld [vmem:[%s18221_s22 + $0x38] sm:$0xff]  ;;  %v18282_v41 = vld [vmem:[%s18221_s22 + $0x40] sm:$0xff]  ;;  %s24242_s10 = scalar_lea.vmem %s24464_s7, %s17935_s8 }
  0x16   : > { %16861 = vmatprep.subr.bf16.mxu0 %v16860_v8  ;;  %v1170_v17 = vsel %vm24502_vm0, %v1168_v13, %v1169_v14  ;;  %v1172_v28 = vsel %vm24502_vm0, %v1169_v14, %v1171_v21  ;;  %v1179_v38 = vrot.slane %v18264_v32, 1  ;;  %v1181_v40 = vrot.slane %v18267_v34, 1  ;;  %v18285_v43 = vld [vmem:[%s18221_s22 + $0x48] sm:$0xff]  ;;  %v18300_v50 = vld [vmem:[%s18221_s22 + $0x50] sm:$0xff]  ;;  %v18303_v52 = vld [vmem:[%s18221_s22 + $0x58] sm:$0xff] }
  0x17   : > { %15194 = vmatprep.mubr.msk.f32.mxu0 %vm24496_vm1, %v1170_v17  ;;  %v1174_v30 = vsel %vm24502_vm0, %v1171_v21, %v1173_v23  ;;  %v1176_v37 = vsel %vm24502_vm0, %v1173_v23, %v1175_v29  ;;  %v1178_v39 = vsel %vm24502_vm0, %v1175_v29, %v1177_v31  ;;  %v1183_v47 = vrot.slane %v18282_v41, 1  ;;  %v18318_v59 = vld [vmem:[%s18221_s22 + $0x60] sm:$0xff]  ;;  %v18323_v61 = vld [vmem:[%s18221_s22 + $0x68] sm:$0xff]  ;;  %v18332_v2 = vld [vmem:[%s18221_s22 + $0x70] sm:$0xff] }
  0x18   : > { %v1180_v46 = vsel %vm24502_vm0, %v1177_v31, %v1179_v38  ;;  %v1182_v48 = vsel %vm24502_vm0, %v1179_v38, %v1181_v40  ;;  %v1185_v49 = vrot.slane %v18285_v43, 1  ;;  %v1187_v56 = vrot.slane %v18300_v50, 1  ;;  %v18336_v3 = vld [vmem:[%s18221_s22 + $0x78] sm:$0xff]  ;;  %v18348_v9 = vld [vmem:[%s18221_s22 + $0x88] sm:$0xff]  ;;  %v18357_v17 = vld [vmem:[%s18221_s22 + $0x90] sm:$0xff] }
  0x19   : > { %16863 = vmatpush3.bf16.msra.mxu0 %v16860_v8  ;;  %v1184_v55 = vsel %vm24502_vm0, %v1181_v40, %v1183_v47  ;;  %v1189_v58 = vrot.slane %v18303_v52, 1  ;;  %v1191_v63 = vrot.slane %v18318_v59, 1  ;;  %v1193_v1 = vrot.slane %v18323_v61, 1  ;;  %v18345_v8 = vld [vmem:[%s18221_s22 + $0x80] sm:$0xff]  ;;  %v18360_v18 = vld [vmem:[%s18221_s22 + $0x98] sm:$0xff]  ;;  %v18372_v27 = vld [vmem:[%s18221_s22 + $0xa8] sm:$0xff] }
  0x1a   : > { %16865 = vmatprep.subr.bf16.mxu0 %v16864_v15  ;;  %v1186_v57 = vsel %vm24502_vm0, %v1183_v47, %v1185_v49  ;;  %v1188_v62 = vsel %vm24502_vm0, %v1185_v49, %v1187_v56  ;;  %v1195_v5 = vrot.slane %v18332_v2, 1  ;;  %v1197_v7 = vrot.slane %v18336_v3, 1  ;;  %v18369_v26 = vld [vmem:[%s18221_s22 + $0xa0] sm:$0xff]  ;;  %v18384_v35 = vld [vmem:[%s18221_s22 + $0xb8] sm:$0xff] }
  0x1b   : > { %v1190_v0 = vsel %vm24502_vm0, %v1187_v56, %v1189_v58  ;;  %v1192_v4 = vsel %vm24502_vm0, %v1189_v58, %v1191_v63  ;;  %v1194_v6 = vsel %vm24502_vm0, %v1191_v63, %v1193_v1  ;;  %v1199_v13 = vrot.slane %v18345_v8, 1  ;;  %24647 = vst [vmem:[#allocation4_spill] sm:$0xff] %v18384_v35  ;;  %v18393_v40 = vld [vmem:[%s18221_s22 + $0xc0] sm:$0xff]  ;;  %v18408_v49 = vld [vmem:[%s18221_s22 + $0xd8] sm:$0xff] }
  0x1c   : > { %v1196_v10 = vsel %vm24502_vm0, %v1193_v1, %v1195_v5  ;;  %v1198_v14 = vsel %vm24502_vm0, %v1195_v5, %v1197_v7  ;;  %v1203_v21 = vrot.slane %v18357_v17, 1  ;;  %v1205_v23 = vrot.slane %v18360_v18, 1  ;;  %24648 = vst [vmem:[#allocation5_spill] sm:$0xff] %v18393_v40  ;;  %24651 = vst [vmem:[#allocation8_spill] sm:$0xff] %v18408_v49  ;;  %v18417_v56 = vld [vmem:[%s18221_s22 + $0xe0] sm:$0xff]  ;;  %v18429_v1 = vld [vmem:[%s18221_s22 + $0xf0] sm:$0xff] }
  0x1d   : > { %16867 = vmatpush3.bf16.msra.mxu0 %v16864_v15  ;;  %v1201_v15 = vrot.slane %v18348_v9, 1  ;;  %v1200_v19 = vsel %vm24502_vm0, %v1197_v7, %v1199_v13  ;;  %v1207_v29 = vrot.slane %v18369_v26, 1  ;;  %v1209_v31 = vrot.slane %v18372_v27, 1  ;;  %24652 = vst [vmem:[#allocation9_spill] sm:$0xff] %v18417_v56  ;;  %24654 = vst [vmem:[#allocation11_spill] sm:$0xff] %v18429_v1 }
  0x1e   : > { %16869 = vmatprep.subr.bf16.mxu0 %v16868_v22  ;;  %v1215_v45 = vrot.slane %v18393_v40, 1 }
  0x1f   : > { %v1208_v36 = vsel %vm24502_vm0, %v1205_v23, %v1207_v29  ;;  %v1210_v38 = vsel %vm24502_vm0, %v1207_v29, %v1209_v31 }
  0x20   : > { %15195 = vmatmul.mubr.msk.f32.vlgmr.msra.gmra.mrb[0].mxu0 %vm24496_vm1, %v1172_v28  ;;  %v1204_v28 = vsel %vm24502_vm0, %v1201_v15, %v1203_v21 }
  0x21   : > { %16871 = vmatpush3.bf16.msra.mxu0 %v16868_v22  ;;  %15197 = vmatprep.mubr.msk.f32.mxu0 %vm24496_vm1, %v1174_v30  ;;  %v1202_v22 = vsel %vm24502_vm0, %v1199_v13, %v1201_v15  ;;  %v1206_v30 = vsel %vm24502_vm0, %v1203_v21, %v1205_v23  ;;  %v18441_v13 = vld [vmem:[%s18221_s22 + $0x100] sm:$0xff]  ;;  %v18453_v23 = vld [vmem:[%s18221_s22 + $0x110] sm:$0xff] }
  0x22   : > { %16873 = vmatprep.subr.bf16.mxu0 %v16872_v33  ;;  %24656 = vst [vmem:[#allocation13_spill] sm:$0xff] %v18441_v13 }
  0x24   : > { %15198 = vmatmul.mubr.msk.f32.gmra.mrb[2].mxu0 %vm24496_vm1, %v1176_v37 }
  0x25   : > { %15200 = vmatprep.mubr.msk.f32.mxu0 %vm24496_vm1, %v1178_v39  ;;  %16875 = vmatpush3.bf16.msra.mxu0 %v16872_v33  ;;  %v18381_v33 = vld [vmem:[%s18221_s22 + $0xb0] sm:$0xff]  ;;  %v1213_v39 = vrot.slane %v18384_v35, 1 }
  0x26   : > { %16877 = vmatprep.subr.bf16.mxu0 %v16876_v42  ;;  %v1211_v37 = vrot.slane %v18381_v33, 1 }
  0x28   : > { %15201 = vmatmul.mubr.msk.f32.gmra.mrb[4].mxu0 %vm24496_vm1, %v1180_v46  ;;  %v1212_v44 = vsel %vm24502_vm0, %v1209_v31, %v1211_v37  ;;  %v1214_v46 = vsel %vm24502_vm0, %v1211_v37, %v1213_v39  ;;  %v18465_v37 = vld [vmem:[%s18221_s22 + $0x120] sm:$0xff] }
  0x29   : > { %15203 = vmatprep.mubr.msk.f32.mxu0 %vm24496_vm1, %v1182_v48  ;;  %16879 = vmatpush3.bf16.msra.mxu0 %v16876_v42  ;;  %v18396_v42 = vld [vmem:[%s18221_s22 + $0xc8] sm:$0xff]  ;;  %v18405_v48 = vld [vmem:[%s18221_s22 + $0xd0] sm:$0xff] }
  0x2a   : > { %16881 = vmatprep.subr.bf16.mxu0 %v16880_v51  ;;  %24649 = vst [vmem:[#allocation6_spill] sm:$0xff] %v18396_v42  ;;  %v1217_v47 = vrot.slane %v18396_v42, 1  ;;  %24650 = vst [vmem:[#allocation7_spill] sm:$0xff] %v18405_v48  ;;  %v1219_v53 = vrot.slane %v18405_v48, 1 }
  0x2c   : > { %15204 = vmatmul.mubr.msk.f32.gmra.mrb[6].mxu0 %vm24496_vm1, %v1184_v55  ;;  %v1218_v54 = vsel %vm24502_vm0, %v1215_v45, %v1217_v47  ;;  %v1221_v55 = vrot.slane %v18408_v49, 1  ;;  %v1220_v58 = vsel %vm24502_vm0, %v1217_v47, %v1219_v53  ;;  %v13108_v47 = vld [vmem:[%s24458_s1 + $0x98] sm:$0xff] }
  0x2d   : > { %15206 = vmatprep.mubr.msk.f32.mxu0 %vm24496_vm1, %v1186_v57  ;;  %16883 = vmatpush3.bf16.msra.mxu0 %v16880_v51  ;;  %v1216_v51 = vsel %vm24502_vm0, %v1213_v39, %v1215_v45  ;;  %v18420_v57 = vld [vmem:[%s18221_s22 + $0xe8] sm:$0xff]  ;;  %v1239_v39 = vrot.slane %v18465_v37, 1 }
  0x2e   : > { %16885 = vmatprep.subr.bf16.mxu0 %v18320_v60  ;;  %24653 = vst [vmem:[#allocation10_spill] sm:$0xff] %v18420_v57  ;;  %v1222_v63 = vsel %vm24502_vm0, %v1219_v53, %v1221_v55  ;;  %v13109_v53 = vld [vmem:[%s24458_s1 + $0xa0] sm:$0xff] }
  0x30   : > { %15207 = vmatmul.mubr.msk.f32.gmra.mrb[8].mxu0 %vm24496_vm1, %v1188_v62  ;;  %v1223_v62 = vrot.slane %v18417_v56, 1 }
  0x31   : > { %15209 = vmatprep.mubr.msk.f32.mxu0 %vm24496_vm1, %v1190_v0  ;;  %v1225_v0 = vrot.slane %v18420_v57, 1 }
  0x32   : > { %v1224_v5 = vsel %vm24502_vm0, %v1221_v55, %v1223_v62 }
  0x33   : > { %v1226_v7 = vsel %vm24502_vm0, %v1223_v62, %v1225_v0  ;;  %v13112_v62 = vld [vmem:[%s24458_s1 + $0xb8] sm:$0xff] }
  0x34   : > { %15210 = vmatmul.mubr.msk.f32.gmra.mrb[10].mxu0 %vm24496_vm1, %v1192_v4  ;;  %v18432_v4 = vld [vmem:[%s18221_s22 + $0xf8] sm:$0xff] }
  0x35   : > { %15212 = vmatprep.mubr.msk.f32.mxu0 %vm24496_vm1, %v1194_v6  ;;  %24655 = vst [vmem:[#allocation12_spill] sm:$0xff] %v18432_v4  ;;  %v1227_v6 = vrot.slane %v18429_v1, 1 }
  0x37   : > { %v1228_v15 = vsel %vm24502_vm0, %v1225_v0, %v1227_v6  ;;  %v13150_v0 = vld [vmem:[%s24458_s1 + $0xc8] sm:$0xff] }
  0x38   : > { %15213 = vmatmul.mubr.msk.f32.gmra.mrb[12].mxu0 %vm24496_vm1, %v1196_v10  ;;  %v1229_v10 = vrot.slane %v18432_v4, 1 }
  0x39   : > { %15215 = vmatprep.mubr.msk.f32.mxu0 %vm24496_vm1, %v1198_v14  ;;  %v18444_v14 = vld [vmem:[%s18221_s22 + $0x108] sm:$0xff] }
  0x3a   : > { %24657 = vst [vmem:[#allocation14_spill] sm:$0xff] %v18444_v14  ;;  %v1230_v21 = vsel %vm24502_vm0, %v1227_v6, %v1229_v10  ;;  %v1886_v6 = vrot.slane %v18224_v11, 2 }
  0x3c   : > { %15216 = vmatmul.mubr.msk.f32.gmra.mrb[14].mxu0 %vm24496_vm1, %v1200_v19  ;;  %v1231_v19 = vrot.slane %v18441_v13, 1 }
  0x3d   : > { %15218 = vmatprep.mubr.msk.f32.mxu0 %vm24496_vm1, %v1202_v22  ;;  %v1233_v22 = vrot.slane %v18444_v14, 1 }
  0x3e   : > { %v1232_v29 = vsel %vm24502_vm0, %v1229_v10, %v1231_v19  ;;  %v1889_v10 = vrot.slane %v18232_v16, 2 }
  0x3f   : > { %v1234_v31 = vsel %vm24502_vm0, %v1231_v19, %v1233_v22  ;;  %v1891_v19 = vrot.slane %v18242_v20, 2 }
  0x40   : > { %15219 = vmatmul.mubr.msk.f32.gmra.mrb[16].mxu0 %vm24496_vm1, %v1204_v28  ;;  %v18456_v28 = vld [vmem:[%s18221_s22 + $0x118] sm:$0xff] }
  0x41   : > { %15221 = vmatprep.mubr.msk.f32.mxu0 %vm24496_vm1, %v1206_v30  ;;  %24658 = vst [vmem:[#allocation15_spill] sm:$0xff] %v18456_v28  ;;  %v1235_v30 = vrot.slane %v18453_v23, 1 }
  0x44   : > { %15222 = vmatmul.mubr.msk.f32.gmra.mrb[18].mxu0 %vm24496_vm1, %v1208_v36  ;;  %v1237_v36 = vrot.slane %v18456_v28, 1 }
  0x45   : > { %15224 = vmatprep.mubr.msk.f32.mxu0 %vm24496_vm1, %v1210_v38  ;;  %v1236_v38 = vsel %vm24502_vm0, %v1233_v22, %v1235_v30  ;;  %v1893_v22 = vrot.slane %v18248_v24, 2 }
  0x46   : > { %v1240_v45 = vsel %vm24502_vm0, %v1237_v36, %v1239_v39 }
  0x47   : > { %v18601_v39 = vsel %vm24498_vm2, %v1891_v19, %v1893_v22 }
  0x48   : > { %15225 = vmatmul.mubr.msk.f32.gmra.mrb[20].mxu0 %vm24496_vm1, %v1212_v44  ;;  %v1238_v44 = vsel %vm24502_vm0, %v1235_v30, %v1237_v36  ;;  %v1895_v30 = vrot.slane %v18251_v25, 2  ;;  %v13153_v36 = vld [vmem:[%s24458_s1 + $0xe0] sm:$0xff] }
  0x49   : > { %15227 = vmatprep.mubr.msk.f32.mxu0 %vm24496_vm1, %v1214_v46  ;;  %v13107_v46 = vld [vmem:[%s24458_s1 + $0x90] sm:$0xff] }
  0x4c   : > { %15228 = vmatmul.mubr.msk.f32.gmra.mrb[22].mxu0 %vm24496_vm1, %v1216_v51  ;;  %v16888_v51 = vpack.c.bf16 %v13108_v47, %v13107_v46  ;;  %v1899_v46 = vrot.slane %v18267_v34, 2 }
  0x4d   : > { %15230 = vmatprep.mubr.msk.f32.mxu0 %vm24496_vm1, %v1218_v54  ;;  %v13110_v54 = vld [vmem:[%s24458_s1 + $0xa8] sm:$0xff] }
  0x4e   : > { %v16892_v55 = vpack.c.bf16 %v13110_v54, %v13109_v53  ;;  %v13156_v53 = vld [vmem:[%s24458_s1 + $0xf8] sm:$0xff] }
  0x50   : > { %15231 = vmatmul.mubr.msk.f32.gmra.mrb[24].mxu0 %vm24496_vm1, %v1220_v58  ;;  %v13111_v58 = vld [vmem:[%s24458_s1 + $0xb0] sm:$0xff] }
  0x51   : > { %15233 = vmatprep.mubr.msk.f32.mxu0 %vm24496_vm1, %v1222_v63  ;;  %v13149_v63 = vld [vmem:[%s24458_s1 + $0xc0] sm:$0xff] }
  0x54   : > { %15234 = vmatmul.mubr.msk.f32.gmra.mrb[26].mxu0 %vm24496_vm1, %v1224_v5  ;;  %v16900_v5 = vpack.c.bf16 %v13150_v0, %v13149_v63  ;;  %v13193_v63 = vld [vmem:[%s24458_s1 + $0x100] sm:$0xff]  ;;  %v13194_v0 = vld [vmem:[%s24458_s1 + $0x108] sm:$0xff] }
  0x55   : > { %15236 = vmatprep.mubr.msk.f32.mxu0 %vm24496_vm1, %v1226_v7  ;;  %v1887_v7 = vrot.slane %v18227_v12, 2 }
  0x58   : > { %15237 = vmatmul.mubr.msk.f32.gmra.mrb[28].mxu0 %vm24496_vm1, %v1228_v15  ;;  %v1888_v15 = vsel %vm24498_vm2, %v1886_v6, %v1887_v7  ;;  %v1905_v6 = vrot.slane %v18300_v50, 2 }
  0x59   : > { %15239 = vmatprep.mubr.msk.f32.mxu0 %vm24496_vm1, %v1230_v21  ;;  %v13151_v21 = vld [vmem:[%s24458_s1 + $0xd0] sm:$0xff] }
  0x5c   : > { %15240 = vmatmul.mubr.msk.f32.gmra.mrb[30].mxu0 %vm24496_vm1, %v1232_v29  ;;  %v18588_v29 = vsel %vm24498_vm2, %v1889_v10, %v1891_v19 }
  0x5d   : > { %15242 = vmatprep.mubr.msk.f32.mxu0 %vm24496_vm1, %v1234_v31 }
  0x60   : > { %15243 = vmatmul.mubr.msk.f32.gmra.mrb[32].mxu0 %vm24496_vm1, %v1236_v38  ;;  %v13154_v38 = vld [vmem:[%s24458_s1 + $0xe8] sm:$0xff] }
  0x61   : > { %15245 = vmatprep.mubr.msk.f32.mxu0 %vm24496_vm1, %v1238_v44  ;;  %v1897_v44 = vrot.slane %v18264_v32, 2  ;;  %v16908_v47 = vpack.c.bf16 %v13154_v38, %v13153_v36  ;;  %v1915_v36 = vrot.slane %v18336_v3, 2 }
  0x63   : > { %v18619_v54 = vsel %vm24498_vm2, %v1895_v30, %v1897_v44 }
  0x64   : > { %15246 = vmatmul.mubr.msk.f32.gmra.mrb[34].mxu0 %vm24496_vm1, %v1240_v45  ;;  %v18605_v45 = vsel %vm24498_vm2, %v1893_v22, %v1895_v30  ;;  %v1913_v30 = vrot.slane %v18332_v2, 2 }
  0x65   : > { %15264 = vmatprep.mubr.msk.f32.mxu0 %vm24496_vm1, %v18224_v11  ;;  %v13152_v11 = vld [vmem:[%s24458_s1 + $0xd8] sm:$0xff] }
  0x66   : > { %v16904_v31 = vpack.c.bf16 %v13152_v11, %v13151_v21  ;;  %v1909_v21 = vrot.slane %v18318_v59, 2 }
  0x68   : > { %15265 = vmatmul.mubr.msk.f32.vlgmr.msra.gmra.mrb[0].mxu0 %vm24496_vm1, %v18227_v12  ;;  %v1890_v12 = vsel %vm24498_vm2, %v1887_v7, %v1889_v10  ;;  %v1907_v10 = vrot.slane %v18303_v52, 2 }
  0x69   : > { %16887 = vmatpush3.bf16.msra.mxu0 %v18320_v60  ;;  %15267 = vmatprep.mubr.msk.f32.mxu0 %vm24496_vm1, %v18232_v16  ;;  %v16896_v60 = vpack.c.bf16 %v13112_v62, %v13111_v58  ;;  %v18623_v58 = vsel %vm24498_vm2, %v1897_v44, %v1899_v46  ;;  %v1903_v62 = vrot.slane %v18285_v43, 2  ;;  %v1917_v44 = vrot.slane %v18345_v8, 2 }
  0x6a   : > { %16889 = vmatprep.subr.bf16.mxu0 %v16888_v51  ;;  %v18655_v11 = vsel %vm24498_vm2, %v1905_v6, %v1907_v10  ;;  %v18664_v22 = vsel %vm24498_vm2, %v1907_v10, %v1909_v21 }
  0x6b   : > { %v18651_v19 = vsel %vm24498_vm2, %v1903_v62, %v1905_v6  ;;  %v1927_v6 = vrot.slane %v18372_v27, 2 }
  0x6c   : > { %15268 = vmatmul.mubr.msk.f32.gmra.mrb[2].mxu0 %vm24496_vm1, %v18242_v20 }
  0x6d   : > { %15270 = vmatprep.mubr.msk.f32.mxu0 %vm24496_vm1, %v18248_v24  ;;  %16891 = vmatpush3.bf16.msra.mxu0 %v16888_v51  ;;  %v13155_v51 = vld [vmem:[%s24458_s1 + $0xf0] sm:$0xff] }
  0x6e   : > { %16893 = vmatprep.subr.bf16.mxu0 %v16892_v55 }
  0x70   : > { %15271 = vmatmul.mubr.msk.f32.gmra.mrb[4].mxu0 %vm24496_vm1, %v18251_v25 }
  0x71   : > { %15273 = vmatprep.mubr.msk.f32.mxu0 %vm24496_vm1, %v18264_v32  ;;  %16895 = vmatpush3.bf16.msra.mxu0 %v16892_v55  ;;  %v1901_v55 = vrot.slane %v18282_v41, 2 }
  0x72   : > { %16897 = vmatprep.subr.bf16.mxu0 %v16896_v60 }
  0x73   : > { %v18641_v7 = vsel %vm24498_vm2, %v1901_v55, %v1903_v62  ;;  %v1923_v62 = vrot.slane %v18360_v18, 2 }
  0x74   : > { %15274 = vmatmul.mubr.msk.f32.gmra.mrb[6].mxu0 %vm24496_vm1, %v18267_v34 }
  0x75   : > { %15276 = vmatprep.mubr.msk.f32.mxu0 %vm24496_vm1, %v18282_v41  ;;  %16899 = vmatpush3.bf16.msra.mxu0 %v16896_v60  ;;  %v16912_v60 = vpack.c.bf16 %v13156_v53, %v13155_v51  ;;  %v18688_v51 = vsel %vm24498_vm2, %v1915_v36, %v1917_v44  ;;  %v1921_v53 = vrot.slane %v18357_v17, 2 }
  0x76   : > { %16901 = vmatprep.subr.bf16.mxu0 %v16900_v5 }
  0x78   : > { %15277 = vmatmul.mubr.msk.f32.gmra.mrb[8].mxu0 %vm24496_vm1, %v18285_v43 }
  0x79   : > { %15279 = vmatprep.mubr.msk.f32.mxu0 %vm24496_vm1, %v18300_v50 }
  0x7c   : > { %15280 = vmatmul.mubr.msk.f32.gmra.mrb[10].mxu0 %vm24496_vm1, %v18303_v52 }
  0x7d   : > { %15282 = vmatprep.mubr.msk.f32.mxu0 %vm24496_vm1, %v18318_v59 }
  0x80   : > { %15283 = vmatmul.mubr.msk.f32.gmra.mrb[12].mxu0 %vm24496_vm1, %v18323_v61 }
  0x81   : > { %15285 = vmatprep.mubr.msk.f32.mxu0 %vm24496_vm1, %v18332_v2 }
  0x84   : > { %15286 = vmatmul.mubr.msk.f32.gmra.mrb[14].mxu0 %vm24496_vm1, %v18336_v3 }
  0x85   : > { %15288 = vmatprep.mubr.msk.f32.mxu0 %vm24496_vm1, %v18345_v8 }
  0x88   : > { %15289 = vmatmul.mubr.msk.f32.gmra.mrb[16].mxu0 %vm24496_vm1, %v18348_v9 }
  0x89   : > { %15291 = vmatprep.mubr.msk.f32.mxu0 %vm24496_vm1, %v18357_v17 }
  0x8c   : > { %15292 = vmatmul.mubr.msk.f32.gmra.mrb[18].mxu0 %vm24496_vm1, %v18360_v18 }
  0x8d   : > { %15294 = vmatprep.mubr.msk.f32.mxu0 %vm24496_vm1, %v18369_v26 }
  0x90   : > { %15295 = vmatmul.mubr.msk.f32.gmra.mrb[20].mxu0 %vm24496_vm1, %v18372_v27 }
  0x91   : > { %15297 = vmatprep.mubr.msk.f32.mxu0 %vm24496_vm1, %v18381_v33 }
  0x94   : > { %15298 = vmatmul.mubr.msk.f32.gmra.mrb[22].mxu0 %vm24496_vm1, %v18384_v35 }
  0x95   : > { %15300 = vmatprep.mubr.msk.f32.mxu0 %vm24496_vm1, %v18393_v40 }
  0x98   : > { %15301 = vmatmul.mubr.msk.f32.gmra.mrb[24].mxu0 %vm24496_vm1, %v18396_v42 }
  0x99   : > { %15303 = vmatprep.mubr.msk.f32.mxu0 %vm24496_vm1, %v18405_v48 }
  0x9c   : > { %15304 = vmatmul.mubr.msk.f32.gmra.mrb[26].mxu0 %vm24496_vm1, %v18408_v49 }
  0x9d   : > { %15306 = vmatprep.mubr.msk.f32.mxu0 %vm24496_vm1, %v18417_v56 }
  0xa0   : > { %15307 = vmatmul.mubr.msk.f32.gmra.mrb[28].mxu0 %vm24496_vm1, %v18420_v57 }
  0xa1   : > { %15309 = vmatprep.mubr.msk.f32.mxu0 %vm24496_vm1, %v18429_v1 }
  0xa4   : > { %15310 = vmatmul.mubr.msk.f32.gmra.mrb[30].mxu0 %vm24496_vm1, %v18432_v4 }
  0xa5   : > { %15312 = vmatprep.mubr.msk.f32.mxu0 %vm24496_vm1, %v18441_v13 }
  0xa8   : > { %15313 = vmatmul.mubr.msk.f32.gmra.mrb[32].mxu0 %vm24496_vm1, %v18444_v14 }
  0xa9   : > { %15315 = vmatprep.mubr.msk.f32.mxu0 %vm24496_vm1, %v18453_v23 }
  0xac   : > { %15316 = vmatmul.mubr.msk.f32.gmra.mrb[34].mxu0 %vm24496_vm1, %v18456_v28 }
  0xad   : > { %15334 = vmatprep.mubr.msk.f32.mxu0 %vm24496_vm1, %v1888_v15  ;;  %v18644_v15 = vpack.c.bf16 %v13194_v0, %v13193_v63  ;;  %v1925_v63 = vrot.slane %v18369_v26, 2  ;;  %v18704_v0 = vsel %vm24498_vm2, %v1921_v53, %v1923_v62 }
  0xaf   : > { %v18712_v10 = vsel %vm24498_vm2, %v1923_v62, %v1925_v63 }
  0xb0   : > { %15335 = vmatmul.mubr.msk.f32.vlgmr.msra.gmra.mrb[0].mxu0 %vm24496_vm1, %v1890_v12  ;;  %v1911_v12 = vrot.slane %v18323_v61, 2 }
  0xb1   : > { %16903 = vmatpush3.bf16.msra.mxu0 %v16900_v5  ;;  %15337 = vmatprep.mubr.msk.f32.mxu0 %vm24496_vm1, %v18588_v29  ;;  %v18637_v5 = vsel %vm24498_vm2, %v1899_v46, %v1901_v55  ;;  %v18680_v46 = vsel %vm24498_vm2, %v1913_v30, %v1915_v36 }
  0xb2   : > { %16905 = vmatprep.subr.bf16.mxu0 %v16904_v31  ;;  %v18676_v38 = vsel %vm24498_vm2, %v1911_v12, %v1913_v30  ;;  %v1931_v30 = vrot.slane %v18384_v35, 2 }
  0xb4   : > { %15338 = vmatmul.mubr.msk.f32.gmra.mrb[2].mxu0 %vm24496_vm1, %v18601_v39 }
  0xb5   : > { %15340 = vmatprep.mubr.msk.f32.mxu0 %vm24496_vm1, %v18605_v45  ;;  %16907 = vmatpush3.bf16.msra.mxu0 %v16904_v31  ;;  %v18668_v31 = vsel %vm24498_vm2, %v1909_v21, %v1911_v12  ;;  %v1929_v21 = vrot.slane %v18381_v33, 2  ;;  %v18716_v12 = vsel %vm24498_vm2, %v1925_v63, %v1927_v6  ;;  %v1937_v63 = vrot.slane %v18405_v48, 2 }
  0xb6   : > { %16909 = vmatprep.subr.bf16.mxu0 %v16908_v47  ;;  %v1943_v48 = vrot.slane %v18420_v57, 2  ;;  %v1949_v57 = vrot.slane %v18441_v13, 2  ;;  %v1955_v13 = vrot.slane %v18456_v28, 2 }
  0xb7   : > { %v18724_v36 = vsel %vm24498_vm2, %v1927_v6, %v1929_v21 }
  0xb8   : > { %15341 = vmatmul.mubr.msk.f32.gmra.mrb[4].mxu0 %vm24496_vm1, %v18619_v54 }
  0xb9   : > { %15343 = vmatprep.mubr.msk.f32.mxu0 %vm24496_vm1, %v18623_v58  ;;  %16911 = vmatpush3.bf16.msra.mxu0 %v16908_v47  ;;  %v1919_v47 = vrot.slane %v18348_v9, 2 }
  0xba   : > { %16913 = vmatprep.subr.bf16.mxu0 %v16912_v60 }
  0xbb   : > { %v18692_v55 = vsel %vm24498_vm2, %v1917_v44, %v1919_v47  ;;  %v1933_v44 = vrot.slane %v18393_v40, 2  ;;  %v1939_v40 = vrot.slane %v18408_v49, 2  ;;  %v1945_v49 = vrot.slane %v18429_v1, 2 }
  0xbc   : > { %15344 = vmatmul.mubr.msk.f32.gmra.mrb[6].mxu0 %vm24496_vm1, %v18637_v5  ;;  %v1951_v1 = vrot.slane %v18444_v14, 2  ;;  %v24478_v14 = vrot.slane %v18465_v37, 2 }
  0xbd   : > { %15346 = vmatprep.mubr.msk.f32.mxu0 %vm24496_vm1, %v18641_v7  ;;  %16915 = vmatpush3.bf16.msra.mxu0 %v16912_v60  ;;  %v18700_v60 = vsel %vm24498_vm2, %v1919_v47, %v1921_v53  ;;  %v18728_v47 = vsel %vm24498_vm2, %v1929_v21, %v1931_v30  ;;  %v1935_v53 = vrot.slane %v18396_v42, 2  ;;  %v18736_v62 = vsel %vm24498_vm2, %v1931_v30, %v1933_v44 }
  0xbe   : > { %16917 = vmatprep.subr.bf16.mxu0 %v18644_v15  ;;  %v1941_v42 = vrot.slane %v18417_v56, 2  ;;  %v18752_v30 = vsel %vm24498_vm2, %v1937_v63, %v1939_v40  ;;  %v1947_v56 = vrot.slane %v18432_v4, 2  ;;  %v1953_v4 = vrot.slane %v18453_v23, 2 }
  0xbf   : > { %v18740_v6 = vsel %vm24498_vm2, %v1933_v44, %v1935_v53  ;;  %v18748_v21 = vsel %vm24498_vm2, %v1935_v53, %v1937_v63  ;;  %v18772_v63 = vsel %vm24498_vm2, %v1943_v48, %v1945_v49 }
  0xc0   : > { %15347 = vmatmul.mubr.msk.f32.gmra.mrb[8].mxu0 %vm24496_vm1, %v18651_v19  ;;  %v18760_v44 = vsel %vm24498_vm2, %v1939_v40, %v1941_v42  ;;  %v18764_v53 = vsel %vm24498_vm2, %v1941_v42, %v1943_v48  ;;  %v18776_v40 = vsel %vm24498_vm2, %v1945_v49, %v1947_v56  ;;  %v18784_v42 = vsel %vm24498_vm2, %v1947_v56, %v1949_v57 }
  0xc1   : > { %15349 = vmatprep.mubr.msk.f32.mxu0 %vm24496_vm1, %v18655_v11  ;;  %v1952_v48 = vsel %vm24498_vm2, %v1949_v57, %v1951_v1  ;;  %v1954_v49 = vsel %vm24498_vm2, %v1951_v1, %v1953_v4  ;;  %v1956_v35 = vsel %vm24498_vm2, %v1953_v4, %v1955_v13  ;;  %v18800_v56 = vsel %vm24498_vm2, %v1955_v13, %v24478_v14  ;;  %v13195_v57 = vld [vmem:[%s24458_s1 + $0x110] sm:$0xff]  ;;  %v13196_v1 = vld [vmem:[%s24458_s1 + $0x118] sm:$0xff]  ;;  %v13197_v13 = vld [vmem:[%s24458_s1 + $0x120] sm:$0xff] }
  0xc2   : > { %v16920_v4 = vpack.c.bf16 %v13196_v1, %v13195_v57  ;;  %v13198_v14 = vld [vmem:[%s24458_s1 + $0x128] sm:$0xff]  ;;  %v13200_v57 = vld [vmem:[%s24458_s1 + $0x138] sm:$0xff] }
  0xc3   : > { %v16924_v28 = vpack.c.bf16 %v13198_v14, %v13197_v13  ;;  %v13237_v14 = vld [vmem:[%s24458_s1 + $0x140] sm:$0xff] }
  0xc4   : > { %15350 = vmatmul.mubr.msk.f32.gmra.mrb[10].mxu0 %vm24496_vm1, %v18664_v22 }
  0xc5   : > { %15352 = vmatprep.mubr.msk.f32.mxu0 %vm24496_vm1, %v18668_v31 }
  0xc8   : > { %15353 = vmatmul.mubr.msk.f32.gmra.mrb[12].mxu0 %vm24496_vm1, %v18676_v38 }
  0xc9   : > { %15355 = vmatprep.mubr.msk.f32.mxu0 %vm24496_vm1, %v18680_v46 }
  0xcc   : > { %15356 = vmatmul.mubr.msk.f32.gmra.mrb[14].mxu0 %vm24496_vm1, %v18688_v51 }
  0xcd   : > { %15358 = vmatprep.mubr.msk.f32.mxu0 %vm24496_vm1, %v18692_v55 }
  0xd0   : > { %15359 = vmatmul.mubr.msk.f32.gmra.mrb[16].mxu0 %vm24496_vm1, %v18700_v60 }
  0xd1   : > { %15361 = vmatprep.mubr.msk.f32.mxu0 %vm24496_vm1, %v18704_v0 }
  0xd4   : > { %15362 = vmatmul.mubr.msk.f32.gmra.mrb[18].mxu0 %vm24496_vm1, %v18712_v10 }
  0xd5   : > { %15364 = vmatprep.mubr.msk.f32.mxu0 %vm24496_vm1, %v18716_v12 }
  0xd8   : > { %15365 = vmatmul.mubr.msk.f32.gmra.mrb[20].mxu0 %vm24496_vm1, %v18724_v36 }
  0xd9   : > { %15367 = vmatprep.mubr.msk.f32.mxu0 %vm24496_vm1, %v18728_v47 }
  0xdc   : > { %15368 = vmatmul.mubr.msk.f32.gmra.mrb[22].mxu0 %vm24496_vm1, %v18736_v62 }
  0xdd   : > { %15370 = vmatprep.mubr.msk.f32.mxu0 %vm24496_vm1, %v18740_v6 }
  0xe0   : > { %15371 = vmatmul.mubr.msk.f32.gmra.mrb[24].mxu0 %vm24496_vm1, %v18748_v21 }
  0xe1   : > { %15373 = vmatprep.mubr.msk.f32.mxu0 %vm24496_vm1, %v18752_v30 }
  0xe4   : > { %15374 = vmatmul.mubr.msk.f32.gmra.mrb[26].mxu0 %vm24496_vm1, %v18760_v44 }
  0xe5   : > { %15376 = vmatprep.mubr.msk.f32.mxu0 %vm24496_vm1, %v18764_v53 }
  0xe8   : > { %15377 = vmatmul.mubr.msk.f32.gmra.mrb[28].mxu0 %vm24496_vm1, %v18772_v63 }
  0xe9   : > { %15379 = vmatprep.mubr.msk.f32.mxu0 %vm24496_vm1, %v18776_v40 }
  0xec   : > { %15380 = vmatmul.mubr.msk.f32.gmra.mrb[30].mxu0 %vm24496_vm1, %v18784_v42 }
  0xed   : > { %15382 = vmatprep.mubr.msk.f32.mxu0 %vm24496_vm1, %v1952_v48 }
  0xf0   : > { %15383 = vmatmul.mubr.msk.f32.gmra.mrb[32].mxu0 %vm24496_vm1, %v1954_v49 }
  0xf1   : > { %15385 = vmatprep.mubr.msk.f32.mxu0 %vm24496_vm1, %v1956_v35 }
  0xf4   : > { %15386 = vmatmul.mubr.msk.f32.gmra.mrb[34].mxu0 %vm24496_vm1, %v18800_v56 }
  0xf5   : > { %15404 = vmatprep.mubr.msk.f32.mxu0 %vm24496_vm1, %v18588_v29  ;;  %v13199_v29 = vld [vmem:[%s24458_s1 + $0x130] sm:$0xff] }
  0xf8   : > { %15405 = vmatmul.mubr.msk.f32.vlgmr.msra.gmra.mrb[0].mxu0 %vm24496_vm1, %v18601_v39  ;;  %v16928_v39 = vpack.c.bf16 %v13200_v57, %v13199_v29  ;;  %v2651_v29 = vrot.slane %v18348_v9, 3  ;;  %v2657_v9 = vrot.slane %v18369_v26, 3 }
  0xf9   : > { %16919 = vmatpush3.bf16.msra.mxu0 %v18644_v15  ;;  %15407 = vmatprep.mubr.msk.f32.mxu0 %vm24496_vm1, %v18605_v45  ;;  %v13238_v45 = vld [vmem:[%s24458_s1 + $0x148] sm:$0xff]  ;;  %v24659_v15 = vrot.slane %v18465_v37, 2 }
  0xfa   : > { %16921 = vmatprep.subr.bf16.mxu0 %v16920_v4 }
  0xfc   : > { %15408 = vmatmul.mubr.msk.f32.gmra.mrb[2].mxu0 %vm24496_vm1, %v18619_v54  ;;  %v16932_v54 = vpack.c.bf16 %v13238_v45, %v13237_v14  ;;  %v2659_v45 = vrot.slane %v18372_v27, 3 }
  0xfd   : > { %15410 = vmatprep.mubr.msk.f32.mxu0 %vm24496_vm1, %v18623_v58  ;;  %16923 = vmatpush3.bf16.msra.mxu0 %v16920_v4  ;;  %v2649_v4 = vrot.slane %v18345_v8, 3 }
  0xfe   : > { %16925 = vmatprep.subr.bf16.mxu0 %v16924_v28 }
  0xff   : > { %v2652_v57 = vsel %vm24501_vm3, %v2649_v4, %v2651_v29 }
 0x100   : > { %15411 = vmatmul.mubr.msk.f32.gmra.mrb[4].mxu0 %vm24496_vm1, %v18637_v5  ;;  %v18895_v5 = vld [vmem:[%s18221_s22 + $0x130] sm:$0xff] }
 0x101   : > { %15413 = vmatprep.mubr.msk.f32.mxu0 %vm24496_vm1, %v18641_v7  ;;  %16927 = vmatpush3.bf16.msra.mxu0 %v16924_v28  ;;  %v18888_v28 = vld [vmem:[%s18221_s22 + $0x128] sm:$0xff]  ;;  %v2325_v7 = vrot.slane %v18895_v5, 2 }
 0x102   : > { %16929 = vmatprep.subr.bf16.mxu0 %v16928_v39  ;;  %v2323_v58 = vrot.slane %v18888_v28, 2 }
 0x104   : > { %15414 = vmatmul.mubr.msk.f32.gmra.mrb[6].mxu0 %vm24496_vm1, %v18651_v19  ;;  %v2324_v19 = vsel %vm24498_vm2, %v24659_v15, %v2323_v58  ;;  %v24661_v15 = vld [vmem:[#allocation5_spill] sm:$0xff] }
 0x105   : > { %15416 = vmatprep.mubr.msk.f32.mxu0 %vm24496_vm1, %v18655_v11  ;;  %16931 = vmatpush3.bf16.msra.mxu0 %v16928_v39  ;;  %v2622_v11 = vrot.slane %v18232_v16, 3  ;;  %v13239_v16 = vld [vmem:[%s24458_s1 + $0x150] sm:$0xff]  ;;  %v2655_v39 = vrot.slane %v18360_v18, 3  ;;  %v2661_v18 = vrot.slane %v18381_v33, 3  ;;  %v2665_v27 = vrot.slane %v24661_v15, 3 }
 0x106   : > { %16933 = vmatprep.subr.bf16.mxu0 %v16932_v54 }
 0x107   : > { %v2662_v26 = vsel %vm24501_vm3, %v2659_v45, %v2661_v18 }
 0x108   : > { %15417 = vmatmul.mubr.msk.f32.gmra.mrb[8].mxu0 %vm24496_vm1, %v18664_v22  ;;  %v2623_v22 = vrot.slane %v18242_v20, 3  ;;  %v13240_v20 = vld [vmem:[%s24458_s1 + $0x158] sm:$0xff] }
 0x109   : > { %15419 = vmatprep.mubr.msk.f32.mxu0 %vm24496_vm1, %v18668_v31  ;;  %v2326_v31 = vsel %vm24498_vm2, %v2323_v58, %v2325_v7  ;;  %v24660_v58 = vld [vmem:[#allocation4_spill] sm:$0xff] }
 0x10a   : > { %v2663_v7 = vrot.slane %v24660_v58, 3 }
 0x10c   : > { %15420 = vmatmul.mubr.msk.f32.gmra.mrb[10].mxu0 %vm24496_vm1, %v18676_v38  ;;  %v2624_v38 = vsel %vm24501_vm3, %v2622_v11, %v2623_v22  ;;  %v24662_v11 = vld [vmem:[#allocation6_spill] sm:$0xff]  ;;  %v2666_v33 = vsel %vm24501_vm3, %v2663_v7, %v2665_v27 }
 0x10d   : > { %15422 = vmatprep.mubr.msk.f32.mxu0 %vm24496_vm1, %v18680_v46  ;;  %v2627_v46 = vrot.slane %v18251_v25, 3  ;;  %v2631_v25 = vrot.slane %v18267_v34, 3 }
 0x110   : > { %15423 = vmatmul.mubr.msk.f32.gmra.mrb[12].mxu0 %vm24496_vm1, %v18688_v51 }
 0x111   : > { %15425 = vmatprep.mubr.msk.f32.mxu0 %vm24496_vm1, %v18692_v55 }
 0x114   : > { %15426 = vmatmul.mubr.msk.f32.gmra.mrb[14].mxu0 %vm24496_vm1, %v18700_v60  ;;  %v16936_v60 = vpack.c.bf16 %v13240_v20, %v13239_v16 }
 0x115   : > { %15428 = vmatprep.mubr.msk.f32.mxu0 %vm24496_vm1, %v18704_v0  ;;  %v13241_v0 = vld [vmem:[%s24458_s1 + $0x160] sm:$0xff] }
 0x118   : > { %15429 = vmatmul.mubr.msk.f32.gmra.mrb[16].mxu0 %vm24496_vm1, %v18712_v10  ;;  %v13242_v10 = vld [vmem:[%s24458_s1 + $0x168] sm:$0xff] }
 0x119   : > { %15431 = vmatprep.mubr.msk.f32.mxu0 %vm24496_vm1, %v18716_v12  ;;  %v2633_v12 = vrot.slane %v18282_v41, 3 }
 0x11b   : > { %v2634_v41 = vsel %vm24501_vm3, %v2631_v25, %v2633_v12 }
 0x11c   : > { %15432 = vmatmul.mubr.msk.f32.gmra.mrb[18].mxu0 %vm24496_vm1, %v18724_v36  ;;  %v2635_v36 = vrot.slane %v18285_v43, 3 }
 0x11d   : > { %15434 = vmatprep.mubr.msk.f32.mxu0 %vm24496_vm1, %v18728_v47  ;;  %v16940_v47 = vpack.c.bf16 %v13242_v10, %v13241_v0  ;;  %v24667_v10 = vld [vmem:[#allocation11_spill] sm:$0xff] }
 0x11e   : > { %v2636_v43 = vsel %vm24501_vm3, %v2633_v12, %v2635_v36 }
 0x120   : > { %15435 = vmatmul.mubr.msk.f32.gmra.mrb[20].mxu0 %vm24496_vm1, %v18736_v62  ;;  %v13243_v62 = vld [vmem:[%s24458_s1 + $0x170] sm:$0xff] }
 0x121   : > { %15437 = vmatprep.mubr.msk.f32.mxu0 %vm24496_vm1, %v18740_v6  ;;  %v13244_v6 = vld [vmem:[%s24458_s1 + $0x178] sm:$0xff] }
 0x124   : > { %15438 = vmatmul.mubr.msk.f32.gmra.mrb[22].mxu0 %vm24496_vm1, %v18748_v21  ;;  %v2637_v21 = vrot.slane %v18300_v50, 3 }
 0x125   : > { %15440 = vmatprep.mubr.msk.f32.mxu0 %vm24496_vm1, %v18752_v30  ;;  %v2639_v30 = vrot.slane %v18303_v52, 3 }
 0x126   : > { %v2638_v50 = vsel %vm24501_vm3, %v2635_v36, %v2637_v21 }
 0x127   : > { %v2640_v52 = vsel %vm24501_vm3, %v2637_v21, %v2639_v30  ;;  %v24670_v21 = vld [vmem:[#allocation14_spill] sm:$0xff] }
 0x128   : > { %15441 = vmatmul.mubr.msk.f32.gmra.mrb[24].mxu0 %vm24496_vm1, %v18760_v44  ;;  %v16944_v44 = vpack.c.bf16 %v13244_v6, %v13243_v62  ;;  %v24669_v62 = vld [vmem:[#allocation13_spill] sm:$0xff] }
 0x129   : > { %15443 = vmatprep.mubr.msk.f32.mxu0 %vm24496_vm1, %v18764_v53  ;;  %v13281_v53 = vld [vmem:[%s24458_s1 + $0x180] sm:$0xff]  ;;  %v2681_v6 = vrot.slane %v24669_v62, 3 }
 0x12c   : > { %15444 = vmatmul.mubr.msk.f32.gmra.mrb[26].mxu0 %vm24496_vm1, %v18772_v63  ;;  %v13282_v63 = vld [vmem:[%s24458_s1 + $0x188] sm:$0xff] }
 0x12d   : > { %15446 = vmatprep.mubr.msk.f32.mxu0 %vm24496_vm1, %v18776_v40  ;;  %v2641_v40 = vrot.slane %v18318_v59, 3  ;;  %v2647_v59 = vrot.slane %v18336_v3, 3  ;;  %v2653_v3 = vrot.slane %v18357_v17, 3  ;;  %v2658_v17 = vsel %vm24501_vm3, %v2655_v39, %v2657_v9 }
 0x12f   : > { %v2654_v8 = vsel %vm24501_vm3, %v2651_v29, %v2653_v3  ;;  %v2656_v14 = vsel %vm24501_vm3, %v2653_v3, %v2655_v39  ;;  %v19046_v3 = vld [vmem:[%s18221_s22 + $0x20] sm:$0xff] }
 0x130   : > { %15447 = vmatmul.mubr.msk.f32.gmra.mrb[28].mxu0 %vm24496_vm1, %v18784_v42  ;;  %v2643_v42 = vrot.slane %v18323_v61, 3 }
 0x131   : > { %15449 = vmatprep.mubr.msk.f32.mxu0 %vm24496_vm1, %v1952_v48  ;;  %v18960_v48 = vpack.c.bf16 %v13282_v63, %v13281_v53  ;;  %v24671_v63 = vld [vmem:[#allocation15_spill] sm:$0xff] }
 0x132   : > { %v2644_v1 = vsel %vm24501_vm3, %v2641_v40, %v2643_v42 }
 0x134   : > { %15450 = vmatmul.mubr.msk.f32.gmra.mrb[30].mxu0 %vm24496_vm1, %v1954_v49  ;;  %v2642_v49 = vsel %vm24501_vm3, %v2639_v30, %v2641_v40 }
 0x135   : > { %15452 = vmatprep.mubr.msk.f32.mxu0 %vm24496_vm1, %v1956_v35  ;;  %v2625_v35 = vrot.slane %v18248_v24, 3  ;;  %v2629_v24 = vrot.slane %v18264_v32, 3 }
 0x137   : > { %v2626_v51 = vsel %vm24501_vm3, %v2623_v22, %v2625_v35  ;;  %v2628_v55 = vsel %vm24501_vm3, %v2625_v35, %v2627_v46  ;;  %v2630_v32 = vsel %vm24501_vm3, %v2627_v46, %v2629_v24  ;;  %v2632_v34 = vsel %vm24501_vm3, %v2629_v24, %v2631_v25  ;;  %v24664_v46 = vld [vmem:[#allocation8_spill] sm:$0xff]  ;;  %v24666_v25 = vld [vmem:[#allocation10_spill] sm:$0xff] }
 0x138   : > { %15453 = vmatmul.mubr.msk.f32.gmra.mrb[32].mxu0 %vm24496_vm1, %v18800_v56  ;;  %v2645_v56 = vrot.slane %v18332_v2, 3  ;;  %v2650_v2 = vsel %vm24501_vm3, %v2647_v59, %v2649_v4  ;;  %v2667_v22 = vrot.slane %v24662_v11, 3  ;;  %v2671_v16 = vrot.slane %v24664_v46, 3  ;;  %v13287_v46 = vld [vmem:[%s24458_s1 + $0x1b0] sm:$0xff] }
 0x139   : > { %15455 = vmatprep.mubr.msk.f32.mxu0 %vm24496_vm1, %v2324_v19  ;;  %v2664_v19 = vsel %vm24501_vm3, %v2661_v18, %v2663_v7  ;;  %v19064_v18 = vld [vmem:[%s18221_s22 + $0x30] sm:$0xff]  ;;  %v19071_v7 = vld [vmem:[%s18221_s22 + $0x38] sm:$0xff] }
 0x13a   : > { %v2646_v61 = vsel %vm24501_vm3, %v2643_v42, %v2645_v56  ;;  %v2648_v13 = vsel %vm24501_vm3, %v2645_v56, %v2647_v59 }
 0x13c   : > { %15456 = vmatmul.mubr.msk.f32.gmra.mrb[34].mxu0 %vm24496_vm1, %v2326_v31  ;;  %v24663_v31 = vld [vmem:[#allocation7_spill] sm:$0xff] }
 0x13d   : > { %15474 = vmatprep.mubr.msk.f32.mxu0 %vm24496_vm1, %v2624_v38  ;;  %v2669_v35 = vrot.slane %v24663_v31, 3  ;;  %v2668_v38 = vsel %vm24501_vm3, %v2665_v27, %v2667_v22  ;;  %v13285_v27 = vld [vmem:[%s24458_s1 + $0x1a0] sm:$0xff] }
 0x13f   : > { %v2670_v20 = vsel %vm24501_vm3, %v2667_v22, %v2669_v35  ;;  %v19088_v22 = vld [vmem:[%s18221_s22 + $0x40] sm:$0xff] }
 0x140   : > { %15475 = vmatmul.mubr.msk.f32.vlgmr.msra.gmra.mrb[0].mxu0 %vm24496_vm1, %v2626_v51  ;;  %v24665_v51 = vld [vmem:[#allocation9_spill] sm:$0xff] }
 0x141   : > { %16935 = vmatpush3.bf16.msra.mxu0 %v16932_v54  ;;  %15477 = vmatprep.mubr.msk.f32.mxu0 %vm24496_vm1, %v2628_v55  ;;  %v2660_v54 = vsel %vm24501_vm3, %v2657_v9, %v2659_v45  ;;  %v2673_v24 = vrot.slane %v24665_v51, 3  ;;  %v2672_v55 = vsel %vm24501_vm3, %v2669_v35, %v2671_v16  ;;  %v13284_v45 = vld [vmem:[%s24458_s1 + $0x198] sm:$0xff]  ;;  %v19095_v35 = vld [vmem:[%s18221_s22 + $0x48] sm:$0xff]  ;;  %v19112_v51 = vld [vmem:[%s18221_s22 + $0x50] sm:$0xff] }
 0x142   : > { %16937 = vmatprep.subr.bf16.mxu0 %v16936_v60 }
 0x143   : > { %v2674_v0 = vsel %vm24501_vm3, %v2671_v16, %v2673_v24  ;;  %v13288_v16 = vld [vmem:[%s24458_s1 + $0x1b8] sm:$0xff] }
 0x144   : > { %15478 = vmatmul.mubr.msk.f32.gmra.mrb[2].mxu0 %vm24496_vm1, %v2630_v32  ;;  %v2677_v32 = vrot.slane %v24667_v10, 3  ;;  %v13325_v10 = vld [vmem:[%s24458_s1 + $0x1c0] sm:$0xff] }
 0x145   : > { %15480 = vmatprep.mubr.msk.f32.mxu0 %vm24496_vm1, %v2632_v34  ;;  %16939 = vmatpush3.bf16.msra.mxu0 %v16936_v60  ;;  %v2675_v60 = vrot.slane %v24666_v25, 3  ;;  %v24668_v34 = vld [vmem:[#allocation12_spill] sm:$0xff]  ;;  %v19119_v25 = vld [vmem:[%s18221_s22 + $0x58] sm:$0xff] }
 0x146   : > { %16941 = vmatprep.subr.bf16.mxu0 %v16940_v47  ;;  %v2679_v36 = vrot.slane %v24668_v34, 3  ;;  %v19136_v34 = vld [vmem:[%s18221_s22 + $0x60] sm:$0xff] }
 0x147   : > { %v2676_v12 = vsel %vm24501_vm3, %v2673_v24, %v2675_v60  ;;  %v3073_v24 = vrot.slane %v19112_v51, 4 }
 0x148   : > { %15481 = vmatmul.mubr.msk.f32.gmra.mrb[4].mxu0 %vm24496_vm1, %v2634_v41  ;;  %v2680_v41 = vsel %vm24501_vm3, %v2677_v32, %v2679_v36  ;;  %v2682_v30 = vsel %vm24501_vm3, %v2679_v36, %v2681_v6  ;;  %v3077_v36 = vrot.slane %v19136_v34, 4 }
 0x149   : > { %15483 = vmatprep.mubr.msk.f32.mxu0 %vm24496_vm1, %v2636_v43  ;;  %16943 = vmatpush3.bf16.msra.mxu0 %v16940_v47  ;;  %v2678_v47 = vsel %vm24501_vm3, %v2675_v60, %v2677_v32  ;;  %v2683_v43 = vrot.slane %v24670_v21, 3  ;;  %v3075_v60 = vrot.slane %v19119_v25, 4  ;;  %v13326_v32 = vld [vmem:[%s24458_s1 + $0x1c8] sm:$0xff] }
 0x14a   : > { %16945 = vmatprep.subr.bf16.mxu0 %v16944_v44 }
 0x14b   : > { %v2684_v53 = vsel %vm24501_vm3, %v2681_v6, %v2683_v43  ;;  %v19143_v6 = vld [vmem:[%s18221_s22 + $0x68] sm:$0xff] }
 0x14c   : > { %15484 = vmatmul.mubr.msk.f32.gmra.mrb[6].mxu0 %vm24496_vm1, %v2638_v50  ;;  %v2687_v50 = vrot.slane %v24671_v63, 3 }
 0x14d   : > { %15486 = vmatprep.mubr.msk.f32.mxu0 %vm24496_vm1, %v2640_v52  ;;  %16947 = vmatpush3.bf16.msra.mxu0 %v16944_v44  ;;  %v2685_v44 = vrot.slane %v18453_v23, 3  ;;  %v2689_v52 = vrot.slane %v18465_v37, 3 }
 0x14e   : > { %16949 = vmatprep.subr.bf16.mxu0 %v18960_v48 }
 0x14f   : > { %v2686_v40 = vsel %vm24501_vm3, %v2683_v43, %v2685_v44  ;;  %v2688_v42 = vsel %vm24501_vm3, %v2685_v44, %v2687_v50  ;;  %v2690_v56 = vsel %vm24501_vm3, %v2687_v50, %v2689_v52  ;;  %v19146_v43 = vpack.c.bf16 %v13326_v32, %v13325_v10  ;;  %v19156_v44 = vld [vmem:[%s18221_s22 + $0x70] sm:$0xff] }
 0x150   : > { %15487 = vmatmul.mubr.msk.f32.gmra.mrb[8].mxu0 %vm24496_vm1, %v2642_v49  ;;  %v2691_v49 = vrot.slane %v18888_v28, 3 }
 0x151   : > { %15489 = vmatprep.mubr.msk.f32.mxu0 %vm24496_vm1, %v2644_v1  ;;  %v2693_v1 = vrot.slane %v18895_v5, 3 }
 0x152   : > { %v2692_v59 = vsel %vm24501_vm3, %v2689_v52, %v2691_v49 }
 0x154   : > { %15490 = vmatmul.mubr.msk.f32.gmra.mrb[10].mxu0 %vm24496_vm1, %v2646_v61  ;;  %v18021_v61 = vld [vmem:[%s18221_s22 + $0x10] sm:$0xff] }
 0x155   : > { %15492 = vmatprep.mubr.msk.f32.mxu0 %vm24496_vm1, %v2648_v13  ;;  %v3058_v4 = vrot.slane %v18021_v61, 4  ;;  %v18022_v13 = vld [vmem:[%s18221_s22 + $0x18] sm:$0xff] }
 0x156   : > { %v3059_v29 = vrot.slane %v18022_v13, 4  ;;  %v19193_v13 = vld [vmem:[%s18221_s22 + $0x90] sm:$0xff] }
 0x158   : > { %15493 = vmatmul.mubr.msk.f32.gmra.mrb[12].mxu0 %vm24496_vm1, %v2650_v2  ;;  %v2694_v2 = vsel %vm24501_vm3, %v2691_v49, %v2693_v1  ;;  %v3060_v39 = vsel %vm24500_vm4, %v3058_v4, %v3059_v29  ;;  %v19175_v49 = vld [vmem:[%s18221_s22 + $0x80] sm:$0xff] }
 0x159   : > { %15495 = vmatprep.mubr.msk.f32.mxu0 %vm24496_vm1, %v2652_v57  ;;  %v3061_v57 = vrot.slane %v19046_v3, 4 }
 0x15c   : > { %15496 = vmatmul.mubr.msk.f32.gmra.mrb[14].mxu0 %vm24496_vm1, %v2654_v8  ;;  %v19051_v8 = vld [vmem:[%s18221_s22 + $0x28] sm:$0xff] }
 0x15d   : > { %15498 = vmatprep.mubr.msk.f32.mxu0 %vm24496_vm1, %v2656_v14  ;;  %v3063_v9 = vrot.slane %v19051_v8, 4  ;;  %v13283_v14 = vld [vmem:[%s24458_s1 + $0x190] sm:$0xff] }
 0x15e   : > { %v16952_v15 = vpack.c.bf16 %v13284_v45, %v13283_v14  ;;  %v19211_v14 = vld [vmem:[%s18221_s22 + $0xa0] sm:$0xff] }
 0x15f   : > { %v19068_v58 = vsel %vm24500_vm4, %v3061_v57, %v3063_v9  ;;  %v3093_v45 = vrot.slane %v19211_v14, 4 }
 0x160   : > { %15499 = vmatmul.mubr.msk.f32.gmra.mrb[16].mxu0 %vm24496_vm1, %v2658_v17  ;;  %v3062_v17 = vsel %vm24500_vm4, %v3059_v29, %v3061_v57  ;;  %v3089_v29 = vrot.slane %v19193_v13, 4  ;;  %v19200_v57 = vld [vmem:[%s18221_s22 + $0x98] sm:$0xff] }
 0x161   : > { %15501 = vmatprep.mubr.msk.f32.mxu0 %vm24496_vm1, %v2660_v54  ;;  %v3065_v54 = vrot.slane %v19064_v18, 4 }
 0x163   : > { %v19085_v11 = vsel %vm24500_vm4, %v3063_v9, %v3065_v54 }
 0x164   : > { %15502 = vmatmul.mubr.msk.f32.gmra.mrb[18].mxu0 %vm24496_vm1, %v2662_v26  ;;  %v3067_v26 = vrot.slane %v19071_v7, 4 }
 0x165   : > { %15504 = vmatprep.mubr.msk.f32.mxu0 %vm24496_vm1, %v2664_v19  ;;  %v13286_v19 = vld [vmem:[%s24458_s1 + $0x1a8] sm:$0xff] }
 0x166   : > { %v19092_v31 = vsel %vm24500_vm4, %v3065_v54, %v3067_v26  ;;  %v19218_v54 = vld [vmem:[%s18221_s22 + $0xa8] sm:$0xff] }
 0x168   : > { %15505 = vmatmul.mubr.msk.f32.gmra.mrb[20].mxu0 %vm24496_vm1, %v2666_v33  ;;  %v3069_v33 = vrot.slane %v19088_v22, 4 }
 0x169   : > { %15507 = vmatprep.mubr.msk.f32.mxu0 %vm24496_vm1, %v2668_v38  ;;  %v3071_v38 = vrot.slane %v19095_v35, 4 }
 0x16c   : > { %15508 = vmatmul.mubr.msk.f32.gmra.mrb[22].mxu0 %vm24496_vm1, %v2670_v20  ;;  %v19109_v20 = vsel %vm24500_vm4, %v3067_v26, %v3069_v33  ;;  %v3095_v26 = vrot.slane %v19218_v54, 4 }
 0x16d   : > { %15510 = vmatprep.mubr.msk.f32.mxu0 %vm24496_vm1, %v2672_v55  ;;  %v19116_v55 = vsel %vm24500_vm4, %v3069_v33, %v3071_v38 }
 0x16e   : > { %v19233_v33 = vsel %vm24500_vm4, %v3093_v45, %v3095_v26 }
 0x170   : > { %15511 = vmatmul.mubr.msk.f32.gmra.mrb[24].mxu0 %vm24496_vm1, %v2674_v0  ;;  %v16960_v0 = vpack.c.bf16 %v13288_v16, %v13287_v46  ;;  %v19247_v16 = vld [vmem:[%s18221_s22 + $0xc0] sm:$0xff] }
 0x171   : > { %15513 = vmatprep.mubr.msk.f32.mxu0 %vm24496_vm1, %v2676_v12  ;;  %v19133_v12 = vsel %vm24500_vm4, %v3071_v38, %v3073_v24  ;;  %v19236_v38 = vld [vmem:[%s18221_s22 + $0xb8] sm:$0xff] }
 0x174   : > { %15514 = vmatmul.mubr.msk.f32.gmra.mrb[26].mxu0 %vm24496_vm1, %v2678_v47  ;;  %v19140_v47 = vsel %vm24500_vm4, %v3073_v24, %v3075_v60  ;;  %v3101_v24 = vrot.slane %v19247_v16, 4 }
 0x175   : > { %15516 = vmatprep.mubr.msk.f32.mxu0 %vm24496_vm1, %v2680_v41  ;;  %v3079_v41 = vrot.slane %v19143_v6, 4 }
 0x177   : > { %v19160_v50 = vsel %vm24500_vm4, %v3077_v36, %v3079_v41 }
 0x178   : > { %15517 = vmatmul.mubr.msk.f32.gmra.mrb[28].mxu0 %vm24496_vm1, %v2682_v30  ;;  %v19153_v30 = vsel %vm24500_vm4, %v3075_v60, %v3077_v36  ;;  %v19265_v36 = vld [vmem:[%s18221_s22 + $0xd0] sm:$0xff] }
 0x179   : > { %15519 = vmatprep.mubr.msk.f32.mxu0 %vm24496_vm1, %v2684_v53  ;;  %v3081_v53 = vrot.slane %v19156_v44, 4  ;;  %24673 = vst [vmem:[#allocation5_spill] sm:$0xff] %v19265_v36 }
 0x17c   : > { %15520 = vmatmul.mubr.msk.f32.gmra.mrb[30].mxu0 %vm24496_vm1, %v2686_v40  ;;  %v19163_v40 = vld [vmem:[%s18221_s22 + $0x78] sm:$0xff] }
 0x17d   : > { %15522 = vmatprep.mubr.msk.f32.mxu0 %vm24496_vm1, %v2688_v42  ;;  %v3083_v52 = vrot.slane %v19163_v40, 4  ;;  %v19172_v42 = vsel %vm24500_vm4, %v3079_v41, %v3081_v53  ;;  %v3105_v41 = vrot.slane %v19265_v36, 4  ;;  %v3121_v36 = vrot.slane %v18453_v23, 4 }
 0x17e   : > { %v3127_v23 = vrot.slane %v18888_v28, 4 }
 0x17f   : > { %v19179_v1 = vsel %vm24500_vm4, %v3081_v53, %v3083_v52 }
 0x180   : > { %15523 = vmatmul.mubr.msk.f32.gmra.mrb[32].mxu0 %vm24496_vm1, %v2690_v56  ;;  %v3085_v56 = vrot.slane %v19175_v49, 4 }
 0x181   : > { %15525 = vmatprep.mubr.msk.f32.mxu0 %vm24496_vm1, %v2692_v59  ;;  %v19182_v59 = vld [vmem:[%s18221_s22 + $0x88] sm:$0xff] }
 0x182   : > { %v3087_v61 = vrot.slane %v19182_v59, 4  ;;  %v19190_v4 = vsel %vm24500_vm4, %v3083_v52, %v3085_v56  ;;  %v19272_v52 = vld [vmem:[%s18221_s22 + $0xd8] sm:$0xff] }
 0x183   : > { %24674 = vst [vmem:[#allocation6_spill] sm:$0xff] %v19272_v52 }
 0x184   : > { %15526 = vmatmul.mubr.msk.f32.gmra.mrb[34].mxu0 %vm24496_vm1, %v2694_v2  ;;  %v19197_v2 = vsel %vm24500_vm4, %v3085_v56, %v3087_v61  ;;  %v19208_v9 = vsel %vm24500_vm4, %v3087_v61, %v3089_v29  ;;  %v3107_v56 = vrot.slane %v19272_v52, 4  ;;  %v3117_v52 = vrot.slane %v24669_v62, 4 }
 0x185   : > { %15544 = vmatprep.mubr.msk.f32.mxu0 %vm24496_vm1, %v3060_v39  ;;  %v3091_v39 = vrot.slane %v19200_v57, 4  ;;  %v3123_v62 = vrot.slane %v24671_v63, 4 }
 0x188   : > { %15545 = vmatmul.mubr.msk.f32.vlgmr.msra.gmra.mrb[0].mxu0 %vm24496_vm1, %v3062_v17  ;;  %v19215_v17 = vsel %vm24500_vm4, %v3089_v29, %v3091_v39  ;;  %v19283_v29 = vld [vmem:[%s18221_s22 + $0xe0] sm:$0xff] }
 0x189   : > { %16951 = vmatpush3.bf16.msra.mxu0 %v18960_v48  ;;  %15547 = vmatprep.mubr.msk.f32.mxu0 %vm24496_vm1, %v19068_v58  ;;  %v16956_v48 = vpack.c.bf16 %v13286_v19, %v13285_v27  ;;  %v19229_v27 = vld [vmem:[%s18221_s22 + $0xb0] sm:$0xff]  ;;  %24675 = vst [vmem:[#allocation7_spill] sm:$0xff] %v19283_v29 }
 0x18a   : > { %16953 = vmatprep.subr.bf16.mxu0 %v16952_v15  ;;  %v3097_v19 = vrot.slane %v19229_v27, 4 }
 0x18c   : > { %15548 = vmatmul.mubr.msk.f32.gmra.mrb[2].mxu0 %vm24496_vm1, %v19085_v11  ;;  %v19244_v46 = vsel %vm24500_vm4, %v3095_v26, %v3097_v19  ;;  %v19290_v26 = vld [vmem:[%s18221_s22 + $0xe8] sm:$0xff] }
 0x18d   : > { %15550 = vmatprep.mubr.msk.f32.mxu0 %vm24496_vm1, %v19092_v31  ;;  %16955 = vmatpush3.bf16.msra.mxu0 %v16952_v15  ;;  %v19226_v15 = vsel %vm24500_vm4, %v3091_v39, %v3093_v45  ;;  %v3109_v39 = vrot.slane %v19283_v29, 4  ;;  %v19287_v45 = vsel %vm24500_vm4, %v3105_v41, %v3107_v56  ;;  %24676 = vst [vmem:[#allocation8_spill] sm:$0xff] %v19290_v26  ;;  %v19308_v29 = vld [vmem:[%s18221_s22 + $0xf8] sm:$0xff] }
 0x18e   : > { %16957 = vmatprep.subr.bf16.mxu0 %v16956_v48  ;;  %24678 = vst [vmem:[#allocation10_spill] sm:$0xff] %v19308_v29 }
 0x190   : > { %15551 = vmatmul.mubr.msk.f32.gmra.mrb[4].mxu0 %vm24496_vm1, %v19109_v20 }
 0x191   : > { %15553 = vmatprep.mubr.msk.f32.mxu0 %vm24496_vm1, %v19116_v55  ;;  %16959 = vmatpush3.bf16.msra.mxu0 %v16956_v48  ;;  %v3099_v48 = vrot.slane %v19236_v38, 4 }
 0x192   : > { %16961 = vmatprep.subr.bf16.mxu0 %v16960_v0 }
 0x193   : > { %v19251_v60 = vsel %vm24500_vm4, %v3097_v19, %v3099_v48  ;;  %v19262_v32 = vsel %vm24500_vm4, %v3099_v48, %v3101_v24  ;;  %v3111_v19 = vrot.slane %v19290_v26, 4  ;;  %v19298_v48 = vsel %vm24500_vm4, %v3107_v56, %v3109_v39 }
 0x194   : > { %15554 = vmatmul.mubr.msk.f32.gmra.mrb[6].mxu0 %vm24496_vm1, %v19133_v12  ;;  %v3115_v26 = vrot.slane %v19308_v29, 4 }
 0x195   : > { %15556 = vmatprep.mubr.msk.f32.mxu0 %vm24496_vm1, %v19140_v47  ;;  %16963 = vmatpush3.bf16.msra.mxu0 %v16960_v0  ;;  %v19254_v0 = vld [vmem:[%s18221_s22 + $0xc8] sm:$0xff] }
 0x196   : > { %16965 = vmatprep.subr.bf16.mxu0 %v19146_v43  ;;  %24672 = vst [vmem:[#allocation4_spill] sm:$0xff] %v19254_v0  ;;  %v3103_v10 = vrot.slane %v19254_v0, 4  ;;  %v19328_v29 = vsel %vm24500_vm4, %v3115_v26, %v3117_v52 }
 0x198   : > { %15557 = vmatmul.mubr.msk.f32.gmra.mrb[8].mxu0 %vm24496_vm1, %v19153_v30  ;;  %v19269_v53 = vsel %vm24500_vm4, %v3101_v24, %v3103_v10  ;;  %v19280_v61 = vsel %vm24500_vm4, %v3103_v10, %v3105_v41  ;;  %v19301_v24 = vld [vmem:[%s18221_s22 + $0xf0] sm:$0xff]  ;;  %v19305_v41 = vsel %vm24500_vm4, %v3109_v39, %v3111_v19  ;;  %v3119_v39 = vrot.slane %v24670_v21, 4 }
 0x199   : > { %15559 = vmatprep.mubr.msk.f32.mxu0 %vm24496_vm1, %v19160_v50  ;;  %24677 = vst [vmem:[#allocation9_spill] sm:$0xff] %v19301_v24  ;;  %v3113_v10 = vrot.slane %v19301_v24, 4 }
 0x19a   : > { %v19340_v21 = vsel %vm24500_vm4, %v3119_v39, %v3121_v36 }
 0x19b   : > { %v19316_v56 = vsel %vm24500_vm4, %v3111_v19, %v3113_v10  ;;  %v19320_v24 = vsel %vm24500_vm4, %v3113_v10, %v3115_v26  ;;  %v19332_v19 = vsel %vm24500_vm4, %v3117_v52, %v3119_v39  ;;  %v3125_v10 = vrot.slane %v18465_v37, 4  ;;  %v13328_v39 = vld [vmem:[%s24458_s1 + $0x1d8] sm:$0xff] }
 0x19c   : > { %15560 = vmatmul.mubr.msk.f32.gmra.mrb[10].mxu0 %vm24496_vm1, %v19172_v42  ;;  %v3124_v26 = vsel %vm24500_vm4, %v3121_v36, %v3123_v62  ;;  %v24495_v52 = vrot.slane %v18895_v5, 4  ;;  %v13327_v36 = vld [vmem:[%s24458_s1 + $0x1d0] sm:$0xff] }
 0x19d   : > { %15562 = vmatprep.mubr.msk.f32.mxu0 %vm24496_vm1, %v19179_v1  ;;  %v3126_v63 = vsel %vm24500_vm4, %v3123_v62, %v3125_v10  ;;  %v3128_v0 = vsel %vm24500_vm4, %v3125_v10, %v3127_v23  ;;  %v16968_v62 = vpack.c.bf16 %v13328_v39, %v13327_v36  ;;  %v13329_v10 = vld [vmem:[%s24458_s1 + $0x1e0] sm:$0xff]  ;;  %v13332_v36 = vld [vmem:[%s24458_s1 + $0x1f8] sm:$0xff]  ;;  %v3811_v39 = vrot.slane %v19143_v6, 5 }
 0x19e   : > { %v19356_v37 = vsel %vm24500_vm4, %v3127_v23, %v24495_v52  ;;  %v13330_v23 = vld [vmem:[%s24458_s1 + $0x1e8] sm:$0xff] }
 0x19f   : > { %v16972_v52 = vpack.c.bf16 %v13330_v23, %v13329_v10  ;;  %v3813_v23 = vrot.slane %v19156_v44, 5 }
 0x1a0   : > { %15563 = vmatmul.mubr.msk.f32.gmra.mrb[12].mxu0 %vm24496_vm1, %v19190_v4 }
 0x1a1   : > { %15565 = vmatprep.mubr.msk.f32.mxu0 %vm24496_vm1, %v19197_v2 }
 0x1a4   : > { %15566 = vmatmul.mubr.msk.f32.gmra.mrb[14].mxu0 %vm24496_vm1, %v19208_v9 }
 0x1a5   : > { %15568 = vmatprep.mubr.msk.f32.mxu0 %vm24496_vm1, %v19215_v17 }
 0x1a8   : > { %15569 = vmatmul.mubr.msk.f32.gmra.mrb[16].mxu0 %vm24496_vm1, %v19226_v15 }
 0x1a9   : > { %15571 = vmatprep.mubr.msk.f32.mxu0 %vm24496_vm1, %v19233_v33 }
 0x1ac   : > { %15572 = vmatmul.mubr.msk.f32.gmra.mrb[18].mxu0 %vm24496_vm1, %v19244_v46 }
 0x1ad   : > { %15574 = vmatprep.mubr.msk.f32.mxu0 %vm24496_vm1, %v19251_v60 }
 0x1b0   : > { %15575 = vmatmul.mubr.msk.f32.gmra.mrb[20].mxu0 %vm24496_vm1, %v19262_v32 }
 0x1b1   : > { %15577 = vmatprep.mubr.msk.f32.mxu0 %vm24496_vm1, %v19269_v53 }
 0x1b4   : > { %15578 = vmatmul.mubr.msk.f32.gmra.mrb[22].mxu0 %vm24496_vm1, %v19280_v61 }
 0x1b5   : > { %15580 = vmatprep.mubr.msk.f32.mxu0 %vm24496_vm1, %v19287_v45 }
 0x1b8   : > { %15581 = vmatmul.mubr.msk.f32.gmra.mrb[24].mxu0 %vm24496_vm1, %v19298_v48 }
 0x1b9   : > { %15583 = vmatprep.mubr.msk.f32.mxu0 %vm24496_vm1, %v19305_v41 }
 0x1bc   : > { %15584 = vmatmul.mubr.msk.f32.gmra.mrb[26].mxu0 %vm24496_vm1, %v19316_v56 }
 0x1bd   : > { %15586 = vmatprep.mubr.msk.f32.mxu0 %vm24496_vm1, %v19320_v24 }
 0x1c0   : > { %15587 = vmatmul.mubr.msk.f32.gmra.mrb[28].mxu0 %vm24496_vm1, %v19328_v29 }
 0x1c1   : > { %15589 = vmatprep.mubr.msk.f32.mxu0 %vm24496_vm1, %v19332_v19 }
 0x1c4   : > { %15590 = vmatmul.mubr.msk.f32.gmra.mrb[30].mxu0 %vm24496_vm1, %v19340_v21 }
 0x1c5   : > { %15592 = vmatprep.mubr.msk.f32.mxu0 %vm24496_vm1, %v3124_v26 }
 0x1c8   : > { %15593 = vmatmul.mubr.msk.f32.gmra.mrb[32].mxu0 %vm24496_vm1, %v3126_v63 }
 0x1c9   : > { %15595 = vmatprep.mubr.msk.f32.mxu0 %vm24496_vm1, %v3128_v0 }
 0x1cc   : > { %15596 = vmatmul.mubr.msk.f32.gmra.mrb[34].mxu0 %vm24496_vm1, %v19356_v37 }
 0x1cd   : > { %15614 = vmatprep.mubr.msk.f32.mxu0 %vm24496_vm1, %v19068_v58  ;;  %v13331_v58 = vld [vmem:[%s24458_s1 + $0x1f0] sm:$0xff] }
 0x1d0   : > { %15615 = vmatmul.mubr.msk.f32.vlgmr.msra.gmra.mrb[0].mxu0 %vm24496_vm1, %v19085_v11  ;;  %v16976_v11 = vpack.c.bf16 %v13332_v36, %v13331_v58  ;;  %v3815_v36 = vrot.slane %v19163_v40, 5 }
 0x1d1   : > { %16967 = vmatpush3.bf16.msra.mxu0 %v19146_v43  ;;  %15617 = vmatprep.mubr.msk.f32.mxu0 %vm24496_vm1, %v19092_v31  ;;  %v13369_v31 = vld [vmem:[%s24458_s1 + $0x200] sm:$0xff]  ;;  %v13370_v43 = vld [vmem:[%s24458_s1 + $0x208] sm:$0xff] }
 0x1d2   : > { %16969 = vmatprep.subr.bf16.mxu0 %v16968_v62 }
 0x1d4   : > { %15618 = vmatmul.mubr.msk.f32.gmra.mrb[2].mxu0 %vm24496_vm1, %v19109_v20  ;;  %v16980_v20 = vpack.c.bf16 %v13370_v43, %v13369_v31  ;;  %v3817_v31 = vrot.slane %v19175_v49, 5  ;;  %v3816_v43 = vsel %vm24499_vm5, %v3813_v23, %v3815_v36 }
 0x1d5   : > { %15620 = vmatprep.mubr.msk.f32.mxu0 %vm24496_vm1, %v19116_v55  ;;  %16971 = vmatpush3.bf16.msra.mxu0 %v16968_v62  ;;  %v19444_v55 = vld [vmem:[%s18221_s22 + $0x138] sm:$0xff] }
 0x1d6   : > { %16973 = vmatprep.subr.bf16.mxu0 %v16972_v52 }
 0x1d8   : > { %15621 = vmatmul.mubr.msk.f32.gmra.mrb[4].mxu0 %vm24496_vm1, %v19133_v12  ;;  %v3495_v12 = vrot.slane %v19444_v55, 4 }
 0x1d9   : > { %15623 = vmatprep.mubr.msk.f32.mxu0 %vm24496_vm1, %v19140_v47  ;;  %16975 = vmatpush3.bf16.msra.mxu0 %v16972_v52  ;;  %v19451_v47 = vld [vmem:[%s18221_s22 + $0x140] sm:$0x3f]  ;;  %v3809_v52 = vrot.slane %v19136_v34, 5 }
 0x1da   : > { %16977 = vmatprep.subr.bf16.mxu0 %v16976_v11 }
 0x1db   : > { %v3812_v58 = vsel %vm24499_vm5, %v3809_v52, %v3811_v39 }
 0x1dc   : > { %15624 = vmatmul.mubr.msk.f32.gmra.mrb[6].mxu0 %vm24496_vm1, %v19153_v30  ;;  %v3497_v30 = vrot.slane %v19451_v47, 4 }
 0x1dd   : > { %15626 = vmatprep.mubr.msk.f32.mxu0 %vm24496_vm1, %v19160_v50  ;;  %16979 = vmatpush3.bf16.msra.mxu0 %v16976_v11  ;;  %v24679_v50 = vrot.slane %v18895_v5, 4  ;;  %v3814_v11 = vsel %vm24499_vm5, %v3811_v39, %v3813_v23 }
 0x1de   : > { %16981 = vmatprep.subr.bf16.mxu0 %v16980_v20 }
 0x1e0   : > { %15627 = vmatmul.mubr.msk.f32.gmra.mrb[8].mxu0 %vm24496_vm1, %v19172_v42  ;;  %v3496_v42 = vsel %vm24500_vm4, %v24679_v50, %v3495_v12 }
 0x1e1   : > { %15629 = vmatprep.mubr.msk.f32.mxu0 %vm24496_vm1, %v19179_v1  ;;  %v3794_v1 = vrot.slane %v19046_v3, 5 }
 0x1e4   : > { %15630 = vmatmul.mubr.msk.f32.gmra.mrb[10].mxu0 %vm24496_vm1, %v19190_v4  ;;  %v3795_v4 = vrot.slane %v19051_v8, 5 }
 0x1e5   : > { %15632 = vmatprep.mubr.msk.f32.mxu0 %vm24496_vm1, %v19197_v2  ;;  %v3498_v2 = vsel %vm24500_vm4, %v3495_v12, %v3497_v30  ;;  %v3818_v12 = vsel %vm24499_vm5, %v3815_v36, %v3817_v31  ;;  %v3821_v30 = vrot.slane %v19193_v13, 5 }
 0x1e8   : > { %15633 = vmatmul.mubr.msk.f32.gmra.mrb[12].mxu0 %vm24496_vm1, %v19208_v9  ;;  %v3797_v9 = vrot.slane %v19064_v18, 5 }
 0x1e9   : > { %15635 = vmatprep.mubr.msk.f32.mxu0 %vm24496_vm1, %v19215_v17  ;;  %v3796_v17 = vsel %vm24499_vm5, %v3794_v1, %v3795_v4 }
 0x1ec   : > { %15636 = vmatmul.mubr.msk.f32.gmra.mrb[14].mxu0 %vm24496_vm1, %v19226_v15  ;;  %v3799_v15 = vrot.slane %v19071_v7, 5 }
 0x1ed   : > { %15638 = vmatprep.mubr.msk.f32.mxu0 %vm24496_vm1, %v19233_v33  ;;  %v13371_v33 = vld [vmem:[%s24458_s1 + $0x210] sm:$0xff] }
 0x1f0   : > { %15639 = vmatmul.mubr.msk.f32.gmra.mrb[16].mxu0 %vm24496_vm1, %v19244_v46  ;;  %v13372_v46 = vld [vmem:[%s24458_s1 + $0x218] sm:$0xff] }
 0x1f1   : > { %15641 = vmatprep.mubr.msk.f32.mxu0 %vm24496_vm1, %v19251_v60  ;;  %v3798_v60 = vsel %vm24499_vm5, %v3795_v4, %v3797_v9  ;;  %v3825_v4 = vrot.slane %v19211_v14, 5 }
 0x1f4   : > { %15642 = vmatmul.mubr.msk.f32.gmra.mrb[18].mxu0 %vm24496_vm1, %v19262_v32  ;;  %v3800_v32 = vsel %vm24499_vm5, %v3797_v9, %v3799_v15  ;;  %v3827_v9 = vrot.slane %v19218_v54, 5 }
 0x1f5   : > { %15644 = vmatprep.mubr.msk.f32.mxu0 %vm24496_vm1, %v19269_v53  ;;  %v3803_v53 = vrot.slane %v19095_v35, 5 }
 0x1f8   : > { %15645 = vmatmul.mubr.msk.f32.gmra.mrb[20].mxu0 %vm24496_vm1, %v19280_v61  ;;  %v16984_v61 = vpack.c.bf16 %v13372_v46, %v13371_v33  ;;  %v3828_v33 = vsel %vm24499_vm5, %v3825_v4, %v3827_v9  ;;  %v3831_v46 = vrot.slane %v19236_v38, 5 }
 0x1f9   : > { %15647 = vmatprep.mubr.msk.f32.mxu0 %vm24496_vm1, %v19287_v45  ;;  %v13374_v45 = vld [vmem:[%s24458_s1 + $0x228] sm:$0xff] }
 0x1fc   : > { %15648 = vmatmul.mubr.msk.f32.gmra.mrb[22].mxu0 %vm24496_vm1, %v19298_v48 }
 0x1fd   : > { %15650 = vmatprep.mubr.msk.f32.mxu0 %vm24496_vm1, %v19305_v41 }
 0x200   : > { %15651 = vmatmul.mubr.msk.f32.gmra.mrb[24].mxu0 %vm24496_vm1, %v19316_v56  ;;  %v3807_v56 = vrot.slane %v19119_v25, 5 }
 0x201   : > { %15653 = vmatprep.mubr.msk.f32.mxu0 %vm24496_vm1, %v19320_v24  ;;  %v3805_v24 = vrot.slane %v19112_v51, 5 }
 0x202   : > { %v3810_v10 = vsel %vm24499_vm5, %v3807_v56, %v3809_v52  ;;  %v24684_v52 = vld [vmem:[#allocation8_spill] sm:$0xff] }
 0x204   : > { %15654 = vmatmul.mubr.msk.f32.gmra.mrb[26].mxu0 %vm24496_vm1, %v19328_v29  ;;  %v13373_v29 = vld [vmem:[%s24458_s1 + $0x220] sm:$0xff] }
 0x205   : > { %15656 = vmatprep.mubr.msk.f32.mxu0 %vm24496_vm1, %v19332_v19  ;;  %v16988_v19 = vpack.c.bf16 %v13374_v45, %v13373_v29  ;;  %v24681_v45 = vld [vmem:[#allocation5_spill] sm:$0xff] }
 0x208   : > { %15657 = vmatmul.mubr.msk.f32.gmra.mrb[28].mxu0 %vm24496_vm1, %v19340_v21  ;;  %v13375_v21 = vld [vmem:[%s24458_s1 + $0x230] sm:$0xff] }
 0x209   : > { %15659 = vmatprep.mubr.msk.f32.mxu0 %vm24496_vm1, %v3124_v26  ;;  %v13376_v26 = vld [vmem:[%s24458_s1 + $0x238] sm:$0xff] }
 0x20a   : > { %v16992_v62 = vpack.c.bf16 %v13376_v26, %v13375_v21  ;;  %v24683_v21 = vld [vmem:[#allocation7_spill] sm:$0xff] }
 0x20b   : > { %v3841_v26 = vrot.slane %v24683_v21, 5 }
 0x20c   : > { %15660 = vmatmul.mubr.msk.f32.gmra.mrb[30].mxu0 %vm24496_vm1, %v3126_v63  ;;  %v3806_v63 = vsel %vm24499_vm5, %v3803_v53, %v3805_v24 }
 0x20d   : > { %15662 = vmatprep.mubr.msk.f32.mxu0 %vm24496_vm1, %v3128_v0  ;;  %v3801_v0 = vrot.slane %v19088_v22, 5 }
 0x20f   : > { %v3802_v48 = vsel %vm24499_vm5, %v3799_v15, %v3801_v0  ;;  %v3804_v41 = vsel %vm24499_vm5, %v3801_v0, %v3803_v53  ;;  %v3829_v15 = vrot.slane %v19229_v27, 5  ;;  %v3833_v0 = vrot.slane %v19247_v16, 5  ;;  %v24680_v53 = vld [vmem:[#allocation4_spill] sm:$0xff] }
 0x210   : > { %15663 = vmatmul.mubr.msk.f32.gmra.mrb[32].mxu0 %vm24496_vm1, %v19356_v37  ;;  %v3808_v37 = vsel %vm24499_vm5, %v3805_v24, %v3807_v56 }
 0x211   : > { %15665 = vmatprep.mubr.msk.f32.mxu0 %vm24496_vm1, %v3496_v42  ;;  %v3823_v42 = vrot.slane %v19200_v57, 5  ;;  %v3834_v29 = vsel %vm24499_vm5, %v3831_v46, %v3833_v0 }
 0x214   : > { %15666 = vmatmul.mubr.msk.f32.gmra.mrb[34].mxu0 %vm24496_vm1, %v3498_v2  ;;  %v3824_v2 = vsel %vm24499_vm5, %v3821_v30, %v3823_v42 }
 0x215   : > { %15684 = vmatprep.mubr.msk.f32.mxu0 %vm24496_vm1, %v3796_v17  ;;  %v3826_v17 = vsel %vm24499_vm5, %v3823_v42, %v3825_v4  ;;  %v19574_v42 = vld [vmem:[%s18221_s22 + $0x110] sm:$0xff] }
 0x218   : > { %15685 = vmatmul.mubr.msk.f32.vlgmr.msra.gmra.mrb[0].mxu0 %vm24496_vm1, %v3798_v60  ;;  %v3830_v60 = vsel %vm24499_vm5, %v3827_v9, %v3829_v15 }
 0x219   : > { %16983 = vmatpush3.bf16.msra.mxu0 %v16980_v20  ;;  %15687 = vmatprep.mubr.msk.f32.mxu0 %vm24496_vm1, %v3800_v32  ;;  %v3819_v20 = vrot.slane %v19182_v59, 5  ;;  %v3832_v32 = vsel %vm24499_vm5, %v3829_v15, %v3831_v46  ;;  %v19586_v15 = vld [vmem:[%s18221_s22 + $0x120] sm:$0xff] }
 0x21a   : > { %16985 = vmatprep.subr.bf16.mxu0 %v16984_v61 }
 0x21b   : > { %v3820_v50 = vsel %vm24499_vm5, %v3817_v31, %v3819_v20  ;;  %v3822_v1 = vsel %vm24499_vm5, %v3819_v20, %v3821_v30  ;;  %v19562_v31 = vld [vmem:[%s18221_s22 + $0x100] sm:$0xff] }
 0x21c   : > { %15688 = vmatmul.mubr.msk.f32.gmra.mrb[2].mxu0 %vm24496_vm1, %v3802_v48  ;;  %v3837_v48 = vrot.slane %v24681_v45, 5 }
 0x21d   : > { %15690 = vmatprep.mubr.msk.f32.mxu0 %vm24496_vm1, %v3804_v41  ;;  %16987 = vmatpush3.bf16.msra.mxu0 %v16984_v61  ;;  %v3835_v61 = vrot.slane %v24680_v53, 5  ;;  %v24682_v41 = vld [vmem:[#allocation6_spill] sm:$0xff] }
 0x21e   : > { %16989 = vmatprep.subr.bf16.mxu0 %v16988_v19  ;;  %v3839_v56 = vrot.slane %v24682_v41, 5 }
 0x21f   : > { %v3836_v24 = vsel %vm24499_vm5, %v3833_v0, %v3835_v61 }
 0x220   : > { %15691 = vmatmul.mubr.msk.f32.gmra.mrb[4].mxu0 %vm24496_vm1, %v3806_v63  ;;  %v3840_v63 = vsel %vm24499_vm5, %v3837_v48, %v3839_v56  ;;  %v3842_v39 = vsel %vm24499_vm5, %v3839_v56, %v3841_v26  ;;  %v4230_v56 = vrot.slane %v19046_v3, 6 }
 0x221   : > { %15693 = vmatprep.mubr.msk.f32.mxu0 %vm24496_vm1, %v3808_v37  ;;  %16991 = vmatpush3.bf16.msra.mxu0 %v16988_v19  ;;  %v3838_v19 = vsel %vm24499_vm5, %v3835_v61, %v3837_v48  ;;  %v3843_v37 = vrot.slane %v24684_v52, 5 }
 0x222   : > { %16993 = vmatprep.subr.bf16.mxu0 %v16992_v62 }
 0x223   : > { %v3844_v23 = vsel %vm24499_vm5, %v3841_v26, %v3843_v37  ;;  %v4233_v26 = vrot.slane %v19064_v18, 6 }
 0x224   : > { %15694 = vmatmul.mubr.msk.f32.gmra.mrb[6].mxu0 %vm24496_vm1, %v3810_v10 }
 0x225   : > { %15696 = vmatprep.mubr.msk.f32.mxu0 %vm24496_vm1, %v3812_v58  ;;  %16995 = vmatpush3.bf16.msra.mxu0 %v16992_v62  ;;  %v24685_v62 = vld [vmem:[#allocation9_spill] sm:$0xff]  ;;  %v24686_v58 = vld [vmem:[#allocation10_spill] sm:$0xff] }
 0x226   : > { %v3845_v10 = vrot.slane %v24685_v62, 5  ;;  %v3847_v36 = vrot.slane %v24686_v58, 5 }
 0x228   : > { %15697 = vmatmul.mubr.msk.f32.gmra.mrb[8].mxu0 %vm24496_vm1, %v3814_v11  ;;  %v3846_v11 = vsel %vm24499_vm5, %v3843_v37, %v3845_v10  ;;  %v3848_v20 = vsel %vm24499_vm5, %v3845_v10, %v3847_v36  ;;  %v4235_v37 = vrot.slane %v19071_v7, 6  ;;  %v4239_v10 = vrot.slane %v19095_v35, 6 }
 0x229   : > { %15699 = vmatprep.mubr.msk.f32.mxu0 %vm24496_vm1, %v3816_v43  ;;  %v3849_v43 = vrot.slane %v19562_v31, 5  ;;  %v4241_v7 = vrot.slane %v19112_v51, 6  ;;  %v4245_v35 = vrot.slane %v19136_v34, 6 }
 0x22c   : > { %15700 = vmatmul.mubr.msk.f32.gmra.mrb[10].mxu0 %vm24496_vm1, %v3818_v12  ;;  %v19567_v12 = vld [vmem:[%s18221_s22 + $0x108] sm:$0xff] }
 0x22d   : > { %15702 = vmatprep.mubr.msk.f32.mxu0 %vm24496_vm1, %v3820_v50  ;;  %v3851_v30 = vrot.slane %v19567_v12, 5  ;;  %v3850_v50 = vsel %vm24499_vm5, %v3847_v36, %v3849_v43  ;;  %v4243_v36 = vrot.slane %v19119_v25, 6  ;;  %v4249_v25 = vrot.slane %v19156_v44, 6 }
 0x22f   : > { %v3852_v4 = vsel %vm24499_vm5, %v3849_v43, %v3851_v30  ;;  %v4247_v43 = vrot.slane %v19143_v6, 6  ;;  %v4246_v51 = vsel %vm24497_vm6, %v4243_v36, %v4245_v35  ;;  %v4253_v6 = vrot.slane %v19175_v49, 6 }
 0x230   : > { %15703 = vmatmul.mubr.msk.f32.gmra.mrb[12].mxu0 %vm24496_vm1, %v3822_v1  ;;  %v3853_v1 = vrot.slane %v19574_v42, 5 }
 0x231   : > { %15705 = vmatprep.mubr.msk.f32.mxu0 %vm24496_vm1, %v3824_v2  ;;  %v19579_v2 = vld [vmem:[%s18221_s22 + $0x118] sm:$0xff]  ;;  %v4250_v34 = vsel %vm24497_vm6, %v4247_v43, %v4249_v25 }
 0x232   : > { %v3855_v9 = vrot.slane %v19579_v2, 5 }
 0x234   : > { %15706 = vmatmul.mubr.msk.f32.gmra.mrb[14].mxu0 %vm24496_vm1, %v3826_v17  ;;  %v3854_v17 = vsel %vm24499_vm5, %v3851_v30, %v3853_v1  ;;  %v3856_v46 = vsel %vm24499_vm5, %v3853_v1, %v3855_v9  ;;  %v4251_v30 = vrot.slane %v19163_v40, 6  ;;  %v4255_v1 = vrot.slane %v19182_v59, 6 }
 0x235   : > { %15708 = vmatprep.mubr.msk.f32.mxu0 %vm24496_vm1, %v3828_v33  ;;  %v3857_v33 = vrot.slane %v19586_v15, 5  ;;  %v4257_v40 = vrot.slane %v19193_v13, 6  ;;  %v4261_v59 = vrot.slane %v19211_v14, 6 }
 0x236   : > { %v4254_v44 = vsel %vm24497_vm6, %v4251_v30, %v4253_v6 }
 0x237   : > { %v3858_v0 = vsel %vm24499_vm5, %v3855_v9, %v3857_v33  ;;  %v4259_v9 = vrot.slane %v19200_v57, 6  ;;  %v4258_v49 = vsel %vm24497_vm6, %v4255_v1, %v4257_v40  ;;  %v4265_v57 = vrot.slane %v19229_v27, 6 }
 0x238   : > { %15709 = vmatmul.mubr.msk.f32.gmra.mrb[16].mxu0 %vm24496_vm1, %v3830_v60  ;;  %v3859_v60 = vrot.slane %v18888_v28, 5  ;;  %v3865_v28 = vrot.slane %v19451_v47, 5 }
 0x239   : > { %15711 = vmatprep.mubr.msk.f32.mxu0 %vm24496_vm1, %v3832_v32  ;;  %v3861_v32 = vrot.slane %v18895_v5, 5  ;;  %v4262_v13 = vsel %vm24497_vm6, %v4259_v9, %v4261_v59 }
 0x23a   : > { %v3860_v61 = vsel %vm24499_vm5, %v3857_v33, %v3859_v60  ;;  %v4263_v33 = vrot.slane %v19218_v54, 6  ;;  %v4269_v54 = vrot.slane %v19247_v16, 6 }
 0x23b   : > { %v3862_v48 = vsel %vm24499_vm5, %v3859_v60, %v3861_v32  ;;  %v4267_v60 = vrot.slane %v19236_v38, 6  ;;  %v4273_v38 = vrot.slane %v24681_v45, 6 }
 0x23c   : > { %15712 = vmatmul.mubr.msk.f32.gmra.mrb[18].mxu0 %vm24496_vm1, %v3834_v29  ;;  %v3863_v29 = vrot.slane %v19444_v55, 5  ;;  %v4266_v14 = vsel %vm24497_vm6, %v4263_v33, %v4265_v57 }
 0x23d   : > { %15714 = vmatprep.mubr.msk.f32.mxu0 %vm24496_vm1, %v3836_v24  ;;  %v4270_v27 = vsel %vm24497_vm6, %v4267_v60, %v4269_v54 }
 0x23e   : > { %v3864_v24 = vsel %vm24499_vm5, %v3861_v32, %v3863_v29  ;;  %v3866_v5 = vsel %vm24499_vm5, %v3863_v29, %v3865_v28  ;;  %v4271_v32 = vrot.slane %v24680_v53, 6  ;;  %v4275_v29 = vrot.slane %v24682_v41, 6 }
 0x23f   : > { %v4277_v53 = vrot.slane %v24683_v21, 6  ;;  %v4279_v28 = vrot.slane %v24684_v52, 6  ;;  %v4281_v41 = vrot.slane %v24685_v62, 6  ;;  %v4285_v52 = vrot.slane %v19562_v31, 6 }
 0x240   : > { %15715 = vmatmul.mubr.msk.f32.gmra.mrb[20].mxu0 %vm24496_vm1, %v3838_v19  ;;  %v4231_v19 = vrot.slane %v19051_v8, 6  ;;  %v4237_v8 = vrot.slane %v19088_v22, 6  ;;  %v4242_v22 = vsel %vm24497_vm6, %v4239_v10, %v4241_v7  ;;  %v4274_v16 = vsel %vm24497_vm6, %v4271_v32, %v4273_v38 }
 0x241   : > { %15717 = vmatprep.mubr.msk.f32.mxu0 %vm24496_vm1, %v3840_v63  ;;  %v4278_v45 = vsel %vm24497_vm6, %v4275_v29, %v4277_v53  ;;  %v4282_v21 = vsel %vm24497_vm6, %v4279_v28, %v4281_v41 }
 0x242   : > { %v4232_v63 = vsel %vm24497_vm6, %v4230_v56, %v4231_v19  ;;  %v4234_v3 = vsel %vm24497_vm6, %v4231_v19, %v4233_v26  ;;  %v4238_v18 = vsel %vm24497_vm6, %v4235_v37, %v4237_v8  ;;  %v4283_v56 = vrot.slane %v24686_v58, 6 }
 0x243   : > { %v4289_v58 = vrot.slane %v19574_v42, 6 }
 0x244   : > { %15718 = vmatmul.mubr.msk.f32.gmra.mrb[22].mxu0 %vm24496_vm1, %v3842_v39  ;;  %v4236_v39 = vsel %vm24497_vm6, %v4233_v26, %v4235_v37  ;;  %v4284_v19 = vsel %vm24497_vm6, %v4281_v41, %v4283_v56  ;;  %v4286_v62 = vsel %vm24497_vm6, %v4283_v56, %v4285_v52 }
 0x245   : > { %15720 = vmatprep.mubr.msk.f32.mxu0 %vm24496_vm1, %v3844_v23  ;;  %v4240_v23 = vsel %vm24497_vm6, %v4237_v8, %v4239_v10 }
 0x248   : > { %15721 = vmatmul.mubr.msk.f32.gmra.mrb[24].mxu0 %vm24496_vm1, %v3846_v11  ;;  %v4244_v11 = vsel %vm24497_vm6, %v4241_v7, %v4243_v36  ;;  %v4301_v7 = vrot.slane %v19451_v47, 6 }
 0x249   : > { %15723 = vmatprep.mubr.msk.f32.mxu0 %vm24496_vm1, %v3848_v20  ;;  %v4248_v20 = vsel %vm24497_vm6, %v4245_v35, %v4247_v43 }
 0x24c   : > { %15724 = vmatmul.mubr.msk.f32.gmra.mrb[26].mxu0 %vm24496_vm1, %v3850_v50  ;;  %v4252_v50 = vsel %vm24497_vm6, %v4249_v25, %v4251_v30 }
 0x24d   : > { %15726 = vmatprep.mubr.msk.f32.mxu0 %vm24496_vm1, %v3852_v4  ;;  %v4256_v4 = vsel %vm24497_vm6, %v4253_v6, %v4255_v1 }
 0x250   : > { %15727 = vmatmul.mubr.msk.f32.gmra.mrb[28].mxu0 %vm24496_vm1, %v3854_v17  ;;  %v4260_v17 = vsel %vm24497_vm6, %v4257_v40, %v4259_v9 }
 0x251   : > { %15729 = vmatprep.mubr.msk.f32.mxu0 %vm24496_vm1, %v3856_v46  ;;  %v4264_v46 = vsel %vm24497_vm6, %v4261_v59, %v4263_v33 }
 0x254   : > { %15730 = vmatmul.mubr.msk.f32.gmra.mrb[30].mxu0 %vm24496_vm1, %v3858_v0  ;;  %v4268_v0 = vsel %vm24497_vm6, %v4265_v57, %v4267_v60 }
 0x255   : > { %15732 = vmatprep.mubr.msk.f32.mxu0 %vm24496_vm1, %v3860_v61  ;;  %v4272_v61 = vsel %vm24497_vm6, %v4269_v54, %v4271_v32 }
 0x258   : > { %15733 = vmatmul.mubr.msk.f32.gmra.mrb[32].mxu0 %vm24496_vm1, %v3862_v48  ;;  %v4276_v48 = vsel %vm24497_vm6, %v4273_v38, %v4275_v29 }
 0x259   : > { %15735 = vmatprep.mubr.msk.f32.mxu0 %vm24496_vm1, %v3864_v24  ;;  %v4280_v24 = vsel %vm24497_vm6, %v4277_v53, %v4279_v28 }
 0x25c   : > { %15736 = vmatmul.mubr.msk.f32.gmra.mrb[34].mxu0 %vm24496_vm1, %v3866_v5  ;;  %v4287_v5 = vrot.slane %v19567_v12, 6  ;;  %v4293_v12 = vrot.slane %v19586_v15, 6 }
 0x25d   : > { %15754 = vmatprep.mubr.msk.f32.mxu0 %vm24496_vm1, %v4232_v63  ;;  %v4291_v63 = vrot.slane %v19579_v2, 6 }
 0x25e   : > { %v4288_v26 = vsel %vm24497_vm6, %v4285_v52, %v4287_v5  ;;  %v4290_v31 = vsel %vm24497_vm6, %v4287_v5, %v4289_v58 }
 0x25f   : > { %v4292_v37 = vsel %vm24497_vm6, %v4289_v58, %v4291_v63  ;;  %v4294_v42 = vsel %vm24497_vm6, %v4291_v63, %v4293_v12 }
 0x260   : > { %15755 = vmatmul.mubr.msk.f32.vlgmr.msra.gmra.mrb[0].mxu0 %vm24496_vm1, %v4234_v3  ;;  %v18056_v3 = vld [vmem:[%s18221_s22 + $0x128] sm:$0xff] }
 0x261   : > { %15757 = vmatprep.mubr.msk.f32.mxu0 %vm24496_vm1, %v4236_v39  ;;  %v4295_v8 = vrot.slane %v18056_v3, 6  ;;  %v18057_v39 = vld [vmem:[%s18221_s22 + $0x130] sm:$0xff] }
 0x262   : > { %v4297_v2 = vrot.slane %v18057_v39, 6 }
 0x263   : > { %v4296_v10 = vsel %vm24497_vm6, %v4293_v12, %v4295_v8 }
 0x264   : > { %15758 = vmatmul.mubr.msk.f32.gmra.mrb[2].mxu0 %vm24496_vm1, %v4238_v18  ;;  %v4299_v18 = vrot.slane %v19444_v55, 6  ;;  %v4298_v15 = vsel %vm24497_vm6, %v4295_v8, %v4297_v2 }
 0x265   : > { %15760 = vmatprep.mubr.msk.f32.mxu0 %vm24496_vm1, %v4240_v23 }
 0x266   : > { %v4300_v23 = vsel %vm24497_vm6, %v4297_v2, %v4299_v18  ;;  %v4302_v36 = vsel %vm24497_vm6, %v4299_v18, %v4301_v7 }
 0x268   : > { %15761 = vmatmul.mubr.msk.f32.gmra.mrb[4].mxu0 %vm24496_vm1, %v4242_v22  ;;  %v320_v22 = vlaneseq }
 0x269   : > { %15763 = vmatprep.mubr.msk.f32.mxu0 %vm24496_vm1, %v4244_v11 }
 0x26a   : > { %v19715_v55 = vshrl.u32 %v320_v22, 7 }
 0x26c   : > { %15764 = vmatmul.mubr.msk.f32.gmra.mrb[6].mxu0 %vm24496_vm1, %v4246_v51  ;;  %v322_v35 = vadd.s32 8, %v19715_v55  ;;  %v324_v47 = vadd.s32 24, %v19715_v55  ;;  %v19723_v51 = vmul.u32.u64.low 3817748708, %v19715_v55  ;;  %v19724_v25 = vmul.u32.u64.high 3817748708, %v19715_v55, %v19723_v51 }
 0x26d   : > { %15766 = vmatprep.mubr.msk.f32.mxu0 %vm24496_vm1, %v4248_v20  ;;  %v323_v6 = vadd.s32 16, %v19715_v55  ;;  %v327_v33 = vadd.s32 48, %v19715_v55  ;;  %v19771_v58 = vadd.s32 80, %v19715_v55  ;;  %v19787_v22 = vadd.s32 88, %v19715_v55 }
 0x26e   : > { %v19718_v11 = vmul.u32.u64.low 3817748708, %v322_v35  ;;  %v19719_v43 = vmul.u32.u64.high 3817748708, %v322_v35, %v19718_v11  ;;  %v363_v9 = vshrl.u32 %v19724_v25, 4 }
 0x270   : > { %15767 = vmatmul.mubr.msk.f32.gmra.mrb[8].mxu0 %vm24496_vm1, %v4250_v34  ;;  %v374_v20 = vshrl.u32 %v19719_v43, 4  ;;  %v19727_v30 = vmul.u32.u64.low 3817748708, %v324_v47  ;;  %v19728_v34 = vmul.u32.u64.high 3817748708, %v324_v47, %v19727_v30  ;;  %v364_v60 = vmul.u32 18, %v363_v9 }
 0x271   : > { %15769 = vmatprep.mubr.msk.f32.mxu0 %vm24496_vm1, %v4252_v50  ;;  %v326_v50 = vadd.s32 40, %v19715_v55 }
 0x272   : > { %v375_v1 = vmul.u32 18, %v374_v20  ;;  %v365_v29 = vsub.s32 %v19715_v55, %v364_v60  ;;  %v19800_v20 = vadd.s32 96, %v19715_v55 }
 0x274   : > { %15770 = vmatmul.mubr.msk.f32.gmra.mrb[10].mxu0 %vm24496_vm1, %v4254_v44  ;;  %v19732_v44 = vmul.u32.u64.low 3817748708, %v323_v6  ;;  %v19733_v40 = vmul.u32.u64.high 3817748708, %v323_v6, %v19732_v44  ;;  %vm753_vm10 = vcmp.ne.s32.totalorder %v365_v29, 0  ;;  %vm789_vm11 = vcmp.lt.s32.totalorder %v365_v29, 0 }
 0x275   : > { %15772 = vmatprep.mubr.msk.f32.mxu0 %vm24496_vm1, %v4256_v4  ;;  %v325_v4 = vadd.s32 32, %v19715_v55  ;;  %v861_v5 = vadd.s32 18, %v365_v29 }
 0x278   : > { %15773 = vmatmul.mubr.msk.f32.gmra.mrb[12].mxu0 %vm24496_vm1, %v4258_v49  ;;  %v19737_v49 = vmul.u32.u64.low 3817748708, %v326_v50  ;;  %v19738_v59 = vmul.u32.u64.high 3817748708, %v326_v50, %v19737_v49 }
 0x279   : > { %15775 = vmatprep.mubr.msk.f32.mxu0 %vm24496_vm1, %v4260_v17  ;;  %v376_v17 = vsub.s32 %v322_v35, %v375_v1  ;;  %v24505_v35 = vmov 0.0  }
 0x27b   : > { %vm754_vm7 = vcmp.ne.s32.totalorder %v376_v17, 0  ;;  %vm790_vm8 = vcmp.lt.s32.totalorder %v376_v17, 0  ;;  %v862_v38 = vadd.s32 18, %v376_v17 }
 0x27c   : > { %15776 = vmatmul.mubr.msk.f32.gmra.mrb[14].mxu0 %vm24496_vm1, %v4262_v13  ;;  %v396_v13 = vshrl.u32 %v19728_v34, 4  ;;  %vm826_vm9 = vmand %vm790_vm8, %vm754_vm7 }
 0x27d   : > { %15778 = vmatprep.mubr.msk.f32.mxu0 %vm24496_vm1, %v4264_v46  ;;  %v19742_v57 = vmul.u32.u64.low 3817748708, %v325_v4  ;;  %v19743_v46 = vmul.u32.u64.high 3817748708, %v325_v4, %v19742_v57  ;;  %vm825_vm7 = vmand %vm789_vm11, %vm753_vm10 }
 0x27e   : > { %v397_v32 = vmul.u32 18, %v396_v13  ;;  %v897_v39 = vsel %vm825_vm7, %v861_v5, %v365_v29  ;;  %v19821_v57 = vadd.s32 112, %v19715_v55 }
 0x27f   : > { %vm933_vm2 = vcmp.ge.s32.totalorder %v897_v39, 1 }
 0x280   : > { %15779 = vmatmul.mubr.msk.f32.gmra.mrb[16].mxu0 %vm24496_vm1, %v4266_v14  ;;  %v19746_v14 = vadd.s32 56, %v19715_v55  ;;  %v398_v28 = vsub.s32 %v324_v47, %v397_v32 }
 0x281   : > { %15781 = vmatprep.mubr.msk.f32.mxu0 %vm24496_vm1, %v4268_v0  ;;  %v19748_v54 = vmul.u32.u64.low 3817748708, %v327_v33  ;;  %v19749_v0 = vmul.u32.u64.high 3817748708, %v327_v33, %v19748_v54 }
 0x282   : > { %vm756_vm13 = vcmp.ne.s32.totalorder %v398_v28, 0  ;;  %vm792_vm14 = vcmp.lt.s32.totalorder %v398_v28, 0  ;;  %v19824_v54 = vadd.s32 120, %v19715_v55 }
 0x283   : > { %vm828_vm8 = vmand %vm792_vm14, %vm756_vm13  ;;  %vm969_vm13 = vcmp.le.s32.totalorder %v897_v39, 16 }
 0x284   : > { %15782 = vmatmul.mubr.msk.f32.gmra.mrb[18].mxu0 %vm24496_vm1, %v4270_v27  ;;  %v19752_v27 = vadd.s32 64, %v19715_v55 }
 0x285   : > { %15784 = vmatprep.mubr.msk.f32.mxu0 %vm24496_vm1, %v4272_v61  ;;  %v385_v61 = vshrl.u32 %v19733_v40, 4 }
 0x287   : > { %v386_v56 = vmul.u32 18, %v385_v61 }
 0x288   : > { %15785 = vmatmul.mubr.msk.f32.gmra.mrb[20].mxu0 %vm24496_vm1, %v4274_v16  ;;  %v418_v16 = vshrl.u32 %v19738_v59, 4 }
 0x289   : > { %15787 = vmatprep.mubr.msk.f32.mxu0 %vm24496_vm1, %v4276_v48  ;;  %v19758_v53 = vmul.u32.u64.low 3817748708, %v19746_v14  ;;  %v19759_v48 = vmul.u32.u64.high 3817748708, %v19746_v14, %v19758_v53  ;;  %v387_v63 = vsub.s32 %v323_v6, %v386_v56 }
 0x28a   : > { %v419_v52 = vmul.u32 18, %v418_v16  ;;  %v19835_v29 = vmul.u32.u64.low 3817748708, %v19821_v57  ;;  %v19836_v16 = vmul.u32.u64.high 3817748708, %v19821_v57, %v19835_v29 }
 0x28b   : > { %vm755_vm10 = vcmp.ne.s32.totalorder %v387_v63, 0  ;;  %vm791_vm11 = vcmp.lt.s32.totalorder %v387_v63, 0  ;;  %v863_v47 = vadd.s32 18, %v387_v63  ;;  %v19985_v29 = vadd.s32 168, %v19715_v55 }
 0x28c   : > { %15788 = vmatmul.mubr.msk.f32.gmra.mrb[22].mxu0 %vm24496_vm1, %v4278_v45  ;;  %v19762_v45 = vmul.u32.u64.low 3817748708, %v19752_v27  ;;  %v19763_v41 = vmul.u32.u64.high 3817748708, %v19752_v27, %v19762_v45  ;;  %v420_v12 = vsub.s32 %v326_v50, %v419_v52  ;;  %vm19792_vm14 = vmand %vm791_vm11, %vm755_vm10 }
 0x28d   : > { %15790 = vmatprep.mubr.msk.f32.mxu0 %vm24496_vm1, %v4280_v24  ;;  %v898_v24 = vsel %vm826_vm9, %v862_v38, %v376_v17  ;;  %v19806_v50 = vmul.u32.u64.low 3817748708, %v19787_v22  ;;  %v19807_v1 = vmul.u32.u64.high 3817748708, %v19787_v22, %v19806_v50  ;;  %v899_v44 = vsel %vm19792_vm14, %v863_v47, %v387_v63 }
 0x28e   : > { %vm934_vm12 = vcmp.ge.s32.totalorder %v898_v24, 1  ;;  %vm970_vm15 = vcmp.le.s32.totalorder %v898_v24, 16  ;;  %v451_v2 = vshrl.u32 %v19763_v41, 4  ;;  %vm794_vm6 = vcmp.lt.s32.totalorder %v420_v12, 0 }
 0x28f   : > { %vm1006_vm9 = vmand %vm934_vm12, %vm970_vm15  ;;  %v866_v51 = vadd.s32 18, %v420_v12  ;;  %v19814_v59 = vmul.u32.u64.low 3817748708, %v19800_v20  ;;  %v19815_v17 = vmul.u32.u64.high 3817748708, %v19800_v20, %v19814_v59  ;;  %vm935_vm14 = vcmp.ge.s32.totalorder %v899_v44, 1 }
 0x290   : > { %15791 = vmatmul.mubr.msk.f32.gmra.mrb[24].mxu0 %vm24496_vm1, %v4282_v21  ;;  %v407_v21 = vshrl.u32 %v19743_v46, 4  ;;  %v19790_v11 = vsel %vm1006_vm9, 1.0, %v24505_v35  ;;  %v452_v25 = vmul.u32 18, %v451_v2  ;;  %v484_v53 = vshrl.u32 %v19807_v1, 4 }
 0x291   : > { %15793 = vmatprep.mubr.msk.f32.mxu0 %vm24496_vm1, %v4284_v19  ;;  %v19767_v19 = vadd.s32 72, %v19715_v55  ;;  %24687 = vst [vmem:[#allocation11_spill] sm:$0xff] %v19790_v11  ;;  %v19851_v41 = vmul.u32.u64.low 3817748708, %v19824_v54  ;;  %v19852_v24 = vmul.u32.u64.high 3817748708, %v19824_v54, %v19851_v41  ;;  %v495_v52 = vshrl.u32 %v19815_v17, 4 }
 0x292   : > { %v19884_v63 = vadd.s32 136, %v19715_v55 }
 0x293   : > { %v19775_v3 = vmul.u32.u64.low 3817748708, %v19767_v19  ;;  %v19776_v8 = vmul.u32.u64.high 3817748708, %v19767_v19, %v19775_v3 }
 0x294   : > { %15794 = vmatmul.mubr.msk.f32.gmra.mrb[26].mxu0 %vm24496_vm1, %v4286_v62  ;;  %v429_v62 = vshrl.u32 %v19749_v0, 4  ;;  %v13414_v3 = vld [vmem:[%s24460_s3 + $0x10] sm:$0xff] }
 0x295   : > { %15796 = vmatprep.mubr.msk.f32.mxu0 %vm24496_vm1, %v4288_v26  ;;  %v864_v26 = vadd.s32 18, %v398_v28  ;;  %v462_v6 = vshrl.u32 %v19776_v8, 4  ;;  %v13415_v8 = vld [vmem:[%s24460_s3 + $0x18] sm:$0xff] }
 0x296   : > { %v16996_v47 = vpack.c.bf16 %v13415_v8, %v13414_v3 }
 0x297   : > { %v19784_v7 = vsel %vm828_vm8, %v864_v26, %v398_v28  ;;  %v463_v13 = vmul.u32 18, %v462_v6 }
 0x298   : > { %15797 = vmatmul.mubr.msk.f32.gmra.mrb[28].mxu0 %vm24496_vm1, %v4290_v31  ;;  %v408_v31 = vmul.u32 18, %v407_v21  ;;  %vm936_vm12 = vcmp.ge.s32.totalorder %v19784_v7, 1  ;;  %vm972_vm9 = vcmp.le.s32.totalorder %v19784_v7, 16  ;;  %16997 = vmatprep.subr.bf16.mxu0 %v16996_v47  ;;  %v20006_v21 = vadd.s32 192, %v19715_v55 }
 0x299   : > { %15799 = vmatprep.mubr.msk.f32.mxu0 %vm24496_vm1, %v4292_v37  ;;  %v440_v37 = vshrl.u32 %v19759_v48, 4  ;;  %v464_v61 = vsub.s32 %v19767_v19, %v463_v13  ;;  %16999 = vmatpush3.bf16.msra.mxu0 %v16996_v47 }
 0x29c   : > { %15800 = vmatmul.mubr.msk.f32.gmra.mrb[30].mxu0 %vm24496_vm1, %v4294_v42  ;;  %v430_v42 = vmul.u32 18, %v429_v62  ;;  %v19870_v62 = vadd.s32 128, %v19715_v55 }
 0x29d   : > { %15802 = vmatprep.mubr.msk.f32.mxu0 %vm24496_vm1, %v4296_v10  ;;  %v19780_v10 = vmul.u32.u64.low 3817748708, %v19771_v58  ;;  %v19781_v18 = vmul.u32.u64.high 3817748708, %v19771_v58, %v19780_v10 }
 0x29f   : > { %v473_v9 = vshrl.u32 %v19781_v18, 4  ;;  %v517_v18 = vshrl.u32 %v19836_v16, 4 }
 0x2a0   : > { %15803 = vmatmul.mubr.msk.f32.gmra.mrb[32].mxu0 %vm24496_vm1, %v4298_v15  ;;  %v409_v15 = vsub.s32 %v325_v4, %v408_v31  ;;  %v453_v4 = vsub.s32 %v19752_v27, %v452_v25 }
 0x2a1   : > { %15805 = vmatprep.mubr.msk.f32.mxu0 %vm24496_vm1, %v4300_v23  ;;  %v441_v23 = vmul.u32 18, %v440_v37  ;;  %v485_v37 = vmul.u32 18, %v484_v53  ;;  %v19988_v53 = vadd.s32 176, %v19715_v55 }
 0x2a2   : > { %vm757_vm15 = vcmp.ne.s32.totalorder %v409_v15, 0  ;;  %vm793_vm7 = vcmp.lt.s32.totalorder %v409_v15, 0  ;;  %v865_v30 = vadd.s32 18, %v409_v15  ;;  %v869_v38 = vadd.s32 18, %v453_v4 }
 0x2a3   : > { %v442_v34 = vsub.s32 %v19746_v14, %v441_v23  ;;  %v474_v14 = vmul.u32 18, %v473_v9  ;;  %v19950_v9 = vadd.s32 144, %v19715_v55 }
 0x2a4   : > { %15806 = vmatmul.mubr.msk.f32.gmra.mrb[34].mxu0 %vm24496_vm1, %v4302_v36  ;;  %vm758_vm1 = vcmp.ne.s32.totalorder %v420_v12, 0  ;;  %v431_v36 = vsub.s32 %v327_v33, %v430_v42  ;;  %v19818_v33 = vadd.s32 104, %v19715_v55  ;;  %v496_v42 = vmul.u32 18, %v495_v52 }
 0x2a5   : > { %vm830_vm8 = vmand %vm794_vm6, %vm758_vm1  ;;  %vm760_vm5 = vcmp.ne.s32.totalorder %v442_v34, 0  ;;  %vm796_vm4 = vcmp.lt.s32.totalorder %v442_v34, 0  ;;  %v868_v60 = vadd.s32 18, %v442_v34  ;;  %v475_v45 = vsub.s32 %v19771_v58, %v474_v14 }
 0x2a6   : > { %vm759_vm10 = vcmp.ne.s32.totalorder %v431_v36, 0  ;;  %vm795_vm11 = vcmp.lt.s32.totalorder %v431_v36, 0  ;;  %vm829_vm1 = vmand %vm793_vm7, %vm757_vm15  ;;  %v902_v40 = vsel %vm830_vm8, %v866_v51, %v420_v12  ;;  %v867_v49 = vadd.s32 18, %v431_v36 }
 0x2a7   : > { %vm831_vm6 = vmand %vm795_vm11, %vm759_vm10  ;;  %vm971_vm15 = vcmp.le.s32.totalorder %v899_v44, 16  ;;  %v901_v46 = vsel %vm829_vm1, %v865_v30, %v409_v15  ;;  %vm761_vm7 = vcmp.ne.s32.totalorder %v453_v4, 0  ;;  %vm797_vm8 = vcmp.lt.s32.totalorder %v453_v4, 0 }
 0x2a8   : > { %v903_v0 = vsel %vm831_vm6, %v867_v49, %v431_v36  ;;  %vm832_vm10 = vmand %vm796_vm4, %vm760_vm5  ;;  %v19828_v32 = vmul.u32.u64.low 3817748708, %v19818_v33  ;;  %v19829_v27 = vmul.u32.u64.high 3817748708, %v19818_v33, %v19828_v32  ;;  %vm937_vm1 = vcmp.ge.s32.totalorder %v901_v46, 1 }
 0x2a9   : > { %vm1005_vm11 = vmand %vm933_vm2, %vm969_vm13  ;;  %vm973_vm0 = vcmp.le.s32.totalorder %v901_v46, 16  ;;  %vm974_vm3 = vcmp.le.s32.totalorder %v902_v40, 16  ;;  %v904_v28 = vsel %vm832_vm10, %v868_v60, %v442_v34  ;;  %vm939_vm13 = vcmp.ge.s32.totalorder %v903_v0, 1 }
 0x2aa   : > { %vm833_vm4 = vmand %vm797_vm8, %vm761_vm7  ;;  %v19855_v56 = vsel %vm1005_vm11, 1.0, %v24505_v35  ;;  %vm762_vm7 = vcmp.ne.s32.totalorder %v464_v61, 0  ;;  %vm798_vm8 = vcmp.lt.s32.totalorder %v464_v61, 0  ;;  %v870_v12 = vadd.s32 18, %v464_v61 }
 0x2ab   : > { %vm19845_vm2 = vmand %vm936_vm12, %vm972_vm9  ;;  %24692 = vst [vmem:[#allocation12_spill] sm:$0xff] %v19855_v56  ;;  %vm975_vm12 = vcmp.le.s32.totalorder %v903_v0, 16  ;;  %vm24695_vm9 = vcmp.ge.s32.totalorder %v902_v40, 1  ;;  %v905_v5 = vsel %vm833_vm4, %v869_v38, %v453_v4  ;;  %vm763_vm11 = vcmp.ne.s32.totalorder %v475_v45, 0 }
 0x2ac   : > { %vm19859_vm5 = vmand %vm935_vm14, %vm971_vm15  ;;  %v19875_v58 = vsel %vm19845_vm2, 1.0, %v24505_v35  ;;  %vm976_vm15 = vcmp.le.s32.totalorder %v904_v28, 16  ;;  %vm799_vm4 = vcmp.lt.s32.totalorder %v475_v45, 0  ;;  %v506_v39 = vshrl.u32 %v19829_v27, 4 }
 0x2ad   : > { %vm19865_vm6 = vmand %vm24695_vm9, %vm974_vm3  ;;  %24698 = vst [vmem:[#allocation13_spill] sm:$0xff] %v19875_v58  ;;  %vm940_vm3 = vcmp.ge.s32.totalorder %v904_v28, 1  ;;  %v871_v10 = vadd.s32 18, %v475_v45  ;;  %v19908_v15 = vmul.u32.u64.low 3817748708, %v19870_v62  ;;  %v19909_v7 = vmul.u32.u64.high 3817748708, %v19870_v62, %v19908_v15 }
 0x2ae   : > { %vm19879_vm14 = vmand %vm937_vm1, %vm973_vm0  ;;  %vm941_vm0 = vcmp.ge.s32.totalorder %v905_v5, 1  ;;  %vm977_vm1 = vcmp.le.s32.totalorder %v905_v5, 16  ;;  %v19914_v23 = vsel %vm19859_vm5, 1.0, %v24505_v35  ;;  %v19925_v51 = vsel %vm19865_vm6, 1.0, %v24505_v35 }
 0x2af   : > { %vm19887_vm10 = vmand %vm939_vm13, %vm975_vm12  ;;  %24705 = vst [vmem:[#allocation14_spill] sm:$0xff] %v19914_v23  ;;  %v19919_v36 = vmul.u32.u64.low 3817748708, %v19884_v63  ;;  %v19920_v43 = vmul.u32.u64.high 3817748708, %v19884_v63, %v19919_v36  ;;  %v19928_v30 = vsub.s32 %v19787_v22, %v485_v37  ;;  %v528_v34 = vshrl.u32 %v19852_v24, 4 }
 0x2b0   : > { %vm834_vm2 = vmand %vm798_vm8, %vm762_vm7  ;;  %24706 = vst [vmem:[#allocation15_spill] sm:$0xff] %v19925_v51  ;;  %v19934_v6 = vsel %vm19879_vm14, 1.0, %v24505_v35  ;;  %v19939_v50 = vsel %vm19887_vm10, 1.0, %v24505_v35  ;;  %v19942_v1 = vsub.s32 %v19800_v20, %v496_v42  ;;  %v507_v44 = vmul.u32 18, %v506_v39 }
 0x2b1   : > { %vm19902_vm13 = vmand %vm940_vm3, %vm976_vm15  ;;  %v906_v25 = vsel %vm834_vm2, %v870_v12, %v464_v61  ;;  %24707 = vst [vmem:[#allocation4_spill] sm:$0xff] %v19934_v6  ;;  %v518_v4 = vmul.u32 18, %v517_v18  ;;  %v19956_v20 = vadd.s32 152, %v19715_v55  ;;  %vm764_vm7 = vcmp.ne.s32.totalorder %v19928_v30, 0 }
 0x2b2   : > { %vm835_vm12 = vmand %vm799_vm4, %vm763_vm11  ;;  %24708 = vst [vmem:[#allocation5_spill] sm:$0xff] %v19939_v50  ;;  %v19947_v22 = vsel %vm19902_vm13, 1.0, %v24505_v35  ;;  %vm942_vm5 = vcmp.ge.s32.totalorder %v906_v25, 1  ;;  %vm978_vm6 = vcmp.le.s32.totalorder %v906_v25, 16  ;;  %vm800_vm8 = vcmp.lt.s32.totalorder %v19928_v30, 0 }
 0x2b3   : > { %vm1013_vm9 = vmand %vm941_vm0, %vm977_vm1  ;;  %24709 = vst [vmem:[#allocation6_spill] sm:$0xff] %v19947_v22  ;;  %v907_v40 = vsel %vm835_vm12, %v871_v10, %v475_v45  ;;  %v872_v59 = vadd.s32 18, %v19928_v30  ;;  %v529_v17 = vmul.u32 18, %v528_v34  ;;  %vm765_vm15 = vcmp.ne.s32.totalorder %v19942_v1, 0 }
 0x2b4   : > { %v19953_v49 = vsel %vm1013_vm9, 1.0, %v24505_v35  ;;  %vm943_vm14 = vcmp.ge.s32.totalorder %v907_v40, 1  ;;  %vm979_vm3 = vcmp.le.s32.totalorder %v907_v40, 16  ;;  %v508_v13 = vsub.s32 %v19818_v33, %v507_v44  ;;  %vm19997_vm2 = vmand %vm942_vm5, %vm978_vm6 }
 0x2b5   : > { %24710 = vst [vmem:[#allocation7_spill] sm:$0xff] %v19953_v49  ;;  %v19964_v46 = vsub.s32 %v19821_v57, %v518_v4  ;;  %v539_v60 = vshrl.u32 %v19909_v7, 4  ;;  %v19968_v14 = vmul.u32.u64.low 3817748708, %v19950_v9  ;;  %v19969_v0 = vmul.u32.u64.high 3817748708, %v19950_v9, %v19968_v14  ;;  %vm20012_vm13 = vmand %vm800_vm8, %vm764_vm7 }
 0x2b6   : > { %v550_v32 = vshrl.u32 %v19920_v43, 4  ;;  %v19973_v27 = vmul.u32.u64.low 3817748708, %v19956_v20  ;;  %v19974_v38 = vmul.u32.u64.high 3817748708, %v19956_v20, %v19973_v27  ;;  %v19977_v61 = vadd.s32 160, %v19715_v55  ;;  %vm20024_vm5 = vmand %vm943_vm14, %vm979_vm3 }
 0x2b7   : > { %vm801_vm10 = vcmp.lt.s32.totalorder %v19942_v1, 0  ;;  %v873_v33 = vadd.s32 18, %v19942_v1  ;;  %v19982_v57 = vsub.s32 %v19824_v54, %v529_v17  ;;  %vm766_vm11 = vcmp.ne.s32.totalorder %v508_v13, 0 }
 0x2b8   : > { %vm802_vm4 = vcmp.lt.s32.totalorder %v508_v13, 0  ;;  %v874_v16 = vadd.s32 18, %v508_v13  ;;  %vm767_vm0 = vcmp.ne.s32.totalorder %v19964_v46, 0  ;;  %vm803_vm1 = vcmp.lt.s32.totalorder %v19964_v46, 0  ;;  %vm20039_vm7 = vmand %vm801_vm10, %vm765_vm15 }
 0x2b9   : > { %v540_v48 = vmul.u32 18, %v539_v60  ;;  %v19993_v28 = vadd.s32 184, %v19715_v55  ;;  %v551_v45 = vmul.u32 18, %v550_v32  ;;  %vm768_vm12 = vcmp.ne.s32.totalorder %v19982_v57, 0  ;;  %vm838_vm8 = vmand %vm802_vm4, %vm766_vm11 }
 0x2ba   : > { %v20002_v41 = vmul.u32.u64.low 3817748708, %v19977_v61  ;;  %v20003_v24 = vmul.u32.u64.high 3817748708, %v19977_v61, %v20002_v41  ;;  %vm804_vm9 = vcmp.lt.s32.totalorder %v19982_v57, 0  ;;  %v20033_v37 = vadd.s32 200, %v19715_v55  ;;  %vm20100_vm14 = vmand %vm803_vm1, %vm767_vm0 }
 0x2bb   : > { %v20019_v19 = vmul.u32.u64.low 3817748708, %v19985_v29  ;;  %v20020_v5 = vmul.u32.u64.high 3817748708, %v19985_v29, %v20019_v19  ;;  %v20029_v31 = vmul.u32.u64.low 3817748708, %v19988_v53  ;;  %v20030_v12 = vmul.u32.u64.high 3817748708, %v19988_v53, %v20029_v31  ;;  %vm20115_vm3 = vmand %vm804_vm9, %vm768_vm12 }
 0x2bc   : > { %vm24503_vm6 = vcmask 130048   ;;  %v20044_v8 = vsub.s32 %v19870_v62, %v540_v48  ;;  %v561_v42 = vshrl.u32 %v19969_v0, 4  ;;  %v552_v62 = vsub.s32 %v19884_v63, %v551_v45 }
 0x2bd   : > { %v20048_v39 = vmul.u32.u64.low 3817748708, %v19993_v28  ;;  %v20049_v2 = vmul.u32.u64.high 3817748708, %v19993_v28, %v20048_v39  ;;  %4844 = vst.msk [vmem:[#allocation2] sm:$0xff] %vm24503_vm6, %v24505_v35  ;;  %4845 = vst.msk [vmem:[#allocation2 + $0x8] sm:$0xff] %vm24503_vm6, %v24505_v35  ;;  %v572_v10 = vshrl.u32 %v19974_v38, 4  ;;  %v20078_v7 = vsel %vm19997_vm2, 1.0, %v24505_v35 }
 0x2be   : > { %5028 = vst.msk [vmem:[#allocation2 + $0x133] sm:$0xff] %vm24503_vm6, %v24505_v35  ;;  %5029 = vst.msk [vmem:[#allocation2 + $0x13b] sm:$0xff] %vm24503_vm6, %v24505_v35  ;;  %v20072_v18 = vmul.u32.u64.low 3817748708, %v20006_v21  ;;  %v20073_v15 = vmul.u32.u64.high 3817748708, %v20006_v21, %v20072_v18  ;;  %v20083_v36 = vsel %vm20024_vm5, 1.0, %v24505_v35  ;;  %v20088_v63 = vsel %vm20012_vm13, %v872_v59, %v19928_v30 }
 0x2bf   : > { %8741 = vst.msk [vmem:[#allocation3] sm:$0xff] %vm24503_vm6, %v24505_v35  ;;  %8742 = vst.msk [vmem:[#allocation3 + $0x8] sm:$0xff] %vm24503_vm6, %v24505_v35  ;;  %v875_v43 = vadd.s32 18, %v19964_v46  ;;  %v20094_v47 = vsel %vm20039_vm7, %v873_v33, %v19942_v1  ;;  %v876_v34 = vadd.s32 18, %v19982_v57  ;;  %v20109_v40 = vsel %vm838_vm8, %v874_v16, %v508_v13 }
 0x2c0   : > { %8924 = vst.msk [vmem:[#allocation3 + $0x133] sm:$0xff] %vm24503_vm6, %v24505_v35  ;;  %8925 = vst.msk [vmem:[#allocation3 + $0x13b] sm:$0xff] %vm24503_vm6, %v24505_v35  ;;  %v20106_v30 = vmul.u32.u64.low 3817748708, %v20033_v37  ;;  %v20107_v44 = vmul.u32.u64.high 3817748708, %v20033_v37, %v20106_v30  ;;  %vm769_vm15 = vcmp.ne.s32.totalorder %v20044_v8, 0  ;;  %vm805_vm10 = vcmp.lt.s32.totalorder %v20044_v8, 0 }
 0x2c1   : > { %24719 = vst [vmem:[#allocation8_spill] sm:$0xff] %v20078_v7  ;;  %24720 = vst [vmem:[#allocation9_spill] sm:$0xff] %v20083_v36  ;;  %v562_v4 = vmul.u32 18, %v561_v42  ;;  %vm770_vm11 = vcmp.ne.s32.totalorder %v552_v62, 0  ;;  %vm806_vm4 = vcmp.lt.s32.totalorder %v552_v62, 0  ;;  %v573_v59 = vmul.u32 18, %v572_v10 }
 0x2c2   : > { %v583_v17 = vshrl.u32 %v20003_v24, 4  ;;  %vm944_vm0 = vcmp.ge.s32.totalorder %v20088_v63, 1  ;;  %vm980_vm1 = vcmp.le.s32.totalorder %v20088_v63, 16  ;;  %v20127_v13 = vsel %vm20100_vm14, %v875_v43, %v19964_v46  ;;  %vm20139_vm12 = vmand %vm805_vm10, %vm769_vm15 }
 0x2c3   : > { %v594_v60 = vshrl.u32 %v20020_v5, 4  ;;  %vm945_vm2 = vcmp.ge.s32.totalorder %v20094_v47, 1  ;;  %vm981_vm13 = vcmp.le.s32.totalorder %v20094_v47, 16  ;;  %v912_v14 = vsel %vm20115_vm3, %v876_v34, %v19982_v57  ;;  %vm842_vm7 = vmand %vm806_vm4, %vm770_vm11 }
 0x2c4   : > { %v877_v46 = vadd.s32 18, %v20044_v8  ;;  %v878_v32 = vadd.s32 18, %v552_v62  ;;  %v605_v27 = vshrl.u32 %v20030_v12, 4  ;;  %vm946_vm9 = vcmp.ge.s32.totalorder %v20109_v40, 1  ;;  %vm20178_vm15 = vmand %vm944_vm0, %vm980_vm1 }
 0x2c5   : > { %vm982_vm5 = vcmp.le.s32.totalorder %v20109_v40, 16  ;;  %v563_v38 = vsub.s32 %v19950_v9, %v562_v4  ;;  %v616_v33 = vshrl.u32 %v20049_v2, 4  ;;  %vm947_vm8 = vcmp.ge.s32.totalorder %v20127_v13, 1  ;;  %vm20198_vm0 = vmand %vm945_vm2, %vm981_vm13 }
 0x2c6   : > { %vm983_vm14 = vcmp.le.s32.totalorder %v20127_v13, 16  ;;  %v574_v57 = vsub.s32 %v19956_v20, %v573_v59  ;;  %v584_v16 = vmul.u32 18, %v583_v17  ;;  %v627_v48 = vshrl.u32 %v20073_v15, 4 }
 0x2c7   : > { %v595_v54 = vmul.u32 18, %v594_v60  ;;  %v20156_v45 = vadd.s32 208, %v19715_v55  ;;  %v913_v9 = vsel %vm20139_vm12, %v877_v46, %v20044_v8  ;;  %v20161_v41 = vsel %vm842_vm7, %v878_v32, %v552_v62  ;;  %vm20216_vm2 = vmand %vm947_vm8, %vm983_vm14 }
 0x2c8   : > { %v606_v24 = vmul.u32 18, %v605_v27  ;;  %v638_v52 = vshrl.u32 %v20107_v44, 4  ;;  %vm771_vm10 = vcmp.ne.s32.totalorder %v563_v38, 0  ;;  %vm807_vm11 = vcmp.lt.s32.totalorder %v563_v38, 0 }
 0x2c9   : > { %v617_v20 = vmul.u32 18, %v616_v33  ;;  %v20165_v19 = vadd.s32 216, %v19715_v55  ;;  %v879_v5 = vadd.s32 18, %v563_v38  ;;  %vm772_vm4 = vcmp.ne.s32.totalorder %v574_v57, 0  ;;  %vm843_vm3 = vmand %vm807_vm11, %vm771_vm10 }
 0x2ca   : > { %v585_v26 = vsub.s32 %v19977_v61, %v584_v16  ;;  %v628_v31 = vmul.u32 18, %v627_v48  ;;  %vm808_vm6 = vcmp.lt.s32.totalorder %v574_v57, 0  ;;  %v596_v12 = vsub.s32 %v19985_v29, %v595_v54 }
 0x2cb   : > { %v20170_v3 = vmul.u32.u64.low 3817748708, %v20156_v45  ;;  %v20171_v8 = vmul.u32.u64.high 3817748708, %v20156_v45, %v20170_v3  ;;  %v607_v42 = vsub.s32 %v19988_v53, %v606_v24  ;;  %v639_v39 = vmul.u32 18, %v638_v52  ;;  %vm20189_vm11 = vmand %vm808_vm6, %vm772_vm4 }
 0x2cc   : > { %v24727_v61 = vmov 0  ;;  %v880_v2 = vadd.s32 18, %v574_v57  ;;  %v618_v29 = vsub.s32 %v19993_v28, %v617_v20  ;;  %v629_v18 = vsub.s32 %v20006_v21, %v628_v31  ;;  %vm20207_vm4 = vmand %vm946_vm9, %vm982_vm5 }
 0x2cd   : > { %v24728_v61 = vsel %vm20178_vm15, 4294967295, %v24727_v61  ;;  %v20184_v62 = vmul.u32.u64.low 3817748708, %v20165_v19  ;;  %v20185_v10 = vmul.u32.u64.high 3817748708, %v20165_v19, %v20184_v62  ;;  %v24731_v28 = vmov 0 }
 0x2ce   : > { %v24732_v28 = vsel %vm20198_vm0, 4294967295, %v24731_v28  ;;  %v915_v15 = vsel %vm843_vm3, %v879_v5, %v563_v38  ;;  %v24733_v63 = vmov 0  ;;  %v881_v21 = vadd.s32 18, %v585_v26  ;;  %v20448_v62 = vld [vmem:[#allocation2 + $0x8] sm:$0xff] }
 0x2cf   : > { %v24734_v63 = vsel %vm20207_vm4, 4294967295, %v24733_v63  ;;  %v640_v43 = vsub.s32 %v20033_v37, %v639_v39  ;;  %v24735_v47 = vmov 0  ;;  %vm24737_vm13 = vcmp.le.s32.totalorder %v912_v14, 16 }
 0x2d0   : > { %v24736_v47 = vsel %vm20216_vm2, 4294967295, %v24735_v47  ;;  %vm24738_vm3 = vcmp.ge.s32.totalorder %v912_v14, 1  ;;  %v24739_v25 = vmov 0  ;;  %vm24741_vm9 = vcmp.le.s32.totalorder %v913_v9, 16 }
 0x2d1   : > { %vm20222_vm1 = vmand %vm24738_vm3, %vm24737_vm13  ;;  %vm24742_vm5 = vcmp.ge.s32.totalorder %v913_v9, 1  ;;  %v24743_v34 = vmov 0  ;;  %v916_v37 = vsel %vm20189_vm11, %v880_v2, %v574_v57  ;;  %vm24745_vm12 = vcmp.ne.s32.totalorder %v585_v26, 0 }
 0x2d2   : > { %v24740_v25 = vsel %vm20222_vm1, 4294967295, %v24739_v25  ;;  %vm20228_vm7 = vmand %vm24742_vm5, %vm24741_vm9  ;;  %vm24746_vm8 = vcmp.lt.s32.totalorder %v585_v26, 0  ;;  %v882_v30 = vadd.s32 18, %v596_v12  ;;  %vm776_vm6 = vcmp.ne.s32.totalorder %v618_v29, 0 }
 0x2d3   : > { %v24744_v34 = vsel %vm20228_vm7, 4294967295, %v24743_v34  ;;  %vm845_vm14 = vmand %vm24746_vm8, %vm24745_vm12  ;;  %vm812_vm10 = vcmp.lt.s32.totalorder %v618_v29, 0  ;;  %vm24747_vm2 = vcmp.ne.s32.totalorder %v596_v12, 0  ;;  %vm24748_vm13 = vcmp.lt.s32.totalorder %v596_v12, 0 }
 0x2d4   : > { %vm20238_vm3 = vmand %vm24748_vm13, %vm24747_vm2  ;;  %v883_v40 = vadd.s32 18, %v607_v42  ;;  %vm777_vm9 = vcmp.ne.s32.totalorder %v629_v18, 0  ;;  %vm813_vm5 = vcmp.lt.s32.totalorder %v629_v18, 0  ;;  %v20243_v1 = vadd.s32 224, %v19715_v55 }
 0x2d5   : > { %vm24751_vm1 = vcmp.ne.s32.totalorder %v607_v42, 0  ;;  %vm24752_vm4 = vcmp.lt.s32.totalorder %v607_v42, 0  ;;  %v884_v4 = vadd.s32 18, %v618_v29  ;;  %v649_v59 = vshrl.u32 %v20171_v8, 4  ;;  %vm848_vm8 = vmand %vm812_vm10, %vm776_vm6 }
 0x2d6   : > { %vm847_vm12 = vmand %vm24752_vm4, %vm24751_vm1  ;;  %v917_v17 = vsel %vm845_vm14, %v881_v21, %v585_v26  ;;  %v885_v13 = vadd.s32 18, %v629_v18  ;;  %vm778_vm2 = vcmp.ne.s32.totalorder %v640_v43, 0  ;;  %vm814_vm13 = vcmp.lt.s32.totalorder %v640_v43, 0 }
 0x2d7   : > { %vm952_vm0 = vcmp.ge.s32.totalorder %v916_v37, 1  ;;  %vm988_vm15 = vcmp.le.s32.totalorder %v916_v37, 16  ;;  %v918_v60 = vsel %vm20238_vm3, %v882_v30, %v596_v12  ;;  %vm849_vm7 = vmand %vm813_vm5, %vm777_vm9  ;;  %v660_v14 = vshrl.u32 %v20185_v10, 4 }
 0x2d8   : > { %vm24753_vm1 = vcmp.le.s32.totalorder %v20161_v41, 16  ;;  %vm24754_vm4 = vcmp.ge.s32.totalorder %v20161_v41, 1  ;;  %v919_v46 = vsel %vm847_vm12, %v883_v40, %v607_v42  ;;  %v886_v32 = vadd.s32 18, %v640_v43  ;;  %vm850_vm14 = vmand %vm814_vm13, %vm778_vm2 }
 0x2d9   : > { %vm20257_vm11 = vmand %vm24754_vm4, %vm24753_vm1  ;;  %v20262_v27 = vmul.u32.u64.low 3817748708, %v20243_v1  ;;  %v20263_v38 = vmul.u32.u64.high 3817748708, %v20243_v1, %v20262_v27  ;;  %vm989_vm6 = vcmp.le.s32.totalorder %v917_v17, 16  ;;  %v920_v33 = vsel %vm848_vm8, %v884_v4, %v618_v29 }
 0x2da   : > { %v650_v57 = vmul.u32 18, %v649_v59  ;;  %vm24757_vm3 = vnez %v24728_v61  ;;  %vm24759_vm9 = vcmp.le.s32.totalorder %v915_v15, 16  ;;  %vm24760_vm5 = vcmp.ge.s32.totalorder %v915_v15, 1  ;;  %vm20283_vm8 = vmand %vm952_vm0, %vm988_vm15 }
 0x2db   : > { %v20268_v16 = vsel %vm24757_vm3, 1.0, %v24505_v35  ;;  %vm20272_vm1 = vmand %vm24760_vm5, %vm24759_vm9  ;;  %vm954_vm12 = vcmp.ge.s32.totalorder %v918_v60, 1  ;;  %vm990_vm4 = vcmp.le.s32.totalorder %v918_v60, 16  ;;  %v921_v54 = vsel %vm849_vm7, %v885_v13, %v629_v18 }
 0x2dc   : > { %24758 = vst [vmem:[#allocation10_spill] sm:$0xff] %v20268_v16  ;;  %vm24763_vm10 = vnez %v24732_v28  ;;  %vm955_vm2 = vcmp.ge.s32.totalorder %v919_v46, 1  ;;  %vm991_vm13 = vcmp.le.s32.totalorder %v919_v46, 16  ;;  %v661_v24 = vmul.u32 18, %v660_v14  ;;  %vm20301_vm0 = vmand %vm954_vm12, %vm990_vm4  ;;  %v20357_v28 = vld [vmem:[%s24459_s2] ss:$0 sm:$0xff] }
 0x2dd   : > { %v20279_v9 = vsel %vm24763_vm10, 1.0, %v24505_v35  ;;  %vm24767_vm3 = vcmp.ge.s32.totalorder %v917_v17, 1  ;;  %vm956_vm7 = vcmp.ge.s32.totalorder %v920_v33, 1  ;;  %vm992_vm5 = vcmp.le.s32.totalorder %v920_v33, 16  ;;  %vm20328_vm4 = vmand %vm955_vm2, %vm991_vm13 }
 0x2de   : > { %24764 = vst [vmem:[#allocation16_spill] sm:$0xff] %v20279_v9  ;;  %vm20288_vm9 = vmand %vm24767_vm3, %vm989_vm6  ;;  %v922_v20 = vsel %vm850_vm14, %v886_v32, %v640_v43  ;;  %v20293_v5 = vadd.s32 232, %v19715_v55  ;;  %vm24770_vm15 = vnez %v24734_v63  ;;  %vm957_vm10 = vcmp.ge.s32.totalorder %v921_v54, 1 }
 0x2df   : > { %v20298_v26 = vsel %vm24770_vm15, 1.0, %v24505_v35  ;;  %vm993_vm6 = vcmp.le.s32.totalorder %v921_v54, 16  ;;  %v651_v12 = vsub.s32 %v20156_v45, %v650_v57  ;;  %vm24774_vm14 = vnez %v24736_v47  ;;  %vm1028_vm15 = vmand %vm956_vm7, %vm992_vm5  ;;  %v5031_v45 = vld [vmem:[#allocation2] sm:$0xff] }
 0x2e0   : > { %24771 = vst [vmem:[#allocation17_spill] sm:$0xff] %v20298_v26  ;;  %v20309_v3 = vsel %vm24774_vm14, 1.0, %v24505_v35  ;;  %vm24776_vm3 = vnez %v24740_v25  ;;  %vm24778_vm12 = vnez %v24744_v34  ;;  %v20324_v39 = vsel %vm20257_vm11, 1.0, %v24505_v35  ;;  %vm20345_vm11 = vmand %vm957_vm10, %vm993_vm6 }
 0x2e1   : > { %24775 = vst [vmem:[#allocation18_spill] sm:$0xff] %v20309_v3  ;;  %v20314_v8 = vsel %vm24776_vm3, 1.0, %v24505_v35  ;;  %v20319_v42 = vsel %vm24778_vm12, 1.0, %v24505_v35  ;;  %24780 = vst [vmem:[#allocation21_spill] sm:$0xff] %v20324_v39  ;;  %v20335_v61 = vsel %vm20272_vm1, 1.0, %v24505_v35  ;;  %vm958_vm14 = vcmp.ge.s32.totalorder %v922_v20, 1 }
 0x2e2   : > { %24777 = vst [vmem:[#allocation19_spill] sm:$0xff] %v20314_v8  ;;  %24779 = vst [vmem:[#allocation20_spill] sm:$0xff] %v20319_v42  ;;  %vm994_vm3 = vcmp.le.s32.totalorder %v922_v20, 16  ;;  %v662_v2 = vsub.s32 %v20165_v19, %v661_v24  ;;  %v20343_v29 = vsel %vm20283_vm8, 1.0, %v24505_v35  ;;  %v671_v10 = vshrl.u32 %v20263_v38, 4 }
 0x2e3   : > { %24783 = vst [vmem:[#allocation22_spill] sm:$0xff] %v20335_v61  ;;  %24784 = vst [vmem:[#allocation23_spill] sm:$0xff] %v20343_v29  ;;  %v20351_v53 = vmul.u32.u64.low 3817748708, %v20293_v5  ;;  %v20352_v18 = vmul.u32.u64.high 3817748708, %v20293_v5, %v20351_v53  ;;  %v20362_v19 = vsel %vm20288_vm9, 1.0, %v24505_v35  ;;  %vm779_vm1 = vcmp.ne.s32.totalorder %v651_v12, 0 }
 0x2e4   : > { %24787 = vst [vmem:[#allocation24_spill] sm:$0xff] %v20362_v19  ;;  %vm815_vm8 = vcmp.lt.s32.totalorder %v651_v12, 0  ;;  %vm4846_vm2 = vcmask 124928   ;;  %v20367_v15 = vsel %vm20301_vm0, 1.0, %v24505_v35  ;;  %v20372_v63 = vsel %vm20328_vm4, 1.0, %v24505_v35  ;;  %vm20378_vm13 = vmand %vm958_vm14, %vm994_vm3 }
 0x2e5   : > { %24788 = vst [vmem:[#allocation25_spill] sm:$0xff] %v20367_v15  ;;  %24789 = vst [vmem:[#allocation26_spill] sm:$0xff] %v20372_v63  ;;  %v20375_v21 = vsel %vm1028_vm15, 1.0, %v24505_v35  ;;  %v20383_v47 = vadd.s32 240, %v19715_v55  ;;  %v20392_v34 = vsel %vm20345_vm11, 1.0, %v24505_v35  ;;  %v887_v37 = vadd.s32 18, %v651_v12 }
 0x2e6   : > { %24790 = vst [vmem:[#allocation27_spill] sm:$0xff] %v20375_v21  ;;  %4847 = vst.msk [vmem:[#allocation2 + $0x10] sm:$0x7] %vm4846_vm2, %v24505_v35  ;;  %vm780_vm9 = vcmp.ne.s32.totalorder %v662_v2, 0  ;;  %vm816_vm7 = vcmp.lt.s32.totalorder %v662_v2, 0  ;;  %v672_v4 = vmul.u32 18, %v671_v10 }
 0x2e7   : > { %5030 = vst.msk [vmem:[#allocation2 + $0x143] sm:$0x7] %vm4846_vm2, %v24505_v35  ;;  %8743 = vst.msk [vmem:[#allocation3 + $0x10] sm:$0x7] %vm4846_vm2, %v24505_v35  ;;  %v20404_v59 = vadd.s32 248, %v19715_v55  ;;  %v20407_v17 = vadd.s32 256, %v19715_v55 }
 0x2e8   : > { %8926 = vst.msk [vmem:[#allocation3 + $0x143] sm:$0x7] %vm4846_vm2, %v24505_v35  ;;  %24793 = vst [vmem:[#allocation28_spill] sm:$0xff] %v20392_v34  ;;  %v20415_v60 = vsel %vm20378_vm13, 1.0, %v24505_v35  ;;  %v888_v14 = vadd.s32 18, %v662_v2  ;;  %v20418_v0 = vadd.s32 264, %v19715_v55  ;;  %v20445_v20 = vsub.s32 %v20243_v1, %v672_v4 }
 0x2e9   : > { %vm20399_vm5 = vmand %vm815_vm8, %vm779_vm1  ;;  %24798 = vst [vmem:[#allocation31_spill] sm:$0xff] %v20415_v60  ;;  %v20428_v27 = vmul.u32.u64.low 3817748708, %v20383_v47  ;;  %v20429_v38 = vmul.u32.u64.high 3817748708, %v20383_v47, %v20428_v27  ;;  %v20438_v54 = vadd.s32 272, %v19715_v55  ;;  %v682_v31 = vshrl.u32 %v20352_v18, 4 }
 0x2ea   : > { %vm20423_vm10 = vmand %vm816_vm7, %vm780_vm9  ;;  %v20435_v48 = vsel %vm20399_vm5, %v887_v37, %v651_v12  ;;  %v5114_v43 = vrot.slane %v5031_v45, 1  ;;  %v24504_v18 = vrot.slane %v20448_v62, 1  ;;  %vm781_vm15 = vcmp.ne.s32.totalorder %v20445_v20, 0 }
 0x2eb   : > { %v20456_v53 = vsel %vm20423_vm10, %v888_v14, %v662_v2  ;;  %v20466_v2 = vmul.u32.u64.low 3817748708, %v20404_v59  ;;  %v20467_v40 = vmul.u32.u64.high 3817748708, %v20404_v59, %v20466_v2  ;;  %vm24804_vm14 = vcmask 1046528  }
 0x2ec   : > { %v5116_v32 = vsel %vm24804_vm14, %v5114_v43, %v24504_v18  ;;  %vm959_vm3 = vcmp.ge.s32.totalorder %v20435_v48, 1  ;;  %vm817_vm11 = vcmp.lt.s32.totalorder %v20445_v20, 0  ;;  %vm24806_vm1 = vcmask 130048   ;;  %v5073_v43 = vld [vmem:[%s24460_s3 + $0x8] sm:$0xff] }
 0x2ed   : > { %15812 = vmatprep.mubr.msk.f32.mxu0 %vm24806_vm1, %v5116_v32  ;;  %vm995_vm8 = vcmp.le.s32.totalorder %v20435_v48, 16  ;;  %v889_v45 = vadd.s32 18, %v20445_v20  ;;  %vm960_vm9 = vcmp.ge.s32.totalorder %v20456_v53, 1  ;;  %vm20510_vm7 = vmand %vm817_vm11, %vm781_vm15  ;;  %v20515_v32 = vadd.s32 280, %v19715_v55 }
 0x2ee   : > { %vm996_vm5 = vcmp.le.s32.totalorder %v20456_v53, 16  ;;  %vm20566_vm14 = vmand %vm959_vm3, %vm995_vm8 }
 0x2ef   : > { %vm20585_vm3 = vmand %vm960_vm9, %vm996_vm5 }
 0x333   : > { %v15756_v25 = vpop.f32.mrb[0].mxu0 }
 0x334   : > { %v20395_v30 = vadd.f32 %v15756_v25, %v20357_v28  ;;  %v4441_v44 = vpop.f32.mrb[1].mxu0 }
 0x335   : > { %v20410_v13 = vadd.f32 %v20357_v28, %v4441_v44 }
 0x336   : > { %24794 = vst [vmem:[#allocation29_spill] sm:$0xff] %v20395_v30  ;;  %vm4700_vm0 = vcmp.gt.f32.partialorder %v20395_v30, 0.0  ;;  %v4736_v46 = vmul.f32 0.1, %v20395_v30 }
 0x337   : > { %24797 = vst [vmem:[#allocation30_spill] sm:$0xff] %v20410_v13  ;;  %v4735_v33 = vmul.f32 0.1, %v20410_v13  ;;  %v15759_v57 = vpop.f32.mrb[2].mxu0  ;;  %vm4699_vm6 = vcmp.gt.f32.partialorder %v20410_v13, 0.0 }
 0x338   : > { %v20441_v41 = vadd.f32 %v15759_v57, %v20357_v28  ;;  %v4451_v24 = vpop.f32.mrb[3].mxu0  ;;  %v4772_v52 = vsel %vm4700_vm0, %v20395_v30, %v4736_v46 }
 0x339   : > { %v20451_v12 = vadd.f32 %v20357_v28, %v4451_v24  ;;  %v4808_v10 = vmul.f32 %v19790_v11, %v4772_v52  ;;  %v4771_v25 = vsel %vm4699_vm6, %v20410_v13, %v4735_v33 }
 0x33a   : > { %24801 = vst [vmem:[#allocation32_spill] sm:$0xff] %v20441_v41  ;;  %vm4702_vm12 = vcmp.gt.f32.partialorder %v20441_v41, 0.0  ;;  %v4738_v1 = vmul.f32 0.1, %v20441_v41  ;;  %v4807_v33 = vmul.f32 %v19855_v56, %v4771_v25 }
 0x33b   : > { %24802 = vst [vmem:[#allocation33_spill] sm:$0xff] %v20451_v12  ;;  %v4737_v37 = vmul.f32 0.1, %v20451_v12  ;;  %4886 = vrot.lane.b32.xlu0 %v4808_v10, %s18139_s15  ;;  %v15762_v44 = vpop.f32.mrb[4].mxu0  ;;  %vm4701_vm4 = vcmp.gt.f32.partialorder %v20451_v12, 0.0  ;;  %v5072_v10 = vld [vmem:[%s24460_s3] sm:$0xff] }
 0x33c   : > { %v20470_v4 = vadd.f32 %v15762_v44, %v20357_v28  ;;  %v4461_v14 = vpop.f32.mrb[5].mxu0  ;;  %v4774_v46 = vsel %vm4702_vm12, %v20441_v41, %v4738_v1 }
 0x33d   : > { %v20478_v27 = vadd.f32 %v20357_v28, %v4461_v14  ;;  %v4810_v57 = vmul.f32 %v19875_v58, %v4774_v46  ;;  %v4773_v52 = vsel %vm4701_vm4, %v20451_v12, %v4737_v37  ;;  %v20500_v37 = vpack.c.bf16 %v5073_v43, %v5072_v10 }
 0x33e   : > { %24803 = vst [vmem:[#allocation34_spill] sm:$0xff] %v20470_v4  ;;  %v4740_v24 = vmul.f32 0.1, %v20470_v4  ;;  %vm4704_vm13 = vcmp.gt.f32.partialorder %v20470_v4, 0.0  ;;  %v683_v46 = vmul.u32 18, %v682_v31  ;;  %v693_v43 = vshrl.u32 %v20429_v38, 4 }
 0x33f   : > { %24805 = vst [vmem:[#allocation35_spill] sm:$0xff] %v20478_v27  ;;  %v4739_v25 = vmul.f32 0.1, %v20478_v27  ;;  %4884 = vrot.lane.b32.xlu0 %v4807_v33, %s18139_s15  ;;  %4890 = vrot.lane.b32.xlu1 %v4810_v57, %s18139_s15  ;;  %v15765_v1 = vpop.f32.mrb[6].mxu0  ;;  %vm4703_vm2 = vcmp.gt.f32.partialorder %v20478_v27, 0.0  ;;  %v4809_v57 = vmul.f32 %v19914_v23, %v4773_v52  ;;  %v925_v38 = vsel %vm20510_vm7, %v889_v45, %v20445_v20 }
 0x340   : > { %v20503_v44 = vadd.f32 %v15765_v1, %v20357_v28  ;;  %v4471_v2 = vpop.f32.mrb[7].mxu0  ;;  %17001 = vmatprep.subr.bf16.mxu0 %v20500_v37  ;;  %v4776_v31 = vsel %vm4704_vm13, %v20470_v4, %v4740_v24  ;;  %v694_v45 = vmul.u32 18, %v693_v43  ;;  %vm961_vm6 = vcmp.ge.s32.totalorder %v925_v38, 1 }
 0x341   : > { %v20518_v33 = vadd.f32 %v20357_v28, %v4471_v2  ;;  %v4775_v10 = vsel %vm4703_vm2, %v20478_v27, %v4739_v25  ;;  %v20540_v25 = vsub.s32 %v20293_v5, %v683_v46  ;;  %v4812_v27 = vmul.f32 %v19925_v51, %v4776_v31 }
 0x342   : > { %24807 = vst [vmem:[#allocation36_spill] sm:$0xff] %v20503_v44  ;;  %v4742_v1 = vmul.f32 0.1, %v20503_v44  ;;  %v4811_v18 = vmul.f32 %v19934_v6, %v4775_v10  ;;  %vm4706_vm10 = vcmp.gt.f32.partialorder %v20503_v44, 0.0  ;;  %vm997_vm15 = vcmp.le.s32.totalorder %v925_v38, 16 }
 0x343   : > { %24810 = vst [vmem:[#allocation37_spill] sm:$0xff] %v20518_v33  ;;  %v4741_v55 = vmul.f32 0.1, %v20518_v33  ;;  %4888 = vrot.lane.b32.xlu1 %v4809_v57, %s18139_s15  ;;  %v15768_v2 = vpop.f32.mrb[8].mxu0  ;;  %vm4705_vm0 = vcmp.gt.f32.partialorder %v20518_v33, 0.0  ;;  %vm782_vm11 = vcmp.ne.s32.totalorder %v20540_v25, 0  ;;  %vm20595_vm1 = vmand %vm961_vm6, %vm997_vm15 }
 0x344   : > { %v20536_v52 = vadd.f32 %v15768_v2, %v20357_v28  ;;  %4892 = vrot.lane.b32.xlu0 %v4811_v18, %s18139_s15  ;;  %v4481_v24 = vpop.f32.mrb[9].mxu0  ;;  %v20543_v57 = vmul.u32.u64.low 3817748708, %v20407_v17  ;;  %v20544_v10 = vmul.u32.u64.high 3817748708, %v20407_v17, %v20543_v57  ;;  %v4778_v2 = vsel %vm4706_vm10, %v20503_v44, %v4742_v1 }
 0x345   : > { %v20547_v35 = vadd.f32 %v20357_v28, %v4481_v24  ;;  %v4777_v20 = vsel %vm4705_vm0, %v20518_v33, %v4741_v55  ;;  %v20572_v55 = vmul.u32.u64.low 3817748708, %v20418_v0  ;;  %v20573_v24 = vmul.u32.u64.high 3817748708, %v20418_v0, %v20572_v55 }
 0x346   : > { %24811 = vst [vmem:[#allocation38_spill] sm:$0xff] %v20536_v52  ;;  %v4744_v14 = vmul.f32 0.1, %v20536_v52  ;;  %v4813_v18 = vmul.f32 %v19939_v50, %v4777_v20  ;;  %vm4708_vm4 = vcmp.gt.f32.partialorder %v20536_v52, 0.0  ;;  %v4814_v20 = vmul.f32 %v19947_v22, %v4778_v2 }
 0x347   : > { %24812 = vst [vmem:[#allocation39_spill] sm:$0xff] %v20547_v35  ;;  %v4743_v5 = vmul.f32 0.1, %v20547_v35  ;;  %4894 = vrot.lane.b32.xlu1 %v4812_v27, %s18139_s15  ;;  %v15771_v46 = vpop.f32.mrb[10].mxu0  ;;  %vm4707_vm12 = vcmp.gt.f32.partialorder %v20547_v35, 0.0  ;;  %v704_v27 = vshrl.u32 %v20467_v40, 4 }
 0x348   : > { %v20559_v31 = vadd.f32 %v15771_v46, %v20357_v28  ;;  %4896 = vrot.lane.b32.xlu0 %v4813_v18, %s18139_s15  ;;  %v4491_v43 = vpop.f32.mrb[11].mxu0  ;;  %vm818_vm8 = vcmp.lt.s32.totalorder %v20540_v25, 0  ;;  %v24821_v55 = vmov 0.0  }
 0x349   : > { %v20577_v57 = vadd.f32 %v20357_v28, %v4491_v43  ;;  %v4779_v18 = vsel %vm4707_vm12, %v20547_v35, %v4743_v5  ;;  %v4780_v43 = vsel %vm4708_vm4, %v20536_v52, %v4744_v14  ;;  %v20607_v14 = vsel %vm20566_vm14, 1.0, %v24821_v55  ;;  %vm854_vm9 = vmand %vm818_vm8, %vm782_vm11 }
 0x34a   : > { %24813 = vst [vmem:[#allocation40_spill] sm:$0xff] %v20559_v31  ;;  %v4746_v40 = vmul.f32 0.1, %v20559_v31  ;;  %v4815_v46 = vmul.f32 %v19953_v49, %v4779_v18  ;;  %vm4710_vm13 = vcmp.gt.f32.partialorder %v20559_v31, 0.0  ;;  %24822 = vst [vmem:[#allocation42_spill] sm:$0xff] %v20607_v14  ;;  %v890_v35 = vadd.s32 18, %v20540_v25 }
 0x34b   : > { %24816 = vst [vmem:[#allocation41_spill] sm:$0xff] %v20577_v57  ;;  %v4745_v53 = vmul.f32 0.1, %v20577_v57  ;;  %4898 = vrot.lane.b32.xlu1 %v4814_v20, %s18139_s15  ;;  %v15774_v5 = vpop.f32.mrb[12].mxu0  ;;  %vm4709_vm2 = vcmp.gt.f32.partialorder %v20577_v57, 0.0  ;;  %v20616_v20 = vsel %vm20585_vm3, 1.0, %v24821_v55  ;;  %v20620_v52 = vsub.s32 %v20383_v47, %v694_v45 }
 0x34c   : > { %v20610_v38 = vadd.f32 %v15774_v5, %v20357_v28  ;;  %4900 = vrot.lane.b32.xlu0 %v4815_v46, %s18139_s15  ;;  %v4501_v18 = vpop.f32.mrb[13].mxu0  ;;  %24824 = vst [vmem:[#allocation44_spill] sm:$0xff] %v20616_v20  ;;  %v4816_v33 = vmul.f32 %v20078_v7, %v4780_v43  ;;  %v20630_v46 = vsel %vm20595_vm1, 1.0, %v24821_v55  ;;  %v4782_v48 = vsel %vm4710_vm13, %v20559_v31, %v4746_v40 }
 0x34d   : > { %v20623_v1 = vadd.f32 %v20357_v28, %v4501_v18  ;;  %v4781_v5 = vsel %vm4709_vm2, %v20577_v57, %v4745_v53  ;;  %24826 = vst [vmem:[#allocation46_spill] sm:$0xff] %v20630_v46  ;;  %v705_v43 = vmul.u32 18, %v704_v27  ;;  %v715_v18 = vshrl.u32 %v20544_v10, 4 }
 0x34e   : > { %24823 = vst [vmem:[#allocation43_spill] sm:$0xff] %v20610_v38  ;;  %v4748_v47 = vmul.f32 0.1, %v20610_v38  ;;  %v4817_v45 = vmul.f32 %v20083_v36, %v4781_v5  ;;  %vm4712_vm5 = vcmp.gt.f32.partialorder %v20610_v38, 0.0  ;;  %v926_v40 = vsel %vm854_vm9, %v890_v35, %v20540_v25 }
 0x34f   : > { %24825 = vst [vmem:[#allocation45_spill] sm:$0xff] %v20623_v1  ;;  %v4747_v53 = vmul.f32 0.1, %v20623_v1  ;;  %4902 = vrot.lane.b32.xlu1 %v4816_v33, %s18139_s15  ;;  %v15777_v2 = vpop.f32.mrb[14].mxu0  ;;  %vm4711_vm7 = vcmp.gt.f32.partialorder %v20623_v1, 0.0  ;;  %vm783_vm0 = vcmp.ne.s32.totalorder %v20620_v52, 0  ;;  %v4818_v27 = vmul.f32 %v20268_v16, %v4782_v48 }
 0x350   : > { %v20647_v57 = vadd.f32 %v15777_v2, %v20357_v28  ;;  %4904 = vrot.lane.b32.xlu0 %v4817_v45, %s18139_s15  ;;  %v4511_v5 = vpop.f32.mrb[15].mxu0  ;;  %vm819_vm10 = vcmp.lt.s32.totalorder %v20620_v52, 0  ;;  %v891_v10 = vadd.s32 18, %v20620_v52  ;;  %v4784_v44 = vsel %vm4712_vm5, %v20610_v38, %v4748_v47  ;;  %v13564_v48 = vld [vmem:[%s24460_s3 + $0x40] sm:$0xff] }
 0x351   : > { %v20654_v33 = vadd.f32 %v20357_v28, %v4511_v5  ;;  %v4783_v31 = vsel %vm4711_vm7, %v20623_v1, %v4747_v53  ;;  %v13565_v53 = vld [vmem:[%s24460_s3 + $0x48] sm:$0xff]  ;;  %v4820_v4 = vmul.f32 %v20298_v26, %v4784_v44  ;;  %vm962_vm4 = vcmp.ge.s32.totalorder %v926_v40, 1  ;;  %vm20696_vm14 = vmand %vm819_vm10, %vm783_vm0 }
 0x352   : > { %24827 = vst [vmem:[#allocation47_spill] sm:$0xff] %v20647_v57  ;;  %v4750_v2 = vmul.f32 0.1, %v20647_v57  ;;  %v4819_v45 = vmul.f32 %v20279_v9, %v4783_v31  ;;  %vm4714_vm6 = vcmp.gt.f32.partialorder %v20647_v57, 0.0  ;;  %v20680_v1 = vpack.c.bf16 %v13565_v53, %v13564_v48  ;;  %v13603_v48 = vld [vmem:[%s24460_s3 + $0x58] sm:$0xff] }
 0x353   : > { %24828 = vst [vmem:[#allocation48_spill] sm:$0xff] %v20654_v33  ;;  %v4749_v35 = vmul.f32 0.1, %v20654_v33  ;;  %4906 = vrot.lane.b32.xlu1 %v4818_v27, %s18139_s15  ;;  %v15780_v25 = vpop.f32.mrb[16].mxu0  ;;  %vm4713_vm12 = vcmp.gt.f32.partialorder %v20654_v33, 0.0  ;;  %vm998_vm15 = vcmp.le.s32.totalorder %v926_v40, 16 }
 0x354   : > { %v20673_v31 = vadd.f32 %v15780_v25, %v20357_v28  ;;  %4908 = vrot.lane.b32.xlu0 %v4819_v45, %s18139_s15  ;;  %v4521_v47 = vpop.f32.mrb[17].mxu0  ;;  %v20677_v5 = vmul.u32.u64.low 3817748708, %v20438_v54  ;;  %v20678_v27 = vmul.u32.u64.high 3817748708, %v20438_v54, %v20677_v5  ;;  %v4786_v45 = vsel %vm4714_vm6, %v20647_v57, %v4750_v2  ;;  %17068 = vmatprep.subr.bf16.mxu1 %v20680_v1  ;;  %vm20724_vm1 = vmand %vm962_vm4, %vm998_vm15  ;;  %v13602_v40 = vld [vmem:[%s24460_s3 + $0x50] sm:$0xff] }
 0x355   : > { %v20683_v38 = vadd.f32 %v20357_v28, %v4521_v47  ;;  %v4785_v12 = vsel %vm4713_vm12, %v20654_v33, %v4749_v35  ;;  %v20706_v2 = vsub.s32 %v20404_v59, %v705_v43  ;;  %17069 = vmatpush3.bf16.msra.mxu1 %v20680_v1  ;;  %v716_v47 = vmul.u32 18, %v715_v18 }
 0x356   : > { %24829 = vst [vmem:[#allocation49_spill] sm:$0xff] %v20673_v31  ;;  %v4752_v25 = vmul.f32 0.1, %v20673_v31  ;;  %v4821_v41 = vmul.f32 %v20309_v3, %v4785_v12  ;;  %vm4716_vm11 = vcmp.gt.f32.partialorder %v20673_v31, 0.0  ;;  %v4822_v57 = vmul.f32 %v20314_v8, %v4786_v45 }
 0x357   : > { %24830 = vst [vmem:[#allocation50_spill] sm:$0xff] %v20683_v38  ;;  %v4751_v44 = vmul.f32 0.1, %v20683_v38  ;;  %4910 = vrot.lane.b32.xlu1 %v4820_v4, %s18139_s15  ;;  %v15783_v12 = vpop.f32.mrb[18].mxu0  ;;  %vm4715_vm3 = vcmp.gt.f32.partialorder %v20683_v38, 0.0  ;;  %vm784_vm13 = vcmp.ne.s32.totalorder %v20706_v2, 0 }
 0x358   : > { %v20710_v35 = vadd.f32 %v15783_v12, %v20357_v28  ;;  %4912 = vrot.lane.b32.xlu0 %v4821_v41, %s18139_s15  ;;  %v4531_v53 = vpop.f32.mrb[19].mxu0  ;;  %v20714_v5 = vmul.u32.u64.low 3817748708, %v20515_v32  ;;  %v20715_v4 = vmul.u32.u64.high 3817748708, %v20515_v32, %v20714_v5  ;;  %v20731_v41 = vsel %vm20696_vm14, %v891_v10, %v20620_v52 }
 0x359   : > { %v20718_v33 = vadd.f32 %v20357_v28, %v4531_v53  ;;  %v4787_v59 = vsel %vm4715_vm3, %v20683_v38, %v4751_v44  ;;  %v4788_v45 = vsel %vm4716_vm11, %v20673_v31, %v4752_v25  ;;  %v726_v44 = vshrl.u32 %v20573_v24, 4 }
 0x35a   : > { %24833 = vst [vmem:[#allocation51_spill] sm:$0xff] %v20710_v35  ;;  %v4754_v18 = vmul.f32 0.1, %v20710_v35  ;;  %v4823_v12 = vmul.f32 %v20319_v42, %v4787_v59  ;;  %vm4718_vm2 = vcmp.gt.f32.partialorder %v20710_v35, 0.0  ;;  %v20749_v25 = vpack.c.bf16 %v13603_v48, %v13602_v40 }
 0x35b   : > { %24834 = vst [vmem:[#allocation52_spill] sm:$0xff] %v20718_v33  ;;  %v4753_v52 = vmul.f32 0.1, %v20718_v33  ;;  %4914 = vrot.lane.b32.xlu1 %v4822_v57, %s18139_s15  ;;  %v15786_v10 = vpop.f32.mrb[20].mxu0  ;;  %vm4717_vm8 = vcmp.gt.f32.partialorder %v20718_v33, 0.0  ;;  %v20758_v5 = vsel %vm20724_vm1, 1.0, %v24821_v55  ;;  %v717_v57 = vsub.s32 %v20407_v17, %v716_v47 }
 0x35c   : > { %v20752_v24 = vadd.f32 %v15786_v10, %v20357_v28  ;;  %4916 = vrot.lane.b32.xlu0 %v4823_v12, %s18139_s15  ;;  %v4541_v53 = vpop.f32.mrb[21].mxu0  ;;  %24838 = vst [vmem:[#allocation54_spill] sm:$0xff] %v20758_v5  ;;  %v737_v59 = vshrl.u32 %v20678_v27, 4  ;;  %v4824_v40 = vmul.f32 %v20324_v39, %v4788_v45  ;;  %17017 = vmatprep.subr.bf16.mxu1 %v20749_v25  ;;  %vm820_vm9 = vcmp.lt.s32.totalorder %v20706_v2, 0 }
 0x35d   : > { %v20763_v38 = vadd.f32 %v20357_v28, %v4541_v53  ;;  %v4789_v48 = vsel %vm4717_vm8, %v20718_v33, %v4753_v52  ;;  %v4790_v10 = vsel %vm4718_vm2, %v20710_v35, %v4754_v18  ;;  %v892_v47 = vadd.s32 18, %v20706_v2  ;;  %vm20794_vm6 = vmand %vm820_vm9, %vm784_vm13 }
 0x35e   : > { %24837 = vst [vmem:[#allocation53_spill] sm:$0xff] %v20752_v24  ;;  %v4756_v12 = vmul.f32 0.1, %v20752_v24  ;;  %v4825_v43 = vmul.f32 %v20335_v61, %v4789_v48  ;;  %vm4720_vm5 = vcmp.gt.f32.partialorder %v20752_v24, 0.0  ;;  %vm785_vm0 = vcmp.ne.s32.totalorder %v717_v57, 0 }
 0x35f   : > { %24839 = vst [vmem:[#allocation55_spill] sm:$0xff] %v20763_v38  ;;  %v4755_v17 = vmul.f32 0.1, %v20763_v38  ;;  %4918 = vrot.lane.b32.xlu1 %v4824_v40, %s18139_s15  ;;  %v15789_v27 = vpop.f32.mrb[22].mxu0  ;;  %vm4719_vm7 = vcmp.gt.f32.partialorder %v20763_v38, 0.0  ;;  %v727_v18 = vmul.u32 18, %v726_v44  ;;  %v4826_v40 = vmul.f32 %v20343_v29, %v4790_v10 }
 0x360   : > { %v20779_v45 = vadd.f32 %v15789_v27, %v20357_v28  ;;  %4920 = vrot.lane.b32.xlu0 %v4825_v43, %s18139_s15  ;;  %v4551_v52 = vpop.f32.mrb[23].mxu0  ;;  %v738_v53 = vmul.u32 18, %v737_v59  ;;  %vm821_vm10 = vcmp.lt.s32.totalorder %v717_v57, 0  ;;  %v4792_v27 = vsel %vm4720_vm5, %v20752_v24, %v4756_v12 }
 0x361   : > { %v20783_v48 = vadd.f32 %v20357_v28, %v4551_v52  ;;  %v4791_v33 = vsel %vm4719_vm7, %v20763_v38, %v4755_v17  ;;  %v748_v59 = vshrl.u32 %v20715_v4, 4  ;;  %vm963_vm15 = vcmp.ge.s32.totalorder %v20731_v41, 1  ;;  %vm20811_vm3 = vmand %vm821_vm10, %vm785_vm0 }
 0x362   : > { %24840 = vst [vmem:[#allocation56_spill] sm:$0xff] %v20779_v45  ;;  %v4758_v35 = vmul.f32 0.1, %v20779_v45  ;;  %v4827_v31 = vmul.f32 %v20362_v19, %v4791_v33  ;;  %vm4722_vm4 = vcmp.gt.f32.partialorder %v20779_v45, 0.0  ;;  %v893_v33 = vadd.s32 18, %v717_v57 }
 0x363   : > { %24841 = vst [vmem:[#allocation57_spill] sm:$0xff] %v20783_v48  ;;  %v4757_v43 = vmul.f32 0.1, %v20783_v48  ;;  %4922 = vrot.lane.b32.xlu1 %v4826_v40, %s18139_s15  ;;  %v15792_v10 = vpop.f32.mrb[24].mxu0  ;;  %vm4721_vm12 = vcmp.gt.f32.partialorder %v20783_v48, 0.0  ;;  %vm999_vm14 = vcmp.le.s32.totalorder %v20731_v41, 16  ;;  %v20816_v52 = vsub.s32 %v20418_v0, %v727_v18 }
 0x364   : > { %v20804_v12 = vadd.f32 %v15792_v10, %v20357_v28  ;;  %4924 = vrot.lane.b32.xlu0 %v4827_v31, %s18139_s15  ;;  %v4561_v17 = vpop.f32.mrb[25].mxu0  ;;  %v20819_v40 = vsub.s32 %v20438_v54, %v738_v53  ;;  %v4828_v31 = vmul.f32 %v20367_v15, %v4792_v27  ;;  %v20829_v24 = vsel %vm20794_vm6, %v892_v47, %v20706_v2 }
 0x365   : > { %v20822_v10 = vadd.f32 %v20357_v28, %v4561_v17  ;;  %v4793_v38 = vsel %vm4721_vm12, %v20783_v48, %v4757_v43  ;;  %v4794_v54 = vsel %vm4722_vm4, %v20779_v45, %v4758_v35  ;;  %v749_v18 = vmul.u32 18, %v748_v59 }
 0x366   : > { %24844 = vst [vmem:[#allocation58_spill] sm:$0xff] %v20804_v12  ;;  %v4760_v13 = vmul.f32 0.1, %v20804_v12  ;;  %v4829_v0 = vmul.f32 %v20372_v63, %v4793_v38  ;;  %vm4724_vm1 = vcmp.gt.f32.partialorder %v20804_v12, 0.0  ;;  %v20842_v2 = vsel %vm20811_vm3, %v893_v33, %v717_v57 }
 0x367   : > { %24847 = vst [vmem:[#allocation59_spill] sm:$0xff] %v20822_v10  ;;  %v4759_v53 = vmul.f32 0.1, %v20822_v10  ;;  %4926 = vrot.lane.b32.xlu1 %v4828_v31, %s18139_s15  ;;  %v15795_v27 = vpop.f32.mrb[26].mxu0  ;;  %vm4723_vm11 = vcmp.gt.f32.partialorder %v20822_v10, 0.0  ;;  %vm786_vm8 = vcmp.ne.s32.totalorder %v20816_v52, 0  ;;  %v4830_v44 = vmul.f32 %v20375_v21, %v4794_v54 }
 0x368   : > { %v20845_v38 = vadd.f32 %v15795_v27, %v20357_v28  ;;  %4928 = vrot.lane.b32.xlu0 %v4829_v0, %s18139_s15  ;;  %v4571_v35 = vpop.f32.mrb[27].mxu0  ;;  %vm822_vm2 = vcmp.lt.s32.totalorder %v20816_v52, 0  ;;  %vm787_vm13 = vcmp.ne.s32.totalorder %v20819_v40, 0  ;;  %vm823_vm9 = vcmp.lt.s32.totalorder %v20819_v40, 0 }
 0x369   : > { %v20852_v47 = vadd.f32 %v20357_v28, %v4571_v35  ;;  %v4795_v57 = vsel %vm4723_vm11, %v20822_v10, %v4759_v53  ;;  %v4796_v33 = vsel %vm4724_vm1, %v20804_v12, %v4760_v13  ;;  %v20861_v17 = vsub.s32 %v20515_v32, %v749_v18  ;;  %vm20877_vm6 = vmand %vm822_vm2, %vm786_vm8 }
 0x36a   : > { %24848 = vst [vmem:[#allocation60_spill] sm:$0xff] %v20845_v38  ;;  %v4762_v59 = vmul.f32 0.1, %v20845_v38  ;;  %v4831_v43 = vmul.f32 %v20392_v34, %v4795_v57  ;;  %vm4726_vm5 = vcmp.gt.f32.partialorder %v20845_v38, 0.0  ;;  %vm964_vm0 = vcmp.ge.s32.totalorder %v20829_v24, 1  ;;  %vm20893_vm4 = vmand %vm823_vm9, %vm787_vm13 }
 0x36b   : > { %24849 = vst [vmem:[#allocation61_spill] sm:$0xff] %v20852_v47  ;;  %v4761_v4 = vmul.f32 0.1, %v20852_v47  ;;  %4930 = vrot.lane.b32.xlu1 %v4830_v44, %s18139_s15  ;;  %v15798_v31 = vpop.f32.mrb[28].mxu0  ;;  %vm4725_vm7 = vcmp.gt.f32.partialorder %v20852_v47, 0.0  ;;  %vm1000_vm10 = vcmp.le.s32.totalorder %v20829_v24, 16  ;;  %v4832_v27 = vmul.f32 %v20415_v60, %v4796_v33  ;;  %vm1035_vm8 = vmand %vm963_vm15, %vm999_vm14 }
 0x36c   : > { %v20869_v0 = vadd.f32 %v15798_v31, %v20357_v28  ;;  %4932 = vrot.lane.b32.xlu0 %v4831_v43, %s18139_s15  ;;  %v4581_v13 = vpop.f32.mrb[29].mxu0  ;;  %v894_v54 = vadd.s32 18, %v20816_v52  ;;  %v895_v18 = vadd.s32 18, %v20819_v40  ;;  %vm965_vm12 = vcmp.ge.s32.totalorder %v20842_v2, 1  ;;  %vm20950_vm9 = vmand %vm964_vm0, %vm1000_vm10 }
 0x36d   : > { %v20884_v53 = vadd.f32 %v20357_v28, %v4581_v13  ;;  %v4797_v35 = vsel %vm4725_vm7, %v20852_v47, %v4761_v4  ;;  %v4798_v33 = vsel %vm4726_vm5, %v20845_v38, %v4762_v59  ;;  %vm788_vm3 = vcmp.ne.s32.totalorder %v20861_v17, 0 }
 0x36e   : > { %24850 = vst [vmem:[#allocation62_spill] sm:$0xff] %v20869_v0  ;;  %v4764_v57 = vmul.f32 0.1, %v20869_v0  ;;  %v4833_v43 = vmul.f32 %v20607_v14, %v4797_v35  ;;  %vm4728_vm1 = vcmp.gt.f32.partialorder %v20869_v0, 0.0  ;;  %vm824_vm2 = vcmp.lt.s32.totalorder %v20861_v17, 0 }
 0x36f   : > { %24853 = vst [vmem:[#allocation63_spill] sm:$0xff] %v20884_v53  ;;  %v4763_v4 = vmul.f32 0.1, %v20884_v53  ;;  %4934 = vrot.lane.b32.xlu1 %v4832_v27, %s18139_s15  ;;  %v15801_v31 = vpop.f32.mrb[30].mxu0  ;;  %vm4727_vm11 = vcmp.gt.f32.partialorder %v20884_v53, 0.0  ;;  %vm1001_vm13 = vcmp.le.s32.totalorder %v20842_v2, 16  ;;  %v930_v27 = vsel %vm20877_vm6, %v894_v54, %v20816_v52  ;;  %vm20939_vm15 = vmand %vm824_vm2, %vm788_vm3 }
 0x370   : > { %v20913_v59 = vadd.f32 %v15801_v31, %v20357_v28  ;;  %4936 = vrot.lane.b32.xlu0 %v4833_v43, %s18139_s15  ;;  %v4591_v13 = vpop.f32.mrb[31].mxu0  ;;  %v931_v35 = vsel %vm20893_vm4, %v895_v18, %v20819_v40  ;;  %v4834_v47 = vmul.f32 %v20616_v20, %v4798_v33  ;;  %v896_v43 = vadd.s32 18, %v20861_v17  ;;  %vm1037_vm6 = vmand %vm965_vm12, %vm1001_vm13 }
 0x371   : > { %v20924_v41 = vadd.f32 %v20357_v28, %v4591_v13  ;;  %v4799_v31 = vsel %vm4727_vm11, %v20884_v53, %v4763_v4  ;;  %v4800_v32 = vsel %vm4728_vm1, %v20869_v0, %v4764_v57  ;;  %v20933_v52 = vsel %vm1035_vm8, 1.0, %v24821_v55 }
 0x372   : > { %24856 = vst [vmem:[#allocation64_spill] sm:$0xff] %v20913_v59  ;;  %v4766_v38 = vmul.f32 0.1, %v20913_v59  ;;  %v4835_v10 = vmul.f32 %v20630_v46, %v4799_v31  ;;  %24858 = vst [vmem:[#allocation66_spill] sm:$0xff] %v20933_v52  ;;  %vm4730_vm7 = vcmp.gt.f32.partialorder %v20913_v59, 0.0  ;;  %vm966_vm5 = vcmp.ge.s32.totalorder %v930_v27, 1 }
 0x373   : > { %24857 = vst [vmem:[#allocation65_spill] sm:$0xff] %v20924_v41  ;;  %v4765_v54 = vmul.f32 0.1, %v20924_v41  ;;  %4938 = vrot.lane.b32.xlu1 %v4834_v47, %s18139_s15  ;;  %v15804_v18 = vpop.f32.mrb[32].mxu0  ;;  %vm4729_vm14 = vcmp.gt.f32.partialorder %v20924_v41, 0.0  ;;  %vm1002_vm4 = vcmp.le.s32.totalorder %v930_v27, 16  ;;  %v4836_v33 = vmul.f32 %v20758_v5, %v4800_v32 }
 0x374   : > { %v20956_v57 = vadd.f32 %v15804_v18, %v20357_v28  ;;  %4940 = vrot.lane.b32.xlu0 %v4835_v10, %s18139_s15  ;;  %v4601_v47 = vpop.f32.mrb[33].mxu0  ;;  %vm967_vm3 = vcmp.ge.s32.totalorder %v931_v35, 1  ;;  %vm1003_vm0 = vcmp.le.s32.totalorder %v931_v35, 16  ;;  %v932_v10 = vsel %vm20939_vm15, %v896_v43, %v20861_v17  ;;  %vm1038_vm12 = vmand %vm966_vm5, %vm1002_vm4 }
 0x375   : > { %v20964_v24 = vadd.f32 %v20357_v28, %v4601_v47  ;;  %v4801_v4 = vsel %vm4729_vm14, %v20924_v41, %v4765_v54  ;;  %v20976_v2 = vsel %vm20950_vm9, 1.0, %v24821_v55  ;;  %v4802_v18 = vsel %vm4730_vm7, %v20913_v59, %v4766_v38  ;;  %vm1039_vm1 = vmand %vm967_vm3, %vm1003_vm0 }
 0x376   : > { %24863 = vst [vmem:[#allocation67_spill] sm:$0xff] %v20956_v57  ;;  %v4768_v13 = vmul.f32 0.1, %v20956_v57  ;;  %v4837_v31 = vmul.f32 %v20933_v52, %v4801_v4  ;;  %24865 = vst [vmem:[#allocation69_spill] sm:$0xff] %v20976_v2  ;;  %v20984_v17 = vsel %vm1037_vm6, 1.0, %v24821_v55  ;;  %vm4732_vm11 = vcmp.gt.f32.partialorder %v20956_v57, 0.0 }
 0x377   : > { %24864 = vst [vmem:[#allocation68_spill] sm:$0xff] %v20964_v24  ;;  %v4767_v32 = vmul.f32 0.1, %v20964_v24  ;;  %4942 = vrot.lane.b32.xlu1 %v4836_v33, %s18139_s15  ;;  %v15807_v54 = vpop.f32.mrb[34].mxu0  ;;  %24866 = vst [vmem:[#allocation70_spill] sm:$0xff] %v20984_v17  ;;  %vm4731_vm10 = vcmp.gt.f32.partialorder %v20964_v24, 0.0  ;;  %v4838_v44 = vmul.f32 %v20976_v2, %v4802_v18 }
 0x378   : > { %v20991_v43 = vadd.f32 %v15807_v54, %v20357_v28  ;;  %4944 = vrot.lane.b32.xlu0 %v4837_v31, %s18139_s15  ;;  %v4611_v38 = vpop.f32.mrb[35].mxu0  ;;  %vm968_vm8 = vcmp.ge.s32.totalorder %v932_v10, 1  ;;  %vm1004_vm2 = vcmp.le.s32.totalorder %v932_v10, 16  ;;  %v21004_v4 = vsel %vm1038_vm12, 1.0, %v24821_v55 }
 0x379   : > { %v20997_v40 = vadd.f32 %v20357_v28, %v4611_v38  ;;  %v4803_v27 = vsel %vm4731_vm10, %v20964_v24, %v4767_v32  ;;  %24869 = vst [vmem:[#allocation73_spill] sm:$0xff] %v21004_v4  ;;  %v4804_v31 = vsel %vm4732_vm11, %v20956_v57, %v4768_v13  ;;  %v21010_v28 = vsel %vm1039_vm1, 1.0, %v24821_v55  ;;  %vm1040_vm15 = vmand %vm968_vm8, %vm1004_vm2 }
 0x37a   : > { %24867 = vst [vmem:[#allocation71_spill] sm:$0xff] %v20991_v43  ;;  %v4770_v47 = vmul.f32 0.1, %v20991_v43  ;;  %v4839_v33 = vmul.f32 %v20984_v17, %v4803_v27  ;;  %24870 = vst [vmem:[#allocation74_spill] sm:$0xff] %v21010_v28  ;;  %vm4734_vm14 = vcmp.gt.f32.partialorder %v20991_v43, 0.0  ;;  %v4840_v10 = vmul.f32 %v21004_v4, %v4804_v31  ;;  %v13488_v31 = vld [vmem:[%s24460_s3 + $0x20] sm:$0xff] }
 0x37b   : > { %24868 = vst [vmem:[#allocation72_spill] sm:$0xff] %v20997_v40  ;;  %v4769_v35 = vmul.f32 0.1, %v20997_v40  ;;  %4946 = vrot.lane.b32.xlu1 %v4838_v44, %s18139_s15  ;;  %vm4733_vm13 = vcmp.gt.f32.partialorder %v20997_v40, 0.0  ;;  %v21019_v32 = vsel %vm1040_vm15, 1.0, %v24821_v55  ;;  %vm24872_vm9 = vcmask 130048  }
 0x37c   : > { %4948 = vrot.lane.b32.xlu0 %v4839_v33, %s18139_s15  ;;  %24871 = vst [vmem:[#allocation75_spill] sm:$0xff] %v21019_v32  ;;  %v4806_v54 = vsel %vm4734_vm14, %v20991_v43, %v4770_v47  ;;  %vm24873_vm7 = vmmov %vm24872_vm9  ;;  %vm24880_vm10 = vcmask 1046528  }
 0x37d   : > { %v4805_v18 = vsel %vm4733_vm13, %v20997_v40, %v4769_v35  ;;  %v4842_v38 = vmul.f32 %v21019_v32, %v4806_v54  ;;  %vm24874_vm5 = vmmov %vm24873_vm7  ;;  %v13489_v35 = vld [vmem:[%s24460_s3 + $0x28] sm:$0xff] }
 0x37e   : > { %v4841_v13 = vmul.f32 %v21010_v28, %v4805_v18  ;;  %vm24875_vm6 = vmmov %vm24874_vm5 }
 0x37f   : > { %4950 = vrot.lane.b32.xlu1 %v4840_v10, %s18139_s15  ;;  %vm24876_vm4 = vmmov %vm24874_vm5 }
 0x380   : > { %4952 = vrot.lane.b32.xlu0 %v4841_v13, %s18139_s15  ;;  %vm24877_vm3 = vmmov %vm24876_vm4 }
 0x381   : > { %vm24878_vm0 = vmmov %vm24877_vm3 }
 0x382   : > { %vm24881_vm12 = vmmov %vm24880_vm10 }
 0x383   : > { %4954 = vrot.lane.b32.xlu1 %v4842_v38, %s18139_s15  ;;  %vm24882_vm11 = vmmov %vm24878_vm0 }
 0x384   : > { %vm24883_vm1 = vmmov %vm24878_vm0 }
 0x385   : > { %vm24884_vm8 = vmmov %vm24878_vm0 }
 0x386   : > { %vm24885_vm2 = vmmov %vm24878_vm0 }
 0x387   : > { %vm24886_vm13 = vmmov %vm24880_vm10 }
 0x388   : > { %vm24887_vm15 = vmmov %vm24880_vm10 }
 0x389   : > { %vm24888_vm14 = vmmov %vm24878_vm0 }
 0x3ad   : > { %v4887_v44 = vpop.permute.xlu0 %4886 }
 0x3ae   : > { %4993 = vst.msk [vmem:[#allocation2 + $0x1b] sm:$0xff] %vm24872_vm9, %v4887_v44  ;;  %vm24889_vm9 = vmmov %vm24878_vm0 }
 0x3b1   : > { %v4885_v27 = vpop.permute.xlu0 %4884  ;;  %v4891_v33 = vpop.permute.xlu1 %4890 }
 0x3b2   : > { %4992 = vst.msk [vmem:[#allocation2 + $0x13] sm:$0xff] %vm24873_vm7, %v4885_v27  ;;  %v21045_v27 = vpack.c.bf16 %v13489_v35, %v13488_v31  ;;  %vm24890_vm7 = vmmov %vm24878_vm0 }
 0x3b3   : > { %4995 = vst.msk [vmem:[#allocation2 + $0x2b] sm:$0xff] %vm24874_vm5, %v4891_v33  ;;  %v24879_v33 = vrot.slane %v20448_v62, 1  ;;  %vm24891_vm5 = vmmov %vm24878_vm0 }
 0x3b5   : > { %v4889_v55 = vpop.permute.xlu1 %4888 }
 0x3b6   : > { %4994 = vst.msk [vmem:[#allocation2 + $0x23] sm:$0xff] %vm24875_vm6, %v4889_v55  ;;  %v4893_v47 = vpop.permute.xlu0 %4892  ;;  %vm24892_vm6 = vmmov %vm24880_vm10 }
 0x3b7   : > { %4996 = vst.msk [vmem:[#allocation2 + $0x33] sm:$0xff] %vm24876_vm4, %v4893_v47  ;;  %vm24893_vm4 = vmmov %vm24892_vm6 }
 0x3b9   : > { %v4895_v10 = vpop.permute.xlu1 %4894  ;;  %v21037_v18 = vld [vmem:[#allocation2 + $0x10] sm:$0xff]  ;;  %v21039_v13 = vld [vmem:[#allocation2 + $0x18] sm:$0xff] }
 0x3ba   : > { %4997 = vst.msk [vmem:[#allocation2 + $0x3b] sm:$0xff] %vm24877_vm3, %v4895_v10  ;;  %v4897_v54 = vpop.permute.xlu0 %4896  ;;  %v5117_v38 = vrot.slane %v21037_v18, 1  ;;  %v5119_v44 = vrot.slane %v21039_v13, 1  ;;  %vm24894_vm3 = vmmov %vm24878_vm0  ;;  %v6976_v26 = vrot.slane %v21037_v18, 4  ;;  %v6977_v36 = vrot.slane %v21039_v13, 4 }
 0x3bb   : > { %4998 = vst.msk [vmem:[#allocation2 + $0x43] sm:$0xff] %vm24878_vm0, %v4897_v54 }
 0x3bc   : > { %v5118_v55 = vsel %vm24880_vm10, %v24879_v33, %v5117_v38  ;;  %v5120_v47 = vsel %vm24881_vm12, %v5117_v38, %v5119_v44  ;;  %vm24895_vm10 = vmmov %vm24878_vm0 }
 0x3bd   : > { %15813 = vmatmul.mubr.msk.f32.vlgmr.msra.gmra.mrb[36].mxu0 %vm24882_vm11, %v5118_v55  ;;  %v4899_v40 = vpop.permute.xlu1 %4898  ;;  %v21052_v43 = vld [vmem:[#allocation2 + $0x20] sm:$0xff]  ;;  %v21054_v10 = vld [vmem:[#allocation2 + $0x28] sm:$0xff]  ;;  %vm24896_vm12 = vmmov %vm24878_vm0 }
 0x3be   : > { %4999 = vst.msk [vmem:[#allocation2 + $0x4b] sm:$0xff] %vm24883_vm1, %v4899_v40  ;;  %15815 = vmatprep.mubr.msk.f32.mxu0 %vm24884_vm8, %v5120_v47  ;;  %v4901_v54 = vpop.permute.xlu0 %4900  ;;  %17003 = vmatpush3.bf16.msra.mxu0 %v20500_v37  ;;  %v5121_v62 = vrot.slane %v21052_v43, 1  ;;  %v5123_v31 = vrot.slane %v21054_v10, 1  ;;  %v21061_v35 = vld [vmem:[#allocation2 + $0x30] sm:$0xff]  ;;  %vm24897_vm11 = vmmov %vm24893_vm4 }
 0x3bf   : > { %5000 = vst.msk [vmem:[#allocation2 + $0x53] sm:$0xff] %vm24885_vm2, %v4901_v54  ;;  %17005 = vmatprep.subr.bf16.mxu0 %v21045_v27  ;;  %v5125_v40 = vrot.slane %v21061_v35, 1  ;;  %vm24898_vm1 = vmmov %vm24893_vm4 }
 0x3c0   : > { %v5122_v38 = vsel %vm24886_vm13, %v5119_v44, %v5121_v62  ;;  %v5124_v33 = vsel %vm24887_vm15, %v5121_v62, %v5123_v31  ;;  %vm24899_vm8 = vmmov %vm24878_vm0 }
 0x3c1   : > { %15816 = vmatmul.mubr.msk.f32.gmra.mrb[38].mxu0 %vm24888_vm14, %v5122_v38  ;;  %v4903_v55 = vpop.permute.xlu1 %4902  ;;  %v21069_v37 = vld [vmem:[#allocation2 + $0x38] sm:$0xff]  ;;  %v5126_v44 = vsel %vm24892_vm6, %v5123_v31, %v5125_v40  ;;  %vm24900_vm2 = vmmov %vm24878_vm0 }
 0x3c2   : > { %5001 = vst.msk [vmem:[#allocation2 + $0x5b] sm:$0xff] %vm24889_vm9, %v4903_v55  ;;  %15818 = vmatprep.mubr.msk.f32.mxu0 %vm24890_vm7, %v5124_v33  ;;  %v4905_v47 = vpop.permute.xlu0 %4904  ;;  %v5127_v54 = vrot.slane %v21069_v37, 1  ;;  %v21074_v24 = vld [vmem:[#allocation2 + $0x40] sm:$0xff]  ;;  %vm24901_vm13 = vmmov %vm24878_vm0 }
 0x3c3   : > { %5002 = vst.msk [vmem:[#allocation2 + $0x63] sm:$0xff] %vm24891_vm5, %v4905_v47  ;;  %v5129_v38 = vrot.slane %v21074_v24, 1  ;;  %vm24902_vm15 = vmmov %vm24878_vm0 }
 0x3c4   : > { %v5128_v62 = vsel %vm24893_vm4, %v5125_v40, %v5127_v54  ;;  %vm24903_vm14 = vmmov %vm24898_vm1 }
 0x3c5   : > { %15819 = vmatmul.mubr.msk.f32.gmra.mrb[40].mxu0 %vm24894_vm3, %v5126_v44  ;;  %v4907_v57 = vpop.permute.xlu1 %4906  ;;  %v21081_v41 = vld [vmem:[#allocation2 + $0x48] sm:$0xff]  ;;  %v5130_v31 = vsel %vm24897_vm11, %v5127_v54, %v5129_v38  ;;  %vm24904_vm9 = vmmov %vm24898_vm1 }
 0x3c6   : > { %5003 = vst.msk [vmem:[#allocation2 + $0x6b] sm:$0xff] %vm24878_vm0, %v4907_v57  ;;  %15821 = vmatprep.mubr.msk.f32.mxu0 %vm24895_vm10, %v5128_v62  ;;  %v4909_v33 = vpop.permute.xlu0 %4908  ;;  %v5131_v55 = vrot.slane %v21081_v41, 1  ;;  %v21086_v59 = vld [vmem:[#allocation2 + $0x50] sm:$0xff]  ;;  %vm24905_vm7 = vmmov %vm24878_vm0 }
 0x3c7   : > { %5004 = vst.msk [vmem:[#allocation2 + $0x73] sm:$0xff] %vm24896_vm12, %v4909_v33  ;;  %v5133_v47 = vrot.slane %v21086_v59, 1  ;;  %vm24906_vm5 = vmmov %vm24878_vm0 }
 0x3c8   : > { %v5132_v40 = vsel %vm24898_vm1, %v5129_v38, %v5131_v55  ;;  %vm24907_vm6 = vmmov %vm24878_vm0 }
 0x3c9   : > { %15822 = vmatmul.mubr.msk.f32.gmra.mrb[42].mxu0 %vm24899_vm8, %v5130_v31  ;;  %v4911_v44 = vpop.permute.xlu1 %4910  ;;  %v21093_v53 = vld [vmem:[#allocation2 + $0x58] sm:$0xff]  ;;  %v5134_v54 = vsel %vm24903_vm14, %v5131_v55, %v5133_v47  ;;  %vm24908_vm4 = vmmov %vm24878_vm0 }
 0x3ca   : > { %5005 = vst.msk [vmem:[#allocation2 + $0x7b] sm:$0xff] %vm24900_vm2, %v4911_v44  ;;  %15824 = vmatprep.mubr.msk.f32.mxu0 %vm24901_vm13, %v5132_v40  ;;  %v4913_v57 = vpop.permute.xlu0 %4912  ;;  %v5135_v62 = vrot.slane %v21093_v53, 1  ;;  %v21098_v0 = vld [vmem:[#allocation2 + $0x60] sm:$0xff]  ;;  %vm24909_vm3 = vmmov %vm24898_vm1 }
 0x3cb   : > { %5006 = vst.msk [vmem:[#allocation2 + $0x83] sm:$0xff] %vm24902_vm15, %v4913_v57  ;;  %v5137_v33 = vrot.slane %v21098_v0, 1  ;;  %vm24910_vm0 = vmmov %vm24898_vm1  ;;  %v6995_v56 = vrot.slane %v21098_v0, 4 }
 0x3cc   : > { %v5136_v38 = vsel %vm24904_vm9, %v5133_v47, %v5135_v62  ;;  %vm24911_vm10 = vmmov %vm24900_vm2 }
 0x3cd   : > { %15825 = vmatmul.mubr.msk.f32.gmra.mrb[44].mxu0 %vm24905_vm7, %v5134_v54  ;;  %v4915_v31 = vpop.permute.xlu1 %4914  ;;  %v21105_v12 = vld [vmem:[#allocation2 + $0x68] sm:$0xff]  ;;  %v5138_v55 = vsel %vm24909_vm3, %v5135_v62, %v5137_v33  ;;  %vm24912_vm12 = vmmov %vm24900_vm2 }
 0x3ce   : > { %5007 = vst.msk [vmem:[#allocation2 + $0x8b] sm:$0xff] %vm24906_vm5, %v4915_v31  ;;  %15827 = vmatprep.mubr.msk.f32.mxu0 %vm24907_vm6, %v5136_v38  ;;  %v4917_v40 = vpop.permute.xlu0 %4916  ;;  %v5139_v44 = vrot.slane %v21105_v12, 1  ;;  %v21110_v48 = vld [vmem:[#allocation2 + $0x70] sm:$0xff]  ;;  %vm24913_vm11 = vmmov %vm24900_vm2  ;;  %vm24924_vm5 = vcmask 1044480  }
 0x3cf   : > { %5008 = vst.msk [vmem:[#allocation2 + $0x93] sm:$0xff] %vm24908_vm4, %v4917_v40  ;;  %v5141_v57 = vrot.slane %v21110_v48, 1  ;;  %vm24915_vm1 = vmmov %vm24900_vm2 }
 0x3d0   : > { %v5140_v47 = vsel %vm24910_vm0, %v5137_v33, %v5139_v44  ;;  %vm24916_vm8 = vmmov %vm24910_vm0 }
 0x3d1   : > { %15828 = vmatmul.mubr.msk.f32.gmra.mrb[46].mxu0 %vm24911_vm10, %v5138_v55  ;;  %v4919_v54 = vpop.permute.xlu1 %4918  ;;  %v21117_v45 = vld [vmem:[#allocation2 + $0x78] sm:$0xff]  ;;  %v5142_v62 = vsel %vm24916_vm8, %v5139_v44, %v5141_v57  ;;  %vm24917_vm2 = vmmov %vm24910_vm0  ;;  %v13640_v55 = vld [vmem:[%s24460_s3 + $0x60] sm:$0xff] }
 0x3d2   : > { %5009 = vst.msk [vmem:[#allocation2 + $0x9b] sm:$0xff] %vm24912_vm12, %v4919_v54  ;;  %15830 = vmatprep.mubr.msk.f32.mxu0 %vm24913_vm11, %v5140_v47  ;;  %v4921_v38 = vpop.permute.xlu0 %4920  ;;  %v5143_v31 = vrot.slane %v21117_v45, 1  ;;  %v21122_v30 = vld [vmem:[#allocation2 + $0x80] sm:$0xff]  ;;  %v13641_v47 = vld [vmem:[%s24460_s3 + $0x68] sm:$0xff]  ;;  %vm24918_vm13 = vmmov %vm24915_vm1 }
 0x3d3   : > { %24914 = vst [vmem:[#allocation76_spill] sm:$0xff] %v21122_v30  ;;  %5010 = vst.msk [vmem:[#allocation2 + $0xa3] sm:$0xff] %vm24915_vm1, %v4921_v38  ;;  %v5145_v40 = vrot.slane %v21122_v30, 1  ;;  %v21146_v4 = vpack.c.bf16 %v13641_v47, %v13640_v55 }
 0x3d4   : > { %v5144_v33 = vsel %vm24917_vm2, %v5141_v57, %v5143_v31  ;;  %vm24919_vm15 = vmmov %vm24915_vm1  ;;  %v24551_v57 = vrot.slane %v21122_v30, 3 }
 0x3d5   : > { %15831 = vmatmul.mubr.msk.f32.gmra.mrb[48].mxu0 %vm24918_vm13, %v5142_v62  ;;  %v4923_v54 = vpop.permute.xlu1 %4922  ;;  %v21135_v28 = vld [vmem:[#allocation2 + $0x88] sm:$0xff]  ;;  %vm24920_vm14 = vmmov %vm24915_vm1 }
 0x3d6   : > { %5011 = vst.msk [vmem:[#allocation2 + $0xab] sm:$0xff] %vm24919_vm15, %v4923_v54  ;;  %15833 = vmatprep.mubr.msk.f32.mxu0 %vm24920_vm14, %v5144_v33  ;;  %v4925_v44 = vpop.permute.xlu0 %4924  ;;  %v6576_v38 = vrot.slane %v21135_v28, 3  ;;  %v5147_v32 = vrot.slane %v21135_v28, 1  ;;  %v21142_v17 = vld [vmem:[#allocation2 + $0x90] sm:$0xff]  ;;  %vm24922_vm9 = vmmov %vm24915_vm1  ;;  %v7005_v11 = vrot.slane %v21135_v28, 4 }
 0x3d7   : > { %24921 = vst [vmem:[#allocation77_spill] sm:$0xff] %v21142_v17  ;;  %5012 = vst.msk [vmem:[#allocation2 + $0xb3] sm:$0xff] %vm24922_vm9, %v4925_v44  ;;  %v6578_v62 = vrot.slane %v21142_v17, 3  ;;  %v5149_v2 = vrot.slane %v21142_v17, 1 }
 0x3d8   : > { %vm24923_vm7 = vmmov %vm24910_vm0  ;;  %v6577_v33 = vsel %vm24924_vm5, %v24551_v57, %v6576_v38 }
 0x3d9   : > { %v5146_v52 = vsel %vm24923_vm7, %v5143_v31, %v5145_v40  ;;  %vm24925_vm6 = vmmov %vm24910_vm0  ;;  %v4927_v46 = vpop.permute.xlu1 %4926  ;;  %v21157_v5 = vld [vmem:[#allocation2 + $0x98] sm:$0xff] }
 0x3da   : > { %v5148_v54 = vsel %vm24925_vm6, %v5145_v40, %v5147_v32  ;;  %vm24926_vm4 = vmmov %vm24915_vm1  ;;  %v4929_v31 = vpop.permute.xlu0 %4928  ;;  %v6580_v40 = vrot.slane %v21157_v5, 3  ;;  %v5151_v55 = vrot.slane %v21157_v5, 1  ;;  %v21164_v47 = vld [vmem:[#allocation2 + $0xa0] sm:$0xff] }
 0x3db   : > { %15834 = vmatmul.mubr.msk.f32.gmra.mrb[50].mxu0 %vm24926_vm4, %v5146_v52  ;;  %vm24927_vm3 = vmmov %vm24915_vm1  ;;  %5014 = vst.msk [vmem:[#allocation2 + $0xc3] sm:$0xff] %vm24915_vm1, %v4929_v31  ;;  %v6582_v52 = vrot.slane %v21164_v47, 3 }
 0x3dc   : > { %16065 = vmatprep.mubr.msk.f32.mxu1 %vm24927_vm3, %v6577_v33  ;;  %vm24928_vm0 = vmmov %vm24924_vm5 }
 0x3dd   : > { %v6579_v44 = vsel %vm24928_vm0, %v6576_v38, %v6578_v62  ;;  %vm24929_vm10 = vmmov %vm24915_vm1 }
 0x3de   : > { %5013 = vst.msk [vmem:[#allocation2 + $0xbb] sm:$0xff] %vm24929_vm10, %v4927_v46  ;;  %vm24930_vm12 = vmmov %vm24915_vm1  ;;  %v21184_v57 = vld [vmem:[#allocation2 + $0xb0] sm:$0xff] }
 0x3df   : > { %15836 = vmatprep.mubr.msk.f32.mxu0 %vm24930_vm12, %v5148_v54  ;;  %vm24931_vm11 = vmmov %vm24915_vm1  ;;  %v5153_v54 = vrot.slane %v21164_v47, 1 }
 0x3e0   : > { %16066 = vmatmul.mubr.msk.f32.vlgmr.msra.gmra.mrb[0].mxu1 %vm24931_vm11, %v6579_v44  ;;  %vm24932_vm8 = vmmov %vm24917_vm2  ;;  %v4931_v44 = vpop.permute.xlu1 %4930 }
 0x3e1   : > { %17019 = vmatpush3.bf16.msra.mxu1 %v20749_v25  ;;  %v5150_v38 = vsel %vm24932_vm8, %v5147_v32, %v5149_v2  ;;  %vm24933_vm2 = vmmov %vm24928_vm0  ;;  %v21177_v25 = vld [vmem:[#allocation2 + $0xa8] sm:$0xff] }
 0x3e2   : > { %v6581_v46 = vsel %vm24933_vm2, %v6578_v62, %v6580_v40  ;;  %vm24934_vm13 = vmmov %vm24925_vm6  ;;  %17021 = vmatprep.subr.bf16.mxu1 %v21146_v4  ;;  %v6584_v32 = vrot.slane %v21177_v25, 3  ;;  %v5155_v62 = vrot.slane %v21177_v25, 1 }
 0x3e3   : > { %v5152_v33 = vsel %vm24934_vm13, %v5149_v2, %v5151_v55  ;;  %vm24935_vm15 = vmmov %vm24915_vm1  ;;  %v4933_v2 = vpop.permute.xlu0 %4932 }
 0x3e4   : > { %15837 = vmatmul.mubr.msk.f32.gmra.mrb[52].mxu0 %vm24935_vm15, %v5150_v38  ;;  %vm24936_vm14 = vmmov %vm24915_vm1  ;;  %v6586_v38 = vrot.slane %v21184_v57, 3 }
 0x3e5   : > { %16068 = vmatprep.mubr.msk.f32.mxu1 %vm24936_vm14, %v6581_v46  ;;  %vm24937_vm9 = vmmov %vm24928_vm0  ;;  %v6585_v46 = vsel %vm24928_vm0, %v6582_v52, %v6584_v32  ;;  %v21195_v20 = vld [vmem:[#allocation2 + $0xb8] sm:$0xff] }
 0x3e6   : > { %v6583_v31 = vsel %vm24937_vm9, %v6580_v40, %v6582_v52  ;;  %vm24938_vm7 = vmmov %vm24915_vm1  ;;  %v6588_v52 = vrot.slane %v21195_v20, 3 }
 0x3e7   : > { %5015 = vst.msk [vmem:[#allocation2 + $0xcb] sm:$0xff] %vm24938_vm7, %v4931_v44  ;;  %vm24939_vm5 = vmmov %vm24915_vm1 }
 0x3e8   : > { %15839 = vmatprep.mubr.msk.f32.mxu0 %vm24939_vm5, %v5152_v33  ;;  %vm24940_vm6 = vmmov %vm24915_vm1  ;;  %v5157_v33 = vrot.slane %v21184_v57, 1 }
 0x3e9   : > { %16069 = vmatmul.mubr.msk.f32.gmra.mrb[2].mxu1 %vm24940_vm6, %v6583_v31  ;;  %vm24941_vm4 = vmmov %vm24915_vm1  ;;  %v4935_v31 = vpop.permute.xlu1 %4934 }
 0x3ea   : > { %5016 = vst.msk [vmem:[#allocation2 + $0xd3] sm:$0xff] %vm24941_vm4, %v4933_v2  ;;  %vm24942_vm3 = vmmov %vm24932_vm8  ;;  %v21202_v2 = vld [vmem:[#allocation2 + $0xc0] sm:$0xff] }
 0x3eb   : > { %v5154_v40 = vsel %vm24942_vm3, %v5151_v55, %v5153_v54  ;;  %vm24943_vm10 = vmmov %vm24942_vm3  ;;  %v4937_v55 = vpop.permute.xlu0 %4936 }
 0x3ec   : > { %v5156_v44 = vsel %vm24943_vm10, %v5153_v54, %v5155_v62  ;;  %vm24944_vm12 = vmmov %vm24915_vm1  ;;  %v5159_v54 = vrot.slane %v21195_v20, 1 }
 0x3ed   : > { %15840 = vmatmul.mubr.msk.f32.gmra.mrb[54].mxu0 %vm24944_vm12, %v5154_v40  ;;  %vm24945_vm11 = vmmov %vm24915_vm1  ;;  %v6590_v40 = vrot.slane %v21202_v2, 3 }
 0x3ee   : > { %16071 = vmatprep.mubr.msk.f32.mxu1 %vm24945_vm11, %v6585_v46  ;;  %vm24946_vm1 = vmmov %vm24928_vm0  ;;  %v21213_v60 = vld [vmem:[#allocation2 + $0xc8] sm:$0xff] }
 0x3ef   : > { %v6587_v14 = vsel %vm24946_vm1, %v6584_v32, %v6586_v38  ;;  %vm24947_vm8 = vmmov %vm24941_vm4 }
 0x3f0   : > { %5017 = vst.msk [vmem:[#allocation2 + $0xdb] sm:$0xff] %vm24947_vm8, %v4935_v31  ;;  %vm24948_vm2 = vmmov %vm24941_vm4 }
 0x3f1   : > { %15842 = vmatprep.mubr.msk.f32.mxu0 %vm24948_vm2, %v5156_v44  ;;  %vm24949_vm13 = vmmov %vm24948_vm2  ;;  %v5161_v44 = vrot.slane %v21202_v2, 1 }
 0x3f2   : > { %16072 = vmatmul.mubr.msk.f32.gmra.mrb[4].mxu1 %vm24949_vm13, %v6587_v14  ;;  %vm24950_vm15 = vmmov %vm24948_vm2  ;;  %v4939_v14 = vpop.permute.xlu1 %4938 }
 0x3f3   : > { %5018 = vst.msk [vmem:[#allocation2 + $0xe3] sm:$0xff] %vm24950_vm15, %v4937_v55  ;;  %vm24951_vm14 = vmmov %vm24942_vm3  ;;  %v21220_v55 = vld [vmem:[#allocation2 + $0xd0] sm:$0xff] }
 0x3f4   : > { %v5158_v32 = vsel %vm24951_vm14, %v5155_v62, %v5157_v33  ;;  %vm24952_vm9 = vmmov %vm24928_vm0  ;;  %v4941_v62 = vpop.permute.xlu0 %4940 }
 0x3f5   : > { %v6589_v46 = vsel %vm24952_vm9, %v6586_v38, %v6588_v52  ;;  %vm24953_vm7 = vmmov %vm24942_vm3  ;;  %v6592_v38 = vrot.slane %v21213_v60, 3 }
 0x3f6   : > { %v5160_v31 = vsel %vm24953_vm7, %v5157_v33, %v5159_v54  ;;  %vm24954_vm5 = vmmov %vm24948_vm2  ;;  %v5163_v33 = vrot.slane %v21213_v60, 1 }
 0x3f7   : > { %15843 = vmatmul.mubr.msk.f32.gmra.mrb[56].mxu0 %vm24954_vm5, %v5158_v32  ;;  %vm24955_vm6 = vmmov %vm24948_vm2  ;;  %v6594_v32 = vrot.slane %v21220_v55, 3  ;;  %v21231_v21 = vld [vmem:[#allocation2 + $0xd8] sm:$0xff] }
 0x3f8   : > { %16074 = vmatprep.mubr.msk.f32.mxu1 %vm24955_vm6, %v6589_v46  ;;  %vm24956_vm4 = vmmov %vm24928_vm0  ;;  %v6593_v46 = vsel %vm24946_vm1, %v6590_v40, %v6592_v38 }
 0x3f9   : > { %v6591_v34 = vsel %vm24956_vm4, %v6588_v52, %v6590_v40  ;;  %vm24957_vm3 = vmmov %vm24948_vm2  ;;  %v6596_v40 = vrot.slane %v21231_v21, 3 }
 0x3fa   : > { %5019 = vst.msk [vmem:[#allocation2 + $0xeb] sm:$0xff] %vm24957_vm3, %v4939_v14  ;;  %vm24958_vm0 = vmmov %vm24948_vm2 }
 0x3fb   : > { %15845 = vmatprep.mubr.msk.f32.mxu0 %vm24958_vm0, %v5160_v31  ;;  %vm24959_vm10 = vmmov %vm24958_vm0  ;;  %v5165_v31 = vrot.slane %v21220_v55, 1 }
 0x3fc   : > { %16075 = vmatmul.mubr.msk.f32.gmra.mrb[6].mxu1 %vm24959_vm10, %v6591_v34  ;;  %vm24960_vm12 = vmmov %vm24958_vm0  ;;  %v4943_v34 = vpop.permute.xlu1 %4942 }
 0x3fd   : > { %5020 = vst.msk [vmem:[#allocation2 + $0xf3] sm:$0xff] %vm24960_vm12, %v4941_v62  ;;  %vm24961_vm11 = vmmov %vm24953_vm7  ;;  %v21238_v62 = vld [vmem:[#allocation2 + $0xe0] sm:$0xff] }
 0x3fe   : > { %v5162_v52 = vsel %vm24961_vm11, %v5159_v54, %v5161_v44  ;;  %vm24962_vm8 = vmmov %vm24953_vm7  ;;  %v4945_v54 = vpop.permute.xlu0 %4944 }
 0x3ff   : > { %v5164_v14 = vsel %vm24962_vm8, %v5161_v44, %v5163_v33  ;;  %vm24963_vm2 = vmmov %vm24958_vm0  ;;  %v5167_v44 = vrot.slane %v21231_v21, 1 }
 0x400   : > { %15846 = vmatmul.mubr.msk.f32.gmra.mrb[58].mxu0 %vm24963_vm2, %v5162_v52  ;;  %vm24964_vm13 = vmmov %vm24958_vm0  ;;  %v6598_v52 = vrot.slane %v21238_v62, 3 }
 0x401   : > { %16077 = vmatprep.mubr.msk.f32.mxu1 %vm24964_vm13, %v6593_v46  ;;  %vm24965_vm15 = vmmov %vm24946_vm1  ;;  %v21249_v15 = vld [vmem:[#allocation2 + $0xe8] sm:$0xff] }
 0x402   : > { %v6595_v63 = vsel %vm24965_vm15, %v6592_v38, %v6594_v32  ;;  %vm24966_vm14 = vmmov %vm24958_vm0 }
 0x403   : > { %5021 = vst.msk [vmem:[#allocation2 + $0xfb] sm:$0xff] %vm24966_vm14, %v4943_v34  ;;  %vm24967_vm9 = vmmov %vm24958_vm0 }
 0x404   : > { %15848 = vmatprep.mubr.msk.f32.mxu0 %vm24967_vm9, %v5164_v14  ;;  %vm24968_vm7 = vmmov %vm24958_vm0  ;;  %v5169_v14 = vrot.slane %v21238_v62, 1 }
 0x405   : > { %16078 = vmatmul.mubr.msk.f32.gmra.mrb[8].mxu1 %vm24968_vm7, %v6595_v63  ;;  %vm24969_vm5 = vmmov %vm24958_vm0  ;;  %v4947_v63 = vpop.permute.xlu1 %4946 }
 0x406   : > { %5022 = vst.msk [vmem:[#allocation2 + $0x103] sm:$0xff] %vm24969_vm5, %v4945_v54  ;;  %vm24970_vm6 = vmmov %vm24962_vm8  ;;  %v21256_v54 = vld [vmem:[#allocation2 + $0xf0] sm:$0xff] }
 0x407   : > { %v5166_v38 = vsel %vm24970_vm6, %v5163_v33, %v5165_v31  ;;  %vm24971_vm4 = vmmov %vm24946_vm1  ;;  %v4949_v33 = vpop.permute.xlu0 %4948 }
 0x408   : > { %v6597_v46 = vsel %vm24971_vm4, %v6594_v32, %v6596_v40  ;;  %vm24972_vm3 = vmmov %vm24970_vm6  ;;  %15849 = vmatmul.mubr.msk.f32.gmra.mrb[60].mxu0 %vm24958_vm0, %v5166_v38  ;;  %v6600_v32 = vrot.slane %v21249_v15, 3  ;;  %v6602_v38 = vrot.slane %v21256_v54, 3 }
 0x409   : > { %v5168_v34 = vsel %vm24972_vm3, %v5165_v31, %v5167_v44  ;;  %vm24973_vm10 = vmmov %vm24958_vm0  ;;  %v5171_v31 = vrot.slane %v21249_v15, 1 }
 0x40a   : > { %16080 = vmatprep.mubr.msk.f32.mxu1 %vm24973_vm10, %v6597_v46  ;;  %vm24974_vm12 = vmmov %vm24946_vm1  ;;  %v21267_v29 = vld [vmem:[#allocation2 + $0xf8] sm:$0xff] }
 0x40b   : > { %v6599_v19 = vsel %vm24974_vm12, %v6596_v40, %v6598_v52  ;;  %vm24975_vm11 = vmmov %vm24958_vm0 }
 0x40c   : > { %5023 = vst.msk [vmem:[#allocation2 + $0x10b] sm:$0xff] %vm24975_vm11, %v4947_v63  ;;  %vm24976_vm1 = vmmov %vm24958_vm0 }
 0x40d   : > { %15851 = vmatprep.mubr.msk.f32.mxu0 %vm24976_vm1, %v5168_v34  ;;  %vm24977_vm8 = vmmov %vm24958_vm0  ;;  %v5173_v34 = vrot.slane %v21256_v54, 1 }
 0x40e   : > { %16081 = vmatmul.mubr.msk.f32.gmra.mrb[10].mxu1 %vm24977_vm8, %v6599_v19  ;;  %vm24978_vm2 = vmmov %vm24958_vm0  ;;  %v4951_v19 = vpop.permute.xlu1 %4950 }
 0x40f   : > { %5024 = vst.msk [vmem:[#allocation2 + $0x113] sm:$0xff] %vm24978_vm2, %v4949_v33  ;;  %vm24979_vm13 = vmmov %vm24972_vm3  ;;  %v21274_v33 = vld [vmem:[#allocation2 + $0x100] sm:$0xff] }
 0x410   : > { %v5170_v40 = vsel %vm24979_vm13, %v5167_v44, %v5169_v14  ;;  %vm24980_vm15 = vmmov %vm24971_vm4  ;;  %v4953_v44 = vpop.permute.xlu0 %4952  ;;  %24988 = vst [vmem:[#allocation78_spill] sm:$0xff] %v21274_v33 }
 0x411   : > { %v6601_v46 = vsel %vm24980_vm15, %v6598_v52, %v6600_v32  ;;  %vm24981_vm14 = vmmov %vm24972_vm3  ;;  %v6604_v52 = vrot.slane %v21267_v29, 3  ;;  %5026 = vst.msk [vmem:[#allocation2 + $0x123] sm:$0xff] %vm24958_vm0, %v4953_v44 }
 0x412   : > { %v5172_v63 = vsel %vm24981_vm14, %v5169_v14, %v5171_v31  ;;  %vm24982_vm9 = vmmov %vm24958_vm0  ;;  %v5175_v14 = vrot.slane %v21267_v29, 1 }
 0x413   : > { %15852 = vmatmul.mubr.msk.f32.gmra.mrb[62].mxu0 %vm24982_vm9, %v5170_v40  ;;  %vm24983_vm7 = vmmov %vm24958_vm0  ;;  %v6606_v40 = vrot.slane %v21274_v33, 3  ;;  %v21285_v39 = vld [vmem:[#allocation2 + $0x108] sm:$0xff] }
 0x414   : > { %16083 = vmatprep.mubr.msk.f32.mxu1 %vm24983_vm7, %v6601_v46  ;;  %vm24984_vm5 = vmmov %vm24971_vm4 }
 0x415   : > { %v6603_v61 = vsel %vm24984_vm5, %v6600_v32, %v6602_v38  ;;  %vm24985_vm6 = vmmov %vm24958_vm0 }
 0x416   : > { %5025 = vst.msk [vmem:[#allocation2 + $0x11b] sm:$0xff] %vm24985_vm6, %v4951_v19  ;;  %vm24986_vm4 = vmmov %vm24958_vm0 }
 0x417   : > { %15854 = vmatprep.mubr.msk.f32.mxu0 %vm24986_vm4, %v5172_v63  ;;  %vm24987_vm3 = vmmov %vm24958_vm0  ;;  %v5177_v63 = vrot.slane %v21274_v33, 1 }
 0x418   : > { %16084 = vmatmul.mubr.msk.f32.gmra.mrb[12].mxu1 %vm24987_vm3, %v6603_v61  ;;  %vm24989_vm10 = vmmov %vm24979_vm13  ;;  %v4955_v61 = vpop.permute.xlu1 %4954 }
 0x419   : > { %v5174_v32 = vsel %vm24989_vm10, %v5171_v31, %v5173_v34  ;;  %vm24990_vm12 = vmmov %vm24984_vm5  ;;  %v6608_v31 = vrot.slane %v21285_v39, 3 }
 0x41a   : > { %v6605_v46 = vsel %vm24990_vm12, %v6602_v38, %v6604_v52  ;;  %vm24991_vm11 = vmmov %vm24989_vm10  ;;  %v5179_v38 = vrot.slane %v21285_v39, 1 }
 0x41b   : > { %v5176_v19 = vsel %vm24991_vm11, %v5173_v34, %v5175_v14  ;;  %vm24992_vm1 = vmmov %vm24958_vm0  ;;  %v21292_v34 = vld [vmem:[#allocation2 + $0x110] sm:$0xff] }
 0x41c   : > { %15855 = vmatmul.mubr.msk.f32.gmra.mrb[64].mxu0 %vm24992_vm1, %v5174_v32  ;;  %vm24993_vm8 = vmmov %vm24958_vm0  ;;  %v6610_v44 = vrot.slane %v21292_v34, 3 }
 0x41d   : > { %16086 = vmatprep.mubr.msk.f32.mxu1 %vm24993_vm8, %v6605_v46  ;;  %vm24994_vm2 = vmmov %vm24984_vm5  ;;  %v21308_v3 = vld [vmem:[#allocation2 + $0x120] sm:$0xff] }
 0x41e   : > { %v6607_v42 = vsel %vm24994_vm2, %v6604_v52, %v6606_v40  ;;  %vm24995_vm13 = vmmov %vm24958_vm0  ;;  %25005 = vst [vmem:[#allocation79_spill] sm:$0xff] %v21308_v3 }
 0x41f   : > { %5027 = vst.msk [vmem:[#allocation2 + $0x12b] sm:$0xff] %vm24995_vm13, %v4955_v61  ;;  %vm24996_vm15 = vmmov %vm24958_vm0  ;;  %v5181_v61 = vrot.slane %v21292_v34, 1 }
 0x420   : > { %15857 = vmatprep.mubr.msk.f32.mxu0 %vm24996_vm15, %v5176_v19  ;;  %vm24997_vm14 = vmmov %vm24958_vm0  ;;  %v21302_v19 = vld [vmem:[#allocation2 + $0x118] sm:$0xff] }
 0x421   : > { %16087 = vmatmul.mubr.msk.f32.gmra.mrb[14].mxu1 %vm24997_vm14, %v6607_v42  ;;  %vm24998_vm9 = vmmov %vm24989_vm10 }
 0x422   : > { %v5178_v32 = vsel %vm24998_vm9, %v5175_v14, %v5177_v63  ;;  %vm24999_vm7 = vmmov %vm24994_vm2  ;;  %v6612_v14 = vrot.slane %v21302_v19, 3 }
 0x423   : > { %v6609_v52 = vsel %vm24999_vm7, %v6606_v40, %v6608_v31  ;;  %vm25000_vm5 = vmmov %vm24998_vm9  ;;  %v5183_v40 = vrot.slane %v21302_v19, 1 }
 0x424   : > { %v5180_v46 = vsel %vm25000_vm5, %v5177_v63, %v5179_v38  ;;  %vm25001_vm6 = vmmov %vm24958_vm0  ;;  %v6614_v63 = vrot.slane %v21308_v3, 3 }
 0x425   : > { %15858 = vmatmul.mubr.msk.f32.gmra.mrb[66].mxu0 %vm25001_vm6, %v5178_v32  ;;  %vm25002_vm4 = vmmov %vm24958_vm0  ;;  %v5185_v32 = vrot.slane %v21308_v3, 1  ;;  %vm25018_vm6 = vcmask 1043456  }
 0x426   : > { %16089 = vmatprep.mubr.msk.f32.mxu1 %vm25002_vm4, %v6609_v52  ;;  %vm25003_vm3 = vmmov %vm24994_vm2  ;;  %15860 = vmatprep.mubr.msk.f32.mxu0 %vm24958_vm0, %v5180_v46  ;;  %v21320_v9 = vld [vmem:[#allocation2 + $0x130] sm:$0xff] }
 0x427   : > { %v6611_v42 = vsel %vm25003_vm3, %v6608_v31, %v6610_v44  ;;  %vm25004_vm10 = vmmov %vm24958_vm0  ;;  %25012 = vst [vmem:[#allocation80_spill] sm:$0xff] %v21320_v9  ;;  %v6257_v6 = vrot.slane %v21320_v9, 2 }
 0x428   : > { %16090 = vmatmul.mubr.msk.f32.gmra.mrb[16].mxu1 %vm25004_vm10, %v6611_v42  ;;  %vm25006_vm12 = vmmov %vm25000_vm5  ;;  %v21318_v42 = vld [vmem:[#allocation2 + $0x128] sm:$0xff] }
 0x429   : > { %v5182_v52 = vsel %vm25006_vm12, %v5179_v38, %v5181_v61  ;;  %vm25007_vm11 = vmmov %vm24994_vm2  ;;  %v24572_v38 = vrot.slane %v21308_v3, 4  ;;  %v6255_v50 = vrot.slane %v21318_v42, 2 }
 0x42a   : > { %v6613_v31 = vsel %vm25007_vm11, %v6610_v44, %v6612_v14  ;;  %vm25008_vm1 = vmmov %vm25000_vm5  ;;  %v6616_v44 = vrot.slane %v21318_v42, 3 }
 0x42b   : > { %v5184_v8 = vsel %vm25008_vm1, %v5181_v61, %v5183_v40  ;;  %vm25009_vm8 = vmmov %vm24958_vm0  ;;  %v6618_v61 = vrot.slane %v21320_v9, 3 }
 0x42c   : > { %15861 = vmatmul.mubr.msk.f32.gmra.mrb[68].mxu0 %vm25009_vm8, %v5182_v52  ;;  %vm25010_vm2 = vmmov %vm24958_vm0  ;;  %v24571_v52 = vrot.slane %v21320_v9, 4 }
 0x42d   : > { %16092 = vmatprep.mubr.msk.f32.mxu1 %vm25010_vm2, %v6613_v31  ;;  %vm25011_vm13 = vmmov %vm25003_vm3 }
 0x42e   : > { %v6615_v46 = vsel %vm25011_vm13, %v6612_v14, %v6614_v63  ;;  %vm25013_vm15 = vmmov %vm24958_vm0  ;;  %v7045_v14 = vrot.slane %v21318_v42, 4 }
 0x42f   : > { %15863 = vmatprep.mubr.msk.f32.mxu0 %vm25013_vm15, %v5184_v8  ;;  %vm25014_vm14 = vmmov %vm24958_vm0 }
 0x430   : > { %16093 = vmatmul.mubr.msk.f32.gmra.mrb[18].mxu1 %vm25014_vm14, %v6615_v46  ;;  %vm25015_vm9 = vmmov %vm25008_vm1  ;;  %v21337_v8 = vsel %vm25018_vm6, %v24572_v38, %v7045_v14  ;;  %v6983_v38 = vrot.slane %v21061_v35, 4 }
 0x431   : > { %v5186_v31 = vsel %vm25015_vm9, %v5183_v40, %v5185_v32  ;;  %vm25016_vm7 = vmmov %vm25003_vm3  ;;  %v6979_v40 = vrot.slane %v21052_v43, 4  ;;  %v13527_v32 = vld [vmem:[%s24460_s3 + $0x38] sm:$0xff] }
 0x432   : > { %v6617_v16 = vsel %vm25016_vm7, %v6614_v63, %v6616_v44  ;;  %vm25017_vm5 = vmmov %vm25003_vm3  ;;  %v13526_v63 = vld [vmem:[%s24460_s3 + $0x30] sm:$0xff] }
 0x433   : > { %v6619_v49 = vsel %vm25017_vm5, %v6616_v44, %v6618_v61  ;;  %vm25019_vm4 = vmmov %vm25018_vm6  ;;  %16095 = vmatprep.mubr.msk.f32.mxu1 %vm24958_vm0, %v6617_v16  ;;  %v21355_v61 = vld [vmem:[#allocation2] sm:$0xff]  ;;  %v6981_v16 = vrot.slane %v21054_v10, 4 }
 0x434   : > { %v21342_v46 = vsel %vm25019_vm4, %v7045_v14, %v24571_v52  ;;  %vm25020_vm3 = vmmov %vm24958_vm0  ;;  %v13678_v14 = vld [vmem:[%s24460_s3 + $0x70] sm:$0xff] }
 0x435   : > { %15864 = vmatmul.mubr.msk.f32.gmra.mrb[70].mxu0 %vm25020_vm3, %v5186_v31  ;;  %vm25021_vm10 = vmmov %vm24958_vm0  ;;  %v13679_v31 = vld [vmem:[%s24460_s3 + $0x78] sm:$0xff] }
 0x436   : > { %16096 = vmatmul.mubr.msk.f32.gmra.mrb[20].mxu1 %vm25021_vm10, %v6619_v49  ;;  %vm25022_vm12 = vmmov %vm25019_vm4  ;;  %v21367_v49 = vpack.c.bf16 %v13527_v32, %v13526_v63  ;;  %v21375_v7 = vpack.c.bf16 %v13679_v31, %v13678_v14  ;;  %v6985_v63 = vrot.slane %v21069_v37, 4  ;;  %v24579_v32 = vrot.slane %v21308_v3, 5 }
 0x437   : > { %v6978_v44 = vsel %vm25022_vm12, %v6976_v26, %v6977_v36  ;;  %vm25023_vm11 = vmmov %vm24958_vm0  ;;  %v21369_v26 = vld [vmem:[#allocation2 + $0x8] sm:$0xff]  ;;  %v6991_v31 = vrot.slane %v21086_v59, 4 }
 0x438   : > { %15870 = vmatprep.mubr.msk.f32.mxu0 %vm25023_vm11, %v21355_v61  ;;  %vm25024_vm1 = vmmov %vm24958_vm0 }
 0x439   : > { %16102 = vmatprep.mubr.msk.f32.mxu1 %vm25024_vm1, %v6978_v44  ;;  %vm25025_vm8 = vmmov %vm24958_vm0 }
 0x43a   : > { %15871 = vmatmul.mubr.msk.f32.vlgmr.msra.gmra.mrb[36].mxu0 %vm25025_vm8, %v21369_v26  ;;  %vm25026_vm2 = vmmov %vm25019_vm4 }
 0x43b   : > { %v6980_v52 = vsel %vm25026_vm2, %v6977_v36, %v6979_v40  ;;  %vm25027_vm13 = vmmov %vm24958_vm0  ;;  %17007 = vmatpush3.bf16.msra.mxu0 %v21045_v27  ;;  %v6987_v36 = vrot.slane %v21074_v24, 4 }
 0x43c   : > { %15873 = vmatprep.mubr.msk.f32.mxu0 %vm25027_vm13, %v21037_v18  ;;  %vm25028_vm15 = vmmov %vm24958_vm0  ;;  %17009 = vmatprep.subr.bf16.mxu0 %v21367_v49 }
 0x43d   : > { %16103 = vmatmul.mubr.msk.f32.vlgmr.msra.gmra.mrb[22].mxu1 %vm25028_vm15, %v6980_v52  ;;  %vm25029_vm14 = vmmov %vm25026_vm2  ;;  %vm25044_vm15 = vcmask 1045504  }
 0x43e   : > { %v21381_v44 = vsel %vm25029_vm14, %v6979_v40, %v6981_v16  ;;  %vm25030_vm9 = vmmov %vm24958_vm0  ;;  %17023 = vmatpush3.bf16.msra.mxu1 %v21146_v4  ;;  %v6989_v40 = vrot.slane %v21081_v41, 4 }
 0x43f   : > { %16105 = vmatprep.mubr.msk.f32.mxu1 %vm25030_vm9, %v21381_v44  ;;  %vm25031_vm7 = vmmov %vm24958_vm0  ;;  %17025 = vmatprep.subr.bf16.mxu1 %v21375_v7 }
 0x440   : > { %15874 = vmatmul.mubr.msk.f32.gmra.mrb[38].mxu0 %vm25031_vm7, %v21039_v13  ;;  %vm25032_vm5 = vmmov %vm25026_vm2 }
 0x441   : > { %v21393_v52 = vsel %vm25032_vm5, %v6981_v16, %v6983_v38  ;;  %vm25033_vm6 = vmmov %vm24958_vm0  ;;  %v7764_v16 = vrot.slane %v21318_v42, 5 }
 0x442   : > { %15876 = vmatprep.mubr.msk.f32.mxu0 %vm25033_vm6, %v21052_v43  ;;  %vm25034_vm4 = vmmov %vm24958_vm0 }
 0x443   : > { %16106 = vmatmul.mubr.msk.f32.gmra.mrb[24].mxu1 %vm25034_vm4, %v21393_v52  ;;  %vm25035_vm3 = vmmov %vm25026_vm2 }
 0x444   : > { %v21402_v4 = vsel %vm25035_vm3, %v6983_v38, %v6985_v63  ;;  %vm25036_vm10 = vmmov %vm25026_vm2  ;;  %v24583_v38 = vrot.slane %v21308_v3, 2 }
 0x445   : > { %16108 = vmatprep.mubr.msk.f32.mxu1 %vm24958_vm0, %v21402_v4  ;;  %v21407_v27 = vsel %vm25036_vm10, %v6985_v63, %v6987_v36  ;;  %vm25037_vm12 = vmmov %vm24958_vm0  ;;  %v6993_v63 = vrot.slane %v21093_v53, 4 }
 0x446   : > { %15877 = vmatmul.mubr.msk.f32.gmra.mrb[40].mxu0 %vm25037_vm12, %v21054_v10  ;;  %vm25038_vm11 = vmmov %vm25026_vm2  ;;  %vm25041_vm2 = vcmask 1042432   ;;  %v21436_v51 = vsel %vm25044_vm15, %v24583_v38, %v6255_v50  ;;  %v7003_v38 = vrot.slane %v21122_v30, 4 }
 0x447   : > { %v21414_v14 = vsel %vm25038_vm11, %v6987_v36, %v6989_v40  ;;  %vm25039_vm1 = vmmov %vm24958_vm0  ;;  %v21427_v22 = vsel %vm25041_vm2, %v24579_v32, %v7764_v16  ;;  %v24582_v36 = vrot.slane %v21320_v9, 5  ;;  %25045 = vst [vmem:[#allocation82_spill] sm:$0xff] %v21436_v51  ;;  %v7011_v51 = vrot.slane %v21164_v47, 4 }
 0x448   : > { %15879 = vmatprep.mubr.msk.f32.mxu0 %vm25039_vm1, %v21061_v35  ;;  %vm25040_vm8 = vmmov %vm24958_vm0  ;;  %25042 = vst [vmem:[#allocation81_spill] sm:$0xff] %v21427_v22  ;;  %v7013_v22 = vrot.slane %v21177_v25, 4 }
 0x449   : > { %16109 = vmatmul.mubr.msk.f32.gmra.mrb[26].mxu1 %vm25040_vm8, %v21407_v27  ;;  %vm25043_vm13 = vmmov %vm24958_vm0 }
 0x44a   : > { %16111 = vmatprep.mubr.msk.f32.mxu1 %vm25043_vm13, %v21414_v14  ;;  %vm25046_vm14 = vmmov %vm25041_vm2 }
 0x44b   : > { %v21441_v23 = vsel %vm25046_vm14, %v7764_v16, %v24582_v36  ;;  %vm25048_vm9 = vmmov %vm25044_vm15  ;;  %v21457_v16 = vsel %vm25035_vm3, %v6991_v31, %v6993_v63  ;;  %v7001_v36 = vrot.slane %v21117_v45, 4 }
 0x44c   : > { %25047 = vst [vmem:[#allocation83_spill] sm:$0xff] %v21441_v23  ;;  %v21444_v32 = vsel %vm25048_vm9, %v6255_v50, %v6257_v6  ;;  %vm25050_vm7 = vmmov %vm24958_vm0  ;;  %v6997_v6 = vrot.slane %v21105_v12, 4  ;;  %v7009_v23 = vrot.slane %v21157_v5, 4 }
 0x44d   : > { %25049 = vst [vmem:[#allocation84_spill] sm:$0xff] %v21444_v32  ;;  %15880 = vmatmul.mubr.msk.f32.gmra.mrb[42].mxu0 %vm25050_vm7, %v21069_v37  ;;  %vm25051_vm5 = vmmov %vm25035_vm3  ;;  %v7007_v32 = vrot.slane %v21142_v17, 4 }
 0x44e   : > { %v21449_v58 = vsel %vm25051_vm5, %v6989_v40, %v6991_v31  ;;  %vm25052_vm6 = vmmov %vm24958_vm0  ;;  %v6999_v40 = vrot.slane %v21110_v48, 4 }
 0x44f   : > { %15882 = vmatprep.mubr.msk.f32.mxu0 %vm25052_vm6, %v21074_v24  ;;  %vm25053_vm4 = vmmov %vm24958_vm0 }
 0x450   : > { %16112 = vmatmul.mubr.msk.f32.gmra.mrb[28].mxu1 %vm25053_vm4, %v21449_v58  ;;  %vm25054_vm10 = vmmov %vm24958_vm0 }
 0x451   : > { %16114 = vmatprep.mubr.msk.f32.mxu1 %vm24958_vm0, %v21457_v16  ;;  %15883 = vmatmul.mubr.msk.f32.gmra.mrb[44].mxu0 %vm25054_vm10, %v21081_v41  ;;  %vm25055_vm12 = vmmov %vm25035_vm3 }
 0x452   : > { %v21465_v50 = vsel %vm25055_vm12, %v6993_v63, %v6995_v56  ;;  %vm25056_vm11 = vmmov %vm24958_vm0 }
 0x453   : > { %15885 = vmatprep.mubr.msk.f32.mxu0 %vm25056_vm11, %v21086_v59  ;;  %vm25057_vm1 = vmmov %vm24958_vm0 }
 0x454   : > { %16115 = vmatmul.mubr.msk.f32.gmra.mrb[30].mxu1 %vm25057_vm1, %v21465_v50  ;;  %vm25058_vm8 = vmmov %vm25035_vm3 }
 0x455   : > { %v21473_v31 = vsel %vm25058_vm8, %v6995_v56, %v6997_v6  ;;  %vm25059_vm2 = vmmov %vm24958_vm0 }
 0x456   : > { %16117 = vmatprep.mubr.msk.f32.mxu1 %vm25059_vm2, %v21473_v31  ;;  %vm25060_vm13 = vmmov %vm24958_vm0 }
 0x457   : > { %15886 = vmatmul.mubr.msk.f32.gmra.mrb[46].mxu0 %vm25060_vm13, %v21093_v53  ;;  %vm25061_vm15 = vmmov %vm25035_vm3 }
 0x458   : > { %v21481_v63 = vsel %vm25061_vm15, %v6997_v6, %v6999_v40  ;;  %vm25062_vm14 = vmmov %vm24958_vm0 }
 0x459   : > { %15888 = vmatprep.mubr.msk.f32.mxu0 %vm25062_vm14, %v21098_v0  ;;  %vm25063_vm9 = vmmov %vm24958_vm0 }
 0x45a   : > { %16118 = vmatmul.mubr.msk.f32.gmra.mrb[32].mxu1 %vm25063_vm9, %v21481_v63  ;;  %vm25064_vm7 = vmmov %vm25035_vm3 }
 0x45b   : > { %v21489_v56 = vsel %vm25064_vm7, %v6999_v40, %v7001_v36  ;;  %vm25065_vm5 = vmmov %vm24958_vm0 }
 0x45c   : > { %16120 = vmatprep.mubr.msk.f32.mxu1 %vm25065_vm5, %v21489_v56  ;;  %vm25066_vm6 = vmmov %vm24958_vm0 }
 0x45d   : > { %15889 = vmatmul.mubr.msk.f32.gmra.mrb[48].mxu0 %vm25066_vm6, %v21105_v12  ;;  %vm25067_vm4 = vmmov %vm25035_vm3 }
 0x45e   : > { %v21497_v6 = vsel %vm25067_vm4, %v7001_v36, %v7003_v38  ;;  %vm25068_vm3 = vmmov %vm24958_vm0 }
 0x45f   : > { %15891 = vmatprep.mubr.msk.f32.mxu0 %vm25068_vm3, %v21110_v48  ;;  %16121 = vmatmul.mubr.msk.f32.gmra.mrb[34].mxu1 %vm24958_vm0, %v21497_v6  ;;  %vm25069_vm10 = vmmov %vm25067_vm4  ;;  %vm25087_vm3 = vcmask 1041408  }
 0x460   : > { %v21505_v40 = vsel %vm25069_vm10, %v7003_v38, %v7005_v11  ;;  %vm25071_vm12 = vmmov %vm24958_vm0 }
 0x461   : > { %25070 = vst [vmem:[#allocation85_spill] sm:$0xff] %v21505_v40  ;;  %16123 = vmatprep.mubr.msk.f32.mxu1 %vm25071_vm12, %v21505_v40  ;;  %vm25072_vm11 = vmmov %vm24958_vm0 }
 0x462   : > { %15892 = vmatmul.mubr.msk.f32.gmra.mrb[50].mxu0 %vm25072_vm11, %v21117_v45  ;;  %vm25073_vm1 = vmmov %vm25067_vm4 }
 0x463   : > { %v21513_v36 = vsel %vm25073_vm1, %v7005_v11, %v7007_v32  ;;  %vm25075_vm8 = vmmov %vm24958_vm0 }
 0x464   : > { %25074 = vst [vmem:[#allocation86_spill] sm:$0xff] %v21513_v36  ;;  %15894 = vmatprep.mubr.msk.f32.mxu0 %vm25075_vm8, %v21122_v30  ;;  %vm25076_vm2 = vmmov %vm24958_vm0  ;;  %v7015_v30 = vrot.slane %v21184_v57, 4 }
 0x465   : > { %16124 = vmatmul.mubr.msk.f32.gmra.mrb[0].mxu1 %vm25076_vm2, %v21513_v36  ;;  %vm25077_vm13 = vmmov %vm25073_vm1  ;;  %v8193_v36 = vrot.slane %v21318_v42, 6 }
 0x466   : > { %v21522_v38 = vsel %vm25077_vm13, %v7007_v32, %v7009_v23  ;;  %vm25079_vm15 = vmmov %vm24958_vm0  ;;  %v7017_v32 = vrot.slane %v21195_v20, 4 }
 0x467   : > { %25078 = vst [vmem:[#allocation87_spill] sm:$0xff] %v21522_v38  ;;  %16126 = vmatprep.mubr.msk.f32.mxu1 %vm25079_vm15, %v21522_v38  ;;  %vm25080_vm14 = vmmov %vm24958_vm0  ;;  %v24592_v38 = vrot.slane %v21308_v3, 6 }
 0x468   : > { %15895 = vmatmul.mubr.msk.f32.gmra.mrb[52].mxu0 %vm25080_vm14, %v21135_v28  ;;  %vm25081_vm9 = vmmov %vm25073_vm1 }
 0x469   : > { %v21529_v11 = vsel %vm25081_vm9, %v7009_v23, %v7011_v51  ;;  %vm25083_vm7 = vmmov %vm25073_vm1  ;;  %v24593_v23 = vrot.slane %v21320_v9, 6  ;;  %v7029_v9 = vrot.slane %v21249_v15, 4 }
 0x46a   : > { %25082 = vst [vmem:[#allocation88_spill] sm:$0xff] %v21529_v11  ;;  %v21532_v40 = vsel %vm25083_vm7, %v7011_v51, %v7013_v22  ;;  %vm25084_vm5 = vmmov %vm24958_vm0  ;;  %v21548_v51 = vsel %vm25087_vm3, %v24592_v38, %v8193_v36 }
 0x46b   : > { %15897 = vmatprep.mubr.msk.f32.mxu0 %vm25084_vm5, %v21142_v17  ;;  %vm25085_vm6 = vmmov %vm24958_vm0  ;;  %25088 = vst [vmem:[#allocation89_spill] sm:$0xff] %v21548_v51  ;;  %v7019_v17 = vrot.slane %v21202_v2, 4  ;;  %v7027_v51 = vrot.slane %v21238_v62, 4 }
 0x46c   : > { %16127 = vmatmul.mubr.msk.f32.gmra.mrb[2].mxu1 %vm25085_vm6, %v21529_v11  ;;  %vm25086_vm4 = vmmov %vm24958_vm0 }
 0x46d   : > { %16129 = vmatprep.mubr.msk.f32.mxu1 %vm25086_vm4, %v21532_v40  ;;  %vm25089_vm0 = vmmov %vm25087_vm3 }
 0x46e   : > { %v21553_v11 = vsel %vm25089_vm0, %v8193_v36, %v24593_v23  ;;  %vm25091_vm10 = vmmov %vm25076_vm2  ;;  %v7021_v36 = vrot.slane %v21213_v60, 4  ;;  %v7023_v23 = vrot.slane %v21220_v55, 4 }
 0x46f   : > { %25090 = vst [vmem:[#allocation90_spill] sm:$0xff] %v21553_v11  ;;  %15898 = vmatmul.mubr.msk.f32.gmra.mrb[54].mxu0 %vm25091_vm10, %v21157_v5  ;;  %vm25092_vm12 = vmmov %vm25073_vm1  ;;  %v7025_v11 = vrot.slane %v21231_v21, 4 }
 0x470   : > { %v21558_v42 = vsel %vm25092_vm12, %v7013_v22, %v7015_v30  ;;  %vm25093_vm11 = vmmov %vm25076_vm2 }
 0x471   : > { %15900 = vmatprep.mubr.msk.f32.mxu0 %vm25093_vm11, %v21164_v47  ;;  %vm25094_vm1 = vmmov %vm25076_vm2 }
 0x472   : > { %16130 = vmatmul.mubr.msk.f32.gmra.mrb[4].mxu1 %vm25094_vm1, %v21558_v42  ;;  %vm25095_vm8 = vmmov %vm25083_vm7 }
 0x473   : > { %v21566_v38 = vsel %vm25095_vm8, %v7015_v30, %v7017_v32  ;;  %vm25096_vm2 = vmmov %vm25094_vm1  ;;  %v21582_v30 = vsel %vm25083_vm7, %v7019_v17, %v7021_v36 }
 0x474   : > { %16132 = vmatprep.mubr.msk.f32.mxu1 %vm25096_vm2, %v21566_v38  ;;  %vm25097_vm13 = vmmov %vm25094_vm1  ;;  %25101 = vst [vmem:[#allocation91_spill] sm:$0xff] %v21582_v30 }
 0x475   : > { %15901 = vmatmul.mubr.msk.f32.gmra.mrb[56].mxu0 %vm25097_vm13, %v21177_v25  ;;  %vm25098_vm15 = vmmov %vm25083_vm7 }
 0x476   : > { %v21574_v22 = vsel %vm25098_vm15, %v7017_v32, %v7019_v17  ;;  %vm25099_vm14 = vmmov %vm25094_vm1 }
 0x477   : > { %15903 = vmatprep.mubr.msk.f32.mxu0 %vm25099_vm14, %v21184_v57  ;;  %vm25100_vm9 = vmmov %vm25094_vm1 }
 0x478   : > { %16133 = vmatmul.mubr.msk.f32.gmra.mrb[6].mxu1 %vm25100_vm9, %v21574_v22  ;;  %vm25102_vm5 = vmmov %vm25094_vm1 }
 0x479   : > { %16135 = vmatprep.mubr.msk.f32.mxu1 %vm25102_vm5, %v21582_v30  ;;  %vm25103_vm6 = vmmov %vm25094_vm1  ;;  %v7031_v30 = vrot.slane %v21256_v54, 4 }
 0x47a   : > { %15904 = vmatmul.mubr.msk.f32.gmra.mrb[58].mxu0 %vm25103_vm6, %v21195_v20  ;;  %vm25104_vm4 = vmmov %vm25083_vm7 }
 0x47b   : > { %v21590_v32 = vsel %vm25104_vm4, %v7021_v36, %v7023_v23  ;;  %vm25106_vm3 = vmmov %vm25094_vm1 }
 0x47c   : > { %25105 = vst [vmem:[#allocation92_spill] sm:$0xff] %v21590_v32  ;;  %15906 = vmatprep.mubr.msk.f32.mxu0 %vm25106_vm3, %v21202_v2  ;;  %vm25107_vm0 = vmmov %vm25094_vm1 }
 0x47d   : > { %16136 = vmatmul.mubr.msk.f32.gmra.mrb[8].mxu1 %vm25107_vm0, %v21590_v32  ;;  %vm25108_vm10 = vmmov %vm25104_vm4  ;;  %v7033_v32 = vrot.slane %v21267_v29, 4 }
 0x47e   : > { %v21598_v17 = vsel %vm25108_vm10, %v7023_v23, %v7025_v11  ;;  %vm25110_vm12 = vmmov %vm25107_vm0 }
 0x47f   : > { %25109 = vst [vmem:[#allocation93_spill] sm:$0xff] %v21598_v17  ;;  %16138 = vmatprep.mubr.msk.f32.mxu1 %vm25110_vm12, %v21598_v17  ;;  %vm25111_vm11 = vmmov %vm25107_vm0  ;;  %v7035_v17 = vrot.slane %v21274_v33, 4 }
 0x480   : > { %15907 = vmatmul.mubr.msk.f32.gmra.mrb[60].mxu0 %vm25111_vm11, %v21213_v60  ;;  %vm25112_vm1 = vmmov %vm25104_vm4 }
 0x481   : > { %v21606_v36 = vsel %vm25112_vm1, %v7025_v11, %v7027_v51  ;;  %vm25114_vm8 = vmmov %vm25107_vm0 }
 0x482   : > { %25113 = vst [vmem:[#allocation94_spill] sm:$0xff] %v21606_v36  ;;  %15909 = vmatprep.mubr.msk.f32.mxu0 %vm25114_vm8, %v21220_v55  ;;  %vm25115_vm2 = vmmov %vm25107_vm0 }
 0x483   : > { %16139 = vmatmul.mubr.msk.f32.gmra.mrb[10].mxu1 %vm25115_vm2, %v21606_v36  ;;  %vm25116_vm13 = vmmov %vm25112_vm1  ;;  %v7037_v36 = vrot.slane %v21285_v39, 4 }
 0x484   : > { %v21614_v23 = vsel %vm25116_vm13, %v7027_v51, %v7029_v9  ;;  %vm25118_vm15 = vmmov %vm25107_vm0 }
 0x485   : > { %25117 = vst [vmem:[#allocation95_spill] sm:$0xff] %v21614_v23  ;;  %16141 = vmatprep.mubr.msk.f32.mxu1 %vm25118_vm15, %v21614_v23  ;;  %vm25119_vm14 = vmmov %vm25107_vm0  ;;  %v7039_v23 = vrot.slane %v21292_v34, 4 }
 0x486   : > { %15910 = vmatmul.mubr.msk.f32.gmra.mrb[62].mxu0 %vm25119_vm14, %v21231_v21  ;;  %vm25120_vm9 = vmmov %vm25112_vm1 }
 0x487   : > { %v21622_v11 = vsel %vm25120_vm9, %v7029_v9, %v7031_v30  ;;  %vm25122_vm7 = vmmov %vm25107_vm0 }
 0x488   : > { %25121 = vst [vmem:[#allocation96_spill] sm:$0xff] %v21622_v11  ;;  %15912 = vmatprep.mubr.msk.f32.mxu0 %vm25122_vm7, %v21238_v62  ;;  %vm25123_vm5 = vmmov %vm25107_vm0 }
 0x489   : > { %16142 = vmatmul.mubr.msk.f32.gmra.mrb[12].mxu1 %vm25123_vm5, %v21622_v11  ;;  %vm25124_vm6 = vmmov %vm25112_vm1  ;;  %v7041_v11 = vrot.slane %v21302_v19, 4 }
 0x48a   : > { %v21630_v51 = vsel %vm25124_vm6, %v7031_v30, %v7033_v32  ;;  %vm25125_vm4 = vmmov %vm25107_vm0 }
 0x48b   : > { %16144 = vmatprep.mubr.msk.f32.mxu1 %vm25125_vm4, %v21630_v51  ;;  %vm25126_vm3 = vmmov %vm25107_vm0 }
 0x48c   : > { %15913 = vmatmul.mubr.msk.f32.gmra.mrb[64].mxu0 %vm25126_vm3, %v21249_v15  ;;  %vm25127_vm0 = vmmov %vm25112_vm1 }
 0x48d   : > { %v21638_v9 = vsel %vm25127_vm0, %v7033_v32, %v7035_v17  ;;  %vm25129_vm10 = vmmov %vm25115_vm2 }
 0x48e   : > { %25128 = vst [vmem:[#allocation97_spill] sm:$0xff] %v21638_v9  ;;  %15915 = vmatprep.mubr.msk.f32.mxu0 %vm25129_vm10, %v21256_v54  ;;  %vm25130_vm12 = vmmov %vm25115_vm2 }
 0x48f   : > { %16145 = vmatmul.mubr.msk.f32.gmra.mrb[14].mxu1 %vm25130_vm12, %v21638_v9  ;;  %vm25131_vm11 = vmmov %vm25127_vm0 }
 0x490   : > { %v21646_v30 = vsel %vm25131_vm11, %v7035_v17, %v7037_v36  ;;  %vm25133_vm1 = vmmov %vm25115_vm2 }
 0x491   : > { %25132 = vst [vmem:[#allocation98_spill] sm:$0xff] %v21646_v30  ;;  %16147 = vmatprep.mubr.msk.f32.mxu1 %vm25133_vm1, %v21646_v30  ;;  %vm25134_vm8 = vmmov %vm25133_vm1  ;;  %v5824_v30 = vrot.slane %v21355_v61, 2 }
 0x492   : > { %15916 = vmatmul.mubr.msk.f32.gmra.mrb[66].mxu0 %vm25134_vm8, %v21267_v29  ;;  %vm25135_vm2 = vmmov %vm25127_vm0 }
 0x493   : > { %v21654_v32 = vsel %vm25135_vm2, %v7037_v36, %v7039_v23  ;;  %vm25136_vm13 = vmmov %vm25133_vm1  ;;  %v25141_v36 = vrot.slane %v21308_v3, 4 }
 0x494   : > { %15918 = vmatprep.mubr.msk.f32.mxu0 %vm25136_vm13, %v21274_v33  ;;  %vm25137_vm15 = vmmov %vm25133_vm1  ;;  %v5825_v33 = vrot.slane %v21369_v26, 2  ;;  %v13716_v26 = vld [vmem:[%s24460_s3 + $0x80] sm:$0xff] }
 0x495   : > { %16148 = vmatmul.mubr.msk.f32.gmra.mrb[16].mxu1 %vm25137_vm15, %v21654_v32  ;;  %vm25138_vm14 = vmmov %vm25127_vm0 }
 0x496   : > { %v21661_v17 = vsel %vm25138_vm14, %v7039_v23, %v7041_v11  ;;  %vm25139_vm9 = vmmov %vm25133_vm1  ;;  %v5827_v23 = vrot.slane %v21037_v18, 2 }
 0x497   : > { %16150 = vmatprep.mubr.msk.f32.mxu1 %vm25139_vm9, %v21661_v17  ;;  %vm25140_vm7 = vmmov %vm25133_vm1 }
 0x498   : > { %15919 = vmatmul.mubr.msk.f32.gmra.mrb[68].mxu0 %vm25140_vm7, %v21285_v39  ;;  %vm25142_vm5 = vmmov %vm25127_vm0  ;;  %vm25146_vm0 = vcmask 1045504  }
 0x499   : > { %v21671_v9 = vsel %vm25142_vm5, %v7041_v11, %v25141_v36  ;;  %vm25143_vm6 = vmmov %vm25133_vm1  ;;  %v5826_v61 = vsel %vm25146_vm0, %v5824_v30, %v5825_v33  ;;  %v5829_v11 = vrot.slane %v21039_v13, 2  ;;  %v13717_v30 = vld [vmem:[%s24460_s3 + $0x88] sm:$0xff]  ;;  %v5831_v13 = vrot.slane %v21052_v43, 2 }
 0x49a   : > { %15921 = vmatprep.mubr.msk.f32.mxu0 %vm25143_vm6, %v21292_v34  ;;  %vm25144_vm4 = vmmov %vm25133_vm1  ;;  %v21703_v3 = vpack.c.bf16 %v13717_v30, %v13716_v26  ;;  %v25194_v26 = vld [vmem:[#allocation77_spill] sm:$0xff] }
 0x49b   : > { %16151 = vmatmul.mubr.msk.f32.gmra.mrb[18].mxu1 %vm25144_vm4, %v21671_v9  ;;  %vm25145_vm3 = vmmov %vm25133_vm1  ;;  %v5859_v30 = vrot.slane %v25194_v26, 2 }
 0x49c   : > { %16153 = vmatprep.mubr.msk.f32.mxu1 %vm25145_vm3, %v21337_v8  ;;  %vm25147_vm10 = vmmov %vm25133_vm1 }
 0x49d   : > { %15922 = vmatmul.mubr.msk.f32.gmra.mrb[70].mxu0 %vm25147_vm10, %v21302_v19  ;;  %vm25148_vm12 = vmmov %vm25133_vm1 }
 0x49e   : > { %vm25149_vm11 = vmmov %vm25133_vm1 }
 0x49f   : > { %16154 = vmatmul.mubr.msk.f32.gmra.mrb[20].mxu1 %vm25148_vm12, %v21342_v46  ;;  %15928 = vmatprep.mubr.msk.f32.mxu0 %vm25149_vm11, %v5826_v61  ;;  %vm25150_vm8 = vmmov %vm25146_vm0  ;;  %v5833_v61 = vrot.slane %v21054_v10, 2  ;;  %v5835_v10 = vrot.slane %v21061_v35, 2  ;;  %v5839_v35 = vrot.slane %v21074_v24, 2  ;;  %v5843_v24 = vrot.slane %v21086_v59, 2 }
 0x4a0   : > { %16160 = vmatprep.mubr.msk.f32.mxu1 %vm25133_vm1, %v21381_v44  ;;  %v5828_v18 = vsel %vm25150_vm8, %v5825_v33, %v5827_v23  ;;  %vm25151_vm2 = vmmov %vm25133_vm1  ;;  %v5841_v44 = vrot.slane %v21081_v41, 2  ;;  %v5845_v41 = vrot.slane %v21093_v53, 2  ;;  %v5847_v59 = vrot.slane %v21098_v0, 2 }
 0x4a1   : > { %15929 = vmatmul.mubr.msk.f32.vlgmr.msra.gmra.mrb[36].mxu0 %vm25151_vm2, %v5828_v18  ;;  %vm25152_vm13 = vmmov %vm25146_vm0  ;;  %v5849_v53 = vrot.slane %v21105_v12, 2  ;;  %v5851_v0 = vrot.slane %v21110_v48, 2  ;;  %v5853_v12 = vrot.slane %v21117_v45, 2  ;;  %v25186_v48 = vld [vmem:[#allocation76_spill] sm:$0xff]  ;;  %v5857_v45 = vrot.slane %v21135_v28, 2 }
 0x4a2   : > { %v21700_v36 = vsel %vm25152_vm13, %v5827_v23, %v5829_v11  ;;  %vm25153_vm15 = vmmov %vm25133_vm1  ;;  %17011 = vmatpush3.bf16.msra.mxu0 %v21367_v49  ;;  %v5837_v49 = vrot.slane %v21069_v37, 2  ;;  %v25192_v23 = vld [vmem:[#allocation87_spill] sm:$0xff]  ;;  %v5861_v28 = vrot.slane %v21157_v5, 2  ;;  %v5865_v5 = vrot.slane %v21177_v25, 2 }
 0x4a3   : > { %15931 = vmatprep.mubr.msk.f32.mxu0 %vm25153_vm15, %v21700_v36  ;;  %vm25154_vm14 = vmmov %vm25133_vm1  ;;  %17013 = vmatprep.subr.bf16.mxu0 %v20680_v1  ;;  %v5869_v25 = vrot.slane %v21195_v20, 2  ;;  %v5873_v20 = vrot.slane %v21213_v60, 2  ;;  %v5877_v60 = vrot.slane %v21231_v21, 2 }
 0x4a4   : > { %16161 = vmatmul.mubr.msk.f32.vlgmr.msra.gmra.mrb[22].mxu1 %vm25154_vm14, %v21393_v52  ;;  %vm25155_vm9 = vmmov %vm25133_vm1 }
 0x4a5   : > { %16163 = vmatprep.mubr.msk.f32.mxu1 %vm25155_vm9, %v21402_v4  ;;  %17027 = vmatpush3.bf16.msra.mxu1 %v21375_v7  ;;  %vm25156_vm7 = vmmov %vm25146_vm0 }
 0x4a6   : > { %v21714_v43 = vsel %vm25156_vm7, %v5829_v11, %v5831_v13  ;;  %vm25157_vm5 = vmmov %vm25133_vm1  ;;  %17029 = vmatprep.subr.bf16.mxu1 %v21703_v3 }
 0x4a7   : > { %15932 = vmatmul.mubr.msk.f32.gmra.mrb[38].mxu0 %vm25157_vm5, %v21714_v43  ;;  %vm25158_vm6 = vmmov %vm25146_vm0 }
 0x4a8   : > { %v21721_v33 = vsel %vm25158_vm6, %v5831_v13, %v5833_v61  ;;  %vm25159_vm4 = vmmov %vm25133_vm1  ;;  %v25197_v13 = vld [vmem:[#allocation88_spill] sm:$0xff] }
 0x4a9   : > { %15934 = vmatprep.mubr.msk.f32.mxu0 %vm25159_vm4, %v21721_v33  ;;  %vm25160_vm3 = vmmov %vm25133_vm1 }
 0x4aa   : > { %16164 = vmatmul.mubr.msk.f32.gmra.mrb[24].mxu1 %vm25160_vm3, %v21407_v27  ;;  %vm25161_vm0 = vmmov %vm25133_vm1 }
 0x4ab   : > { %16166 = vmatprep.mubr.msk.f32.mxu1 %vm25161_vm0, %v21414_v14  ;;  %vm25162_vm10 = vmmov %vm25158_vm6 }
 0x4ac   : > { %v21732_v7 = vsel %vm25162_vm10, %v5833_v61, %v5835_v10  ;;  %vm25163_vm12 = vmmov %vm25161_vm0 }
 0x4ad   : > { %15935 = vmatmul.mubr.msk.f32.gmra.mrb[40].mxu0 %vm25163_vm12, %v21732_v7  ;;  %vm25164_vm11 = vmmov %vm25158_vm6 }
 0x4ae   : > { %v21738_v37 = vsel %vm25164_vm11, %v5835_v10, %v5837_v49  ;;  %vm25165_vm1 = vmmov %vm25161_vm0  ;;  %v5863_v10 = vrot.slane %v21164_v47, 2  ;;  %v5867_v47 = vrot.slane %v21184_v57, 2  ;;  %v5871_v57 = vrot.slane %v21202_v2, 2 }
 0x4af   : > { %15937 = vmatprep.mubr.msk.f32.mxu0 %vm25165_vm1, %v21738_v37  ;;  %vm25166_vm8 = vmmov %vm25161_vm0  ;;  %v5875_v2 = vrot.slane %v21220_v55, 2  ;;  %v5879_v55 = vrot.slane %v21238_v62, 2 }
 0x4b0   : > { %16167 = vmatmul.mubr.msk.f32.gmra.mrb[26].mxu1 %vm25166_vm8, %v21449_v58  ;;  %vm25167_vm2 = vmmov %vm25161_vm0  ;;  %v21764_v58 = vsel %vm25158_vm6, %v5841_v44, %v5843_v24 }
 0x4b1   : > { %16169 = vmatprep.mubr.msk.f32.mxu1 %vm25167_vm2, %v21457_v16  ;;  %vm25168_vm13 = vmmov %vm25158_vm6 }
 0x4b2   : > { %v21748_v52 = vsel %vm25168_vm13, %v5837_v49, %v5839_v35  ;;  %vm25169_vm15 = vmmov %vm25161_vm0 }
 0x4b3   : > { %15938 = vmatmul.mubr.msk.f32.gmra.mrb[42].mxu0 %vm25169_vm15, %v21748_v52  ;;  %vm25170_vm14 = vmmov %vm25158_vm6 }
 0x4b4   : > { %v21754_v4 = vsel %vm25170_vm14, %v5839_v35, %v5841_v44  ;;  %vm25171_vm9 = vmmov %vm25161_vm0 }
 0x4b5   : > { %15940 = vmatprep.mubr.msk.f32.mxu0 %vm25171_vm9, %v21754_v4  ;;  %vm25172_vm7 = vmmov %vm25161_vm0 }
 0x4b6   : > { %16170 = vmatmul.mubr.msk.f32.gmra.mrb[28].mxu1 %vm25172_vm7, %v21465_v50  ;;  %vm25173_vm5 = vmmov %vm25161_vm0  ;;  %v25183_v50 = vld [vmem:[#allocation85_spill] sm:$0xff] }
 0x4b7   : > { %16172 = vmatprep.mubr.msk.f32.mxu1 %vm25173_vm5, %v21473_v31  ;;  %vm25174_vm4 = vmmov %vm25161_vm0 }
 0x4b8   : > { %15941 = vmatmul.mubr.msk.f32.gmra.mrb[44].mxu0 %vm25174_vm4, %v21764_v58  ;;  %vm25175_vm3 = vmmov %vm25158_vm6 }
 0x4b9   : > { %v21770_v27 = vsel %vm25175_vm3, %v5843_v24, %v5845_v41  ;;  %vm25176_vm10 = vmmov %vm25161_vm0  ;;  %v25218_v24 = vld [vmem:[#allocation93_spill] sm:$0xff] }
 0x4ba   : > { %15943 = vmatprep.mubr.msk.f32.mxu0 %vm25161_vm0, %v21770_v27  ;;  %16173 = vmatmul.mubr.msk.f32.gmra.mrb[30].mxu1 %vm25176_vm10, %v21481_v63  ;;  %vm25177_vm12 = vmmov %vm25161_vm0  ;;  %v5855_v63 = vrot.slane %v25186_v48, 2 }
 0x4bb   : > { %16175 = vmatprep.mubr.msk.f32.mxu1 %vm25177_vm12, %v21489_v56  ;;  %vm25178_vm11 = vmmov %vm25175_vm3 }
 0x4bc   : > { %v21780_v14 = vsel %vm25178_vm11, %v5845_v41, %v5847_v59  ;;  %vm25179_vm1 = vmmov %vm25161_vm0  ;;  %v21812_v11 = vsel %vm25175_vm3, %v5853_v12, %v5855_v63 }
 0x4bd   : > { %15944 = vmatmul.mubr.msk.f32.gmra.mrb[46].mxu0 %vm25179_vm1, %v21780_v14  ;;  %vm25180_vm8 = vmmov %vm25175_vm3 }
 0x4be   : > { %v21786_v16 = vsel %vm25180_vm8, %v5847_v59, %v5849_v53  ;;  %vm25181_vm2 = vmmov %vm25161_vm0 }
 0x4bf   : > { %15946 = vmatprep.mubr.msk.f32.mxu0 %vm25181_vm2, %v21786_v16  ;;  %vm25182_vm13 = vmmov %vm25161_vm0 }
 0x4c0   : > { %16176 = vmatmul.mubr.msk.f32.gmra.mrb[32].mxu1 %vm25182_vm13, %v21497_v6  ;;  %vm25184_vm15 = vmmov %vm25161_vm0  ;;  %v25190_v6 = vld [vmem:[#allocation86_spill] sm:$0xff] }
 0x4c1   : > { %16178 = vmatprep.mubr.msk.f32.mxu1 %vm25184_vm15, %v25183_v50  ;;  %vm25185_vm14 = vmmov %vm25175_vm3 }
 0x4c2   : > { %v21796_v31 = vsel %vm25185_vm14, %v5849_v53, %v5851_v0  ;;  %vm25187_vm9 = vmmov %vm25161_vm0  ;;  %v25224_v53 = vld [vmem:[#allocation94_spill] sm:$0xff] }
 0x4c3   : > { %15947 = vmatmul.mubr.msk.f32.gmra.mrb[48].mxu0 %vm25187_vm9, %v21796_v31  ;;  %vm25188_vm7 = vmmov %vm25175_vm3 }
 0x4c4   : > { %v21802_v56 = vsel %vm25188_vm7, %v5851_v0, %v5853_v12  ;;  %vm25189_vm5 = vmmov %vm25161_vm0  ;;  %v25226_v0 = vld [vmem:[#allocation95_spill] sm:$0xff] }
 0x4c5   : > { %15949 = vmatprep.mubr.msk.f32.mxu0 %vm25189_vm5, %v21802_v56  ;;  %vm25191_vm6 = vmmov %vm25161_vm0 }
 0x4c6   : > { %16179 = vmatmul.mubr.msk.f32.gmra.mrb[34].mxu1 %vm25191_vm6, %v25190_v6  ;;  %vm25193_vm4 = vmmov %vm25161_vm0 }
 0x4c7   : > { %16181 = vmatprep.mubr.msk.f32.mxu1 %vm25193_vm4, %v25192_v23  ;;  %15950 = vmatmul.mubr.msk.f32.gmra.mrb[50].mxu0 %vm25161_vm0, %v21812_v11  ;;  %vm25195_vm10 = vmmov %vm25175_vm3  ;;  %v5883_v23 = vrot.slane %v21256_v54, 2 }
 0x4c8   : > { %v21818_v18 = vsel %vm25195_vm10, %v5855_v63, %v5857_v45  ;;  %vm25196_vm12 = vmmov %vm25161_vm0  ;;  %v5881_v63 = vrot.slane %v21249_v15, 2 }
 0x4c9   : > { %15952 = vmatprep.mubr.msk.f32.mxu0 %vm25196_vm12, %v21818_v18  ;;  %vm25198_vm11 = vmmov %vm25161_vm0 }
 0x4ca   : > { %16182 = vmatmul.mubr.msk.f32.gmra.mrb[0].mxu1 %vm25198_vm11, %v25197_v13  ;;  %vm25199_vm1 = vmmov %vm25161_vm0 }
 0x4cb   : > { %16184 = vmatprep.mubr.msk.f32.mxu1 %vm25199_vm1, %v21532_v40  ;;  %vm25200_vm8 = vmmov %vm25175_vm3 }
 0x4cc   : > { %v21828_v61 = vsel %vm25200_vm8, %v5857_v45, %v5859_v30  ;;  %vm25201_vm2 = vmmov %vm25161_vm0  ;;  %v25230_v45 = vld [vmem:[#allocation96_spill] sm:$0xff] }
 0x4cd   : > { %15953 = vmatmul.mubr.msk.f32.gmra.mrb[52].mxu0 %vm25201_vm2, %v21828_v61  ;;  %vm25202_vm13 = vmmov %vm25175_vm3 }
 0x4ce   : > { %v21834_v49 = vsel %vm25202_vm13, %v5859_v30, %v5861_v28  ;;  %vm25203_vm15 = vmmov %vm25161_vm0  ;;  %v5885_v30 = vrot.slane %v21267_v29, 2 }
 0x4cf   : > { %15955 = vmatprep.mubr.msk.f32.mxu0 %vm25203_vm15, %v21834_v49  ;;  %vm25204_vm14 = vmmov %vm25161_vm0 }
 0x4d0   : > { %16185 = vmatmul.mubr.msk.f32.gmra.mrb[2].mxu1 %vm25204_vm14, %v21558_v42  ;;  %vm25205_vm9 = vmmov %vm25161_vm0 }
 0x4d1   : > { %16187 = vmatprep.mubr.msk.f32.mxu1 %vm25205_vm9, %v21566_v38  ;;  %vm25206_vm7 = vmmov %vm25175_vm3  ;;  %v25211_v38 = vld [vmem:[#allocation91_spill] sm:$0xff] }
 0x4d2   : > { %v21844_v40 = vsel %vm25206_vm7, %v5861_v28, %v5863_v10  ;;  %vm25207_vm5 = vmmov %vm25161_vm0  ;;  %v25237_v28 = vld [vmem:[#allocation97_spill] sm:$0xff] }
 0x4d3   : > { %15956 = vmatmul.mubr.msk.f32.gmra.mrb[54].mxu0 %vm25207_vm5, %v21844_v40  ;;  %vm25208_vm6 = vmmov %vm25175_vm3 }
 0x4d4   : > { %v21850_v35 = vsel %vm25208_vm6, %v5863_v10, %v5865_v5  ;;  %vm25209_vm4 = vmmov %vm25161_vm0  ;;  %v21892_v12 = vsel %vm25208_vm6, %v5873_v20, %v5875_v2  ;;  %v25242_v10 = vld [vmem:[#allocation78_spill] sm:$0xff] }
 0x4d5   : > { %15958 = vmatprep.mubr.msk.f32.mxu0 %vm25209_vm4, %v21850_v35  ;;  %vm25210_vm3 = vmmov %vm25161_vm0 }
 0x4d6   : > { %16188 = vmatmul.mubr.msk.f32.gmra.mrb[4].mxu1 %vm25210_vm3, %v21574_v22  ;;  %vm25212_vm10 = vmmov %vm25208_vm6  ;;  %v25216_v22 = vld [vmem:[#allocation92_spill] sm:$0xff] }
 0x4d7   : > { %16190 = vmatprep.mubr.msk.f32.mxu1 %vm25161_vm0, %v25211_v38  ;;  %v21860_v42 = vsel %vm25212_vm10, %v5865_v5, %v5867_v47  ;;  %vm25213_vm12 = vmmov %vm25161_vm0  ;;  %v5887_v5 = vrot.slane %v25242_v10, 2  ;;  %v21939_v38 = vld [vmem:[#allocation2 + $0x138] sm:$0xff] }
 0x4d8   : > { %15959 = vmatmul.mubr.msk.f32.gmra.mrb[56].mxu0 %vm25213_vm12, %v21860_v42  ;;  %vm25214_vm11 = vmmov %vm25208_vm6 }
 0x4d9   : > { %v21866_v44 = vsel %vm25214_vm11, %v5867_v47, %v5869_v25  ;;  %vm25215_vm1 = vmmov %vm25161_vm0 }
 0x4da   : > { %15961 = vmatprep.mubr.msk.f32.mxu0 %vm25215_vm1, %v21866_v44  ;;  %vm25217_vm8 = vmmov %vm25161_vm0 }
 0x4db   : > { %16191 = vmatmul.mubr.msk.f32.gmra.mrb[6].mxu1 %vm25217_vm8, %v25216_v22  ;;  %vm25219_vm2 = vmmov %vm25161_vm0  ;;  %v21945_v22 = vld [vmem:[#allocation2 + $0x140] sm:$0x3f] }
 0x4dc   : > { %16193 = vmatprep.mubr.msk.f32.mxu1 %vm25219_vm2, %v25218_v24  ;;  %vm25220_vm13 = vmmov %vm25208_vm6 }
 0x4dd   : > { %v21876_v41 = vsel %vm25220_vm13, %v5869_v25, %v5871_v57  ;;  %vm25221_vm15 = vmmov %vm25161_vm0  ;;  %v5889_v25 = vrot.slane %v21285_v39, 2 }
 0x4de   : > { %15962 = vmatmul.mubr.msk.f32.gmra.mrb[58].mxu0 %vm25221_vm15, %v21876_v41  ;;  %vm25222_vm14 = vmmov %vm25208_vm6 }
 0x4df   : > { %v21882_v59 = vsel %vm25222_vm14, %v5871_v57, %v5873_v20  ;;  %vm25223_vm9 = vmmov %vm25161_vm0  ;;  %v5891_v20 = vrot.slane %v21292_v34, 2 }
 0x4e0   : > { %15964 = vmatprep.mubr.msk.f32.mxu0 %vm25223_vm9, %v21882_v59  ;;  %vm25225_vm7 = vmmov %vm25161_vm0 }
 0x4e1   : > { %16194 = vmatmul.mubr.msk.f32.gmra.mrb[8].mxu1 %vm25225_vm7, %v25224_v53  ;;  %vm25227_vm5 = vmmov %vm25161_vm0 }
 0x4e2   : > { %16196 = vmatprep.mubr.msk.f32.mxu1 %vm25227_vm5, %v25226_v0  ;;  %vm25228_vm4 = vmmov %vm25161_vm0 }
 0x4e3   : > { %15965 = vmatmul.mubr.msk.f32.gmra.mrb[60].mxu0 %vm25228_vm4, %v21892_v12  ;;  %vm25229_vm3 = vmmov %vm25208_vm6 }
 0x4e4   : > { %v21898_v50 = vsel %vm25229_vm3, %v5875_v2, %v5877_v60  ;;  %vm25231_vm10 = vmmov %vm25161_vm0  ;;  %v21942_v57 = vsel %vm25229_vm3, %v5885_v30, %v5887_v5  ;;  %v7409_v2 = vrot.slane %v21945_v22, 4 }
 0x4e5   : > { %15967 = vmatprep.mubr.msk.f32.mxu0 %vm25161_vm0, %v21898_v50  ;;  %16197 = vmatmul.mubr.msk.f32.gmra.mrb[10].mxu1 %vm25231_vm10, %v25230_v45  ;;  %vm25232_vm12 = vmmov %vm25161_vm0  ;;  %v21979_v45 = vld [vmem:[#allocation2 + $0x28] sm:$0xff] }
 0x4e6   : > { %16199 = vmatprep.mubr.msk.f32.mxu1 %vm25232_vm12, %v21630_v51  ;;  %vm25233_vm11 = vmmov %vm25229_vm3  ;;  %v25239_v51 = vld [vmem:[#allocation98_spill] sm:$0xff] }
 0x4e7   : > { %v21908_v6 = vsel %vm25233_vm11, %v5877_v60, %v5879_v55  ;;  %vm25234_vm1 = vmmov %vm25161_vm0 }
 0x4e8   : > { %15968 = vmatmul.mubr.msk.f32.gmra.mrb[62].mxu0 %vm25234_vm1, %v21908_v6  ;;  %vm25235_vm8 = vmmov %vm25229_vm3 }
 0x4e9   : > { %v21914_v26 = vsel %vm25235_vm8, %v5879_v55, %v5881_v63  ;;  %vm25236_vm2 = vmmov %vm25161_vm0  ;;  %v21976_v55 = vld [vmem:[#allocation2 + $0x20] sm:$0xff] }
 0x4ea   : > { %15970 = vmatprep.mubr.msk.f32.mxu0 %vm25236_vm2, %v21914_v26  ;;  %vm25238_vm13 = vmmov %vm25161_vm0 }
 0x4eb   : > { %16200 = vmatmul.mubr.msk.f32.gmra.mrb[12].mxu1 %vm25238_vm13, %v25237_v28  ;;  %vm25240_vm15 = vmmov %vm25161_vm0  ;;  %v25262_v28 = vld [vmem:[#allocation79_spill] sm:$0xff] }
 0x4ec   : > { %16202 = vmatprep.mubr.msk.f32.mxu1 %vm25240_vm15, %v25239_v51  ;;  %vm25241_vm14 = vmmov %vm25229_vm3  ;;  %v25263_v51 = vrot.slane %v25262_v28, 2 }
 0x4ed   : > { %v21924_v13 = vsel %vm25241_vm14, %v5881_v63, %v5883_v23  ;;  %vm25243_vm9 = vmmov %vm25161_vm0  ;;  %v7699_v63 = vrot.slane %v21976_v55, 5 }
 0x4ee   : > { %15971 = vmatmul.mubr.msk.f32.gmra.mrb[64].mxu0 %vm25243_vm9, %v21924_v13  ;;  %vm25244_vm7 = vmmov %vm25229_vm3  ;;  %vm25259_vm9 = vcmask 1043456  }
 0x4ef   : > { %v21930_v47 = vsel %vm25244_vm7, %v5883_v23, %v5885_v30  ;;  %vm25245_vm5 = vmmov %vm25161_vm0  ;;  %v7700_v23 = vrot.slane %v21979_v45, 5 }
 0x4f0   : > { %15973 = vmatprep.mubr.msk.f32.mxu0 %vm25245_vm5, %v21930_v47  ;;  %vm25246_vm6 = vmmov %vm25161_vm0 }
 0x4f1   : > { %16203 = vmatmul.mubr.msk.f32.gmra.mrb[14].mxu1 %vm25246_vm6, %v21654_v32  ;;  %vm25247_vm4 = vmmov %vm25161_vm0  ;;  %v5893_v32 = vrot.slane %v21302_v19, 2 }
 0x4f2   : > { %16205 = vmatprep.mubr.msk.f32.mxu1 %vm25247_vm4, %v21661_v17  ;;  %15974 = vmatmul.mubr.msk.f32.gmra.mrb[66].mxu0 %vm25161_vm0, %v21942_v57  ;;  %vm25248_vm10 = vmmov %vm25229_vm3  ;;  %v7407_v17 = vrot.slane %v21939_v38, 4 }
 0x4f3   : > { %v21950_v24 = vsel %vm25248_vm10, %v5887_v5, %v5889_v25  ;;  %vm25249_vm12 = vmmov %vm25161_vm0  ;;  %v21991_v5 = vld [vmem:[#allocation2 + $0x30] sm:$0xff]  ;;  %vm25267_vm10 = vcmask 1042432  }
 0x4f4   : > { %15976 = vmatprep.mubr.msk.f32.mxu0 %vm25249_vm12, %v21950_v24  ;;  %vm25250_vm11 = vmmov %vm25161_vm0 }
 0x4f5   : > { %16206 = vmatmul.mubr.msk.f32.gmra.mrb[16].mxu1 %vm25250_vm11, %v21671_v9  ;;  %vm25251_vm1 = vmmov %vm25161_vm0  ;;  %v25257_v9 = vld [vmem:[#allocation80_spill] sm:$0xff] }
 0x4f6   : > { %16208 = vmatprep.mubr.msk.f32.mxu1 %vm25251_vm1, %v21337_v8  ;;  %vm25252_vm8 = vmmov %vm25229_vm3  ;;  %v25258_v0 = vrot.slane %v25257_v9, 4 }
 0x4f7   : > { %v21962_v60 = vsel %vm25252_vm8, %v5889_v25, %v5891_v20  ;;  %vm25253_vm2 = vmmov %vm25161_vm0  ;;  %v7702_v25 = vrot.slane %v21991_v5, 5 }
 0x4f8   : > { %15977 = vmatmul.mubr.msk.f32.gmra.mrb[68].mxu0 %vm25253_vm2, %v21962_v60  ;;  %vm25254_vm13 = vmmov %vm25229_vm3  ;;  %v7408_v8 = vsel %vm25259_vm9, %v25258_v0, %v7407_v17  ;;  %v22005_v0 = vld [vmem:[#allocation2 + $0x40] sm:$0xff] }
 0x4f9   : > { %v21967_v53 = vsel %vm25254_vm13, %v5891_v20, %v5893_v32  ;;  %vm25255_vm15 = vmmov %vm25161_vm0  ;;  %v7701_v20 = vsel %vm25267_vm10, %v7699_v63, %v7700_v23  ;;  %v22012_v63 = vld [vmem:[#allocation2 + $0x48] sm:$0xff] }
 0x4fa   : > { %15979 = vmatprep.mubr.msk.f32.mxu0 %vm25255_vm15, %v21967_v53  ;;  %vm25256_vm14 = vmmov %vm25161_vm0 }
 0x4fb   : > { %16209 = vmatmul.mubr.msk.f32.gmra.mrb[18].mxu1 %vm25256_vm14, %v21342_v46  ;;  %vm25260_vm7 = vmmov %vm25161_vm0 }
 0x4fc   : > { %16211 = vmatprep.mubr.msk.f32.mxu1 %vm25260_vm7, %v7408_v8  ;;  %vm25261_vm5 = vmmov %vm25259_vm9  ;;  %v7706_v8 = vrot.slane %v22005_v0, 5 }
 0x4fd   : > { %v7410_v30 = vsel %vm25261_vm5, %v7407_v17, %v7409_v2  ;;  %vm25264_vm6 = vmmov %vm25229_vm3  ;;  %v21998_v17 = vld [vmem:[#allocation2 + $0x38] sm:$0xff] }
 0x4fe   : > { %v21987_v46 = vsel %vm25264_vm6, %v5893_v32, %v25263_v51  ;;  %vm25265_vm4 = vmmov %vm25161_vm0  ;;  %v7704_v2 = vrot.slane %v21998_v17, 5  ;;  %v22028_v51 = vld [vmem:[#allocation2 + $0x58] sm:$0xff] }
 0x4ff   : > { %15980 = vmatmul.mubr.msk.f32.gmra.mrb[70].mxu0 %vm25265_vm4, %v21987_v46  ;;  %vm25266_vm3 = vmmov %vm25161_vm0  ;;  %16212 = vmatmul.mubr.msk.f32.gmra.mrb[20].mxu1 %vm25161_vm0, %v7410_v30  ;;  %v7708_v30 = vrot.slane %v22012_v63, 5 }
 0x500   : > { %15986 = vmatprep.mubr.msk.f32.mxu0 %vm25266_vm3, %v21700_v36  ;;  %vm25268_vm12 = vmmov %vm25161_vm0 }
 0x501   : > { %16218 = vmatprep.mubr.msk.f32.mxu1 %vm25268_vm12, %v7701_v20  ;;  %vm25269_vm11 = vmmov %vm25161_vm0 }
 0x502   : > { %vm25270_vm1 = vmmov %vm25267_vm10 }
 0x503   : > { %15987 = vmatmul.mubr.msk.f32.vlgmr.msra.gmra.mrb[36].mxu0 %vm25269_vm11, %v21714_v43  ;;  %v7703_v32 = vsel %vm25270_vm1, %v7700_v23, %v7702_v25  ;;  %vm25271_vm8 = vmmov %vm25161_vm0 }
 0x504   : > { %15989 = vmatprep.mubr.msk.f32.mxu0 %vm25271_vm8, %v21721_v33  ;;  %vm25272_vm2 = vmmov %vm25161_vm0  ;;  %17015 = vmatpush3.bf16.msra.mxu0 %v20680_v1  ;;  %v22021_v33 = vld [vmem:[#allocation2 + $0x50] sm:$0xff] }
 0x505   : > { %16219 = vmatmul.mubr.msk.f32.vlgmr.msra.gmra.mrb[22].mxu1 %vm25272_vm2, %v7703_v32  ;;  %vm25273_vm13 = vmmov %vm25270_vm1  ;;  %v7710_v23 = vrot.slane %v22021_v33, 5 }
 0x506   : > { %v7705_v36 = vsel %vm25273_vm13, %v7702_v25, %v7704_v2  ;;  %vm25274_vm15 = vmmov %vm25161_vm0  ;;  %17031 = vmatpush3.bf16.msra.mxu1 %v21703_v3  ;;  %v7712_v3 = vrot.slane %v22028_v51, 5  ;;  %v22035_v25 = vld [vmem:[#allocation2 + $0x60] sm:$0xff] }
 0x507   : > { %16221 = vmatprep.mubr.msk.f32.mxu1 %vm25274_vm15, %v7705_v36  ;;  %vm25275_vm14 = vmmov %vm25161_vm0  ;;  %v7714_v20 = vrot.slane %v22035_v25, 5 }
 0x508   : > { %15990 = vmatmul.mubr.msk.f32.gmra.mrb[38].mxu0 %vm25275_vm14, %v21732_v7  ;;  %vm25276_vm9 = vmmov %vm25270_vm1 }
 0x509   : > { %v7707_v43 = vsel %vm25276_vm9, %v7704_v2, %v7706_v8  ;;  %vm25277_vm7 = vmmov %vm25161_vm0  ;;  %v22042_v2 = vld [vmem:[#allocation2 + $0x68] sm:$0xff] }
 0x50a   : > { %15992 = vmatprep.mubr.msk.f32.mxu0 %vm25277_vm7, %v21738_v37  ;;  %vm25278_vm5 = vmmov %vm25161_vm0  ;;  %v7716_v32 = vrot.slane %v22042_v2, 5 }
 0x50b   : > { %16222 = vmatmul.mubr.msk.f32.gmra.mrb[24].mxu1 %vm25278_vm5, %v7707_v43  ;;  %vm25279_vm6 = vmmov %vm25270_vm1 }
 0x50c   : > { %v7709_v1 = vsel %vm25279_vm6, %v7706_v8, %v7708_v30  ;;  %vm25280_vm4 = vmmov %vm25161_vm0  ;;  %v22049_v8 = vld [vmem:[#allocation2 + $0x70] sm:$0xff] }
 0x50d   : > { %16224 = vmatprep.mubr.msk.f32.mxu1 %vm25280_vm4, %v7709_v1  ;;  %vm25281_vm3 = vmmov %vm25161_vm0  ;;  %v7718_v36 = vrot.slane %v22049_v8, 5 }
 0x50e   : > { %15993 = vmatmul.mubr.msk.f32.gmra.mrb[40].mxu0 %vm25281_vm3, %v21748_v52  ;;  %vm25282_vm0 = vmmov %vm25270_vm1 }
 0x50f   : > { %v7711_v7 = vsel %vm25282_vm0, %v7708_v30, %v7710_v23  ;;  %vm25283_vm10 = vmmov %vm25272_vm2  ;;  %v22056_v30 = vld [vmem:[#allocation2 + $0x78] sm:$0xff] }
 0x510   : > { %15995 = vmatprep.mubr.msk.f32.mxu0 %vm25283_vm10, %v21754_v4  ;;  %vm25284_vm12 = vmmov %vm25272_vm2  ;;  %v7720_v43 = vrot.slane %v22056_v30, 5 }
 0x511   : > { %16225 = vmatmul.mubr.msk.f32.gmra.mrb[26].mxu1 %vm25284_vm12, %v7711_v7  ;;  %vm25285_vm11 = vmmov %vm25282_vm0 }
 0x512   : > { %v7713_v37 = vsel %vm25285_vm11, %v7710_v23, %v7712_v3  ;;  %vm25286_vm1 = vmmov %vm25272_vm2  ;;  %v22063_v23 = vld [vmem:[#allocation2 + $0x80] sm:$0xff] }
 0x513   : > { %16227 = vmatprep.mubr.msk.f32.mxu1 %vm25286_vm1, %v7713_v37  ;;  %vm25287_vm8 = vmmov %vm25286_vm1  ;;  %v7722_v1 = vrot.slane %v22063_v23, 5 }
 0x514   : > { %15996 = vmatmul.mubr.msk.f32.gmra.mrb[42].mxu0 %vm25287_vm8, %v21764_v58  ;;  %vm25288_vm2 = vmmov %vm25282_vm0 }
 0x515   : > { %v7715_v52 = vsel %vm25288_vm2, %v7712_v3, %v7714_v20  ;;  %vm25289_vm13 = vmmov %vm25286_vm1  ;;  %v22070_v3 = vld [vmem:[#allocation2 + $0x88] sm:$0xff] }
 0x516   : > { %15998 = vmatprep.mubr.msk.f32.mxu0 %vm25289_vm13, %v21770_v27  ;;  %vm25290_vm15 = vmmov %vm25286_vm1  ;;  %v7724_v7 = vrot.slane %v22070_v3, 5 }
 0x517   : > { %16228 = vmatmul.mubr.msk.f32.gmra.mrb[28].mxu1 %vm25290_vm15, %v7715_v52  ;;  %vm25291_vm14 = vmmov %vm25282_vm0 }
 0x518   : > { %v7717_v4 = vsel %vm25291_vm14, %v7714_v20, %v7716_v32  ;;  %vm25292_vm9 = vmmov %vm25286_vm1  ;;  %v22077_v20 = vld [vmem:[#allocation2 + $0x90] sm:$0xff] }
 0x519   : > { %16230 = vmatprep.mubr.msk.f32.mxu1 %vm25292_vm9, %v7717_v4  ;;  %vm25293_vm7 = vmmov %vm25286_vm1  ;;  %v7726_v37 = vrot.slane %v22077_v20, 5 }
 0x51a   : > { %15999 = vmatmul.mubr.msk.f32.gmra.mrb[44].mxu0 %vm25293_vm7, %v21780_v14  ;;  %vm25294_vm5 = vmmov %vm25282_vm0 }
 0x51b   : > { %v7719_v58 = vsel %vm25294_vm5, %v7716_v32, %v7718_v36  ;;  %vm25295_vm6 = vmmov %vm25286_vm1  ;;  %v22084_v32 = vld [vmem:[#allocation2 + $0x98] sm:$0xff] }
 0x51c   : > { %16001 = vmatprep.mubr.msk.f32.mxu0 %vm25295_vm6, %v21786_v16  ;;  %vm25296_vm4 = vmmov %vm25286_vm1  ;;  %v7728_v52 = vrot.slane %v22084_v32, 5 }
 0x51d   : > { %16231 = vmatmul.mubr.msk.f32.gmra.mrb[30].mxu1 %vm25296_vm4, %v7719_v58  ;;  %vm25297_vm3 = vmmov %vm25282_vm0 }
 0x51e   : > { %v7721_v27 = vsel %vm25297_vm3, %v7718_v36, %v7720_v43  ;;  %vm25298_vm0 = vmmov %vm25286_vm1  ;;  %v22091_v36 = vld [vmem:[#allocation2 + $0xa0] sm:$0xff] }
 0x51f   : > { %16233 = vmatprep.mubr.msk.f32.mxu1 %vm25298_vm0, %v7721_v27  ;;  %vm25299_vm10 = vmmov %vm25298_vm0  ;;  %v7730_v4 = vrot.slane %v22091_v36, 5 }
 0x520   : > { %16002 = vmatmul.mubr.msk.f32.gmra.mrb[46].mxu0 %vm25299_vm10, %v21796_v31  ;;  %vm25300_vm12 = vmmov %vm25288_vm2 }
 0x521   : > { %v7723_v14 = vsel %vm25300_vm12, %v7720_v43, %v7722_v1  ;;  %vm25301_vm11 = vmmov %vm25298_vm0  ;;  %v22098_v43 = vld [vmem:[#allocation2 + $0xa8] sm:$0xff] }
 0x522   : > { %16004 = vmatprep.mubr.msk.f32.mxu0 %vm25301_vm11, %v21802_v56  ;;  %vm25302_vm1 = vmmov %vm25298_vm0  ;;  %v7732_v58 = vrot.slane %v22098_v43, 5 }
 0x523   : > { %16234 = vmatmul.mubr.msk.f32.gmra.mrb[32].mxu1 %vm25302_vm1, %v7723_v14  ;;  %vm25303_vm8 = vmmov %vm25288_vm2 }
 0x524   : > { %v7725_v16 = vsel %vm25303_vm8, %v7722_v1, %v7724_v7  ;;  %vm25304_vm2 = vmmov %vm25298_vm0  ;;  %v22105_v1 = vld [vmem:[#allocation2 + $0xb0] sm:$0xff] }
 0x525   : > { %16236 = vmatprep.mubr.msk.f32.mxu1 %vm25304_vm2, %v7725_v16  ;;  %vm25305_vm13 = vmmov %vm25298_vm0  ;;  %v7734_v27 = vrot.slane %v22105_v1, 5 }
 0x526   : > { %16005 = vmatmul.mubr.msk.f32.gmra.mrb[48].mxu0 %vm25305_vm13, %v21812_v11  ;;  %vm25306_vm15 = vmmov %vm25297_vm3 }
 0x527   : > { %v7727_v31 = vsel %vm25306_vm15, %v7724_v7, %v7726_v37  ;;  %vm25307_vm14 = vmmov %vm25298_vm0  ;;  %v22112_v7 = vld [vmem:[#allocation2 + $0xb8] sm:$0xff] }
 0x528   : > { %16007 = vmatprep.mubr.msk.f32.mxu0 %vm25307_vm14, %v21818_v18  ;;  %vm25308_vm9 = vmmov %vm25298_vm0  ;;  %v7736_v14 = vrot.slane %v22112_v7, 5 }
 0x529   : > { %16237 = vmatmul.mubr.msk.f32.gmra.mrb[34].mxu1 %vm25308_vm9, %v7727_v31  ;;  %vm25309_vm7 = vmmov %vm25297_vm3 }
 0x52a   : > { %v7729_v56 = vsel %vm25309_vm7, %v7726_v37, %v7728_v52  ;;  %vm25310_vm5 = vmmov %vm25298_vm0  ;;  %v22119_v37 = vld [vmem:[#allocation2 + $0xc0] sm:$0xff] }
 0x52b   : > { %16239 = vmatprep.mubr.msk.f32.mxu1 %vm25310_vm5, %v7729_v56  ;;  %vm25311_vm6 = vmmov %vm25298_vm0  ;;  %v7738_v16 = vrot.slane %v22119_v37, 5 }
 0x52c   : > { %16008 = vmatmul.mubr.msk.f32.gmra.mrb[50].mxu0 %vm25311_vm6, %v21828_v61  ;;  %vm25312_vm4 = vmmov %vm25297_vm3 }
 0x52d   : > { %v7731_v11 = vsel %vm25312_vm4, %v7728_v52, %v7730_v4  ;;  %vm25313_vm3 = vmmov %vm25298_vm0  ;;  %v22126_v52 = vld [vmem:[#allocation2 + $0xc8] sm:$0xff] }
 0x52e   : > { %16010 = vmatprep.mubr.msk.f32.mxu0 %vm25313_vm3, %v21834_v49  ;;  %16240 = vmatmul.mubr.msk.f32.gmra.mrb[0].mxu1 %vm25298_vm0, %v7731_v11  ;;  %vm25314_vm10 = vmmov %vm25312_vm4  ;;  %v7740_v31 = vrot.slane %v22126_v52, 5  ;;  %v7746_v11 = vrot.slane %v21238_v62, 5 }
 0x52f   : > { %v7733_v18 = vsel %vm25314_vm10, %v7730_v4, %v7732_v58  ;;  %vm25315_vm12 = vmmov %vm25298_vm0  ;;  %v22133_v4 = vld [vmem:[#allocation2 + $0xd0] sm:$0xff] }
 0x530   : > { %16242 = vmatprep.mubr.msk.f32.mxu1 %vm25315_vm12, %v7733_v18  ;;  %vm25316_vm11 = vmmov %vm25298_vm0  ;;  %v7742_v56 = vrot.slane %v22133_v4, 5 }
 0x531   : > { %16011 = vmatmul.mubr.msk.f32.gmra.mrb[52].mxu0 %vm25316_vm11, %v21844_v40  ;;  %vm25317_vm1 = vmmov %vm25312_vm4 }
 0x532   : > { %v7735_v61 = vsel %vm25317_vm1, %v7732_v58, %v7734_v27  ;;  %vm25318_vm8 = vmmov %vm25298_vm0  ;;  %v7744_v58 = vrot.slane %v21231_v21, 5 }
 0x533   : > { %16013 = vmatprep.mubr.msk.f32.mxu0 %vm25318_vm8, %v21850_v35  ;;  %vm25319_vm2 = vmmov %vm25298_vm0 }
 0x534   : > { %16243 = vmatmul.mubr.msk.f32.gmra.mrb[2].mxu1 %vm25319_vm2, %v7735_v61  ;;  %vm25320_vm13 = vmmov %vm25317_vm1 }
 0x535   : > { %v7737_v49 = vsel %vm25320_vm13, %v7734_v27, %v7736_v14  ;;  %vm25321_vm15 = vmmov %vm25298_vm0  ;;  %v7748_v27 = vrot.slane %v21249_v15, 5 }
 0x536   : > { %16245 = vmatprep.mubr.msk.f32.mxu1 %vm25321_vm15, %v7737_v49  ;;  %vm25322_vm14 = vmmov %vm25298_vm0  ;;  %v25369_v49 = vrot.slane %v25257_v9, 5 }
 0x537   : > { %16014 = vmatmul.mubr.msk.f32.gmra.mrb[54].mxu0 %vm25322_vm14, %v21860_v42  ;;  %vm25323_vm9 = vmmov %vm25317_vm1 }
 0x538   : > { %v7739_v40 = vsel %vm25323_vm9, %v7736_v14, %v7738_v16  ;;  %vm25324_vm7 = vmmov %vm25298_vm0  ;;  %v18084_v14 = vld [vmem:[#allocation2 + $0x18] sm:$0xff] }
 0x539   : > { %16016 = vmatprep.mubr.msk.f32.mxu0 %vm25324_vm7, %v21866_v44  ;;  %vm25325_vm5 = vmmov %vm25298_vm0  ;;  %v6548_v61 = vrot.slane %v18084_v14, 3  ;;  %v6568_v14 = vrot.slane %v22042_v2, 3 }
 0x53a   : > { %16246 = vmatmul.mubr.msk.f32.gmra.mrb[4].mxu1 %vm25325_vm5, %v7739_v40  ;;  %vm25326_vm6 = vmmov %vm25317_vm1  ;;  %v8128_v40 = vrot.slane %v21976_v55, 6 }
 0x53b   : > { %v7741_v35 = vsel %vm25326_vm6, %v7738_v16, %v7740_v31  ;;  %vm25327_vm4 = vmmov %vm25298_vm0  ;;  %v25365_v16 = vld [vmem:[#allocation82_spill] sm:$0xff] }
 0x53c   : > { %16248 = vmatprep.mubr.msk.f32.mxu1 %vm25327_vm4, %v7741_v35  ;;  %vm25328_vm3 = vmmov %vm25298_vm0  ;;  %v6550_v35 = vrot.slane %v21976_v55, 3 }
 0x53d   : > { %16017 = vmatmul.mubr.msk.f32.gmra.mrb[56].mxu0 %vm25328_vm3, %v21876_v41  ;;  %vm25329_vm0 = vmmov %vm25317_vm1  ;;  %v7750_v41 = vrot.slane %v21256_v54, 5 }
 0x53e   : > { %v7743_v42 = vsel %vm25329_vm0, %v7740_v31, %v7742_v56  ;;  %vm25330_vm10 = vmmov %vm25319_vm2 }
 0x53f   : > { %16019 = vmatprep.mubr.msk.f32.mxu0 %vm25330_vm10, %v21882_v59  ;;  %vm25331_vm12 = vmmov %vm25319_vm2  ;;  %v7752_v59 = vrot.slane %v21267_v29, 5 }
 0x540   : > { %16249 = vmatmul.mubr.msk.f32.gmra.mrb[6].mxu1 %vm25331_vm12, %v7743_v42  ;;  %vm25332_vm11 = vmmov %vm25329_vm0 }
 0x541   : > { %v7745_v44 = vsel %vm25332_vm11, %v7742_v56, %v7744_v58  ;;  %vm25333_vm1 = vmmov %vm25319_vm2  ;;  %v8129_v56 = vrot.slane %v21979_v45, 6 }
 0x542   : > { %16251 = vmatprep.mubr.msk.f32.mxu1 %vm25333_vm1, %v7745_v44  ;;  %vm25334_vm8 = vmmov %vm25333_vm1  ;;  %v8131_v44 = vrot.slane %v21991_v5, 6 }
 0x543   : > { %16020 = vmatmul.mubr.msk.f32.gmra.mrb[58].mxu0 %vm25334_vm8, %v21892_v12  ;;  %vm25335_vm2 = vmmov %vm25329_vm0  ;;  %v7754_v12 = vrot.slane %v25242_v10, 5  ;;  %v7760_v10 = vrot.slane %v21302_v19, 5  ;;  %v25359_v19 = vrot.slane %v25262_v28, 5 }
 0x544   : > { %v7747_v21 = vsel %vm25335_vm2, %v7744_v58, %v7746_v11  ;;  %vm25336_vm13 = vmmov %vm25333_vm1  ;;  %v25373_v58 = vld [vmem:[#allocation84_spill] sm:$0xff] }
 0x545   : > { %16022 = vmatprep.mubr.msk.f32.mxu0 %vm25336_vm13, %v21898_v50  ;;  %vm25337_vm15 = vmmov %vm25333_vm1  ;;  %v7756_v50 = vrot.slane %v21285_v39, 5 }
 0x546   : > { %16252 = vmatmul.mubr.msk.f32.gmra.mrb[8].mxu1 %vm25337_vm15, %v7747_v21  ;;  %vm25338_vm14 = vmmov %vm25329_vm0  ;;  %v8133_v21 = vrot.slane %v21998_v17, 6 }
 0x547   : > { %v7749_v62 = vsel %vm25338_vm14, %v7746_v11, %v7748_v27  ;;  %vm25339_vm9 = vmmov %vm25333_vm1  ;;  %v6552_v11 = vrot.slane %v21979_v45, 3 }
 0x548   : > { %16254 = vmatprep.mubr.msk.f32.mxu1 %vm25339_vm9, %v7749_v62  ;;  %vm25340_vm7 = vmmov %vm25333_vm1 }
 0x549   : > { %16023 = vmatmul.mubr.msk.f32.gmra.mrb[60].mxu0 %vm25340_vm7, %v21908_v6  ;;  %vm25341_vm5 = vmmov %vm25329_vm0  ;;  %v7758_v6 = vrot.slane %v21292_v34, 5 }
 0x54a   : > { %v7751_v15 = vsel %vm25341_vm5, %v7748_v27, %v7750_v41  ;;  %vm25342_vm6 = vmmov %vm25333_vm1 }
 0x54b   : > { %16025 = vmatprep.mubr.msk.f32.mxu0 %vm25342_vm6, %v21914_v26  ;;  %vm25343_vm4 = vmmov %vm25333_vm1 }
 0x54c   : > { %16255 = vmatmul.mubr.msk.f32.gmra.mrb[10].mxu1 %vm25343_vm4, %v7751_v15  ;;  %vm25344_vm3 = vmmov %vm25329_vm0  ;;  %v8135_v15 = vrot.slane %v22005_v0, 6 }
 0x54d   : > { %v7753_v54 = vsel %vm25344_vm3, %v7750_v41, %v7752_v59  ;;  %vm25345_vm0 = vmmov %vm25333_vm1  ;;  %v6554_v41 = vrot.slane %v21991_v5, 3 }
 0x54e   : > { %16257 = vmatprep.mubr.msk.f32.mxu1 %vm25345_vm0, %v7753_v54  ;;  %vm25346_vm10 = vmmov %vm25345_vm0  ;;  %v8137_v54 = vrot.slane %v22012_v63, 6 }
 0x54f   : > { %16026 = vmatmul.mubr.msk.f32.gmra.mrb[62].mxu0 %vm25346_vm10, %v21924_v13  ;;  %vm25347_vm12 = vmmov %vm25335_vm2 }
 0x550   : > { %v7755_v29 = vsel %vm25347_vm12, %v7752_v59, %v7754_v12  ;;  %vm25348_vm11 = vmmov %vm25345_vm0  ;;  %v6556_v59 = vrot.slane %v21998_v17, 3 }
 0x551   : > { %16028 = vmatprep.mubr.msk.f32.mxu0 %vm25348_vm11, %v21930_v47  ;;  %vm25349_vm1 = vmmov %vm25345_vm0  ;;  %v7768_v47 = vrot.slane %v21939_v38, 5 }
 0x552   : > { %16258 = vmatmul.mubr.msk.f32.gmra.mrb[12].mxu1 %vm25349_vm1, %v7755_v29  ;;  %vm25350_vm8 = vmmov %vm25335_vm2 }
 0x553   : > { %v7757_v26 = vsel %vm25350_vm8, %v7754_v12, %v7756_v50  ;;  %vm25351_vm2 = vmmov %vm25345_vm0 }
 0x554   : > { %16260 = vmatprep.mubr.msk.f32.mxu1 %vm25351_vm2, %v7757_v26  ;;  %vm25352_vm13 = vmmov %vm25345_vm0  ;;  %v8139_v26 = vrot.slane %v22021_v33, 6 }
 0x555   : > { %16029 = vmatmul.mubr.msk.f32.gmra.mrb[64].mxu0 %vm25352_vm13, %v21942_v57  ;;  %vm25353_vm15 = vmmov %vm25344_vm3  ;;  %v25362_v57 = vld [vmem:[#allocation81_spill] sm:$0xff] }
 0x556   : > { %v7759_v39 = vsel %vm25353_vm15, %v7756_v50, %v7758_v6  ;;  %vm25354_vm14 = vmmov %vm25345_vm0  ;;  %v6558_v50 = vrot.slane %v22005_v0, 3 }
 0x557   : > { %16031 = vmatprep.mubr.msk.f32.mxu0 %vm25354_vm14, %v21950_v24  ;;  %vm25355_vm9 = vmmov %vm25345_vm0  ;;  %v7770_v24 = vrot.slane %v21945_v22, 5  ;;  %vm25375_vm14 = vcmask 1044480  }
 0x558   : > { %16261 = vmatmul.mubr.msk.f32.gmra.mrb[14].mxu1 %vm25355_vm9, %v7759_v39  ;;  %vm25356_vm7 = vmmov %vm25344_vm3  ;;  %v8141_v39 = vrot.slane %v22028_v51, 6 }
 0x559   : > { %v7761_v34 = vsel %vm25356_vm7, %v7758_v6, %v7760_v10  ;;  %vm25357_vm5 = vmmov %vm25345_vm0  ;;  %v6560_v6 = vrot.slane %v22012_v63, 3 }
 0x55a   : > { %16263 = vmatprep.mubr.msk.f32.mxu1 %vm25357_vm5, %v7761_v34  ;;  %vm25358_vm6 = vmmov %vm25345_vm0  ;;  %vm25378_vm5 = vcmask 1041408   ;;  %v6562_v34 = vrot.slane %v22021_v33, 3 }
 0x55b   : > { %16032 = vmatmul.mubr.msk.f32.gmra.mrb[66].mxu0 %vm25358_vm6, %v21962_v60  ;;  %vm25360_vm4 = vmmov %vm25344_vm3  ;;  %v18083_v60 = vld [vmem:[#allocation2 + $0x10] sm:$0xff]  ;;  %v8130_v27 = vsel %vm25378_vm5, %v8128_v40, %v8129_v56  ;;  %v6572_v40 = vrot.slane %v22056_v30, 3 }
 0x55c   : > { %v7763_v13 = vsel %vm25360_vm4, %v7760_v10, %v25359_v19  ;;  %vm25361_vm3 = vmmov %vm25345_vm0  ;;  %v6547_v18 = vrot.slane %v18083_v60, 3  ;;  %v6566_v60 = vrot.slane %v22035_v25, 3 }
 0x55d   : > { %16034 = vmatprep.mubr.msk.f32.mxu0 %vm25361_vm3, %v21967_v53  ;;  %16264 = vmatmul.mubr.msk.f32.gmra.mrb[16].mxu1 %vm25345_vm0, %v7763_v13  ;;  %vm25363_vm10 = vmmov %vm25345_vm0  ;;  %v25367_v53 = vld [vmem:[#allocation83_spill] sm:$0xff]  ;;  %v6564_v13 = vrot.slane %v22028_v51, 3 }
 0x55e   : > { %16266 = vmatprep.mubr.msk.f32.mxu1 %vm25363_vm10, %v25362_v57  ;;  %vm25364_vm12 = vmmov %vm25345_vm0  ;;  %v6549_v42 = vsel %vm25375_vm14, %v6547_v18, %v6548_v61 }
 0x55f   : > { %16035 = vmatmul.mubr.msk.f32.gmra.mrb[68].mxu0 %vm25364_vm12, %v21987_v46  ;;  %vm25366_vm11 = vmmov %vm25345_vm0 }
 0x560   : > { %16037 = vmatprep.mubr.msk.f32.mxu0 %vm25366_vm11, %v25365_v16  ;;  %vm25368_vm1 = vmmov %vm25345_vm0 }
 0x561   : > { %16267 = vmatmul.mubr.msk.f32.gmra.mrb[18].mxu1 %vm25368_vm1, %v25367_v53  ;;  %vm25370_vm8 = vmmov %vm25360_vm4  ;;  %v8149_v53 = vrot.slane %v22056_v30, 6 }
 0x562   : > { %v7769_v31 = vsel %vm25370_vm8, %v25369_v49, %v7768_v47  ;;  %vm25371_vm2 = vmmov %vm25345_vm0  ;;  %v6570_v49 = vrot.slane %v22049_v8, 3 }
 0x563   : > { %16269 = vmatprep.mubr.msk.f32.mxu1 %vm25371_vm2, %v7769_v31  ;;  %vm25372_vm13 = vmmov %vm25360_vm4 }
 0x564   : > { %v7771_v46 = vsel %vm25372_vm13, %v7768_v47, %v7770_v24  ;;  %vm25374_vm15 = vmmov %vm25345_vm0  ;;  %v8143_v47 = vrot.slane %v22035_v25, 6  ;;  %v8145_v24 = vrot.slane %v22042_v2, 6 }
 0x565   : > { %16038 = vmatmul.mubr.msk.f32.gmra.mrb[70].mxu0 %vm25374_vm15, %v25373_v58  ;;  %vm25376_vm9 = vmmov %vm25345_vm0 }
 0x566   : > { %16044 = vmatprep.mubr.msk.f32.mxu0 %vm25376_vm9, %v6549_v42  ;;  %vm25377_vm7 = vmmov %vm25345_vm0 }
 0x567   : > { %16270 = vmatmul.mubr.msk.f32.gmra.mrb[20].mxu1 %vm25377_vm7, %v7771_v46  ;;  %vm25379_vm6 = vmmov %vm25345_vm0 }
 0x568   : > { %16276 = vmatprep.mubr.msk.f32.mxu1 %vm25379_vm6, %v8130_v27  ;;  %vm25380_vm4 = vmmov %vm25375_vm14 }
 0x569   : > { %v6551_v55 = vsel %vm25380_vm4, %v6548_v61, %v6550_v35  ;;  %vm25381_vm3 = vmmov %vm25345_vm0  ;;  %v8147_v61 = vrot.slane %v22049_v8, 6 }
 0x56a   : > { %16045 = vmatmul.mubr.msk.f32.vlgmr.msra.gmra.mrb[36].mxu0 %vm25381_vm3, %v6551_v55  ;;  %vm25382_vm0 = vmmov %vm25380_vm4  ;;  %v8161_v55 = vrot.slane %v22098_v43, 6 }
 0x56b   : > { %v6553_v45 = vsel %vm25382_vm0, %v6550_v35, %v6552_v11  ;;  %vm25383_vm10 = vmmov %vm25378_vm5  ;;  %v6561_v63 = vsel %vm25382_vm0, %v6558_v50, %v6560_v6  ;;  %v6569_v2 = vsel %vm25382_vm0, %v6566_v60, %v6568_v14  ;;  %v8153_v35 = vrot.slane %v22070_v3, 6 }
 0x56c   : > { %v8132_v62 = vsel %vm25383_vm10, %v8129_v56, %v8131_v44  ;;  %vm25384_vm12 = vmmov %vm25368_vm1  ;;  %v8151_v56 = vrot.slane %v22063_v23, 6  ;;  %v8155_v23 = vrot.slane %v22077_v20, 6  ;;  %v8157_v3 = vrot.slane %v22084_v32, 6 }
 0x56d   : > { %16047 = vmatprep.mubr.msk.f32.mxu0 %vm25384_vm12, %v6553_v45  ;;  %vm25385_vm11 = vmmov %vm25368_vm1  ;;  %v8159_v20 = vrot.slane %v22091_v36, 6  ;;  %v8165_v45 = vrot.slane %v22112_v7, 6 }
 0x56e   : > { %16277 = vmatmul.mubr.msk.f32.vlgmr.msra.gmra.mrb[22].mxu1 %vm25385_vm11, %v8132_v62  ;;  %vm25386_vm1 = vmmov %vm25378_vm5  ;;  %v8167_v62 = vrot.slane %v22119_v37, 6 }
 0x56f   : > { %v8134_v12 = vsel %vm25386_vm1, %v8131_v44, %v8133_v21  ;;  %vm25387_vm8 = vmmov %vm25371_vm2  ;;  %v8142_v57 = vsel %vm25386_vm1, %v8139_v26, %v8141_v39  ;;  %v8150_v46 = vsel %vm25386_vm1, %v8147_v61, %v8149_v53 }
 0x570   : > { %16279 = vmatprep.mubr.msk.f32.mxu1 %vm25387_vm8, %v8134_v12  ;;  %vm25388_vm2 = vmmov %vm25382_vm0  ;;  %v18085_v12 = vld [vmem:[#allocation2 + $0xd8] sm:$0xff] }
 0x571   : > { %v6555_v5 = vsel %vm25388_vm2, %v6552_v11, %v6554_v41  ;;  %vm25389_vm13 = vmmov %vm25381_vm3  ;;  %v25422_v11 = vrot.slane %v25186_v48, 3  ;;  %v8163_v48 = vrot.slane %v22105_v1, 6 }
 0x572   : > { %16048 = vmatmul.mubr.msk.f32.gmra.mrb[38].mxu0 %vm25389_vm13, %v6555_v5  ;;  %vm25390_vm15 = vmmov %vm25382_vm0  ;;  %v18086_v5 = vld [vmem:[#allocation2 + $0xe0] sm:$0xff] }
 0x573   : > { %v6557_v17 = vsel %vm25390_vm15, %v6554_v41, %v6556_v59  ;;  %vm25391_vm14 = vmmov %vm25386_vm1 }
 0x574   : > { %v8136_v29 = vsel %vm25391_vm14, %v8133_v21, %v8135_v15  ;;  %vm25392_vm9 = vmmov %vm25381_vm3 }
 0x575   : > { %16050 = vmatprep.mubr.msk.f32.mxu0 %vm25392_vm9, %v6557_v17  ;;  %vm25393_vm7 = vmmov %vm25381_vm3  ;;  %v18087_v17 = vld [vmem:[#allocation2 + $0xe8] sm:$0xff] }
 0x576   : > { %16280 = vmatmul.mubr.msk.f32.gmra.mrb[24].mxu1 %vm25393_vm7, %v8136_v29  ;;  %vm25394_vm5 = vmmov %vm25386_vm1  ;;  %v8177_v29 = vrot.slane %v18087_v17, 6 }
 0x577   : > { %v8138_v10 = vsel %vm25394_vm5, %v8135_v15, %v8137_v54  ;;  %vm25395_vm6 = vmmov %vm25381_vm3  ;;  %v8171_v15 = vrot.slane %v22133_v4, 6 }
 0x578   : > { %16282 = vmatprep.mubr.msk.f32.mxu1 %vm25395_vm6, %v8138_v10  ;;  %vm25396_vm4 = vmmov %vm25382_vm0 }
 0x579   : > { %v6559_v0 = vsel %vm25396_vm4, %v6556_v59, %v6558_v50  ;;  %vm25397_vm10 = vmmov %vm25386_vm1  ;;  %v8169_v59 = vrot.slane %v22126_v52, 6  ;;  %v8175_v50 = vrot.slane %v18086_v5, 6 }
 0x57a   : > { %16051 = vmatmul.mubr.msk.f32.gmra.mrb[40].mxu0 %vm25381_vm3, %v6559_v0  ;;  %v8140_v19 = vsel %vm25397_vm10, %v8137_v54, %v8139_v26  ;;  %vm25398_vm12 = vmmov %vm25381_vm3  ;;  %v8173_v54 = vrot.slane %v18085_v12, 6 }
 0x57b   : > { %16053 = vmatprep.mubr.msk.f32.mxu0 %vm25398_vm12, %v6561_v63  ;;  %vm25399_vm11 = vmmov %vm25381_vm3  ;;  %v18090_v63 = vld [vmem:[#allocation2 + $0x100] sm:$0xff] }
 0x57c   : > { %16283 = vmatmul.mubr.msk.f32.gmra.mrb[26].mxu1 %vm25399_vm11, %v8140_v19  ;;  %vm25400_vm8 = vmmov %vm25381_vm3  ;;  %v8183_v19 = vrot.slane %v18090_v63, 6 }
 0x57d   : > { %16285 = vmatprep.mubr.msk.f32.mxu1 %vm25400_vm8, %v8142_v57  ;;  %vm25401_vm2 = vmmov %vm25382_vm0 }
 0x57e   : > { %v6563_v33 = vsel %vm25401_vm2, %v6560_v6, %v6562_v34  ;;  %vm25402_vm13 = vmmov %vm25381_vm3  ;;  %v18088_v6 = vld [vmem:[#allocation2 + $0xf0] sm:$0xff] }
 0x57f   : > { %16054 = vmatmul.mubr.msk.f32.gmra.mrb[42].mxu0 %vm25402_vm13, %v6563_v33  ;;  %vm25403_vm15 = vmmov %vm25382_vm0  ;;  %v8179_v26 = vrot.slane %v18088_v6, 6  ;;  %v18092_v33 = vld [vmem:[#allocation2 + $0x110] sm:$0xff] }
 0x580   : > { %v6565_v51 = vsel %vm25403_vm15, %v6562_v34, %v6564_v13  ;;  %vm25404_vm14 = vmmov %vm25386_vm1 }
 0x581   : > { %v8144_v18 = vsel %vm25404_vm14, %v8141_v39, %v8143_v47  ;;  %vm25405_vm9 = vmmov %vm25381_vm3  ;;  %v18089_v39 = vld [vmem:[#allocation2 + $0xf8] sm:$0xff] }
 0x582   : > { %16056 = vmatprep.mubr.msk.f32.mxu0 %vm25405_vm9, %v6565_v51  ;;  %vm25406_vm7 = vmmov %vm25381_vm3  ;;  %v8181_v0 = vrot.slane %v18089_v39, 6 }
 0x583   : > { %16286 = vmatmul.mubr.msk.f32.gmra.mrb[28].mxu1 %vm25406_vm7, %v8144_v18  ;;  %vm25407_vm5 = vmmov %vm25386_vm1  ;;  %v18093_v18 = vld [vmem:[#allocation2 + $0x118] sm:$0xff] }
 0x584   : > { %v8146_v16 = vsel %vm25407_vm5, %v8143_v47, %v8145_v24  ;;  %vm25408_vm6 = vmmov %vm25381_vm3  ;;  %v18091_v47 = vld [vmem:[#allocation2 + $0x108] sm:$0xff] }
 0x585   : > { %16288 = vmatprep.mubr.msk.f32.mxu1 %vm25408_vm6, %v8146_v16  ;;  %vm25409_vm4 = vmmov %vm25382_vm0  ;;  %v8185_v57 = vrot.slane %v18091_v47, 6  ;;  %v8927_v47 = vld [vmem:[#allocation3] sm:$0xff] }
 0x586   : > { %v6567_v25 = vsel %vm25409_vm4, %v6564_v13, %v6566_v60  ;;  %vm25410_vm10 = vmmov %vm25386_vm1  ;;  %v8187_v60 = vrot.slane %v18092_v33, 6 }
 0x587   : > { %16057 = vmatmul.mubr.msk.f32.gmra.mrb[44].mxu0 %vm25381_vm3, %v6567_v25  ;;  %v8148_v31 = vsel %vm25410_vm10, %v8145_v24, %v8147_v61  ;;  %vm25411_vm12 = vmmov %vm25381_vm3 }
 0x588   : > { %16059 = vmatprep.mubr.msk.f32.mxu0 %vm25411_vm12, %v6569_v2  ;;  %vm25412_vm11 = vmmov %vm25381_vm3  ;;  %v25459_v2 = vld [vmem:[#allocation89_spill] sm:$0xff] }
 0x589   : > { %16289 = vmatmul.mubr.msk.f32.gmra.mrb[30].mxu1 %vm25412_vm11, %v8148_v31  ;;  %vm25413_vm8 = vmmov %vm25381_vm3  ;;  %v8199_v31 = vrot.slane %v21945_v22, 6  ;;  %v13756_v22 = vld [vmem:[%s24462_s5 + $0x18] sm:$0xff] }
 0x58a   : > { %16291 = vmatprep.mubr.msk.f32.mxu1 %vm25413_vm8, %v8150_v46  ;;  %vm25414_vm2 = vmmov %vm25382_vm0 }
 0x58b   : > { %v6571_v8 = vsel %vm25414_vm2, %v6568_v14, %v6570_v49  ;;  %vm25415_vm13 = vmmov %vm25381_vm3  ;;  %v8189_v14 = vrot.slane %v18093_v18, 6 }
 0x58c   : > { %16060 = vmatmul.mubr.msk.f32.gmra.mrb[46].mxu0 %vm25415_vm13, %v6571_v8  ;;  %vm25416_vm15 = vmmov %vm25382_vm0 }
 0x58d   : > { %v6573_v58 = vsel %vm25416_vm15, %v6570_v49, %v6572_v40  ;;  %vm25417_vm14 = vmmov %vm25386_vm1  ;;  %v8197_v49 = vrot.slane %v21939_v38, 6  ;;  %v13755_v38 = vld [vmem:[%s24462_s5 + $0x10] sm:$0xff] }
 0x58e   : > { %v8152_v30 = vsel %vm25417_vm14, %v8149_v53, %v8151_v56  ;;  %vm25418_vm9 = vmmov %vm25381_vm3  ;;  %v25456_v53 = vrot.slane %v25262_v28, 6 }
 0x58f   : > { %16062 = vmatprep.mubr.msk.f32.mxu0 %vm25418_vm9, %v6573_v58  ;;  %vm25419_vm7 = vmmov %vm25381_vm3 }
 0x590   : > { %16292 = vmatmul.mubr.msk.f32.gmra.mrb[32].mxu1 %vm25419_vm7, %v8152_v30  ;;  %vm25420_vm5 = vmmov %vm25386_vm1 }
 0x591   : > { %v8154_v42 = vsel %vm25420_vm5, %v8151_v56, %v8153_v35  ;;  %vm25421_vm6 = vmmov %vm25381_vm3  ;;  %v25463_v56 = vrot.slane %v25257_v9, 6 }
 0x592   : > { %16294 = vmatprep.mubr.msk.f32.mxu1 %vm25421_vm6, %v8154_v42  ;;  %vm25423_vm4 = vmmov %vm25382_vm0 }
 0x593   : > { %v6575_v44 = vsel %vm25423_vm4, %v6572_v40, %v25422_v11  ;;  %vm25424_vm0 = vmmov %vm25386_vm1  ;;  %v25461_v40 = vld [vmem:[#allocation90_spill] sm:$0xff] }
 0x594   : > { %16063 = vmatmul.mubr.msk.f32.gmra.mrb[48].mxu0 %vm25381_vm3, %v6575_v44  ;;  %v8156_v27 = vsel %vm25424_vm0, %v8153_v35, %v8155_v23  ;;  %vm25425_vm10 = vmmov %vm25381_vm3  ;;  %v8172_v37 = vsel %vm25424_vm0, %v8169_v59, %v8171_v15  ;;  %v8188_v61 = vsel %vm25424_vm0, %v8185_v57, %v8187_v60  ;;  %v17032_v35 = vpack.c.bf16 %v13756_v22, %v13755_v38 }
 0x595   : > { %16295 = vmatmul.mubr.msk.f32.gmra.mrb[34].mxu1 %vm25425_vm10, %v8156_v27  ;;  %vm25426_vm12 = vmmov %vm25424_vm0 }
 0x596   : > { %v8158_v21 = vsel %vm25426_vm12, %v8155_v23, %v8157_v3  ;;  %vm25427_vm11 = vmmov %vm25381_vm3  ;;  %17033 = vmatprep.subr.bf16.mxu1 %v17032_v35 }
 0x597   : > { %16297 = vmatprep.mubr.msk.f32.mxu1 %vm25427_vm11, %v8158_v21  ;;  %vm25428_vm1 = vmmov %vm25424_vm0  ;;  %17035 = vmatpush3.bf16.msra.mxu1 %v17032_v35 }
 0x598   : > { %v8160_v32 = vsel %vm25428_vm1, %v8157_v3, %v8159_v20  ;;  %vm25429_vm8 = vmmov %vm25381_vm3 }
 0x599   : > { %16298 = vmatmul.mubr.msk.f32.gmra.mrb[0].mxu1 %vm25429_vm8, %v8160_v32  ;;  %vm25430_vm2 = vmmov %vm25424_vm0 }
 0x59a   : > { %v8162_v41 = vsel %vm25430_vm2, %v8159_v20, %v8161_v55  ;;  %vm25431_vm13 = vmmov %vm25381_vm3 }
 0x59b   : > { %16300 = vmatprep.mubr.msk.f32.mxu1 %vm25431_vm13, %v8162_v41  ;;  %vm25432_vm15 = vmmov %vm25424_vm0 }
 0x59c   : > { %v8164_v36 = vsel %vm25432_vm15, %v8161_v55, %v8163_v48  ;;  %vm25433_vm14 = vmmov %vm25381_vm3 }
 0x59d   : > { %16301 = vmatmul.mubr.msk.f32.gmra.mrb[2].mxu1 %vm25433_vm14, %v8164_v36  ;;  %vm25434_vm9 = vmmov %vm25424_vm0 }
 0x59e   : > { %v8166_v43 = vsel %vm25434_vm9, %v8163_v48, %v8165_v45  ;;  %vm25435_vm7 = vmmov %vm25381_vm3 }
 0x59f   : > { %16303 = vmatprep.mubr.msk.f32.mxu1 %vm25435_vm7, %v8166_v43  ;;  %vm25436_vm5 = vmmov %vm25424_vm0 }
 0x5a0   : > { %v8168_v1 = vsel %vm25436_vm5, %v8165_v45, %v8167_v62  ;;  %vm25437_vm6 = vmmov %vm25381_vm3 }
 0x5a1   : > { %16304 = vmatmul.mubr.msk.f32.gmra.mrb[4].mxu1 %vm25437_vm6, %v8168_v1  ;;  %vm25438_vm4 = vmmov %vm25424_vm0 }
 0x5a2   : > { %v8170_v7 = vsel %vm25438_vm4, %v8167_v62, %v8169_v59  ;;  %vm25439_vm10 = vmmov %vm25381_vm3 }
 0x5a3   : > { %16306 = vmatprep.mubr.msk.f32.mxu1 %vm25381_vm3, %v8170_v7  ;;  %vm25440_vm12 = vmmov %vm25424_vm0 }
 0x5a4   : > { %v8174_v52 = vsel %vm25440_vm12, %v8171_v15, %v8173_v54  ;;  %vm25441_vm11 = vmmov %vm25381_vm3 }
 0x5a5   : > { %16307 = vmatmul.mubr.msk.f32.gmra.mrb[6].mxu1 %vm25439_vm10, %v8172_v37  ;;  %vm25442_vm1 = vmmov %vm25424_vm0 }
 0x5a6   : > { %16309 = vmatprep.mubr.msk.f32.mxu1 %vm25441_vm11, %v8174_v52  ;;  %v8176_v4 = vsel %vm25442_vm1, %v8173_v54, %v8175_v50  ;;  %vm25443_vm8 = vmmov %vm25381_vm3  ;;  %v22412_v54 = vld [vmem:[%s24461_s4] ss:$0 sm:$0xff] }
 0x5a7   : > { %vm25444_vm2 = vmmov %vm25424_vm0 }
 0x5a8   : > { %v8178_v10 = vsel %vm25444_vm2, %v8175_v50, %v8177_v29  ;;  %vm25445_vm13 = vmmov %vm25381_vm3 }
 0x5a9   : > { %16310 = vmatmul.mubr.msk.f32.gmra.mrb[8].mxu1 %vm25443_vm8, %v8176_v4  ;;  %vm25446_vm15 = vmmov %vm25424_vm0 }
 0x5aa   : > { %16312 = vmatprep.mubr.msk.f32.mxu1 %vm25445_vm13, %v8178_v10  ;;  %v8180_v34 = vsel %vm25446_vm15, %v8177_v29, %v8179_v26  ;;  %vm25447_vm14 = vmmov %vm25381_vm3 }
 0x5ab   : > { %vm25448_vm9 = vmmov %vm25424_vm0 }
 0x5ac   : > { %v8182_v13 = vsel %vm25448_vm9, %v8179_v26, %v8181_v0  ;;  %vm25449_vm7 = vmmov %vm25381_vm3 }
 0x5ad   : > { %16313 = vmatmul.mubr.msk.f32.gmra.mrb[10].mxu1 %vm25447_vm14, %v8180_v34  ;;  %vm25450_vm5 = vmmov %vm25424_vm0 }
 0x5ae   : > { %16315 = vmatprep.mubr.msk.f32.mxu1 %vm25449_vm7, %v8182_v13  ;;  %v8184_v24 = vsel %vm25450_vm5, %v8181_v0, %v8183_v19  ;;  %vm25451_vm6 = vmmov %vm25381_vm3 }
 0x5af   : > { %vm25452_vm4 = vmmov %vm25424_vm0 }
 0x5b0   : > { %v8186_v51 = vsel %vm25452_vm4, %v8183_v19, %v8185_v57  ;;  %vm25453_vm10 = vmmov %vm25381_vm3  ;;  %v22428_v57 = vld [vmem:[#allocation3 + $0x8] sm:$0xff] }
 0x5b1   : > { %16316 = vmatmul.mubr.msk.f32.gmra.mrb[12].mxu1 %vm25451_vm6, %v8184_v24  ;;  %vm25454_vm12 = vmmov %vm25424_vm0 }
 0x5b2   : > { %16318 = vmatprep.mubr.msk.f32.mxu1 %vm25381_vm3, %v8186_v51  ;;  %v8190_v16 = vsel %vm25454_vm12, %v8187_v60, %v8189_v14  ;;  %vm25455_vm11 = vmmov %vm25381_vm3  ;;  %v25468_v51 = vld [vmem:[#allocation11_spill] sm:$0xff] }
 0x5b3   : > { %vm25457_vm1 = vmmov %vm25424_vm0 }
 0x5b4   : > { %v8192_v25 = vsel %vm25457_vm1, %v8189_v14, %v25456_v53  ;;  %vm25458_vm8 = vmmov %vm25381_vm3 }
 0x5b5   : > { %16319 = vmatmul.mubr.msk.f32.gmra.mrb[14].mxu1 %vm25453_vm10, %v8188_v61  ;;  %vm25460_vm2 = vmmov %vm25381_vm3  ;;  %v9010_v61 = vrot.slane %v8927_v47, 1 }
 0x5b6   : > { %16321 = vmatprep.mubr.msk.f32.mxu1 %vm25455_vm11, %v8190_v16  ;;  %vm25462_vm13 = vmmov %vm25460_vm2 }
 0x5b7   : > { %vm25464_vm15 = vmmov %vm25424_vm0 }
 0x5b8   : > { %v8198_v46 = vsel %vm25464_vm15, %v25463_v56, %v8197_v49  ;;  %vm25465_vm14 = vmmov %vm25460_vm2 }
 0x5b9   : > { %16322 = vmatmul.mubr.msk.f32.gmra.mrb[16].mxu1 %vm25458_vm8, %v8192_v25  ;;  %vm25466_vm9 = vmmov %vm25424_vm0  ;;  %v25469_v25 = vld [vmem:[#allocation12_spill] sm:$0xff]  ;;  %vm25471_vm0 = vcmask 1046528  }
 0x5ba   : > { %16324 = vmatprep.mubr.msk.f32.mxu1 %vm25460_vm2, %v25459_v2  ;;  %v8200_v28 = vsel %vm25466_vm9, %v8197_v49, %v8199_v31  ;;  %vm25467_vm7 = vmmov %vm25460_vm2  ;;  %v8968_v31 = vld [vmem:[%s24462_s5] sm:$0xff] }
 0x5bb   : > { %vm25473_vm12 = vmmov %vm25460_vm2 }
 0x5bd   : > { %16325 = vmatmul.mubr.msk.f32.gmra.mrb[18].mxu1 %vm25462_vm13, %v25461_v40  ;;  %v8969_v40 = vld [vmem:[%s24462_s5 + $0x8] sm:$0xff] }
 0x5be   : > { %16327 = vmatprep.mubr.msk.f32.mxu1 %vm25465_vm14, %v8198_v46 }
 0x5c1   : > { %16328 = vmatmul.mubr.msk.f32.gmra.mrb[20].mxu1 %vm25467_vm7, %v8200_v28  ;;  %v9011_v28 = vrot.slane %v22428_v57, 1 }
 0x5ff   : > { %v22365_v9 = vpop.f32.mrb[50].mxu0 }
 0x600   : > { %v22367_v8 = vpop.f32.mrb[51].mxu0 }
 0x604   : > { %v22369_v58 = vpop.f32.mrb[52].mxu0 }
 0x605   : > { %v22371_v30 = vpop.f32.mrb[53].mxu0 }
 0x60a   : > { %v22373_v23 = vpop.f32.mrb[54].mxu0 }
 0x60b   : > { %v22375_v42 = vpop.f32.mrb[55].mxu0 }
 0x610   : > { %v22377_v3 = vpop.f32.mrb[56].mxu0 }
 0x611   : > { %v22379_v11 = vpop.f32.mrb[57].mxu0 }
 0x616   : > { %v22381_v44 = vpop.f32.mrb[58].mxu0 }
 0x617   : > { %v22383_v27 = vpop.f32.mrb[59].mxu0 }
 0x61c   : > { %v22385_v20 = vpop.f32.mrb[60].mxu0 }
 0x61d   : > { %v22387_v21 = vpop.f32.mrb[61].mxu0 }
 0x622   : > { %v22389_v55 = vpop.f32.mrb[62].mxu0 }
 0x623   : > { %v22391_v32 = vpop.f32.mrb[63].mxu0 }
 0x628   : > { %v22393_v48 = vpop.f32.mrb[64].mxu0 }
 0x629   : > { %v22395_v41 = vpop.f32.mrb[65].mxu0 }
 0x62e   : > { %v22397_v45 = vpop.f32.mrb[66].mxu0 }
 0x62f   : > { %v22399_v36 = vpop.f32.mrb[67].mxu0 }
 0x632   : > { %v22401_v62 = vpop.f32.mrb[68].mxu0 }
 0x633   : > { %v22403_v43 = vpop.f32.mrb[69].mxu0 }
 0x638   : > { %v22405_v59 = vpop.f32.mrb[70].mxu0 }
 0x639   : > { %v22407_v1 = vpop.f32.mrb[71].mxu0 }
 0x63d   : > { %v16046_v15 = vpop.f32.mrb[36].mxu0 }
 0x63e   : > { %v6758_v7 = vpop.f32.mrb[37].mxu0 }
 0x641   : > { %v16278_v12 = vpop.f32.mrb[22].mxu1 }
 0x642   : > { %v17070_v37 = vadd.f32 %v16278_v12, %v16046_v15  ;;  %v8339_v5 = vpop.f32.mrb[23].mxu1  ;;  %v22453_v15 = vpack.c.bf16 %v8969_v40, %v8968_v31 }
 0x643   : > { %v17071_v50 = vadd.f32 %v8339_v5, %v6758_v7  ;;  %v25470_v5 = vld [vmem:[#allocation13_spill] sm:$0xff] }
 0x644   : > { %v22415_v52 = vadd.f32 %v17070_v37, %v22412_v54  ;;  %17037 = vmatprep.subr.bf16.mxu1 %v22453_v15 }
 0x645   : > { %v16049_v17 = vpop.f32.mrb[38].mxu0  ;;  %v22418_v29 = vadd.f32 %v17071_v50, %v22412_v54 }
 0x646   : > { %v6768_v4 = vpop.f32.mrb[39].mxu0  ;;  %vm8598_vm5 = vcmp.gt.f32.partialorder %v22415_v52, 0.0  ;;  %v8634_v39 = vmul.f32 0.1, %v22415_v52 }
 0x647   : > { %vm8597_vm6 = vcmp.gt.f32.partialorder %v22418_v29, 0.0  ;;  %v8633_v34 = vmul.f32 0.1, %v22418_v29 }
 0x648   : > { %v8670_v13 = vsel %vm8598_vm5, %v22415_v52, %v8634_v39 }
 0x649   : > { %v16281_v6 = vpop.f32.mrb[24].mxu1  ;;  %v8706_v18 = vmul.f32 %v25468_v51, %v8670_v13  ;;  %v8669_v14 = vsel %vm8597_vm6, %v22418_v29, %v8633_v34 }
 0x64a   : > { %v17072_v26 = vadd.f32 %v16281_v6, %v16049_v17  ;;  %v8349_v10 = vpop.f32.mrb[25].mxu1  ;;  %v8705_v49 = vmul.f32 %v25469_v25, %v8669_v14  ;;  %v25474_v14 = vld [vmem:[#allocation15_spill] sm:$0xff] }
 0x64b   : > { %v17073_v0 = vadd.f32 %v8349_v10, %v6768_v4  ;;  %8782 = vrot.lane.b32.xlu1 %v8706_v18, %s18140_s16  ;;  %v9012_v4 = vsel %vm25471_vm0, %v9010_v61, %v9011_v28  ;;  %v25472_v10 = vld [vmem:[#allocation14_spill] sm:$0xff] }
 0x64c   : > { %v22425_v63 = vadd.f32 %v17072_v26, %v22412_v54  ;;  %8780 = vrot.lane.b32.xlu0 %v8705_v49, %s18140_s16  ;;  %16334 = vmatprep.mubr.msk.f32.mxu1 %vm25473_vm12, %v9012_v4  ;;  %v25475_v49 = vld [vmem:[#allocation4_spill] sm:$0xff] }
 0x64d   : > { %v16052_v19 = vpop.f32.mrb[40].mxu0  ;;  %v22431_v24 = vadd.f32 %v17073_v0, %v22412_v54 }
 0x64e   : > { %v6778_v33 = vpop.f32.mrb[41].mxu0  ;;  %vm8600_vm4 = vcmp.gt.f32.partialorder %v22425_v63, 0.0  ;;  %v8636_v2 = vmul.f32 0.1, %v22425_v63 }
 0x64f   : > { %v16284_v60 = vpop.f32.mrb[26].mxu1  ;;  %vm8599_vm3 = vcmp.gt.f32.partialorder %v22431_v24, 0.0  ;;  %v8635_v46 = vmul.f32 0.1, %v22431_v24 }
 0x650   : > { %v17074_v16 = vadd.f32 %v16284_v60, %v16052_v19  ;;  %v8359_v53 = vpop.f32.mrb[27].mxu1  ;;  %v8672_v35 = vsel %vm8600_vm4, %v22425_v63, %v8636_v2 }
 0x651   : > { %v17075_v56 = vadd.f32 %v8359_v53, %v6778_v33  ;;  %v8708_v50 = vmul.f32 %v25470_v5, %v8672_v35  ;;  %v8671_v17 = vsel %vm8599_vm3, %v22431_v24, %v8635_v46 }
 0x652   : > { %v22449_v38 = vadd.f32 %v17074_v16, %v22412_v54  ;;  %v16055_v22 = vpop.f32.mrb[42].mxu0  ;;  %v8707_v39 = vmul.f32 %v25472_v10, %v8671_v17  ;;  %v25477_v10 = vld [vmem:[#allocation5_spill] sm:$0xff] }
 0x653   : > { %v22456_v7 = vadd.f32 %v17075_v56, %v22412_v54  ;;  %v6788_v12 = vpop.f32.mrb[43].mxu0  ;;  %8786 = vrot.lane.b32.xlu1 %v8708_v50, %s18140_s16  ;;  %v25476_v50 = vld [vmem:[#allocation6_spill] sm:$0xff] }
 0x654   : > { %vm8602_vm10 = vcmp.gt.f32.partialorder %v22449_v38, 0.0  ;;  %v8638_v0 = vmul.f32 0.1, %v22449_v38  ;;  %8784 = vrot.lane.b32.xlu0 %v8707_v39, %s18140_s16 }
 0x655   : > { %vm8601_vm11 = vcmp.gt.f32.partialorder %v22456_v7, 0.0  ;;  %v8637_v19 = vmul.f32 0.1, %v22456_v7 }
 0x656   : > { %v16287_v37 = vpop.f32.mrb[28].mxu1  ;;  %v8674_v33 = vsel %vm8602_vm10, %v22449_v38, %v8638_v0 }
 0x657   : > { %v17076_v6 = vadd.f32 %v16287_v37, %v16055_v22  ;;  %v8369_v26 = vpop.f32.mrb[29].mxu1  ;;  %v8710_v61 = vmul.f32 %v25474_v14, %v8674_v33  ;;  %v8673_v16 = vsel %vm8601_vm11, %v22456_v7, %v8637_v19 }
 0x658   : > { %v17077_v34 = vadd.f32 %v8369_v26, %v6788_v12  ;;  %v8709_v2 = vmul.f32 %v25475_v49, %v8673_v16  ;;  %v25478_v16 = vld [vmem:[#allocation8_spill] sm:$0xff] }
 0x659   : > { %v22472_v13 = vadd.f32 %v17076_v6, %v22412_v54  ;;  %8790 = vrot.lane.b32.xlu1 %v8710_v61, %s18140_s16 }
 0x65a   : > { %v16058_v47 = vpop.f32.mrb[44].mxu0  ;;  %v22477_v60 = vadd.f32 %v17077_v34, %v22412_v54  ;;  %8788 = vrot.lane.b32.xlu0 %v8709_v2, %s18140_s16 }
 0x65b   : > { %v6798_v51 = vpop.f32.mrb[45].mxu0  ;;  %vm8604_vm1 = vcmp.gt.f32.partialorder %v22472_v13, 0.0  ;;  %v8640_v31 = vmul.f32 0.1, %v22472_v13 }
 0x65c   : > { %v16290_v18 = vpop.f32.mrb[30].mxu1  ;;  %vm8603_vm8 = vcmp.gt.f32.partialorder %v22477_v60, 0.0  ;;  %v8639_v56 = vmul.f32 0.1, %v22477_v60 }
 0x65d   : > { %v17078_v53 = vadd.f32 %v16290_v18, %v16058_v47  ;;  %v8379_v25 = vpop.f32.mrb[31].mxu1  ;;  %v8676_v35 = vsel %vm8604_vm1, %v22472_v13, %v8640_v31  ;;  %v25479_v31 = vld [vmem:[#allocation7_spill] sm:$0xff] }
 0x65e   : > { %v17079_v40 = vadd.f32 %v8379_v25, %v6798_v51  ;;  %v8712_v17 = vmul.f32 %v25476_v50, %v8676_v35  ;;  %v8675_v4 = vsel %vm8603_vm8, %v22477_v60, %v8639_v56 }
 0x65f   : > { %v22488_v46 = vadd.f32 %v17078_v53, %v22412_v54  ;;  %v16061_v22 = vpop.f32.mrb[46].mxu0  ;;  %v8711_v39 = vmul.f32 %v25477_v10, %v8675_v4  ;;  %v25480_v4 = vld [vmem:[#allocation10_spill] sm:$0xff] }
 0x660   : > { %v22493_v12 = vadd.f32 %v17079_v40, %v22412_v54  ;;  %v6808_v37 = vpop.f32.mrb[47].mxu0  ;;  %8794 = vrot.lane.b32.xlu1 %v8712_v17, %s18140_s16 }
 0x661   : > { %vm8606_vm2 = vcmp.gt.f32.partialorder %v22488_v46, 0.0  ;;  %v8642_v0 = vmul.f32 0.1, %v22488_v46  ;;  %8792 = vrot.lane.b32.xlu0 %v8711_v39, %s18140_s16 }
 0x662   : > { %vm8605_vm13 = vcmp.gt.f32.partialorder %v22493_v12, 0.0  ;;  %v8641_v19 = vmul.f32 0.1, %v22493_v12 }
 0x663   : > { %v16293_v5 = vpop.f32.mrb[32].mxu1  ;;  %v8678_v51 = vsel %vm8606_vm2, %v22488_v46, %v8642_v0  ;;  %v25481_v0 = vld [vmem:[#allocation9_spill] sm:$0xff] }
 0x664   : > { %v17080_v6 = vadd.f32 %v16293_v5, %v16061_v22  ;;  %v8389_v26 = vpop.f32.mrb[33].mxu1  ;;  %v8714_v53 = vmul.f32 %v25478_v16, %v8678_v51  ;;  %v8677_v25 = vsel %vm8605_vm13, %v22493_v12, %v8641_v19 }
 0x665   : > { %v17081_v34 = vadd.f32 %v8389_v26, %v6808_v37  ;;  %v8713_v40 = vmul.f32 %v25479_v31, %v8677_v25  ;;  %v25483_v31 = vld [vmem:[#allocation16_spill] sm:$0xff] }
 0x666   : > { %v22504_v47 = vadd.f32 %v17080_v6, %v22412_v54  ;;  %8798 = vrot.lane.b32.xlu1 %v8714_v53, %s18140_s16  ;;  %v25482_v53 = vld [vmem:[#allocation17_spill] sm:$0xff] }
 0x667   : > { %v16064_v33 = vpop.f32.mrb[48].mxu0  ;;  %v22509_v18 = vadd.f32 %v17081_v34, %v22412_v54  ;;  %8796 = vrot.lane.b32.xlu0 %v8713_v40, %s18140_s16 }
 0x668   : > { %v6818_v14 = vpop.f32.mrb[49].mxu0  ;;  %v16296_v61 = vpop.f32.mrb[34].mxu1  ;;  %vm8608_vm15 = vcmp.gt.f32.partialorder %v22504_v47, 0.0  ;;  %v8644_v56 = vmul.f32 0.1, %v22504_v47 }
 0x669   : > { %v17082_v49 = vadd.f32 %v16296_v61, %v16064_v33  ;;  %v8399_v2 = vpop.f32.mrb[35].mxu1  ;;  %vm8607_vm14 = vcmp.gt.f32.partialorder %v22509_v18, 0.0  ;;  %v8643_v35 = vmul.f32 0.1, %v22509_v18 }
 0x66a   : > { %v17083_v22 = vadd.f32 %v8399_v2, %v6818_v14  ;;  %v8680_v5 = vsel %vm8608_vm15, %v22504_v47, %v8644_v56 }
 0x66b   : > { %v22520_v37 = vadd.f32 %v17082_v49, %v22412_v54  ;;  %v8716_v6 = vmul.f32 %v25480_v4, %v8680_v5  ;;  %v8679_v26 = vsel %vm8607_vm14, %v22509_v18, %v8643_v35 }
 0x66c   : > { %v22525_v50 = vadd.f32 %v17083_v22, %v22412_v54  ;;  %v16299_v17 = vpop.f32.mrb[0].mxu1  ;;  %v8715_v34 = vmul.f32 %v25481_v0, %v8679_v26  ;;  %v25485_v0 = vld [vmem:[#allocation18_spill] sm:$0xff] }
 0x66d   : > { %v17084_v10 = vadd.f32 %v16299_v17, %v22365_v9  ;;  %v8409_v39 = vpop.f32.mrb[1].mxu1  ;;  %vm8610_vm9 = vcmp.gt.f32.partialorder %v22520_v37, 0.0  ;;  %v8646_v19 = vmul.f32 0.1, %v22520_v37  ;;  %8802 = vrot.lane.b32.xlu1 %v8716_v6, %s18140_s16  ;;  %v25484_v6 = vld [vmem:[#allocation19_spill] sm:$0xff] }
 0x66e   : > { %v17085_v33 = vadd.f32 %v8409_v39, %v22367_v8  ;;  %vm8609_vm7 = vcmp.gt.f32.partialorder %v22525_v50, 0.0  ;;  %v8645_v51 = vmul.f32 0.1, %v22525_v50  ;;  %8800 = vrot.lane.b32.xlu0 %v8715_v34, %s18140_s16 }
 0x66f   : > { %v22538_v14 = vadd.f32 %v17084_v10, %v22412_v54  ;;  %v8682_v9 = vsel %vm8610_vm9, %v22520_v37, %v8646_v19 }
 0x670   : > { %v22543_v61 = vadd.f32 %v17085_v33, %v22412_v54  ;;  %v16302_v16 = vpop.f32.mrb[2].mxu1  ;;  %v8718_v25 = vmul.f32 %v25482_v53, %v8682_v9  ;;  %v8681_v8 = vsel %vm8609_vm7, %v22525_v50, %v8645_v51 }
 0x671   : > { %v17086_v49 = vadd.f32 %v16302_v16, %v22369_v58  ;;  %v8419_v2 = vpop.f32.mrb[3].mxu1  ;;  %v8717_v40 = vmul.f32 %v25483_v31, %v8681_v8  ;;  %vm8612_vm5 = vcmp.gt.f32.partialorder %v22538_v14, 0.0  ;;  %v8648_v56 = vmul.f32 0.1, %v22538_v14  ;;  %v25487_v31 = vld [vmem:[#allocation20_spill] sm:$0xff] }
 0x672   : > { %v17087_v22 = vadd.f32 %v8419_v2, %v22371_v30  ;;  %8806 = vrot.lane.b32.xlu1 %v8718_v25, %s18140_s16  ;;  %vm8611_vm6 = vcmp.gt.f32.partialorder %v22543_v61, 0.0  ;;  %v8647_v35 = vmul.f32 0.1, %v22543_v61  ;;  %v25486_v25 = vld [vmem:[#allocation21_spill] sm:$0xff] }
 0x673   : > { %v22556_v5 = vadd.f32 %v17086_v49, %v22412_v54  ;;  %8804 = vrot.lane.b32.xlu0 %v8717_v40, %s18140_s16  ;;  %v8684_v58 = vsel %vm8612_vm5, %v22538_v14, %v8648_v56 }
 0x674   : > { %v22561_v17 = vadd.f32 %v17087_v22, %v22412_v54  ;;  %v16305_v4 = vpop.f32.mrb[4].mxu1  ;;  %v8720_v26 = vmul.f32 %v25484_v6, %v8684_v58  ;;  %v8683_v30 = vsel %vm8611_vm6, %v22543_v61, %v8647_v35 }
 0x675   : > { %v17088_v10 = vadd.f32 %v16305_v4, %v22373_v23  ;;  %v8429_v39 = vpop.f32.mrb[5].mxu1  ;;  %v8719_v34 = vmul.f32 %v25485_v0, %v8683_v30  ;;  %vm8614_vm4 = vcmp.gt.f32.partialorder %v22556_v5, 0.0  ;;  %v8650_v19 = vmul.f32 0.1, %v22556_v5  ;;  %v25489_v0 = vld [vmem:[#allocation22_spill] sm:$0xff] }
 0x676   : > { %v17089_v33 = vadd.f32 %v8429_v39, %v22375_v42  ;;  %8810 = vrot.lane.b32.xlu1 %v8720_v26, %s18140_s16  ;;  %vm8613_vm3 = vcmp.gt.f32.partialorder %v22561_v17, 0.0  ;;  %v8649_v51 = vmul.f32 0.1, %v22561_v17  ;;  %v25488_v26 = vld [vmem:[#allocation23_spill] sm:$0xff] }
 0x677   : > { %v22574_v9 = vadd.f32 %v17088_v10, %v22412_v54  ;;  %8808 = vrot.lane.b32.xlu0 %v8719_v34, %s18140_s16  ;;  %v8686_v23 = vsel %vm8614_vm4, %v22556_v5, %v8650_v19 }
 0x678   : > { %v22579_v16 = vadd.f32 %v17089_v33, %v22412_v54  ;;  %v16308_v53 = vpop.f32.mrb[6].mxu1  ;;  %v8722_v8 = vmul.f32 %v25486_v25, %v8686_v23  ;;  %v8685_v42 = vsel %vm8613_vm3, %v22561_v17, %v8649_v51 }
 0x679   : > { %v17090_v49 = vadd.f32 %v16308_v53, %v22377_v3  ;;  %v8439_v2 = vpop.f32.mrb[7].mxu1  ;;  %v8721_v40 = vmul.f32 %v25487_v31, %v8685_v42  ;;  %vm8616_vm0 = vcmp.gt.f32.partialorder %v22574_v9, 0.0  ;;  %v8652_v56 = vmul.f32 0.1, %v22574_v9  ;;  %v25491_v31 = vld [vmem:[#allocation24_spill] sm:$0xff] }
 0x67a   : > { %v17091_v22 = vadd.f32 %v8439_v2, %v22379_v11  ;;  %8814 = vrot.lane.b32.xlu1 %v8722_v8, %s18140_s16  ;;  %vm8615_vm10 = vcmp.gt.f32.partialorder %v22579_v16, 0.0  ;;  %v8651_v35 = vmul.f32 0.1, %v22579_v16  ;;  %v25490_v8 = vld [vmem:[#allocation25_spill] sm:$0xff] }
 0x67b   : > { %v22592_v58 = vadd.f32 %v17090_v49, %v22412_v54  ;;  %8812 = vrot.lane.b32.xlu0 %v8721_v40, %s18140_s16  ;;  %v8688_v3 = vsel %vm8616_vm0, %v22574_v9, %v8652_v56 }
 0x67c   : > { %v22597_v4 = vadd.f32 %v17091_v22, %v22412_v54  ;;  %v16311_v6 = vpop.f32.mrb[8].mxu1  ;;  %v8724_v30 = vmul.f32 %v25488_v26, %v8688_v3  ;;  %v8687_v11 = vsel %vm8615_vm10, %v22579_v16, %v8651_v35 }
 0x67d   : > { %v17092_v10 = vadd.f32 %v16311_v6, %v22381_v44  ;;  %v8449_v39 = vpop.f32.mrb[9].mxu1  ;;  %v8723_v34 = vmul.f32 %v25489_v0, %v8687_v11  ;;  %vm8618_vm12 = vcmp.gt.f32.partialorder %v22592_v58, 0.0  ;;  %v8654_v19 = vmul.f32 0.1, %v22592_v58  ;;  %v25493_v0 = vld [vmem:[#allocation26_spill] sm:$0xff] }
 0x67e   : > { %v17093_v33 = vadd.f32 %v8449_v39, %v22383_v27  ;;  %8818 = vrot.lane.b32.xlu1 %v8724_v30, %s18140_s16  ;;  %vm8617_vm11 = vcmp.gt.f32.partialorder %v22597_v4, 0.0  ;;  %v8653_v51 = vmul.f32 0.1, %v22597_v4  ;;  %v25492_v30 = vld [vmem:[#allocation27_spill] sm:$0xff] }
 0x67f   : > { %v22610_v23 = vadd.f32 %v17092_v10, %v22412_v54  ;;  %8816 = vrot.lane.b32.xlu0 %v8723_v34, %s18140_s16  ;;  %v8690_v44 = vsel %vm8618_vm12, %v22592_v58, %v8654_v19  ;;  %vm25506_vm12 = vcmask 130048  }
 0x680   : > { %v22615_v53 = vadd.f32 %v17093_v33, %v22412_v54  ;;  %v16314_v25 = vpop.f32.mrb[10].mxu1  ;;  %v8726_v42 = vmul.f32 %v25490_v8, %v8690_v44  ;;  %v8689_v27 = vsel %vm8617_vm11, %v22597_v4, %v8653_v51  ;;  %vm25507_vm11 = vmmov %vm25506_vm12 }
 0x681   : > { %v17094_v49 = vadd.f32 %v16314_v25, %v22385_v20  ;;  %v8459_v2 = vpop.f32.mrb[11].mxu1  ;;  %v8725_v40 = vmul.f32 %v25491_v31, %v8689_v27  ;;  %vm8620_vm1 = vcmp.gt.f32.partialorder %v22610_v23, 0.0  ;;  %v8656_v56 = vmul.f32 0.1, %v22610_v23  ;;  %v25495_v31 = vld [vmem:[#allocation28_spill] sm:$0xff] }
 0x682   : > { %v17095_v22 = vadd.f32 %v8459_v2, %v22387_v21  ;;  %8822 = vrot.lane.b32.xlu1 %v8726_v42, %s18140_s16  ;;  %vm8619_vm8 = vcmp.gt.f32.partialorder %v22615_v53, 0.0  ;;  %v8655_v35 = vmul.f32 0.1, %v22615_v53  ;;  %v25494_v42 = vld [vmem:[#allocation31_spill] sm:$0xff] }
 0x683   : > { %v22628_v3 = vadd.f32 %v17094_v49, %v22412_v54  ;;  %8820 = vrot.lane.b32.xlu0 %v8725_v40, %s18140_s16  ;;  %v8692_v20 = vsel %vm8620_vm1, %v22610_v23, %v8656_v56  ;;  %vm25508_vm1 = vmmov %vm25507_vm11 }
 0x684   : > { %v22633_v6 = vadd.f32 %v17095_v22, %v22412_v54  ;;  %v16317_v26 = vpop.f32.mrb[12].mxu1  ;;  %v8728_v11 = vmul.f32 %v25492_v30, %v8692_v20  ;;  %v8691_v21 = vsel %vm8619_vm8, %v22615_v53, %v8655_v35  ;;  %vm25509_vm8 = vmmov %vm25508_vm1 }
 0x685   : > { %v17096_v10 = vadd.f32 %v16317_v26, %v22389_v55  ;;  %v8469_v39 = vpop.f32.mrb[13].mxu1  ;;  %v8727_v34 = vmul.f32 %v25493_v0, %v8691_v21  ;;  %vm8622_vm2 = vcmp.gt.f32.partialorder %v22628_v3, 0.0  ;;  %v8658_v19 = vmul.f32 0.1, %v22628_v3  ;;  %v25497_v0 = vld [vmem:[#allocation42_spill] sm:$0xff] }
 0x686   : > { %v17097_v33 = vadd.f32 %v8469_v39, %v22391_v32  ;;  %8826 = vrot.lane.b32.xlu1 %v8728_v11, %s18140_s16  ;;  %vm8621_vm13 = vcmp.gt.f32.partialorder %v22633_v6, 0.0  ;;  %v8657_v51 = vmul.f32 0.1, %v22633_v6  ;;  %v25496_v11 = vld [vmem:[#allocation44_spill] sm:$0xff] }
 0x687   : > { %v22646_v44 = vadd.f32 %v17096_v10, %v22412_v54  ;;  %8824 = vrot.lane.b32.xlu0 %v8727_v34, %s18140_s16  ;;  %v8694_v55 = vsel %vm8622_vm2, %v22628_v3, %v8658_v19  ;;  %vm25510_vm2 = vmmov %vm25508_vm1 }
 0x688   : > { %v22651_v25 = vadd.f32 %v17097_v33, %v22412_v54  ;;  %v16320_v8 = vpop.f32.mrb[14].mxu1  ;;  %v8730_v27 = vmul.f32 %v25494_v42, %v8694_v55  ;;  %v8693_v32 = vsel %vm8621_vm13, %v22633_v6, %v8657_v51  ;;  %vm25511_vm13 = vmmov %vm25508_vm1 }
 0x689   : > { %v17098_v49 = vadd.f32 %v16320_v8, %v22393_v48  ;;  %v8479_v2 = vpop.f32.mrb[15].mxu1  ;;  %v8729_v40 = vmul.f32 %v25495_v31, %v8693_v32  ;;  %vm8624_vm15 = vcmp.gt.f32.partialorder %v22646_v44, 0.0  ;;  %v8660_v56 = vmul.f32 0.1, %v22646_v44  ;;  %v25499_v31 = vld [vmem:[#allocation46_spill] sm:$0xff] }
 0x68a   : > { %v17099_v22 = vadd.f32 %v8479_v2, %v22395_v41  ;;  %8830 = vrot.lane.b32.xlu1 %v8730_v27, %s18140_s16  ;;  %vm8623_vm14 = vcmp.gt.f32.partialorder %v22651_v25, 0.0  ;;  %v8659_v35 = vmul.f32 0.1, %v22651_v25  ;;  %v25498_v27 = vld [vmem:[#allocation54_spill] sm:$0xff] }
 0x68b   : > { %v22664_v20 = vadd.f32 %v17098_v49, %v22412_v54  ;;  %8828 = vrot.lane.b32.xlu0 %v8729_v40, %s18140_s16  ;;  %v8696_v48 = vsel %vm8624_vm15, %v22646_v44, %v8660_v56  ;;  %vm25512_vm15 = vcmask 1046528  }
 0x68c   : > { %v22669_v26 = vadd.f32 %v17099_v22, %v22412_v54  ;;  %v16323_v30 = vpop.f32.mrb[16].mxu1  ;;  %v8732_v21 = vmul.f32 %v25496_v11, %v8696_v48  ;;  %v8695_v41 = vsel %vm8623_vm14, %v22651_v25, %v8659_v35  ;;  %vm25513_vm14 = vmmov %vm25512_vm15 }
 0x68d   : > { %v17100_v10 = vadd.f32 %v16323_v30, %v22397_v45  ;;  %v8489_v39 = vpop.f32.mrb[17].mxu1  ;;  %v8731_v34 = vmul.f32 %v25497_v0, %v8695_v41  ;;  %vm8626_vm9 = vcmp.gt.f32.partialorder %v22664_v20, 0.0  ;;  %v8662_v19 = vmul.f32 0.1, %v22664_v20  ;;  %v25501_v0 = vld [vmem:[#allocation66_spill] sm:$0xff] }
 0x68e   : > { %v17101_v33 = vadd.f32 %v8489_v39, %v22399_v36  ;;  %8834 = vrot.lane.b32.xlu1 %v8732_v21, %s18140_s16  ;;  %vm8625_vm7 = vcmp.gt.f32.partialorder %v22669_v26, 0.0  ;;  %v8661_v51 = vmul.f32 0.1, %v22669_v26  ;;  %v25500_v21 = vld [vmem:[#allocation69_spill] sm:$0xff] }
 0x68f   : > { %v22682_v55 = vadd.f32 %v17100_v10, %v22412_v54  ;;  %8832 = vrot.lane.b32.xlu0 %v8731_v34, %s18140_s16  ;;  %v8698_v45 = vsel %vm8626_vm9, %v22664_v20, %v8662_v19  ;;  %vm25514_vm9 = vmmov %vm25508_vm1 }
 0x690   : > { %v22687_v8 = vadd.f32 %v17101_v33, %v22412_v54  ;;  %v16326_v42 = vpop.f32.mrb[18].mxu1  ;;  %v8734_v32 = vmul.f32 %v25498_v27, %v8698_v45  ;;  %v8697_v36 = vsel %vm8625_vm7, %v22669_v26, %v8661_v51  ;;  %v25502_v27 = vld [vmem:[#allocation73_spill] sm:$0xff]  ;;  %vm25515_vm7 = vmmov %vm25508_vm1 }
 0x691   : > { %v17102_v49 = vadd.f32 %v16326_v42, %v22401_v62  ;;  %v8499_v2 = vpop.f32.mrb[19].mxu1  ;;  %v8733_v40 = vmul.f32 %v25499_v31, %v8697_v36  ;;  %vm8628_vm5 = vcmp.gt.f32.partialorder %v22682_v55, 0.0  ;;  %v8664_v56 = vmul.f32 0.1, %v22682_v55  ;;  %v25503_v36 = vld [vmem:[#allocation70_spill] sm:$0xff] }
 0x692   : > { %v17103_v22 = vadd.f32 %v8499_v2, %v22403_v43  ;;  %8838 = vrot.lane.b32.xlu1 %v8734_v32, %s18140_s16  ;;  %vm8627_vm6 = vcmp.gt.f32.partialorder %v22687_v8, 0.0  ;;  %v8663_v35 = vmul.f32 0.1, %v22687_v8 }
 0x693   : > { %v22700_v48 = vadd.f32 %v17102_v49, %v22412_v54  ;;  %8836 = vrot.lane.b32.xlu0 %v8733_v40, %s18140_s16  ;;  %v8700_v62 = vsel %vm8628_vm5, %v22682_v55, %v8664_v56  ;;  %v25504_v40 = vld [vmem:[#allocation75_spill] sm:$0xff]  ;;  %vm25516_vm5 = vmmov %vm25508_vm1 }
 0x694   : > { %v22705_v30 = vadd.f32 %v17103_v22, %v22412_v54  ;;  %v16329_v11 = vpop.f32.mrb[20].mxu1  ;;  %v8736_v41 = vmul.f32 %v25500_v21, %v8700_v62  ;;  %v8699_v43 = vsel %vm8627_vm6, %v22687_v8, %v8663_v35  ;;  %v25505_v35 = vld [vmem:[#allocation74_spill] sm:$0xff]  ;;  %vm25517_vm6 = vmmov %vm25508_vm1 }
 0x695   : > { %v17104_v10 = vadd.f32 %v16329_v11, %v22405_v59  ;;  %v8509_v39 = vpop.f32.mrb[21].mxu1  ;;  %v8735_v34 = vmul.f32 %v25501_v0, %v8699_v43  ;;  %vm8630_vm4 = vcmp.gt.f32.partialorder %v22700_v48, 0.0  ;;  %v8666_v19 = vmul.f32 0.1, %v22700_v48 }
 0x696   : > { %v17105_v33 = vadd.f32 %v8509_v39, %v22407_v1  ;;  %8842 = vrot.lane.b32.xlu1 %v8736_v41, %s18140_s16  ;;  %vm8629_vm3 = vcmp.gt.f32.partialorder %v22705_v30, 0.0  ;;  %v8665_v51 = vmul.f32 0.1, %v22705_v30 }
 0x697   : > { %v22718_v45 = vadd.f32 %v17104_v10, %v22412_v54  ;;  %8840 = vrot.lane.b32.xlu0 %v8735_v34, %s18140_s16  ;;  %v8702_v59 = vsel %vm8630_vm4, %v22700_v48, %v8666_v19  ;;  %vm25518_vm4 = vmmov %vm25513_vm14 }
 0x698   : > { %v22723_v42 = vadd.f32 %v17105_v33, %v22412_v54  ;;  %v8738_v32 = vmul.f32 %v25502_v27, %v8702_v59  ;;  %v8701_v1 = vsel %vm8629_vm3, %v22705_v30, %v8665_v51  ;;  %vm25519_vm3 = vmmov %vm25518_vm4 }
 0x699   : > { %v8737_v49 = vmul.f32 %v25503_v36, %v8701_v1  ;;  %vm8632_vm0 = vcmp.gt.f32.partialorder %v22718_v45, 0.0  ;;  %v8668_v2 = vmul.f32 0.1, %v22718_v45 }
 0x69a   : > { %8846 = vrot.lane.b32.xlu1 %v8738_v32, %s18140_s16  ;;  %vm8631_vm10 = vcmp.gt.f32.partialorder %v22723_v42, 0.0  ;;  %v8667_v31 = vmul.f32 0.1, %v22723_v42 }
 0x69b   : > { %8844 = vrot.lane.b32.xlu0 %v8737_v49, %s18140_s16  ;;  %v8704_v54 = vsel %vm8632_vm0, %v22718_v45, %v8668_v2  ;;  %vm25520_vm0 = vmmov %vm25508_vm1 }
 0x69c   : > { %v8740_v56 = vmul.f32 %v25504_v40, %v8704_v54  ;;  %v8703_v22 = vsel %vm8631_vm10, %v22723_v42, %v8667_v31  ;;  %vm25521_vm10 = vmmov %vm25520_vm0 }
 0x69d   : > { %v8739_v62 = vmul.f32 %v25505_v35, %v8703_v22 }
 0x69e   : > { %8850 = vrot.lane.b32.xlu1 %v8740_v56, %s18140_s16 }
 0x69f   : > { %8848 = vrot.lane.b32.xlu0 %v8739_v62, %s18140_s16 }
 0x6a2   : > { %12531 = vrot.lane.b32.xlu1 %v22415_v52, %s18141_s17 }
 0x6a3   : > { %12529 = vrot.lane.b32.xlu0 %v22418_v29, %s18141_s17 }
 0x6a6   : > { %12535 = vrot.lane.b32.xlu1 %v22425_v63, %s18141_s17 }
 0x6a7   : > { %12533 = vrot.lane.b32.xlu0 %v22431_v24, %s18141_s17 }
 0x6aa   : > { %12539 = vrot.lane.b32.xlu1 %v22449_v38, %s18141_s17 }
 0x6ab   : > { %12537 = vrot.lane.b32.xlu0 %v22456_v7, %s18141_s17  ;;  %v13829_v7 = vld [vmem:[%s24462_s5 + $0x20] sm:$0xff] }
 0x6ae   : > { %12543 = vrot.lane.b32.xlu1 %v22472_v13, %s18141_s17 }
 0x6af   : > { %12541 = vrot.lane.b32.xlu0 %v22477_v60, %s18141_s17 }
 0x6b2   : > { %12547 = vrot.lane.b32.xlu1 %v22488_v46, %s18141_s17 }
 0x6b3   : > { %12545 = vrot.lane.b32.xlu0 %v22493_v12, %s18141_s17  ;;  %v13830_v12 = vld [vmem:[%s24462_s5 + $0x28] sm:$0xff] }
 0x6b6   : > { %12551 = vrot.lane.b32.xlu1 %v22504_v47, %s18141_s17 }
 0x6b7   : > { %12549 = vrot.lane.b32.xlu0 %v22509_v18, %s18141_s17 }
 0x6ba   : > { %12555 = vrot.lane.b32.xlu1 %v22520_v37, %s18141_s17 }
 0x6bb   : > { %12553 = vrot.lane.b32.xlu0 %v22525_v50, %s18141_s17 }
 0x6bd   : > { %v8783_v52 = vpop.permute.xlu1 %8782 }
 0x6be   : > { %12559 = vrot.lane.b32.xlu1 %v22538_v14, %s18141_s17  ;;  %8889 = vst.msk [vmem:[#allocation3 + $0x1b] sm:$0xff] %vm25506_vm12, %v8783_v52  ;;  %v8781_v29 = vpop.permute.xlu0 %8780  ;;  %vm25522_vm12 = vmmov %vm25520_vm0 }
 0x6bf   : > { %12557 = vrot.lane.b32.xlu0 %v22543_v61, %s18141_s17  ;;  %8888 = vst.msk [vmem:[#allocation3 + $0x13] sm:$0xff] %vm25507_vm11, %v8781_v29  ;;  %v22818_v61 = vpack.c.bf16 %v13830_v12, %v13829_v7  ;;  %vm25523_vm11 = vmmov %vm25520_vm0 }
 0x6c2   : > { %12563 = vrot.lane.b32.xlu1 %v22556_v5, %s18141_s17 }
 0x6c3   : > { %12561 = vrot.lane.b32.xlu0 %v22561_v17, %s18141_s17 }
 0x6c5   : > { %v8787_v63 = vpop.permute.xlu1 %8786 }
 0x6c6   : > { %12567 = vrot.lane.b32.xlu1 %v22574_v9, %s18141_s17  ;;  %8891 = vst.msk [vmem:[#allocation3 + $0x2b] sm:$0xff] %vm25508_vm1, %v8787_v63  ;;  %v8785_v24 = vpop.permute.xlu0 %8784  ;;  %v22800_v60 = vld [vmem:[#allocation3 + $0x10] sm:$0xff]  ;;  %v22802_v46 = vld [vmem:[#allocation3 + $0x18] sm:$0xff]  ;;  %vm25524_vm1 = vmmov %vm25519_vm3 }
 0x6c7   : > { %12565 = vrot.lane.b32.xlu0 %v22579_v16, %s18141_s17  ;;  %8890 = vst.msk [vmem:[#allocation3 + $0x23] sm:$0xff] %vm25509_vm8, %v8785_v24  ;;  %v9013_v47 = vrot.slane %v22800_v60, 1  ;;  %v9015_v18 = vrot.slane %v22802_v46, 1  ;;  %vm25525_vm8 = vmmov %vm25524_vm1 }
 0x6c9   : > { %v9014_v50 = vsel %vm25512_vm15, %v9011_v28, %v9013_v47  ;;  %v9016_v14 = vsel %vm25513_vm14, %v9013_v47, %v9015_v18  ;;  %vm25528_vm15 = vmmov %vm25520_vm0 }
 0x6ca   : > { %12571 = vrot.lane.b32.xlu1 %v22592_v58, %s18141_s17  ;;  %16335 = vmatmul.mubr.msk.f32.vlgmr.msra.gmra.mrb[36].mxu1 %vm25515_vm7, %v9014_v50  ;;  %vm25529_vm14 = vmmov %vm25520_vm0 }
 0x6cb   : > { %12569 = vrot.lane.b32.xlu0 %v22597_v4, %s18141_s17  ;;  %v8791_v38 = vpop.permute.xlu1 %8790  ;;  %16337 = vmatprep.mubr.msk.f32.mxu1 %vm25517_vm6, %v9016_v14  ;;  %vm25531_vm7 = vmmov %vm25524_vm1 }
 0x6cc   : > { %8893 = vst.msk [vmem:[#allocation3 + $0x3b] sm:$0xff] %vm25510_vm2, %v8791_v38  ;;  %v8789_v13 = vpop.permute.xlu0 %8788  ;;  %17039 = vmatpush3.bf16.msra.mxu1 %v22453_v15  ;;  %vm25526_vm2 = vmmov %vm25520_vm0 }
 0x6cd   : > { %8892 = vst.msk [vmem:[#allocation3 + $0x33] sm:$0xff] %vm25511_vm13, %v8789_v13  ;;  %17041 = vmatprep.subr.bf16.mxu1 %v22818_v61  ;;  %vm25527_vm13 = vmmov %vm25520_vm0 }
 0x6ce   : > { %12575 = vrot.lane.b32.xlu1 %v22610_v23, %s18141_s17  ;;  %v22822_v17 = vld [vmem:[#allocation3 + $0x20] sm:$0xff]  ;;  %v22824_v9 = vld [vmem:[#allocation3 + $0x28] sm:$0xff]  ;;  %vm25533_vm6 = vmmov %vm25520_vm0 }
 0x6cf   : > { %12573 = vrot.lane.b32.xlu0 %v22615_v53, %s18141_s17  ;;  %v9017_v57 = vrot.slane %v22822_v17, 1  ;;  %v9019_v28 = vrot.slane %v22824_v9, 1 }
 0x6d1   : > { %v9018_v58 = vsel %vm25518_vm4, %v9015_v18, %v9017_v57  ;;  %v9020_v4 = vsel %vm25519_vm3, %v9017_v57, %v9019_v28  ;;  %vm25534_vm4 = vmmov %vm25520_vm0 }
 0x6d2   : > { %12579 = vrot.lane.b32.xlu1 %v22628_v3, %s18141_s17  ;;  %v8795_v37 = vpop.permute.xlu1 %8794  ;;  %16338 = vmatmul.mubr.msk.f32.gmra.mrb[38].mxu1 %vm25521_vm10, %v9018_v58  ;;  %vm25535_vm3 = vmmov %vm25520_vm0 }
 0x6d3   : > { %12577 = vrot.lane.b32.xlu0 %v22633_v6, %s18141_s17  ;;  %8895 = vst.msk [vmem:[#allocation3 + $0x4b] sm:$0xff] %vm25514_vm9, %v8795_v37  ;;  %v8793_v5 = vpop.permute.xlu0 %8792  ;;  %16340 = vmatprep.mubr.msk.f32.mxu1 %vm25523_vm11, %v9020_v4  ;;  %vm25530_vm9 = vmmov %vm25524_vm1 }
 0x6d4   : > { %8894 = vst.msk [vmem:[#allocation3 + $0x43] sm:$0xff] %vm25516_vm5, %v8793_v5  ;;  %v22840_v23 = vld [vmem:[#allocation3 + $0x30] sm:$0xff]  ;;  %v22842_v53 = vld [vmem:[#allocation3 + $0x38] sm:$0xff]  ;;  %vm25532_vm5 = vmmov %vm25520_vm0 }
 0x6d5   : > { %v9021_v3 = vrot.slane %v22840_v23, 1  ;;  %v9023_v6 = vrot.slane %v22842_v53, 1  ;;  %vm25539_vm11 = vmmov %vm25526_vm2 }
 0x6d6   : > { %12583 = vrot.lane.b32.xlu1 %v22646_v44, %s18141_s17 }
 0x6d7   : > { %12581 = vrot.lane.b32.xlu0 %v22651_v25, %s18141_s17  ;;  %v9022_v25 = vsel %vm25524_vm1, %v9019_v28, %v9021_v3 }
 0x6d8   : > { %v8799_v16 = vpop.permute.xlu1 %8798  ;;  %16341 = vmatmul.mubr.msk.f32.gmra.mrb[40].mxu1 %vm25527_vm13, %v9022_v25 }
 0x6d9   : > { %8897 = vst.msk [vmem:[#allocation3 + $0x5b] sm:$0xff] %vm25520_vm0, %v8799_v16  ;;  %v8797_v15 = vpop.permute.xlu0 %8796  ;;  %vm25536_vm0 = vmmov %vm25524_vm1 }
 0x6da   : > { %12587 = vrot.lane.b32.xlu1 %v22664_v20, %s18141_s17  ;;  %8896 = vst.msk [vmem:[#allocation3 + $0x53] sm:$0xff] %vm25522_vm12, %v8797_v15  ;;  %v9024_v20 = vsel %vm25525_vm8, %v9021_v3, %v9023_v6  ;;  %vm25537_vm10 = vmmov %vm25536_vm0 }
 0x6db   : > { %12585 = vrot.lane.b32.xlu0 %v22669_v26, %s18141_s17  ;;  %v22856_v11 = vld [vmem:[#allocation3 + $0x40] sm:$0xff]  ;;  %v22858_v21 = vld [vmem:[#allocation3 + $0x48] sm:$0xff]  ;;  %16343 = vmatprep.mubr.msk.f32.mxu1 %vm25529_vm14, %v9024_v20  ;;  %vm25538_vm12 = vmmov %vm25526_vm2 }
 0x6dc   : > { %vm25540_vm1 = vmmov %vm25526_vm2 }
 0x6dd   : > { %vm25541_vm8 = vmmov %vm25540_vm1 }
 0x6de   : > { %12591 = vrot.lane.b32.xlu1 %v22682_v55, %s18141_s17  ;;  %v9025_v55 = vrot.slane %v22856_v11, 1  ;;  %vm25543_vm13 = vmmov %vm25536_vm0 }
 0x6df   : > { %12589 = vrot.lane.b32.xlu0 %v22687_v8, %s18141_s17  ;;  %v8803_v44 = vpop.permute.xlu1 %8802  ;;  %v9027_v8 = vrot.slane %v22858_v21, 1  ;;  %vm25545_vm14 = vmmov %vm25540_vm1 }
 0x6e0   : > { %8899 = vst.msk [vmem:[#allocation3 + $0x6b] sm:$0xff] %vm25526_vm2, %v8803_v44  ;;  %v8801_v26 = vpop.permute.xlu0 %8800  ;;  %v9026_v43 = vsel %vm25530_vm9, %v9023_v6, %v9025_v55  ;;  %vm25542_vm2 = vmmov %vm25536_vm0 }
 0x6e1   : > { %8898 = vst.msk [vmem:[#allocation3 + $0x63] sm:$0xff] %vm25528_vm15, %v8801_v26  ;;  %v9028_v10 = vsel %vm25531_vm7, %v9025_v55, %v9027_v8  ;;  %16344 = vmatmul.mubr.msk.f32.gmra.mrb[42].mxu1 %vm25533_vm6, %v9026_v43  ;;  %v22872_v0 = vld [vmem:[#allocation3 + $0x50] sm:$0xff]  ;;  %v22874_v34 = vld [vmem:[#allocation3 + $0x58] sm:$0xff]  ;;  %vm25544_vm15 = vmmov %vm25540_vm1 }
 0x6e2   : > { %12595 = vrot.lane.b32.xlu1 %v22700_v48, %s18141_s17  ;;  %16346 = vmatprep.mubr.msk.f32.mxu1 %vm25535_vm3, %v9028_v10  ;;  %v9029_v48 = vrot.slane %v22872_v0, 1  ;;  %vm25546_vm9 = vmmov %vm25540_vm1 }
 0x6e3   : > { %12593 = vrot.lane.b32.xlu0 %v22705_v30, %s18141_s17  ;;  %v9031_v30 = vrot.slane %v22874_v34, 1  ;;  %vm25547_vm7 = vmmov %vm25540_vm1 }
 0x6e4   : > { %v8807_v41 = vpop.permute.xlu1 %8806  ;;  %v9030_v33 = vsel %vm25536_vm0, %v9027_v8, %v9029_v48  ;;  %vm25549_vm6 = vmmov %vm25536_vm0 }
 0x6e5   : > { %8901 = vst.msk [vmem:[#allocation3 + $0x7b] sm:$0xff] %vm25532_vm5, %v8807_v41  ;;  %v8805_v39 = vpop.permute.xlu0 %8804  ;;  %v9032_v51 = vsel %vm25537_vm10, %v9029_v48, %v9031_v30  ;;  %16347 = vmatmul.mubr.msk.f32.gmra.mrb[44].mxu1 %vm25539_vm11, %v9030_v33  ;;  %vm25548_vm5 = vmmov %vm25536_vm0 }
 0x6e6   : > { %8900 = vst.msk [vmem:[#allocation3 + $0x73] sm:$0xff] %vm25534_vm4, %v8805_v39  ;;  %12599 = vrot.lane.b32.xlu1 %v22718_v45, %s18141_s17  ;;  %16349 = vmatprep.mubr.msk.f32.mxu1 %vm25541_vm8, %v9032_v51  ;;  %vm25550_vm4 = vmmov %vm25540_vm1 }
 0x6e7   : > { %12597 = vrot.lane.b32.xlu0 %v22723_v42, %s18141_s17  ;;  %vm25551_vm3 = vmmov %vm25540_vm1 }
 0x6e8   : > { %v8811_v19 = vpop.permute.xlu1 %8810  ;;  %v22888_v27 = vld [vmem:[#allocation3 + $0x60] sm:$0xff]  ;;  %v22890_v32 = vld [vmem:[#allocation3 + $0x68] sm:$0xff]  ;;  %vm25552_vm0 = vmmov %vm25540_vm1 }
 0x6e9   : > { %8903 = vst.msk [vmem:[#allocation3 + $0x8b] sm:$0xff] %vm25538_vm12, %v8811_v19  ;;  %v8809_v59 = vpop.permute.xlu0 %8808  ;;  %v9033_v45 = vrot.slane %v22888_v27, 1  ;;  %v9035_v42 = vrot.slane %v22890_v32, 1  ;;  %vm25553_vm10 = vmmov %vm25552_vm0 }
 0x6ea   : > { %8902 = vst.msk [vmem:[#allocation3 + $0x83] sm:$0xff] %vm25540_vm1, %v8809_v59  ;;  %vm25554_vm12 = vmmov %vm25542_vm2 }
 0x6eb   : > { %v9034_v36 = vsel %vm25542_vm2, %v9031_v30, %v9033_v45  ;;  %v9036_v49 = vsel %vm25543_vm13, %v9033_v45, %v9035_v42  ;;  %vm25555_vm11 = vmmov %vm25542_vm2 }
 0x6ec   : > { %v8815_v1 = vpop.permute.xlu1 %8814  ;;  %16350 = vmatmul.mubr.msk.f32.gmra.mrb[46].mxu1 %vm25545_vm14, %v9034_v36  ;;  %vm25556_vm1 = vmmov %vm25552_vm0 }
 0x6ed   : > { %8905 = vst.msk [vmem:[#allocation3 + $0x9b] sm:$0xff] %vm25544_vm15, %v8815_v1  ;;  %v8813_v2 = vpop.permute.xlu0 %8812  ;;  %v22900_v31 = vld [vmem:[#allocation3 + $0x70] sm:$0xff]  ;;  %v22902_v54 = vld [vmem:[#allocation3 + $0x78] sm:$0xff]  ;;  %16352 = vmatprep.mubr.msk.f32.mxu1 %vm25547_vm7, %v9036_v49  ;;  %vm25557_vm8 = vmmov %vm25552_vm0 }
 0x6ee   : > { %8904 = vst.msk [vmem:[#allocation3 + $0x93] sm:$0xff] %vm25546_vm9, %v8813_v2  ;;  %v9037_v40 = vrot.slane %v22900_v31, 1  ;;  %v9039_v56 = vrot.slane %v22902_v54, 1  ;;  %vm25558_vm2 = vmmov %vm25552_vm0 }
 0x6ef   : > { %vm25559_vm13 = vmmov %vm25552_vm0 }
 0x6f0   : > { %v8819_v22 = vpop.permute.xlu1 %8818  ;;  %v9038_v35 = vsel %vm25548_vm5, %v9035_v42, %v9037_v40  ;;  %v9040_v62 = vsel %vm25549_vm6, %v9037_v40, %v9039_v56  ;;  %vm25560_vm15 = vmmov %vm25548_vm5 }
 0x6f1   : > { %8907 = vst.msk [vmem:[#allocation3 + $0xab] sm:$0xff] %vm25550_vm4, %v8819_v22  ;;  %16353 = vmatmul.mubr.msk.f32.gmra.mrb[48].mxu1 %vm25551_vm3, %v9038_v35  ;;  %v8817_v52 = vpop.permute.xlu0 %8816  ;;  %v22912_v29 = vld [vmem:[#allocation3 + $0x80] sm:$0xff]  ;;  %v22914_v63 = vld [vmem:[#allocation3 + $0x88] sm:$0xff]  ;;  %vm25561_vm14 = vmmov %vm25548_vm5 }
 0x6f2   : > { %8906 = vst.msk [vmem:[#allocation3 + $0xa3] sm:$0xff] %vm25552_vm0, %v8817_v52  ;;  %16355 = vmatprep.mubr.msk.f32.mxu1 %vm25553_vm10, %v9040_v62  ;;  %v9041_v24 = vrot.slane %v22912_v29, 1  ;;  %v9043_v38 = vrot.slane %v22914_v63, 1  ;;  %vm25562_vm9 = vmmov %vm25552_vm0 }
 0x6f3   : > { %vm25563_vm7 = vmmov %vm25552_vm0 }
 0x6f4   : > { %v8823_v7 = vpop.permute.xlu1 %8822  ;;  %v9042_v13 = vsel %vm25554_vm12, %v9039_v56, %v9041_v24  ;;  %v9044_v12 = vsel %vm25555_vm11, %v9041_v24, %v9043_v38  ;;  %vm25565_vm5 = vmmov %vm25552_vm0 }
 0x6f5   : > { %8909 = vst.msk [vmem:[#allocation3 + $0xbb] sm:$0xff] %vm25556_vm1, %v8823_v7  ;;  %16356 = vmatmul.mubr.msk.f32.gmra.mrb[50].mxu1 %vm25557_vm8, %v9042_v13  ;;  %v8821_v47 = vpop.permute.xlu0 %8820  ;;  %v22924_v18 = vld [vmem:[#allocation3 + $0x90] sm:$0xff]  ;;  %v22926_v37 = vld [vmem:[#allocation3 + $0x98] sm:$0xff]  ;;  %vm25566_vm6 = vmmov %vm25552_vm0 }
 0x6f6   : > { %8908 = vst.msk [vmem:[#allocation3 + $0xb3] sm:$0xff] %vm25558_vm2, %v8821_v47  ;;  %16358 = vmatprep.mubr.msk.f32.mxu1 %vm25559_vm13, %v9044_v12  ;;  %v9045_v50 = vrot.slane %v22924_v18, 1  ;;  %v9047_v14 = vrot.slane %v22926_v37, 1  ;;  %vm25567_vm4 = vmmov %vm25555_vm11 }
 0x6f7   : > { %vm25568_vm3 = vmmov %vm25567_vm4 }
 0x6f8   : > { %v8827_v5 = vpop.permute.xlu1 %8826  ;;  %v9046_v57 = vsel %vm25560_vm15, %v9043_v38, %v9045_v50  ;;  %v9048_v28 = vsel %vm25561_vm14, %v9045_v50, %v9047_v14  ;;  %vm25569_vm10 = vmmov %vm25552_vm0 }
 0x6f9   : > { %8911 = vst.msk [vmem:[#allocation3 + $0xcb] sm:$0xff] %vm25562_vm9, %v8827_v5  ;;  %16359 = vmatmul.mubr.msk.f32.gmra.mrb[52].mxu1 %vm25563_vm7, %v9046_v57  ;;  %v8825_v16 = vpop.permute.xlu0 %8824  ;;  %v22936_v58 = vld [vmem:[#allocation3 + $0xa0] sm:$0xff]  ;;  %v22938_v4 = vld [vmem:[#allocation3 + $0xa8] sm:$0xff]  ;;  %vm25572_vm12 = vmmov %vm25552_vm0 }
 0x6fa   : > { %25564 = vst [vmem:[#allocation85_spill] sm:$0xff] %v22938_v4  ;;  %8910 = vst.msk [vmem:[#allocation3 + $0xc3] sm:$0xff] %vm25565_vm5, %v8825_v16  ;;  %16361 = vmatprep.mubr.msk.f32.mxu1 %vm25566_vm6, %v9048_v28  ;;  %v9049_v15 = vrot.slane %v22936_v58, 1  ;;  %v9051_v3 = vrot.slane %v22938_v4, 1 }
 0x6fb   : > { %vm25573_vm11 = vmmov %vm25552_vm0 }
 0x6fc   : > { %v8831_v6 = vpop.permute.xlu1 %8830  ;;  %v9050_v44 = vsel %vm25567_vm4, %v9047_v14, %v9049_v15  ;;  %v9052_v25 = vsel %vm25568_vm3, %v9049_v15, %v9051_v3  ;;  %vm25574_vm1 = vmmov %vm25568_vm3 }
 0x6fd   : > { %8913 = vst.msk [vmem:[#allocation3 + $0xdb] sm:$0xff] %vm25552_vm0, %v8831_v6  ;;  %16362 = vmatmul.mubr.msk.f32.gmra.mrb[54].mxu1 %vm25569_vm10, %v9050_v44  ;;  %v8829_v20 = vpop.permute.xlu0 %8828  ;;  %v22948_v26 = vld [vmem:[#allocation3 + $0xb0] sm:$0xff]  ;;  %v22950_v55 = vld [vmem:[#allocation3 + $0xb8] sm:$0xff]  ;;  %vm25575_vm8 = vmmov %vm25574_vm1 }
 0x6fe   : > { %25570 = vst [vmem:[#allocation76_spill] sm:$0xff] %v22948_v26  ;;  %25571 = vst [vmem:[#allocation86_spill] sm:$0xff] %v22950_v55  ;;  %16364 = vmatprep.mubr.msk.f32.mxu1 %vm25573_vm11, %v9052_v25  ;;  %v9053_v8 = vrot.slane %v22948_v26, 1  ;;  %v9055_v41 = vrot.slane %v22950_v55, 1 }
 0x6ff   : > { %8912 = vst.msk [vmem:[#allocation3 + $0xd3] sm:$0xff] %vm25572_vm12, %v8829_v20  ;;  %vm25576_vm2 = vmmov %vm25552_vm0 }
 0x700   : > { %v8835_v43 = vpop.permute.xlu1 %8834  ;;  %v9054_v10 = vsel %vm25574_vm1, %v9051_v3, %v9053_v8  ;;  %v9056_v39 = vsel %vm25575_vm8, %v9053_v8, %v9055_v41  ;;  %vm25577_vm13 = vmmov %vm25552_vm0 }
 0x701   : > { %8915 = vst.msk [vmem:[#allocation3 + $0xeb] sm:$0xff] %vm25576_vm2, %v8835_v43  ;;  %16365 = vmatmul.mubr.msk.f32.gmra.mrb[56].mxu1 %vm25577_vm13, %v9054_v10  ;;  %v8833_v48 = vpop.permute.xlu0 %8832  ;;  %v22960_v30 = vld [vmem:[#allocation3 + $0xc0] sm:$0xff]  ;;  %v22962_v19 = vld [vmem:[#allocation3 + $0xc8] sm:$0xff]  ;;  %vm25580_vm15 = vmmov %vm25552_vm0 }
 0x702   : > { %25578 = vst [vmem:[#allocation87_spill] sm:$0xff] %v22960_v30  ;;  %25579 = vst [vmem:[#allocation77_spill] sm:$0xff] %v22962_v19  ;;  %v9057_v33 = vrot.slane %v22960_v30, 1  ;;  %v9059_v51 = vrot.slane %v22962_v19, 1 }
 0x703   : > { %8914 = vst.msk [vmem:[#allocation3 + $0xe3] sm:$0xff] %vm25580_vm15, %v8833_v48  ;;  %vm25581_vm14 = vmmov %vm25552_vm0 }
 0x704   : > { %16367 = vmatprep.mubr.msk.f32.mxu1 %vm25581_vm14, %v9056_v39  ;;  %v8839_v59 = vpop.permute.xlu1 %8838  ;;  %vm25582_vm9 = vmmov %vm25574_vm1 }
 0x705   : > { %v9058_v45 = vsel %vm25582_vm9, %v9055_v41, %v9057_v33  ;;  %vm25583_vm7 = vmmov %vm25574_vm1  ;;  %v8837_v1 = vpop.permute.xlu0 %8836 }
 0x706   : > { %v9060_v42 = vsel %vm25583_vm7, %v9057_v33, %v9059_v51  ;;  %vm25584_vm5 = vmmov %vm25552_vm0  ;;  %v22972_v36 = vld [vmem:[#allocation3 + $0xd0] sm:$0xff]  ;;  %v22974_v49 = vld [vmem:[#allocation3 + $0xd8] sm:$0xff] }
 0x707   : > { %8917 = vst.msk [vmem:[#allocation3 + $0xfb] sm:$0xff] %vm25584_vm5, %v8839_v59  ;;  %vm25585_vm6 = vmmov %vm25552_vm0  ;;  %v9061_v2 = vrot.slane %v22972_v36, 1  ;;  %v9063_v40 = vrot.slane %v22974_v49, 1 }
 0x708   : > { %16368 = vmatmul.mubr.msk.f32.gmra.mrb[58].mxu1 %vm25585_vm6, %v9058_v45  ;;  %25586 = vst [vmem:[#allocation88_spill] sm:$0xff] %v22972_v36  ;;  %25587 = vst [vmem:[#allocation91_spill] sm:$0xff] %v22974_v49  ;;  %v8843_v56 = vpop.permute.xlu1 %8842 }
 0x709   : > { %vm25588_vm4 = vmmov %vm25552_vm0  ;;  %v8841_v62 = vpop.permute.xlu0 %8840 }
 0x70a   : > { %8916 = vst.msk [vmem:[#allocation3 + $0xf3] sm:$0xff] %vm25588_vm4, %v8837_v1  ;;  %vm25589_vm3 = vmmov %vm25552_vm0  ;;  %v22984_v52 = vld [vmem:[#allocation3 + $0xe0] sm:$0xff]  ;;  %v22986_v24 = vld [vmem:[#allocation3 + $0xe8] sm:$0xff] }
 0x70b   : > { %16370 = vmatprep.mubr.msk.f32.mxu1 %vm25589_vm3, %v9060_v42  ;;  %vm25590_vm0 = vmmov %vm25574_vm1  ;;  %25594 = vst [vmem:[#allocation92_spill] sm:$0xff] %v22984_v52  ;;  %v9065_v38 = vrot.slane %v22984_v52, 1  ;;  %v9067_v7 = vrot.slane %v22986_v24, 1 }
 0x70c   : > { %v9062_v22 = vsel %vm25590_vm0, %v9059_v51, %v9061_v2  ;;  %vm25591_vm10 = vmmov %vm25590_vm0  ;;  %25595 = vst [vmem:[#allocation93_spill] sm:$0xff] %v22986_v24  ;;  %v8847_v13 = vpop.permute.xlu1 %8846 }
 0x70d   : > { %v9064_v35 = vsel %vm25591_vm10, %v9061_v2, %v9063_v40  ;;  %vm25592_vm12 = vmmov %vm25576_vm2  ;;  %v8845_v50 = vpop.permute.xlu0 %8844 }
 0x70e   : > { %8919 = vst.msk [vmem:[#allocation3 + $0x10b] sm:$0xff] %vm25592_vm12, %v8843_v56  ;;  %vm25593_vm11 = vmmov %vm25576_vm2 }
 0x70f   : > { %16371 = vmatmul.mubr.msk.f32.gmra.mrb[60].mxu1 %vm25593_vm11, %v9062_v22  ;;  %vm25596_vm1 = vmmov %vm25576_vm2 }
 0x710   : > { %8918 = vst.msk [vmem:[#allocation3 + $0x103] sm:$0xff] %vm25596_vm1, %v8841_v62  ;;  %vm25597_vm8 = vmmov %vm25596_vm1  ;;  %v8851_v16 = vpop.permute.xlu1 %8850  ;;  %v13867_v62 = vld [vmem:[%s24462_s5 + $0x30] sm:$0xff] }
 0x711   : > { %16373 = vmatprep.mubr.msk.f32.mxu1 %vm25597_vm8, %v9064_v35  ;;  %vm25598_vm2 = vmmov %vm25590_vm0  ;;  %v22996_v14 = vld [vmem:[#allocation3 + $0xf0] sm:$0xff]  ;;  %v22998_v5 = vld [vmem:[#allocation3 + $0xf8] sm:$0xff]  ;;  %v8849_v6 = vpop.permute.xlu0 %8848 }
 0x712   : > { %v9066_v12 = vsel %vm25598_vm2, %v9063_v40, %v9065_v38  ;;  %vm25599_vm13 = vmmov %vm25590_vm0  ;;  %25602 = vst [vmem:[#allocation94_spill] sm:$0xff] %v22996_v14  ;;  %v9069_v57 = vrot.slane %v22996_v14, 1  ;;  %v9071_v28 = vrot.slane %v22998_v5, 1 }
 0x713   : > { %v9068_v47 = vsel %vm25599_vm13, %v9065_v38, %v9067_v7  ;;  %vm25600_vm15 = vmmov %vm25596_vm1  ;;  %25603 = vst [vmem:[#allocation95_spill] sm:$0xff] %v22998_v5  ;;  %v13868_v38 = vld [vmem:[%s24462_s5 + $0x38] sm:$0xff] }
 0x714   : > { %8921 = vst.msk [vmem:[#allocation3 + $0x11b] sm:$0xff] %vm25600_vm15, %v8847_v13  ;;  %vm25601_vm14 = vmmov %vm25596_vm1 }
 0x715   : > { %16374 = vmatmul.mubr.msk.f32.gmra.mrb[62].mxu1 %vm25601_vm14, %v9066_v12  ;;  %vm25604_vm9 = vmmov %vm25596_vm1  ;;  %v23056_v12 = vld [vmem:[#allocation3] sm:$0xff] }
 0x716   : > { %8920 = vst.msk [vmem:[#allocation3 + $0x113] sm:$0xff] %vm25604_vm9, %v8845_v50  ;;  %vm25605_vm7 = vmmov %vm25596_vm1 }
 0x717   : > { %16376 = vmatprep.mubr.msk.f32.mxu1 %vm25605_vm7, %v9068_v47  ;;  %vm25606_vm5 = vmmov %vm25590_vm0  ;;  %v23008_v44 = vld [vmem:[#allocation3 + $0x100] sm:$0xff]  ;;  %v23010_v25 = vld [vmem:[#allocation3 + $0x108] sm:$0xff]  ;;  %v23060_v47 = vpack.c.bf16 %v13868_v38, %v13867_v62  ;;  %v9720_v38 = vrot.slane %v23056_v12, 2 }
 0x718   : > { %v9070_v15 = vsel %vm25606_vm5, %v9067_v7, %v9069_v57  ;;  %vm25607_vm6 = vmmov %vm25590_vm0  ;;  %25610 = vst [vmem:[#allocation96_spill] sm:$0xff] %v23008_v44  ;;  %v9073_v20 = vrot.slane %v23008_v44, 1  ;;  %v9075_v8 = vrot.slane %v23010_v25, 1  ;;  %vm25624_vm5 = vcmask 1044480  }
 0x719   : > { %v9072_v3 = vsel %vm25607_vm6, %v9069_v57, %v9071_v28  ;;  %vm25608_vm4 = vmmov %vm25596_vm1  ;;  %25611 = vst [vmem:[#allocation97_spill] sm:$0xff] %v23010_v25 }
 0x71a   : > { %8923 = vst.msk [vmem:[#allocation3 + $0x12b] sm:$0xff] %vm25608_vm4, %v8851_v16  ;;  %vm25609_vm3 = vmmov %vm25596_vm1  ;;  %v23065_v16 = vld [vmem:[#allocation3 + $0x8] sm:$0xff] }
 0x71b   : > { %16377 = vmatmul.mubr.msk.f32.gmra.mrb[64].mxu1 %vm25609_vm3, %v9070_v15  ;;  %vm25612_vm0 = vmmov %vm25596_vm1 }
 0x71c   : > { %8922 = vst.msk [vmem:[#allocation3 + $0x123] sm:$0xff] %vm25612_vm0, %v8849_v6  ;;  %vm25613_vm10 = vmmov %vm25612_vm0 }
 0x71d   : > { %16379 = vmatprep.mubr.msk.f32.mxu1 %vm25613_vm10, %v9072_v3  ;;  %vm25614_vm12 = vmmov %vm25598_vm2  ;;  %v23019_v10 = vld [vmem:[#allocation3 + $0x110] sm:$0xff]  ;;  %v23021_v39 = vld [vmem:[#allocation3 + $0x118] sm:$0xff] }
 0x71e   : > { %v9074_v41 = vsel %vm25614_vm12, %v9071_v28, %v9073_v20  ;;  %vm25615_vm11 = vmmov %vm25598_vm2  ;;  %25617 = vst [vmem:[#allocation98_spill] sm:$0xff] %v23021_v39  ;;  %v9077_v48 = vrot.slane %v23019_v10, 1  ;;  %v9079_v33 = vrot.slane %v23021_v39, 1 }
 0x71f   : > { %v9076_v43 = vsel %vm25615_vm11, %v9073_v20, %v9075_v8  ;;  %vm25616_vm1 = vmmov %vm25612_vm0 }
 0x720   : > { %16380 = vmatmul.mubr.msk.f32.gmra.mrb[66].mxu1 %vm25616_vm1, %v9074_v41  ;;  %vm25618_vm8 = vmmov %vm25612_vm0  ;;  %v9078_v51 = vsel %vm25598_vm2, %v9075_v8, %v9077_v48 }
 0x721   : > { %16382 = vmatprep.mubr.msk.f32.mxu1 %vm25618_vm8, %v9076_v43  ;;  %vm25619_vm13 = vmmov %vm25598_vm2  ;;  %v23028_v45 = vld [vmem:[#allocation3 + $0x130] sm:$0xff] }
 0x722   : > { %v9080_v59 = vsel %vm25619_vm13, %v9077_v48, %v9079_v33  ;;  %vm25620_vm15 = vmmov %vm25612_vm0  ;;  %v10514_v22 = vrot.slane %v23028_v45, 3  ;;  %v24612_v28 = vrot.slane %v23028_v45, 4  ;;  %v11662_v8 = vrot.slane %v23028_v45, 5 }
 0x723   : > { %v23031_v42 = vld [vmem:[#allocation3 + $0x120] sm:$0xff]  ;;  %v23033_v1 = vld [vmem:[#allocation3 + $0x128] sm:$0xff]  ;;  %vm25621_vm14 = vmmov %vm25612_vm0 }
 0x724   : > { %16383 = vmatmul.mubr.msk.f32.gmra.mrb[68].mxu1 %vm25620_vm15, %v9078_v51  ;;  %v9081_v2 = vrot.slane %v23031_v42, 1  ;;  %v24614_v40 = vrot.slane %v23031_v42, 3  ;;  %v10512_v56 = vrot.slane %v23033_v1, 3  ;;  %vm25622_vm9 = vmmov %vm25598_vm2  ;;  %v24613_v50 = vrot.slane %v23031_v42, 4 }
 0x725   : > { %16385 = vmatprep.mubr.msk.f32.mxu1 %vm25621_vm14, %v9080_v59  ;;  %vm25623_vm7 = vmmov %vm25612_vm0  ;;  %v10941_v57 = vrot.slane %v23033_v1, 4  ;;  %v24611_v6 = vrot.slane %v23031_v42, 5  ;;  %v11660_v20 = vrot.slane %v23033_v1, 5  ;;  %v24609_v51 = vrot.slane %v23031_v42, 6 }
 0x726   : > { %v9082_v35 = vsel %vm25622_vm9, %v9079_v33, %v9081_v2  ;;  %v23051_v7 = vsel %vm25624_vm5, %v24614_v40, %v10512_v56  ;;  %vm25626_vm6 = vmmov %vm25624_vm5  ;;  %v12089_v59 = vrot.slane %v23033_v1, 6  ;;  %v12091_v2 = vrot.slane %v23028_v45, 6 }
 0x727   : > { %25625 = vst [vmem:[#allocation78_spill] sm:$0xff] %v23051_v7  ;;  %v23054_v13 = vsel %vm25626_vm6, %v10512_v56, %v10514_v22  ;;  %vm25628_vm4 = vmmov %vm25612_vm0  ;;  %vm25645_vm6 = vcmask 1042432   ;;  %v9745_v40 = vrot.slane %v22890_v32, 2  ;;  %v9767_v7 = vrot.slane %v22960_v30, 2 }
 0x728   : > { %16386 = vmatmul.mubr.msk.f32.gmra.mrb[70].mxu1 %vm25623_vm7, %v9082_v35  ;;  %25627 = vst [vmem:[#allocation80_spill] sm:$0xff] %v23054_v13  ;;  %vm25629_vm3 = vmmov %vm25612_vm0  ;;  %vm25630_vm0 = vcmask 1043456   ;;  %v23112_v43 = vsel %vm25645_vm6, %v24611_v6, %v11660_v20  ;;  %v9739_v6 = vrot.slane %v22872_v0, 2  ;;  %v9765_v13 = vrot.slane %v22950_v55, 2 }
 0x729   : > { %16392 = vmatprep.mubr.msk.f32.mxu1 %vm25628_vm4, %v23056_v12  ;;  %v23072_v15 = vsel %vm25630_vm0, %v24613_v50, %v10941_v57  ;;  %vm25632_vm10 = vmmov %vm25616_vm1  ;;  %25646 = vst [vmem:[#allocation83_spill] sm:$0xff] %v23112_v43  ;;  %v13906_v12 = vld [vmem:[%s24462_s5 + $0x48] sm:$0xff]  ;;  %v9743_v50 = vrot.slane %v22888_v27, 2  ;;  %v9757_v43 = vrot.slane %v22926_v37, 2 }
 0x72a   : > { %25631 = vst [vmem:[#allocation79_spill] sm:$0xff] %v23072_v15  ;;  %vm25633_vm12 = vmmov %vm25630_vm0  ;;  %v9763_v15 = vrot.slane %v22948_v26, 2 }
 0x72b   : > { %v23080_v3 = vsel %vm25633_vm12, %v10941_v57, %v24612_v28  ;;  %vm25635_vm11 = vmmov %vm25616_vm1  ;;  %v9721_v57 = vrot.slane %v23065_v16, 2  ;;  %v9741_v28 = vrot.slane %v22874_v34, 2 }
 0x72c   : > { %16393 = vmatmul.mubr.msk.f32.vlgmr.msra.gmra.mrb[36].mxu1 %vm25629_vm3, %v23065_v16  ;;  %25634 = vst [vmem:[#allocation81_spill] sm:$0xff] %v23080_v3  ;;  %vm25636_vm8 = vmmov %vm25616_vm1  ;;  %v9725_v16 = vrot.slane %v22802_v46, 2  ;;  %v9761_v3 = vrot.slane %v22938_v4, 2 }
 0x72d   : > { %16395 = vmatprep.mubr.msk.f32.mxu1 %vm25632_vm10, %v22800_v60  ;;  %17043 = vmatpush3.bf16.msra.mxu1 %v22818_v61  ;;  %vm25637_vm2 = vmmov %vm25616_vm1  ;;  %v23097_v61 = vld [vmem:[#allocation3 + $0x138] sm:$0xff] }
 0x72e   : > { %17045 = vmatprep.subr.bf16.mxu1 %v23060_v47  ;;  %vm25638_vm13 = vmmov %vm25616_vm1  ;;  %25641 = vst [vmem:[#allocation82_spill] sm:$0xff] %v23097_v61  ;;  %v24610_v41 = vrot.slane %v23097_v61, 5  ;;  %v24608_v56 = vrot.slane %v23097_v61, 6  ;;  %v9759_v61 = vrot.slane %v22936_v58, 2 }
 0x72f   : > { %vm25639_vm15 = vmmov %vm25616_vm1 }
 0x730   : > { %16396 = vmatmul.mubr.msk.f32.gmra.mrb[38].mxu1 %vm25635_vm11, %v22802_v46  ;;  %vm25640_vm14 = vmmov %vm25616_vm1 }
 0x731   : > { %16398 = vmatprep.mubr.msk.f32.mxu1 %vm25616_vm1, %v22822_v17  ;;  %vm25642_vm9 = vmmov %vm25616_vm1 }
 0x732   : > { %vm25643_vm7 = vmmov %vm25616_vm1 }
 0x733   : > { %vm25644_vm5 = vmmov %vm25616_vm1 }
 0x734   : > { %16399 = vmatmul.mubr.msk.f32.gmra.mrb[40].mxu1 %vm25636_vm8, %v22824_v9  ;;  %vm25647_vm4 = vmmov %vm25645_vm6 }
 0x735   : > { %16401 = vmatprep.mubr.msk.f32.mxu1 %vm25637_vm2, %v22840_v23  ;;  %v23115_v48 = vsel %vm25647_vm4, %v11660_v20, %v11662_v8  ;;  %vm25649_vm3 = vmmov %vm25647_vm4 }
 0x736   : > { %25648 = vst [vmem:[#allocation84_spill] sm:$0xff] %v23115_v48  ;;  %v23120_v33 = vsel %vm25649_vm3, %v11662_v8, %v24610_v41  ;;  %vm25651_vm0 = vmmov %vm25616_vm1  ;;  %v9723_v8 = vrot.slane %v22800_v60, 2  ;;  %v9729_v41 = vrot.slane %v22824_v9, 2  ;;  %v9755_v48 = vrot.slane %v22924_v18, 2 }
 0x737   : > { %25650 = vst [vmem:[#allocation89_spill] sm:$0xff] %v23120_v33  ;;  %vm25652_vm10 = vmmov %vm25651_vm0  ;;  %v9753_v33 = vrot.slane %v22914_v63, 2 }
 0x738   : > { %16402 = vmatmul.mubr.msk.f32.gmra.mrb[42].mxu1 %vm25638_vm13, %v22842_v53  ;;  %vm25653_vm12 = vmmov %vm25651_vm0 }
 0x739   : > { %16404 = vmatprep.mubr.msk.f32.mxu1 %vm25639_vm15, %v22856_v11  ;;  %vm25654_vm11 = vmmov %vm25651_vm0 }
 0x73a   : > { %vm25655_vm1 = vmmov %vm25651_vm0 }
 0x73b   : > { %vm25656_vm8 = vmmov %vm25651_vm0 }
 0x73c   : > { %16405 = vmatmul.mubr.msk.f32.gmra.mrb[44].mxu1 %vm25640_vm14, %v22858_v21  ;;  %vm25657_vm2 = vmmov %vm25651_vm0 }
 0x73d   : > { %16407 = vmatprep.mubr.msk.f32.mxu1 %vm25642_vm9, %v22872_v0  ;;  %vm25658_vm13 = vmmov %vm25651_vm0  ;;  %vm25661_vm9 = vcmask 1041408  }
 0x73e   : > { %vm25659_vm15 = vmmov %vm25651_vm0  ;;  %v23149_v22 = vsel %vm25661_vm9, %v24609_v51, %v12089_v59 }
 0x73f   : > { %vm25660_vm14 = vmmov %vm25651_vm0  ;;  %25662 = vst [vmem:[#allocation90_spill] sm:$0xff] %v23149_v22  ;;  %v9751_v22 = vrot.slane %v22912_v29, 2 }
 0x740   : > { %16408 = vmatmul.mubr.msk.f32.gmra.mrb[46].mxu1 %vm25643_vm7, %v22874_v34  ;;  %vm25663_vm7 = vmmov %vm25661_vm9 }
 0x741   : > { %16410 = vmatprep.mubr.msk.f32.mxu1 %vm25644_vm5, %v22888_v27  ;;  %v23152_v35 = vsel %vm25663_vm7, %v12089_v59, %v12091_v2  ;;  %vm25665_vm5 = vmmov %vm25663_vm7  ;;  %v13905_v59 = vld [vmem:[%s24462_s5 + $0x40] sm:$0xff] }
 0x742   : > { %25664 = vst [vmem:[#allocation11_spill] sm:$0xff] %v23152_v35  ;;  %v23157_v62 = vsel %vm25665_vm5, %v12091_v2, %v24608_v56  ;;  %vm25667_vm6 = vmmov %vm25651_vm0  ;;  %v23197_v2 = vpack.c.bf16 %v13906_v12, %v13905_v59  ;;  %v9727_v56 = vrot.slane %v22822_v17, 2  ;;  %v9733_v59 = vrot.slane %v22842_v53, 2 }
 0x743   : > { %25666 = vst [vmem:[#allocation12_spill] sm:$0xff] %v23157_v62  ;;  %vm25668_vm4 = vmmov %vm25651_vm0  ;;  %v9735_v12 = vrot.slane %v22856_v11, 2  ;;  %v9747_v62 = vrot.slane %v22900_v31, 2  ;;  %v9749_v35 = vrot.slane %v22902_v54, 2 }
 0x744   : > { %16411 = vmatmul.mubr.msk.f32.gmra.mrb[48].mxu1 %vm25651_vm0, %v22890_v32  ;;  %vm25669_vm3 = vmmov %vm25651_vm0 }
 0x745   : > { %16413 = vmatprep.mubr.msk.f32.mxu1 %vm25652_vm10, %v22900_v31  ;;  %vm25670_vm10 = vmmov %vm25651_vm0 }
 0x746   : > { %vm25679_vm9 = vmmov %vm25651_vm0 }
 0x747   : > { %vm25680_vm7 = vmmov %vm25651_vm0 }
 0x748   : > { %16414 = vmatmul.mubr.msk.f32.gmra.mrb[50].mxu1 %vm25653_vm12, %v22902_v54  ;;  %vm25671_vm12 = vmmov %vm25651_vm0 }
 0x749   : > { %16416 = vmatprep.mubr.msk.f32.mxu1 %vm25654_vm11, %v22912_v29  ;;  %vm25672_vm11 = vmmov %vm25651_vm0 }
 0x74c   : > { %16417 = vmatmul.mubr.msk.f32.gmra.mrb[52].mxu1 %vm25655_vm1, %v22914_v63  ;;  %vm25673_vm1 = vmmov %vm25651_vm0 }
 0x74d   : > { %16419 = vmatprep.mubr.msk.f32.mxu1 %vm25656_vm8, %v22924_v18  ;;  %vm25674_vm8 = vmmov %vm25651_vm0 }
 0x750   : > { %16420 = vmatmul.mubr.msk.f32.gmra.mrb[54].mxu1 %vm25657_vm2, %v22926_v37  ;;  %vm25675_vm2 = vmmov %vm25651_vm0 }
 0x751   : > { %16422 = vmatprep.mubr.msk.f32.mxu1 %vm25658_vm13, %v22936_v58  ;;  %vm25676_vm13 = vmmov %vm25651_vm0 }
 0x754   : > { %16423 = vmatmul.mubr.msk.f32.gmra.mrb[56].mxu1 %vm25659_vm15, %v22938_v4  ;;  %vm25677_vm15 = vmmov %vm25651_vm0  ;;  %v9777_v4 = vrot.slane %v22986_v24, 2 }
 0x755   : > { %16425 = vmatprep.mubr.msk.f32.mxu1 %vm25660_vm14, %v22948_v26  ;;  %vm25678_vm14 = vcmask 1045504   ;;  %v9769_v26 = vrot.slane %v22962_v19, 2 }
 0x756   : > { %v9722_v20 = vsel %vm25678_vm14, %v9720_v38, %v9721_v57  ;;  %vm25681_vm5 = vmmov %vm25678_vm14 }
 0x757   : > { %v9724_v38 = vsel %vm25681_vm5, %v9721_v57, %v9723_v8  ;;  %v9731_v57 = vrot.slane %v22840_v23, 2 }
 0x758   : > { %16426 = vmatmul.mubr.msk.f32.gmra.mrb[58].mxu1 %vm25667_vm6, %v22950_v55  ;;  %vm25682_vm6 = vmmov %vm25651_vm0  ;;  %v9771_v55 = vrot.slane %v22972_v36, 2 }
 0x759   : > { %16428 = vmatprep.mubr.msk.f32.mxu1 %vm25668_vm4, %v22960_v30  ;;  %vm25683_vm4 = vmmov %vm25681_vm5  ;;  %v9773_v30 = vrot.slane %v22974_v49, 2 }
 0x75a   : > { %v23203_v51 = vsel %vm25683_vm4, %v9723_v8, %v9725_v16 }
 0x75c   : > { %16429 = vmatmul.mubr.msk.f32.gmra.mrb[60].mxu1 %vm25669_vm3, %v22962_v19  ;;  %vm25684_vm3 = vmmov %vm25651_vm0  ;;  %v9775_v19 = vrot.slane %v22984_v52, 2 }
 0x75d   : > { %16431 = vmatprep.mubr.msk.f32.mxu1 %vm25651_vm0, %v22972_v36  ;;  %vm25685_vm0 = vmmov %vm25683_vm4 }
 0x75e   : > { %vm25694_vm14 = vmmov %vm25684_vm3  ;;  %v9776_v36 = vsel %vm25685_vm0, %v9773_v30, %v9775_v19 }
 0x75f   : > { %vm25697_vm5 = vmmov %vm25685_vm0 }
 0x760   : > { %16432 = vmatmul.mubr.msk.f32.gmra.mrb[62].mxu1 %vm25670_vm10, %v22974_v49  ;;  %vm25686_vm10 = vmmov %vm25673_vm1 }
 0x761   : > { %16434 = vmatprep.mubr.msk.f32.mxu1 %vm25671_vm12, %v22984_v52  ;;  %vm25687_vm12 = vmmov %vm25685_vm0 }
 0x762   : > { %v23217_v8 = vsel %vm25687_vm12, %v9727_v56, %v9729_v41  ;;  %vm25699_vm4 = vmmov %vm25685_vm0 }
 0x763   : > { %vm25701_vm12 = vmmov %vm25685_vm0 }
 0x764   : > { %16435 = vmatmul.mubr.msk.f32.gmra.mrb[64].mxu1 %vm25672_vm11, %v22986_v24  ;;  %vm25688_vm11 = vmmov %vm25673_vm1 }
 0x765   : > { %16437 = vmatprep.mubr.msk.f32.mxu1 %vm25673_vm1, %v22996_v14  ;;  %vm25689_vm1 = vmmov %vm25685_vm0 }
 0x768   : > { %16438 = vmatmul.mubr.msk.f32.gmra.mrb[66].mxu1 %vm25674_vm8, %v22998_v5  ;;  %vm25690_vm8 = vmmov %vm25675_vm2 }
 0x769   : > { %16440 = vmatprep.mubr.msk.f32.mxu1 %vm25675_vm2, %v23008_v44  ;;  %vm25691_vm2 = vmmov %vm25685_vm0 }
 0x76c   : > { %16441 = vmatmul.mubr.msk.f32.gmra.mrb[68].mxu1 %vm25676_vm13, %v23010_v25  ;;  %vm25692_vm13 = vmmov %vm25684_vm3 }
 0x76d   : > { %16443 = vmatprep.mubr.msk.f32.mxu1 %vm25677_vm15, %v23019_v10  ;;  %vm25693_vm15 = vmmov %vm25685_vm0 }
 0x770   : > { %16444 = vmatmul.mubr.msk.f32.gmra.mrb[70].mxu1 %vm25679_vm9, %v23021_v39  ;;  %vm25695_vm9 = vmmov %vm25685_vm0 }
 0x771   : > { %16450 = vmatprep.mubr.msk.f32.mxu1 %vm25680_vm7, %v9722_v20  ;;  %v23211_v20 = vsel %vm25685_vm0, %v9725_v16, %v9727_v56  ;;  %v23229_v16 = vsel %vm25691_vm2, %v9731_v57, %v9733_v59  ;;  %v23235_v56 = vsel %vm25693_vm15, %v9733_v59, %v9735_v12  ;;  %vm25696_vm7 = vmmov %vm25684_vm3  ;;  %v23253_v59 = vsel %vm25699_vm4, %v9739_v6, %v9741_v28 }
 0x772   : > { %vm25705_vm2 = vmmov %vm25685_vm0 }
 0x773   : > { %vm25707_vm15 = vmmov %vm25685_vm0 }
 0x774   : > { %16451 = vmatmul.mubr.msk.f32.vlgmr.msra.gmra.mrb[36].mxu1 %vm25682_vm6, %v9724_v38  ;;  %v9737_v38 = vrot.slane %v22858_v21, 2  ;;  %vm25698_vm6 = vmmov %vm25684_vm3 }
 0x775   : > { %16453 = vmatprep.mubr.msk.f32.mxu1 %vm25684_vm3, %v23203_v51  ;;  %17047 = vmatpush3.bf16.msra.mxu1 %v23060_v47  ;;  %v23223_v47 = vsel %vm25689_vm1, %v9729_v41, %v9731_v57  ;;  %vm25703_vm1 = vmmov %vm25685_vm0 }
 0x776   : > { %17049 = vmatprep.subr.bf16.mxu1 %v23197_v2  ;;  %v23241_v41 = vsel %vm25695_vm9, %v9735_v12, %v9737_v38  ;;  %v23247_v57 = vsel %vm25697_vm5, %v9737_v38, %v9739_v6  ;;  %v23259_v12 = vsel %vm25685_vm0, %v9741_v28, %v9743_v50  ;;  %v23265_v38 = vsel %vm25701_vm12, %v9743_v50, %v9745_v40  ;;  %vm25709_vm9 = vmmov %vm25685_vm0 }
 0x777   : > { %v23271_v6 = vsel %vm25703_vm1, %v9745_v40, %v9747_v62  ;;  %v23277_v28 = vsel %vm25705_vm2, %v9747_v62, %v9749_v35  ;;  %v23283_v50 = vsel %vm25707_vm15, %v9749_v35, %v9751_v22  ;;  %v23289_v40 = vsel %vm25709_vm9, %v9751_v22, %v9753_v33  ;;  %vm25711_vm5 = vmmov %vm25685_vm0 }
 0x778   : > { %16454 = vmatmul.mubr.msk.f32.gmra.mrb[38].mxu1 %vm25686_vm10, %v23211_v20  ;;  %vm25700_vm10 = vmmov %vm25684_vm3  ;;  %v23295_v62 = vsel %vm25711_vm5, %v9753_v33, %v9755_v48  ;;  %v23307_v22 = vsel %vm25685_vm0, %v9757_v43, %v9759_v61 }
 0x779   : > { %16456 = vmatprep.mubr.msk.f32.mxu1 %vm25688_vm11, %v23217_v8  ;;  %vm25702_vm11 = vmmov %vm25684_vm3 }
 0x77a   : > { %vm25713_vm4 = vmmov %vm25685_vm0 }
 0x77b   : > { %v23301_v35 = vsel %vm25713_vm4, %v9755_v48, %v9757_v43  ;;  %vm25715_vm12 = vmmov %vm25685_vm0 }
 0x77c   : > { %16457 = vmatmul.mubr.msk.f32.gmra.mrb[40].mxu1 %vm25690_vm8, %v23223_v47  ;;  %vm25704_vm8 = vmmov %vm25684_vm3  ;;  %v23313_v33 = vsel %vm25715_vm12, %v9759_v61, %v9761_v3 }
 0x77d   : > { %16459 = vmatprep.mubr.msk.f32.mxu1 %vm25692_vm13, %v23229_v16  ;;  %vm25706_vm13 = vmmov %vm25684_vm3 }
 0x77e   : > { %vm25717_vm1 = vmmov %vm25685_vm0 }
 0x77f   : > { %v23319_v48 = vsel %vm25717_vm1, %v9761_v3, %v9763_v15  ;;  %vm25719_vm2 = vmmov %vm25685_vm0 }
 0x780   : > { %16460 = vmatmul.mubr.msk.f32.gmra.mrb[42].mxu1 %vm25694_vm14, %v23235_v56  ;;  %vm25708_vm14 = vmmov %vm25684_vm3  ;;  %v23325_v43 = vsel %vm25719_vm2, %v9763_v15, %v9765_v13 }
 0x781   : > { %16462 = vmatprep.mubr.msk.f32.mxu1 %vm25696_vm7, %v23241_v41  ;;  %vm25710_vm7 = vmmov %vm25684_vm3 }
 0x782   : > { %vm25721_vm15 = vmmov %vm25685_vm0 }
 0x783   : > { %v23331_v61 = vsel %vm25721_vm15, %v9765_v13, %v9767_v7  ;;  %vm25723_vm9 = vmmov %vm25685_vm0 }
 0x784   : > { %16463 = vmatmul.mubr.msk.f32.gmra.mrb[44].mxu1 %vm25698_vm6, %v23247_v57  ;;  %vm25712_vm6 = vmmov %vm25684_vm3  ;;  %v9770_v3 = vsel %vm25723_vm9, %v9767_v7, %v9769_v26  ;;  %v9779_v7 = vrot.slane %v22996_v14, 2 }
 0x785   : > { %16465 = vmatprep.mubr.msk.f32.mxu1 %vm25684_vm3, %v23253_v59  ;;  %vm25725_vm5 = vmmov %vm25685_vm0 }
 0x786   : > { %v9772_v15 = vsel %vm25725_vm5, %v9769_v26, %v9771_v55  ;;  %vm25727_vm4 = vmmov %vm25685_vm0  ;;  %v9781_v26 = vrot.slane %v22998_v5, 2 }
 0x787   : > { %v9774_v13 = vsel %vm25727_vm4, %v9771_v55, %v9773_v30  ;;  %vm25729_vm12 = vmmov %vm25685_vm0  ;;  %v9783_v55 = vrot.slane %v23008_v44, 2  ;;  %v9785_v30 = vrot.slane %v23010_v25, 2 }
 0x788   : > { %16466 = vmatmul.mubr.msk.f32.gmra.mrb[46].mxu1 %vm25700_vm10, %v23259_v12  ;;  %vm25714_vm10 = vmmov %vm25684_vm3  ;;  %v9778_v49 = vsel %vm25729_vm12, %v9775_v19, %v9777_v4  ;;  %v9787_v19 = vrot.slane %v23019_v10, 2 }
 0x789   : > { %16468 = vmatprep.mubr.msk.f32.mxu1 %vm25702_vm11, %v23265_v38  ;;  %vm25716_vm11 = vmmov %vm25684_vm3 }
 0x78a   : > { %vm25731_vm1 = vmmov %vm25685_vm0 }
 0x78b   : > { %v9780_v52 = vsel %vm25731_vm1, %v9777_v4, %v9779_v7  ;;  %vm25733_vm2 = vmmov %vm25685_vm0  ;;  %v9789_v4 = vrot.slane %v23021_v39, 2  ;;  %v13944_v39 = vld [vmem:[%s24462_s5 + $0x58] sm:$0xff] }
 0x78c   : > { %16469 = vmatmul.mubr.msk.f32.gmra.mrb[48].mxu1 %vm25704_vm8, %v23271_v6  ;;  %vm25718_vm8 = vmmov %vm25684_vm3  ;;  %v9782_v24 = vsel %vm25733_vm2, %v9779_v7, %v9781_v26  ;;  %v9791_v7 = vrot.slane %v23031_v42, 2 }
 0x78d   : > { %16471 = vmatprep.mubr.msk.f32.mxu1 %vm25706_vm13, %v23277_v28  ;;  %vm25720_vm13 = vmmov %vm25684_vm3 }
 0x78e   : > { %vm25735_vm15 = vmmov %vm25685_vm0 }
 0x78f   : > { %v9784_v14 = vsel %vm25735_vm15, %v9781_v26, %v9783_v55  ;;  %vm25737_vm9 = vmmov %vm25685_vm0  ;;  %v9792_v26 = vsel %vm25685_vm0, %v9789_v4, %v9791_v7 }
 0x790   : > { %16472 = vmatmul.mubr.msk.f32.gmra.mrb[50].mxu1 %vm25708_vm14, %v23283_v50  ;;  %vm25722_vm14 = vmmov %vm25684_vm3  ;;  %v9786_v5 = vsel %vm25737_vm9, %v9783_v55, %v9785_v30  ;;  %v13943_v55 = vld [vmem:[%s24462_s5 + $0x50] sm:$0xff] }
 0x791   : > { %16474 = vmatprep.mubr.msk.f32.mxu1 %vm25710_vm7, %v23289_v40  ;;  %vm25724_vm7 = vmmov %vm25684_vm3 }
 0x792   : > { %vm25739_vm5 = vmmov %vm25685_vm0 }
 0x793   : > { %v9788_v44 = vsel %vm25739_vm5, %v9785_v30, %v9787_v19  ;;  %vm25741_vm4 = vmmov %vm25685_vm0  ;;  %v17052_v30 = vpack.c.bf16 %v13944_v39, %v13943_v55  ;;  %v10151_v39 = vrot.slane %v23033_v1, 2  ;;  %v10450_v1 = vrot.slane %v22840_v23, 3 }
 0x794   : > { %16475 = vmatmul.mubr.msk.f32.gmra.mrb[52].mxu1 %vm25712_vm6, %v23295_v62  ;;  %vm25726_vm6 = vmmov %vm25684_vm3  ;;  %v9790_v25 = vsel %vm25741_vm4, %v9787_v19, %v9789_v4  ;;  %v10456_v23 = vrot.slane %v22858_v21, 3  ;;  %v25814_v19 = vld [vmem:[#allocation76_spill] sm:$0xff] }
 0x795   : > { %16477 = vmatprep.mubr.msk.f32.mxu1 %vm25684_vm3, %v23301_v35  ;;  %vm25743_vm12 = vmmov %vm25684_vm3  ;;  %v10482_v4 = vrot.slane %v25814_v19, 3 }
 0x796   : > { %vm25745_vm1 = vmmov %vm25684_vm3 }
 0x797   : > { %vm25747_vm2 = vmmov %vm25745_vm1 }
 0x798   : > { %16478 = vmatmul.mubr.msk.f32.gmra.mrb[54].mxu1 %vm25714_vm10, %v23307_v22  ;;  %vm25728_vm10 = vmmov %vm25684_vm3 }
 0x799   : > { %16480 = vmatprep.mubr.msk.f32.mxu1 %vm25716_vm11, %v23313_v33  ;;  %vm25730_vm11 = vmmov %vm25684_vm3 }
 0x79a   : > { %vm25749_vm15 = vmmov %vm25745_vm1 }
 0x79b   : > { %vm25751_vm9 = vmmov %vm25745_vm1 }
 0x79c   : > { %16481 = vmatmul.mubr.msk.f32.gmra.mrb[56].mxu1 %vm25718_vm8, %v23319_v48  ;;  %vm25732_vm8 = vmmov %vm25684_vm3 }
 0x79d   : > { %16483 = vmatprep.mubr.msk.f32.mxu1 %vm25720_vm13, %v23325_v43  ;;  %vm25734_vm13 = vmmov %vm25684_vm3 }
 0x79e   : > { %vm25753_vm5 = vmmov %vm25745_vm1 }
 0x79f   : > { %vm25755_vm4 = vmmov %vm25745_vm1 }
 0x7a0   : > { %16484 = vmatmul.mubr.msk.f32.gmra.mrb[58].mxu1 %vm25722_vm14, %v23331_v61  ;;  %vm25736_vm14 = vmmov %vm25684_vm3 }
 0x7a1   : > { %16486 = vmatprep.mubr.msk.f32.mxu1 %vm25724_vm7, %v9770_v3  ;;  %vm25738_vm7 = vmmov %vm25684_vm3 }
 0x7a2   : > { %vm25757_vm0 = vmmov %vm25745_vm1 }
 0x7a4   : > { %16487 = vmatmul.mubr.msk.f32.gmra.mrb[60].mxu1 %vm25726_vm6, %v9772_v15  ;;  %vm25740_vm6 = vmmov %vm25684_vm3 }
 0x7a5   : > { %16489 = vmatprep.mubr.msk.f32.mxu1 %vm25684_vm3, %v9774_v13 }
 0x7a8   : > { %16490 = vmatmul.mubr.msk.f32.gmra.mrb[62].mxu1 %vm25728_vm10, %v9776_v36  ;;  %vm25742_vm10 = vmmov %vm25684_vm3 }
 0x7a9   : > { %16492 = vmatprep.mubr.msk.f32.mxu1 %vm25730_vm11, %v9778_v49  ;;  %vm25744_vm11 = vmmov %vm25684_vm3 }
 0x7ac   : > { %16493 = vmatmul.mubr.msk.f32.gmra.mrb[64].mxu1 %vm25732_vm8, %v9780_v52  ;;  %vm25746_vm8 = vmmov %vm25745_vm1 }
 0x7ad   : > { %16495 = vmatprep.mubr.msk.f32.mxu1 %vm25734_vm13, %v9782_v24  ;;  %vm25748_vm13 = vmmov %vm25745_vm1 }
 0x7b0   : > { %16496 = vmatmul.mubr.msk.f32.gmra.mrb[66].mxu1 %vm25736_vm14, %v9784_v14  ;;  %vm25750_vm14 = vmmov %vm25745_vm1 }
 0x7b1   : > { %16498 = vmatprep.mubr.msk.f32.mxu1 %vm25738_vm7, %v9786_v5  ;;  %vm25752_vm7 = vmmov %vm25745_vm1 }
 0x7b4   : > { %16499 = vmatmul.mubr.msk.f32.gmra.mrb[68].mxu1 %vm25740_vm6, %v9788_v44  ;;  %vm25754_vm6 = vmmov %vm25745_vm1 }
 0x7b5   : > { %16501 = vmatprep.mubr.msk.f32.mxu1 %vm25684_vm3, %v9790_v25  ;;  %vm25756_vm3 = vmmov %vm25745_vm1 }
 0x7b8   : > { %16502 = vmatmul.mubr.msk.f32.gmra.mrb[70].mxu1 %vm25742_vm10, %v9792_v26  ;;  %vm25758_vm10 = vmmov %vm25757_vm0 }
 0x7b9   : > { %16508 = vmatprep.mubr.msk.f32.mxu1 %vm25743_vm12, %v23203_v51  ;;  %vm25759_vm12 = vmmov %vm25757_vm0  ;;  %v10153_v51 = vrot.slane %v23028_v45, 2 }
 0x7bc   : > { %16509 = vmatmul.mubr.msk.f32.vlgmr.msra.gmra.mrb[36].mxu1 %vm25744_vm11, %v23211_v20  ;;  %vm25760_vm11 = vmmov %vm25757_vm0  ;;  %v10452_v20 = vrot.slane %v22842_v53, 3  ;;  %v10458_v53 = vrot.slane %v22872_v0, 3 }
 0x7bd   : > { %16511 = vmatprep.mubr.msk.f32.mxu1 %vm25745_vm1, %v23217_v8  ;;  %17051 = vmatpush3.bf16.msra.mxu1 %v23197_v2  ;;  %vm25761_vm1 = vmmov %vm25757_vm0  ;;  %v10454_v8 = vrot.slane %v22856_v11, 3 }
 0x7be   : > { %17053 = vmatprep.subr.bf16.mxu1 %v17052_v30 }
 0x7c0   : > { %16512 = vmatmul.mubr.msk.f32.gmra.mrb[38].mxu1 %vm25746_vm8, %v23223_v47  ;;  %vm25762_vm8 = vmmov %vm25757_vm0 }
 0x7c1   : > { %16514 = vmatprep.mubr.msk.f32.mxu1 %vm25747_vm2, %v23229_v16  ;;  %vm25763_vm2 = vmmov %vm25757_vm0 }
 0x7c4   : > { %16515 = vmatmul.mubr.msk.f32.gmra.mrb[40].mxu1 %vm25748_vm13, %v23235_v56  ;;  %vm25764_vm13 = vmmov %vm25757_vm0 }
 0x7c5   : > { %16517 = vmatprep.mubr.msk.f32.mxu1 %vm25749_vm15, %v23241_v41  ;;  %vm25765_vm15 = vmmov %vm25757_vm0  ;;  %v10460_v41 = vrot.slane %v22874_v34, 3 }
 0x7c8   : > { %16518 = vmatmul.mubr.msk.f32.gmra.mrb[42].mxu1 %vm25750_vm14, %v23247_v57  ;;  %vm25766_vm14 = vmmov %vm25757_vm0  ;;  %v10462_v57 = vrot.slane %v22888_v27, 3 }
 0x7c9   : > { %16520 = vmatprep.mubr.msk.f32.mxu1 %vm25751_vm9, %v23253_v59  ;;  %vm25767_vm9 = vmmov %vm25757_vm0  ;;  %v10464_v59 = vrot.slane %v22890_v32, 3 }
 0x7cc   : > { %16521 = vmatmul.mubr.msk.f32.gmra.mrb[44].mxu1 %vm25752_vm7, %v23259_v12  ;;  %vm25768_vm7 = vmmov %vm25757_vm0  ;;  %v10466_v12 = vrot.slane %v22900_v31, 3 }
 0x7cd   : > { %16523 = vmatprep.mubr.msk.f32.mxu1 %vm25753_vm5, %v23265_v38  ;;  %vm25769_vm5 = vmmov %vm25757_vm0  ;;  %v10468_v38 = vrot.slane %v22902_v54, 3 }
 0x7d0   : > { %16524 = vmatmul.mubr.msk.f32.gmra.mrb[46].mxu1 %vm25754_vm6, %v23271_v6  ;;  %vm25770_vm6 = vmmov %vm25757_vm0 }
 0x7d1   : > { %16526 = vmatprep.mubr.msk.f32.mxu1 %vm25755_vm4, %v23277_v28  ;;  %vm25771_vm4 = vmmov %vm25757_vm0  ;;  %v10470_v28 = vrot.slane %v22912_v29, 3 }
 0x7d4   : > { %16527 = vmatmul.mubr.msk.f32.gmra.mrb[48].mxu1 %vm25756_vm3, %v23283_v50  ;;  %vm25772_vm3 = vmmov %vm25757_vm0 }
 0x7d5   : > { %16529 = vmatprep.mubr.msk.f32.mxu1 %vm25757_vm0, %v23289_v40  ;;  %v10472_v40 = vrot.slane %v22914_v63, 3 }
 0x7d8   : > { %16530 = vmatmul.mubr.msk.f32.gmra.mrb[50].mxu1 %vm25758_vm10, %v23295_v62  ;;  %vm25773_vm10 = vmmov %vm25757_vm0 }
 0x7d9   : > { %16532 = vmatprep.mubr.msk.f32.mxu1 %vm25759_vm12, %v23301_v35  ;;  %vm25774_vm12 = vmmov %vm25757_vm0  ;;  %v10474_v35 = vrot.slane %v22924_v18, 3 }
 0x7dc   : > { %16533 = vmatmul.mubr.msk.f32.gmra.mrb[52].mxu1 %vm25760_vm11, %v23307_v22  ;;  %vm25775_vm11 = vmmov %vm25757_vm0 }
 0x7dd   : > { %16535 = vmatprep.mubr.msk.f32.mxu1 %vm25761_vm1, %v23313_v33  ;;  %vm25776_vm1 = vcmask 1045504   ;;  %v10476_v33 = vrot.slane %v22926_v37, 3 }
 0x7e0   : > { %16536 = vmatmul.mubr.msk.f32.gmra.mrb[54].mxu1 %vm25762_vm8, %v23319_v48  ;;  %vm25777_vm8 = vmmov %vm25757_vm0 }
 0x7e1   : > { %16538 = vmatprep.mubr.msk.f32.mxu1 %vm25763_vm2, %v23325_v43  ;;  %vm25778_vm2 = vmmov %vm25776_vm1  ;;  %v10478_v43 = vrot.slane %v22936_v58, 3 }
 0x7e4   : > { %16539 = vmatmul.mubr.msk.f32.gmra.mrb[56].mxu1 %vm25764_vm13, %v23331_v61  ;;  %vm25779_vm13 = vmmov %vm25757_vm0 }
 0x7e5   : > { %16541 = vmatprep.mubr.msk.f32.mxu1 %vm25765_vm15, %v9770_v3  ;;  %vm25780_vm15 = vcmask 1044480   ;;  %v25811_v3 = vld [vmem:[#allocation85_spill] sm:$0xff] }
 0x7e8   : > { %16542 = vmatmul.mubr.msk.f32.gmra.mrb[58].mxu1 %vm25766_vm14, %v9772_v15  ;;  %vm25781_vm14 = vmmov %vm25757_vm0  ;;  %v10480_v15 = vrot.slane %v25811_v3, 3 }
 0x7e9   : > { %16544 = vmatprep.mubr.msk.f32.mxu1 %vm25767_vm9, %v9774_v13  ;;  %vm25782_vm9 = vmmov %vm25780_vm15 }
 0x7ec   : > { %16545 = vmatmul.mubr.msk.f32.gmra.mrb[60].mxu1 %vm25768_vm7, %v9776_v36  ;;  %v10152_v36 = vsel %vm25776_vm1, %v9791_v7, %v10151_v39  ;;  %vm25783_vm7 = vmmov %vm25757_vm0 }
 0x7ed   : > { %16547 = vmatprep.mubr.msk.f32.mxu1 %vm25769_vm5, %v9778_v49  ;;  %v10443_v49 = vrot.slane %v22800_v60, 3  ;;  %vm25784_vm5 = vmmov %vm25782_vm9 }
 0x7f0   : > { %16548 = vmatmul.mubr.msk.f32.gmra.mrb[62].mxu1 %vm25770_vm6, %v9780_v52  ;;  %v10444_v52 = vrot.slane %v22802_v46, 3  ;;  %v10448_v46 = vrot.slane %v22824_v9, 3  ;;  %vm25785_vm6 = vmmov %vm25757_vm0 }
 0x7f1   : > { %16550 = vmatprep.mubr.msk.f32.mxu1 %vm25771_vm4, %v9782_v24  ;;  %v10154_v24 = vsel %vm25778_vm2, %v10151_v39, %v10153_v51  ;;  %vm25786_vm4 = vmmov %vm25784_vm5  ;;  %v25820_v39 = vld [vmem:[#allocation87_spill] sm:$0xff] }
 0x7f2   : > { %v10445_v60 = vsel %vm25780_vm15, %v10443_v49, %v10444_v52  ;;  %v10451_v9 = vsel %vm25786_vm4, %v10448_v46, %v10450_v1  ;;  %v10486_v51 = vrot.slane %v25820_v39, 3  ;;  %v25821_v49 = vld [vmem:[#allocation77_spill] sm:$0xff] }
 0x7f4   : > { %16551 = vmatmul.mubr.msk.f32.gmra.mrb[64].mxu1 %vm25772_vm3, %v9784_v14  ;;  %v10446_v14 = vrot.slane %v22822_v17, 3  ;;  %vm25787_vm3 = vmmov %vm25757_vm0 }
 0x7f5   : > { %16553 = vmatprep.mubr.msk.f32.mxu1 %vm25757_vm0, %v9786_v5  ;;  %v13981_v5 = vld [vmem:[%s24462_s5 + $0x60] sm:$0xff]  ;;  %vm25788_vm0 = vmmov %vm25786_vm4 }
 0x7f6   : > { %v10447_v17 = vsel %vm25782_vm9, %v10444_v52, %v10446_v14  ;;  %v10449_v2 = vsel %vm25784_vm5, %v10446_v14, %v10448_v46  ;;  %v10453_v47 = vsel %vm25788_vm0, %v10450_v1, %v10452_v20  ;;  %vm25792_vm1 = vmmov %vm25788_vm0  ;;  %v10469_v50 = vsel %vm25788_vm0, %v10466_v12, %v10468_v38  ;;  %v25824_v14 = vld [vmem:[#allocation88_spill] sm:$0xff] }
 0x7f7   : > { %v10457_v56 = vsel %vm25792_vm1, %v10454_v8, %v10456_v23  ;;  %vm25794_vm2 = vmmov %vm25788_vm0  ;;  %v10488_v52 = vrot.slane %v25821_v49, 3  ;;  %v25830_v1 = vld [vmem:[#allocation92_spill] sm:$0xff] }
 0x7f8   : > { %16554 = vmatmul.mubr.msk.f32.gmra.mrb[66].mxu1 %vm25773_vm10, %v9788_v44  ;;  %v13982_v44 = vld [vmem:[%s24462_s5 + $0x68] sm:$0xff]  ;;  %vm25789_vm10 = vmmov %vm25787_vm3  ;;  %v10459_v11 = vsel %vm25794_vm2, %v10456_v23, %v10458_v53  ;;  %v25836_v23 = vld [vmem:[#allocation94_spill] sm:$0xff] }
 0x7f9   : > { %16556 = vmatprep.mubr.msk.f32.mxu1 %vm25774_vm12, %v9790_v25  ;;  %v23451_v25 = vpack.c.bf16 %v13982_v44, %v13981_v5  ;;  %vm25790_vm12 = vmmov %vm25788_vm0  ;;  %v10490_v5 = vrot.slane %v25824_v14, 3 }
 0x7fa   : > { %v10455_v16 = vsel %vm25790_vm12, %v10452_v20, %v10454_v8  ;;  %vm25796_vm15 = vmmov %vm25788_vm0 }
 0x7fb   : > { %v10461_v21 = vsel %vm25796_vm15, %v10458_v53, %v10460_v41  ;;  %vm25798_vm9 = vmmov %vm25788_vm0 }
 0x7fc   : > { %16557 = vmatmul.mubr.msk.f32.gmra.mrb[68].mxu1 %vm25775_vm11, %v9792_v26  ;;  %vm25791_vm11 = vmmov %vm25787_vm3  ;;  %v10463_v0 = vsel %vm25798_vm9, %v10460_v41, %v10462_v57  ;;  %v25817_v26 = vld [vmem:[#allocation86_spill] sm:$0xff] }
 0x7fd   : > { %16559 = vmatprep.mubr.msk.f32.mxu1 %vm25777_vm8, %v10152_v36  ;;  %vm25793_vm8 = vmmov %vm25787_vm3  ;;  %v10484_v55 = vrot.slane %v25817_v26, 3 }
 0x7fe   : > { %vm25800_vm5 = vmmov %vm25788_vm0 }
 0x7ff   : > { %v10465_v34 = vsel %vm25800_vm5, %v10462_v57, %v10464_v59  ;;  %vm25802_vm4 = vmmov %vm25788_vm0  ;;  %v10485_v36 = vsel %vm25788_vm0, %v10482_v4, %v10484_v55  ;;  %v25842_v57 = vld [vmem:[#allocation96_spill] sm:$0xff] }
 0x800   : > { %16560 = vmatmul.mubr.msk.f32.gmra.mrb[70].mxu1 %vm25779_vm13, %v10154_v24  ;;  %vm25795_vm13 = vmmov %vm25787_vm3  ;;  %v10467_v6 = vsel %vm25802_vm4, %v10464_v59, %v10466_v12 }
 0x801   : > { %16566 = vmatprep.mubr.msk.f32.mxu1 %vm25781_vm14, %v10445_v60  ;;  %vm25797_vm14 = vmmov %vm25787_vm3  ;;  %v25827_v60 = vld [vmem:[#allocation91_spill] sm:$0xff] }
 0x802   : > { %vm25804_vm12 = vmmov %vm25788_vm0  ;;  %v10492_v46 = vrot.slane %v25827_v60, 3 }
 0x803   : > { %v10471_v62 = vsel %vm25804_vm12, %v10468_v38, %v10470_v28  ;;  %vm25806_vm1 = vmmov %vm25788_vm0  ;;  %v10506_v38 = vrot.slane %v23019_v10, 3 }
 0x804   : > { %16567 = vmatmul.mubr.msk.f32.vlgmr.msra.gmra.mrb[36].mxu1 %vm25783_vm7, %v10447_v17  ;;  %vm25799_vm7 = vmmov %vm25787_vm3  ;;  %v10473_v22 = vsel %vm25806_vm1, %v10470_v28, %v10472_v40  ;;  %v25848_v28 = vld [vmem:[#allocation98_spill] sm:$0xff] }
 0x805   : > { %16569 = vmatprep.mubr.msk.f32.mxu1 %vm25785_vm6, %v10449_v2  ;;  %17055 = vmatpush3.bf16.msra.mxu1 %v17052_v30  ;;  %vm25801_vm6 = vmmov %vm25787_vm3  ;;  %v10494_v2 = vrot.slane %v25830_v1, 3 }
 0x806   : > { %17057 = vmatprep.subr.bf16.mxu1 %v23451_v25  ;;  %vm25808_vm2 = vmmov %vm25788_vm0 }
 0x807   : > { %v10475_v48 = vsel %vm25808_vm2, %v10472_v40, %v10474_v35  ;;  %vm25810_vm15 = vmmov %vm25788_vm0 }
 0x808   : > { %16570 = vmatmul.mubr.msk.f32.gmra.mrb[38].mxu1 %vm25787_vm3, %v10451_v9  ;;  %v10477_v61 = vsel %vm25810_vm15, %v10474_v35, %v10476_v33  ;;  %vm25813_vm9 = vmmov %vm25788_vm0  ;;  %v25833_v9 = vld [vmem:[#allocation93_spill] sm:$0xff]  ;;  %v25854_v35 = vrot.slane %v23031_v42, 3 }
 0x809   : > { %16572 = vmatprep.mubr.msk.f32.mxu1 %vm25789_vm10, %v10453_v47  ;;  %vm25803_vm10 = vmmov %vm25787_vm3  ;;  %v10479_v13 = vsel %vm25813_vm9, %v10476_v33, %v10478_v43  ;;  %v10496_v8 = vrot.slane %v25833_v9, 3  ;;  %v18096_v33 = vld [vmem:[#allocation3 + $0x10] sm:$0xff] }
 0x80a   : > { %vm25816_vm5 = vmmov %vm25788_vm0 }
 0x80b   : > { %v10481_v7 = vsel %vm25816_vm5, %v10478_v43, %v10480_v15  ;;  %vm25819_vm4 = vmmov %vm25788_vm0  ;;  %v18097_v43 = vld [vmem:[#allocation3 + $0x18] sm:$0xff] }
 0x80c   : > { %16573 = vmatmul.mubr.msk.f32.gmra.mrb[40].mxu1 %vm25791_vm11, %v10455_v16  ;;  %vm25805_vm11 = vmmov %vm25787_vm3  ;;  %v10483_v30 = vsel %vm25819_vm4, %v10480_v15, %v10482_v4  ;;  %v10498_v16 = vrot.slane %v25836_v23, 3  ;;  %v25857_v15 = vld [vmem:[#allocation78_spill] sm:$0xff] }
 0x80d   : > { %16575 = vmatprep.mubr.msk.f32.mxu1 %vm25793_vm8, %v10457_v56  ;;  %vm25807_vm8 = vmmov %vm25787_vm3  ;;  %v25839_v56 = vld [vmem:[#allocation95_spill] sm:$0xff] }
 0x80e   : > { %vm25823_vm12 = vmmov %vm25788_vm0  ;;  %v10500_v41 = vrot.slane %v25839_v56, 3 }
 0x80f   : > { %v10487_v24 = vsel %vm25823_vm12, %v10484_v55, %v10486_v51  ;;  %vm25826_vm1 = vmmov %vm25788_vm0  ;;  %v14020_v55 = vld [vmem:[%s24462_s5 + $0x78] sm:$0xff] }
 0x810   : > { %16576 = vmatmul.mubr.msk.f32.gmra.mrb[42].mxu1 %vm25795_vm13, %v10459_v11  ;;  %vm25809_vm13 = vmmov %vm25787_vm3  ;;  %v10489_v44 = vsel %vm25826_vm1, %v10486_v51, %v10488_v52  ;;  %v10501_v59 = vsel %vm25788_vm0, %v10498_v16, %v10500_v41 }
 0x811   : > { %16578 = vmatprep.mubr.msk.f32.mxu1 %vm25797_vm14, %v10461_v21  ;;  %vm25812_vm14 = vmmov %vm25787_vm3  ;;  %v10502_v21 = vrot.slane %v25842_v57, 3 }
 0x812   : > { %vm25829_vm2 = vmmov %vm25788_vm0 }
 0x813   : > { %v10491_v17 = vsel %vm25829_vm2, %v10488_v52, %v10490_v5  ;;  %vm25832_vm15 = vmmov %vm25788_vm0 }
 0x814   : > { %16579 = vmatmul.mubr.msk.f32.gmra.mrb[44].mxu1 %vm25799_vm7, %v10463_v0  ;;  %vm25815_vm7 = vmmov %vm25787_vm3  ;;  %v10493_v20 = vsel %vm25832_vm15, %v10490_v5, %v10492_v46  ;;  %v25843_v0 = vld [vmem:[#allocation97_spill] sm:$0xff] }
 0x815   : > { %16581 = vmatprep.mubr.msk.f32.mxu1 %vm25801_vm6, %v10465_v34  ;;  %vm25818_vm6 = vmmov %vm25787_vm3  ;;  %v10504_v12 = vrot.slane %v25843_v0, 3 }
 0x816   : > { %vm25835_vm9 = vmmov %vm25788_vm0 }
 0x817   : > { %v10495_v47 = vsel %vm25835_vm9, %v10492_v46, %v10494_v2  ;;  %vm25838_vm5 = vmmov %vm25788_vm0 }
 0x818   : > { %16582 = vmatmul.mubr.msk.f32.gmra.mrb[46].mxu1 %vm25787_vm3, %v10467_v6  ;;  %v10497_v53 = vsel %vm25838_vm5, %v10494_v2, %v10496_v8  ;;  %vm25841_vm4 = vmmov %vm25788_vm0  ;;  %v23580_v2 = vld [vmem:[#allocation3 + $0x38] sm:$0xff] }
 0x819   : > { %16584 = vmatprep.mubr.msk.f32.mxu1 %vm25803_vm10, %v10469_v50  ;;  %vm25822_vm10 = vmmov %vm25787_vm3  ;;  %v10499_v11 = vsel %vm25841_vm4, %v10496_v8, %v10498_v16  ;;  %v10508_v50 = vrot.slane %v25848_v28, 3  ;;  %vm25861_vm4 = vcmask 1043456  }
 0x81a   : > { %vm25845_vm12 = vmmov %vm25788_vm0 }
 0x81b   : > { %v10503_v34 = vsel %vm25845_vm12, %v10500_v41, %v10502_v21  ;;  %vm25847_vm1 = vmmov %vm25788_vm0  ;;  %v23598_v41 = vld [vmem:[#allocation3 + $0x48] sm:$0xff] }
 0x81c   : > { %16585 = vmatmul.mubr.msk.f32.gmra.mrb[48].mxu1 %vm25805_vm11, %v10471_v62  ;;  %vm25825_vm11 = vmmov %vm25787_vm3  ;;  %v10505_v6 = vsel %vm25847_vm1, %v10502_v21, %v10504_v12  ;;  %v23606_v21 = vld [vmem:[#allocation3 + $0x50] sm:$0xff] }
 0x81d   : > { %16587 = vmatprep.mubr.msk.f32.mxu1 %vm25807_vm8, %v10473_v22  ;;  %vm25828_vm8 = vmmov %vm25787_vm3 }
 0x81e   : > { %vm25850_vm2 = vmmov %vm25788_vm0 }
 0x81f   : > { %v10507_v40 = vsel %vm25850_vm2, %v10504_v12, %v10506_v38  ;;  %vm25852_vm15 = vmmov %vm25788_vm0 }
 0x820   : > { %16588 = vmatmul.mubr.msk.f32.gmra.mrb[50].mxu1 %vm25809_vm13, %v10475_v48  ;;  %vm25831_vm13 = vmmov %vm25787_vm3  ;;  %v10509_v62 = vsel %vm25852_vm15, %v10506_v38, %v10508_v50  ;;  %v10872_v48 = vrot.slane %v18096_v33, 4  ;;  %v10897_v33 = vrot.slane %v22902_v54, 4 }
 0x821   : > { %16590 = vmatprep.mubr.msk.f32.mxu1 %vm25812_vm14, %v10477_v61  ;;  %vm25834_vm14 = vmmov %vm25787_vm3  ;;  %v10873_v61 = vrot.slane %v18097_v43, 4  ;;  %v10901_v43 = vrot.slane %v22914_v63, 4 }
 0x822   : > { %vm25855_vm9 = vmmov %vm25788_vm0 }
 0x823   : > { %v10511_v22 = vsel %vm25855_vm9, %v10508_v50, %v25854_v35  ;;  %vm25858_vm5 = vmmov %vm25787_vm3  ;;  %v10874_v51 = vsel %vm25861_vm4, %v10872_v48, %v10873_v61  ;;  %v10891_v50 = vrot.slane %v22888_v27, 4  ;;  %v10899_v48 = vrot.slane %v22912_v29, 4 }
 0x824   : > { %16591 = vmatmul.mubr.msk.f32.gmra.mrb[52].mxu1 %vm25815_vm7, %v10479_v13  ;;  %vm25837_vm7 = vmmov %vm25787_vm3  ;;  %v23554_v13 = vld [vmem:[#allocation3 + $0x20] sm:$0xff] }
 0x825   : > { %16593 = vmatprep.mubr.msk.f32.mxu1 %vm25818_vm6, %v10481_v7  ;;  %vm25840_vm6 = vmmov %vm25787_vm3  ;;  %v10875_v4 = vrot.slane %v23554_v13, 4  ;;  %v14019_v7 = vld [vmem:[%s24462_s5 + $0x70] sm:$0xff] }
 0x826   : > { %vm25862_vm0 = vmmov %vm25861_vm4 }
 0x827   : > { %v10876_v5 = vsel %vm25862_vm0, %v10873_v61, %v10875_v4  ;;  %vm25864_vm12 = vmmov %vm25862_vm0  ;;  %v10903_v61 = vrot.slane %v22924_v18, 4 }
 0x828   : > { %16594 = vmatmul.mubr.msk.f32.gmra.mrb[54].mxu1 %vm25787_vm3, %v10483_v30  ;;  %v25859_v30 = vld [vmem:[#allocation80_spill] sm:$0xff]  ;;  %vm25866_vm1 = vmmov %vm25862_vm0 }
 0x829   : > { %16596 = vmatprep.mubr.msk.f32.mxu1 %vm25822_vm10, %v10485_v36  ;;  %vm25844_vm10 = vmmov %vm25787_vm3  ;;  %v23566_v36 = vld [vmem:[#allocation3 + $0x28] sm:$0xff] }
 0x82a   : > { %v10877_v52 = vrot.slane %v23566_v36, 4  ;;  %vm25868_vm2 = vmmov %vm25862_vm0 }
 0x82b   : > { %vm25870_vm15 = vmmov %vm25862_vm0 }
 0x82c   : > { %16597 = vmatmul.mubr.msk.f32.gmra.mrb[56].mxu1 %vm25825_vm11, %v10487_v24  ;;  %vm25846_vm11 = vmmov %vm25787_vm3  ;;  %v23570_v24 = vpack.c.bf16 %v14020_v55, %v14019_v7  ;;  %v10909_v7 = vrot.slane %v25811_v3, 4  ;;  %v10911_v55 = vrot.slane %v25814_v19, 4 }
 0x82d   : > { %16599 = vmatprep.mubr.msk.f32.mxu1 %vm25828_vm8, %v10489_v44  ;;  %vm25849_vm8 = vmmov %vm25787_vm3  ;;  %v23573_v44 = vld [vmem:[#allocation3 + $0x30] sm:$0xff] }
 0x82e   : > { %v10879_v46 = vrot.slane %v23573_v44, 4  ;;  %vm25872_vm9 = vmmov %vm25862_vm0 }
 0x82f   : > { %vm25876_vm4 = vmmov %vm25862_vm0 }
 0x830   : > { %16600 = vmatmul.mubr.msk.f32.gmra.mrb[58].mxu1 %vm25831_vm13, %v10491_v17  ;;  %vm25851_vm13 = vmmov %vm25787_vm3  ;;  %v23578_v17 = vsel %vm25864_vm12, %v10875_v4, %v10877_v52  ;;  %v23588_v8 = vsel %vm25866_vm1, %v10877_v52, %v10879_v46  ;;  %v10907_v4 = vrot.slane %v22936_v58, 4  ;;  %v10917_v52 = vrot.slane %v25821_v49, 4 }
 0x831   : > { %16602 = vmatprep.mubr.msk.f32.mxu1 %vm25834_vm14, %v10493_v20  ;;  %vm25853_vm14 = vmmov %vm25787_vm3  ;;  %v10881_v20 = vrot.slane %v23580_v2, 4 }
 0x832   : > { %vm25878_vm12 = vmmov %vm25862_vm0 }
 0x833   : > { %vm25880_vm1 = vmmov %vm25862_vm0 }
 0x834   : > { %16603 = vmatmul.mubr.msk.f32.gmra.mrb[60].mxu1 %vm25837_vm7, %v10495_v47  ;;  %vm25856_vm7 = vmmov %vm25787_vm3  ;;  %v23590_v47 = vld [vmem:[#allocation3 + $0x40] sm:$0xff] }
 0x835   : > { %16605 = vmatprep.mubr.msk.f32.mxu1 %vm25840_vm6, %v10497_v53  ;;  %vm25860_vm6 = vmmov %vm25787_vm3  ;;  %v10883_v16 = vrot.slane %v23590_v47, 4  ;;  %v23596_v53 = vsel %vm25868_vm2, %v10879_v46, %v10881_v20 }
 0x836   : > { %vm25882_vm2 = vmmov %vm25862_vm0 }
 0x838   : > { %16606 = vmatmul.mubr.msk.f32.gmra.mrb[62].mxu1 %vm25787_vm3, %v10499_v11  ;;  %v10885_v11 = vrot.slane %v23598_v41, 4 }
 0x839   : > { %16608 = vmatprep.mubr.msk.f32.mxu1 %vm25844_vm10, %v10501_v59  ;;  %vm25863_vm10 = vmmov %vm25787_vm3  ;;  %v10887_v59 = vrot.slane %v23606_v21, 4 }
 0x83a   : > { %v23612_v12 = vsel %vm25872_vm9, %v10883_v16, %v10885_v11  ;;  %vm25886_vm9 = vmmov %vm25862_vm0 }
 0x83b   : > { %v23662_v29 = vsel %vm25886_vm9, %v10899_v48, %v10901_v43  ;;  %vm25900_vm9 = vmmov %vm25862_vm0 }
 0x83c   : > { %16609 = vmatmul.mubr.msk.f32.gmra.mrb[64].mxu1 %vm25846_vm11, %v10503_v34  ;;  %vm25865_vm11 = vmmov %vm25787_vm3  ;;  %v23614_v34 = vld [vmem:[#allocation3 + $0x58] sm:$0xff] }
 0x83d   : > { %16611 = vmatprep.mubr.msk.f32.mxu1 %vm25849_vm8, %v10505_v6  ;;  %vm25867_vm8 = vmmov %vm25787_vm3  ;;  %v10889_v38 = vrot.slane %v23614_v34, 4 }
 0x83f   : > { %v23632_v35 = vsel %vm25862_vm0, %v10889_v38, %v10891_v50 }
 0x840   : > { %16612 = vmatmul.mubr.msk.f32.gmra.mrb[66].mxu1 %vm25851_vm13, %v10507_v40  ;;  %vm25869_vm13 = vmmov %vm25787_vm3  ;;  %v23626_v40 = vsel %vm25876_vm4, %v10887_v59, %v10889_v38  ;;  %v10929_v38 = vrot.slane %v25839_v56, 4 }
 0x841   : > { %16614 = vmatprep.mubr.msk.f32.mxu1 %vm25853_vm14, %v10509_v62  ;;  %vm25871_vm14 = vmmov %vm25787_vm3  ;;  %v10893_v62 = vrot.slane %v22890_v32, 4 }
 0x842   : > { %vm25890_vm4 = vmmov %vm25862_vm0 }
 0x843   : > { %v23638_v27 = vsel %vm25878_vm12, %v10891_v50, %v10893_v62  ;;  %vm25892_vm12 = vmmov %vm25862_vm0  ;;  %v10931_v50 = vrot.slane %v25842_v57, 4 }
 0x844   : > { %16615 = vmatmul.mubr.msk.f32.gmra.mrb[68].mxu1 %vm25856_vm7, %v10511_v22  ;;  %vm25873_vm7 = vmmov %vm25787_vm3  ;;  %v10895_v22 = vrot.slane %v22900_v31, 4  ;;  %v23686_v58 = vsel %vm25892_vm12, %v10907_v4, %v10909_v7 }
 0x845   : > { %16617 = vmatprep.mubr.msk.f32.mxu1 %vm25858_vm5, %v25857_v15  ;;  %vm25874_vm5 = vmmov %vm25862_vm0  ;;  %v10905_v15 = vrot.slane %v22926_v37, 4 }
 0x846   : > { %v23620_v6 = vsel %vm25874_vm5, %v10885_v11, %v10887_v59  ;;  %v23644_v32 = vsel %vm25880_vm1, %v10893_v62, %v10895_v22  ;;  %v23650_v31 = vsel %vm25882_vm2, %v10895_v22, %v10897_v33  ;;  %vm25888_vm5 = vmmov %vm25862_vm0  ;;  %v10925_v11 = vrot.slane %v25833_v9, 4 }
 0x847   : > { %v23668_v63 = vsel %vm25888_vm5, %v10901_v43, %v10903_v61  ;;  %v23674_v18 = vsel %vm25890_vm4, %v10903_v61, %v10905_v15  ;;  %v23680_v37 = vsel %vm25862_vm0, %v10905_v15, %v10907_v4  ;;  %vm25894_vm1 = vmmov %vm25862_vm0  ;;  %v10927_v59 = vrot.slane %v25836_v23, 4  ;;  %v25921_v43 = vld [vmem:[#allocation79_spill] sm:$0xff]  ;;  %v25923_v15 = vld [vmem:[#allocation81_spill] sm:$0xff] }
 0x848   : > { %16618 = vmatmul.mubr.msk.f32.gmra.mrb[70].mxu1 %vm25860_vm6, %v25859_v30  ;;  %vm25875_vm6 = vmmov %vm25787_vm3  ;;  %v10913_v30 = vrot.slane %v25817_v26, 4  ;;  %v23692_v3 = vsel %vm25894_vm1, %v10909_v7, %v10911_v55  ;;  %v10933_v62 = vrot.slane %v25843_v0, 4  ;;  %v10935_v22 = vrot.slane %v23019_v10, 4  ;;  %v14058_v61 = vld [vmem:[%s24462_s5 + $0x88] sm:$0xff] }
 0x849   : > { %16624 = vmatprep.mubr.msk.f32.mxu1 %vm25787_vm3, %v10874_v51  ;;  %v10915_v51 = vrot.slane %v25820_v39, 4  ;;  %vm25896_vm2 = vmmov %vm25862_vm0  ;;  %v10921_v39 = vrot.slane %v25827_v60, 4  ;;  %v11606_v7 = vrot.slane %v23606_v21, 5 }
 0x84a   : > { %v23698_v19 = vsel %vm25896_vm2, %v10911_v55, %v10913_v30  ;;  %vm25902_vm5 = vmmov %vm25862_vm0  ;;  %v11608_v55 = vrot.slane %v23614_v34, 5 }
 0x84b   : > { %v10918_v46 = vsel %vm25900_vm9, %v10915_v51, %v10917_v52  ;;  %vm25904_vm4 = vmmov %vm25862_vm0 }
 0x84c   : > { %16625 = vmatmul.mubr.msk.f32.vlgmr.msra.gmra.mrb[36].mxu1 %vm25863_vm10, %v10876_v5  ;;  %vm25877_vm10 = vmmov %vm25787_vm3  ;;  %v10919_v5 = vrot.slane %v25824_v14, 4 }
 0x84d   : > { %16627 = vmatprep.mubr.msk.f32.mxu1 %vm25865_vm11, %v23578_v17  ;;  %17059 = vmatpush3.bf16.msra.mxu1 %v23451_v25  ;;  %v23604_v25 = vsel %vm25870_vm15, %v10881_v20, %v10883_v16  ;;  %vm25879_vm11 = vmmov %vm25787_vm3  ;;  %v10923_v16 = vrot.slane %v25830_v1, 4 }
 0x84e   : > { %17061 = vmatprep.subr.bf16.mxu1 %v23570_v24  ;;  %vm25884_vm15 = vmmov %vm25862_vm0  ;;  %v10920_v20 = vsel %vm25902_vm5, %v10917_v52, %v10919_v5  ;;  %v10922_v49 = vsel %vm25904_vm4, %v10919_v5, %v10921_v39  ;;  %v23846_v5 = vld [vmem:[#allocation3 + $0x70] sm:$0xff] }
 0x84f   : > { %v23656_v54 = vsel %vm25884_vm15, %v10897_v33, %v10899_v48  ;;  %vm25898_vm15 = vmmov %vm25862_vm0  ;;  %v10924_v14 = vsel %vm25862_vm0, %v10921_v39, %v10923_v16  ;;  %v10937_v33 = vrot.slane %v25848_v28, 4  ;;  %v25919_v48 = vrot.slane %v23031_v42, 4  ;;  %v14057_v28 = vld [vmem:[%s24462_s5 + $0x80] sm:$0xff] }
 0x850   : > { %16628 = vmatmul.mubr.msk.f32.gmra.mrb[38].mxu1 %vm25867_vm8, %v23588_v8  ;;  %vm25881_vm8 = vmmov %vm25787_vm3  ;;  %v10916_v26 = vsel %vm25898_vm15, %v10913_v30, %v10915_v51  ;;  %v17064_v4 = vpack.c.bf16 %v14058_v61, %v14057_v28  ;;  %v23836_v30 = vld [vmem:[#allocation3 + $0x60] sm:$0xff]  ;;  %v23886_v28 = vld [vmem:[#allocation3 + $0xb0] sm:$0xff] }
 0x851   : > { %16630 = vmatprep.mubr.msk.f32.mxu1 %vm25869_vm13, %v23596_v53  ;;  %vm25883_vm13 = vmmov %vm25787_vm3  ;;  %v10940_v10 = vsel %vm25862_vm0, %v10937_v33, %v25919_v48  ;;  %v23881_v48 = vld [vmem:[#allocation3 + $0xa8] sm:$0xff]  ;;  %v11630_v61 = vrot.slane %v23886_v28, 5 }
 0x852   : > { %vm25906_vm12 = vmmov %vm25862_vm0 }
 0x853   : > { %v10926_v60 = vsel %vm25906_vm12, %v10923_v16, %v10925_v11  ;;  %vm25908_vm1 = vmmov %vm25862_vm0 }
 0x854   : > { %16631 = vmatmul.mubr.msk.f32.gmra.mrb[40].mxu1 %vm25871_vm14, %v23604_v25  ;;  %vm25885_vm14 = vmmov %vm25787_vm3  ;;  %v10928_v1 = vsel %vm25908_vm1, %v10925_v11, %v10927_v59  ;;  %v23856_v11 = vld [vmem:[#allocation3 + $0x80] sm:$0xff] }
 0x855   : > { %16633 = vmatprep.mubr.msk.f32.mxu1 %vm25873_vm7, %v23612_v12  ;;  %vm25887_vm7 = vmmov %vm25787_vm3 }
 0x856   : > { %vm25910_vm2 = vmmov %vm25862_vm0 }
 0x857   : > { %v10930_v9 = vsel %vm25910_vm2, %v10927_v59, %v10929_v38  ;;  %vm25912_vm15 = vmmov %vm25862_vm0 }
 0x858   : > { %16634 = vmatmul.mubr.msk.f32.gmra.mrb[42].mxu1 %vm25875_vm6, %v23620_v6  ;;  %vm25889_vm6 = vmmov %vm25787_vm3  ;;  %v10932_v23 = vsel %vm25912_vm15, %v10929_v38, %v10931_v50 }
 0x859   : > { %16636 = vmatprep.mubr.msk.f32.mxu1 %vm25787_vm3, %v23626_v40  ;;  %vm25914_vm9 = vmmov %vm25862_vm0 }
 0x85a   : > { %v10934_v56 = vsel %vm25914_vm9, %v10931_v50, %v10933_v62  ;;  %vm25916_vm5 = vmmov %vm25862_vm0  ;;  %v23866_v50 = vld [vmem:[#allocation3 + $0x90] sm:$0xff] }
 0x85b   : > { %v10936_v57 = vsel %vm25916_vm5, %v10933_v62, %v10935_v22  ;;  %vm25918_vm4 = vmmov %vm25862_vm0 }
 0x85c   : > { %16637 = vmatmul.mubr.msk.f32.gmra.mrb[44].mxu1 %vm25877_vm10, %v23632_v35  ;;  %vm25891_vm10 = vmmov %vm25787_vm3  ;;  %v10938_v0 = vsel %vm25918_vm4, %v10935_v22, %v10937_v33  ;;  %v23876_v33 = vld [vmem:[#allocation3 + $0xa0] sm:$0xff] }
 0x85d   : > { %16639 = vmatprep.mubr.msk.f32.mxu1 %vm25879_vm11, %v23638_v27  ;;  %vm25893_vm11 = vmmov %vm25787_vm3 }
 0x85e   : > { %vm25922_vm12 = vmmov %vm25787_vm3 }
 0x85f   : > { %vm25925_vm1 = vmmov %vm25787_vm3 }
 0x860   : > { %16640 = vmatmul.mubr.msk.f32.gmra.mrb[46].mxu1 %vm25881_vm8, %v23644_v32  ;;  %vm25895_vm8 = vmmov %vm25787_vm3 }
 0x861   : > { %16642 = vmatprep.mubr.msk.f32.mxu1 %vm25883_vm13, %v23650_v31  ;;  %vm25897_vm13 = vmmov %vm25787_vm3 }
 0x862   : > { %vm25927_vm2 = vmmov %vm25925_vm1 }
 0x863   : > { %vm25929_vm15 = vmmov %vm25925_vm1 }
 0x864   : > { %16643 = vmatmul.mubr.msk.f32.gmra.mrb[48].mxu1 %vm25885_vm14, %v23656_v54  ;;  %vm25899_vm14 = vmmov %vm25787_vm3 }
 0x865   : > { %16645 = vmatprep.mubr.msk.f32.mxu1 %vm25887_vm7, %v23662_v29  ;;  %vm25901_vm7 = vmmov %vm25787_vm3 }
 0x866   : > { %vm25931_vm9 = vmmov %vm25925_vm1 }
 0x867   : > { %vm25933_vm5 = vmmov %vm25925_vm1 }
 0x868   : > { %16646 = vmatmul.mubr.msk.f32.gmra.mrb[50].mxu1 %vm25889_vm6, %v23668_v63  ;;  %vm25903_vm6 = vmmov %vm25787_vm3 }
 0x869   : > { %16648 = vmatprep.mubr.msk.f32.mxu1 %vm25787_vm3, %v23674_v18  ;;  %vm25935_vm4 = vmmov %vm25925_vm1 }
 0x86a   : > { %vm25937_vm0 = vmmov %vm25925_vm1 }
 0x86c   : > { %16649 = vmatmul.mubr.msk.f32.gmra.mrb[52].mxu1 %vm25891_vm10, %v23680_v37  ;;  %vm25905_vm10 = vmmov %vm25787_vm3 }
 0x86d   : > { %16651 = vmatprep.mubr.msk.f32.mxu1 %vm25893_vm11, %v23686_v58  ;;  %vm25907_vm11 = vmmov %vm25787_vm3 }
 0x870   : > { %16652 = vmatmul.mubr.msk.f32.gmra.mrb[54].mxu1 %vm25895_vm8, %v23692_v3  ;;  %vm25909_vm8 = vmmov %vm25787_vm3 }
 0x871   : > { %16654 = vmatprep.mubr.msk.f32.mxu1 %vm25897_vm13, %v23698_v19  ;;  %vm25911_vm13 = vmmov %vm25787_vm3 }
 0x874   : > { %16655 = vmatmul.mubr.msk.f32.gmra.mrb[56].mxu1 %vm25899_vm14, %v10916_v26  ;;  %vm25913_vm14 = vmmov %vm25787_vm3 }
 0x875   : > { %16657 = vmatprep.mubr.msk.f32.mxu1 %vm25901_vm7, %v10918_v46  ;;  %vm25915_vm7 = vmmov %vm25787_vm3 }
 0x878   : > { %16658 = vmatmul.mubr.msk.f32.gmra.mrb[58].mxu1 %vm25903_vm6, %v10920_v20  ;;  %vm25917_vm6 = vmmov %vm25787_vm3 }
 0x879   : > { %16660 = vmatprep.mubr.msk.f32.mxu1 %vm25787_vm3, %v10922_v49 }
 0x87c   : > { %16661 = vmatmul.mubr.msk.f32.gmra.mrb[60].mxu1 %vm25905_vm10, %v10924_v14  ;;  %vm25920_vm10 = vmmov %vm25787_vm3 }
 0x87d   : > { %16663 = vmatprep.mubr.msk.f32.mxu1 %vm25907_vm11, %v10926_v60  ;;  %vm25924_vm11 = vmmov %vm25787_vm3 }
 0x880   : > { %16664 = vmatmul.mubr.msk.f32.gmra.mrb[62].mxu1 %vm25909_vm8, %v10928_v1  ;;  %vm25926_vm8 = vmmov %vm25925_vm1 }
 0x881   : > { %16666 = vmatprep.mubr.msk.f32.mxu1 %vm25911_vm13, %v10930_v9  ;;  %vm25928_vm13 = vmmov %vm25925_vm1 }
 0x884   : > { %16667 = vmatmul.mubr.msk.f32.gmra.mrb[64].mxu1 %vm25913_vm14, %v10932_v23  ;;  %vm25930_vm14 = vmmov %vm25925_vm1 }
 0x885   : > { %16669 = vmatprep.mubr.msk.f32.mxu1 %vm25915_vm7, %v10934_v56  ;;  %vm25932_vm7 = vmmov %vm25925_vm1 }
 0x888   : > { %16670 = vmatmul.mubr.msk.f32.gmra.mrb[66].mxu1 %vm25917_vm6, %v10936_v57  ;;  %vm25934_vm6 = vmmov %vm25925_vm1 }
 0x889   : > { %16672 = vmatprep.mubr.msk.f32.mxu1 %vm25787_vm3, %v10938_v0  ;;  %vm25936_vm3 = vmmov %vm25925_vm1 }
 0x88c   : > { %16673 = vmatmul.mubr.msk.f32.gmra.mrb[68].mxu1 %vm25920_vm10, %v10940_v10  ;;  %vm25938_vm10 = vmmov %vm25937_vm0 }
 0x88d   : > { %16675 = vmatprep.mubr.msk.f32.mxu1 %vm25922_vm12, %v25921_v43  ;;  %vm25939_vm12 = vmmov %vm25937_vm0 }
 0x890   : > { %16676 = vmatmul.mubr.msk.f32.gmra.mrb[70].mxu1 %vm25924_vm11, %v25923_v15  ;;  %vm25940_vm11 = vmmov %vm25937_vm0 }
 0x891   : > { %16682 = vmatprep.mubr.msk.f32.mxu1 %vm25925_vm1, %v23578_v17  ;;  %vm25941_vm1 = vmmov %vm25937_vm0  ;;  %v25956_v17 = vld [vmem:[#allocation82_spill] sm:$0xff] }
 0x894   : > { %16683 = vmatmul.mubr.msk.f32.vlgmr.msra.gmra.mrb[36].mxu1 %vm25926_vm8, %v23588_v8  ;;  %vm25942_vm8 = vmmov %vm25937_vm0  ;;  %v11303_v8 = vrot.slane %v25956_v17, 4 }
 0x895   : > { %16685 = vmatprep.mubr.msk.f32.mxu1 %vm25927_vm2, %v23596_v53  ;;  %17063 = vmatpush3.bf16.msra.mxu1 %v23570_v24  ;;  %vm25943_vm2 = vmmov %vm25937_vm0  ;;  %v23802_v24 = vld [vmem:[#allocation3 + $0x140] sm:$0x3f] }
 0x896   : > { %17065 = vmatprep.subr.bf16.mxu1 %v17064_v4  ;;  %v11305_v53 = vrot.slane %v23802_v24, 4 }
 0x898   : > { %16686 = vmatmul.mubr.msk.f32.gmra.mrb[38].mxu1 %vm25928_vm13, %v23604_v25  ;;  %vm25944_vm13 = vmmov %vm25937_vm0  ;;  %v25959_v25 = vrot.slane %v23028_v45, 4 }
 0x899   : > { %16688 = vmatprep.mubr.msk.f32.mxu1 %vm25929_vm15, %v23612_v12  ;;  %vm25945_vm15 = vmmov %vm25937_vm0 }
 0x89c   : > { %16689 = vmatmul.mubr.msk.f32.gmra.mrb[40].mxu1 %vm25930_vm14, %v23620_v6  ;;  %vm25946_vm14 = vmmov %vm25937_vm0  ;;  %v11595_v6 = vrot.slane %v23554_v13, 5 }
 0x89d   : > { %16691 = vmatprep.mubr.msk.f32.mxu1 %vm25931_vm9, %v23626_v40  ;;  %vm25947_vm9 = vmmov %vm25937_vm0  ;;  %v11596_v40 = vrot.slane %v23566_v36, 5 }
 0x8a0   : > { %16692 = vmatmul.mubr.msk.f32.gmra.mrb[42].mxu1 %vm25932_vm7, %v23632_v35  ;;  %vm25948_vm7 = vmmov %vm25937_vm0 }
 0x8a1   : > { %16694 = vmatprep.mubr.msk.f32.mxu1 %vm25933_vm5, %v23638_v27  ;;  %vm25949_vm5 = vmmov %vm25937_vm0  ;;  %v11598_v27 = vrot.slane %v23573_v44, 5 }
 0x8a4   : > { %16695 = vmatmul.mubr.msk.f32.gmra.mrb[44].mxu1 %vm25934_vm6, %v23644_v32  ;;  %vm25950_vm6 = vmmov %vm25937_vm0 }
 0x8a5   : > { %16697 = vmatprep.mubr.msk.f32.mxu1 %vm25935_vm4, %v23650_v31  ;;  %vm25951_vm4 = vmmov %vm25937_vm0  ;;  %v11600_v31 = vrot.slane %v23580_v2, 5 }
 0x8a8   : > { %16698 = vmatmul.mubr.msk.f32.gmra.mrb[46].mxu1 %vm25936_vm3, %v23656_v54  ;;  %vm25952_vm3 = vmmov %vm25937_vm0  ;;  %v11602_v54 = vrot.slane %v23590_v47, 5 }
 0x8a9   : > { %16700 = vmatprep.mubr.msk.f32.mxu1 %vm25937_vm0, %v23662_v29 }
 0x8ac   : > { %16701 = vmatmul.mubr.msk.f32.gmra.mrb[48].mxu1 %vm25938_vm10, %v23668_v63  ;;  %vm25953_vm10 = vmmov %vm25937_vm0  ;;  %v11604_v63 = vrot.slane %v23598_v41, 5 }
 0x8ad   : > { %16703 = vmatprep.mubr.msk.f32.mxu1 %vm25939_vm12, %v23674_v18  ;;  %vm25954_vm12 = vmmov %vm25937_vm0 }
 0x8b0   : > { %16704 = vmatmul.mubr.msk.f32.gmra.mrb[50].mxu1 %vm25940_vm11, %v23680_v37  ;;  %vm25955_vm11 = vmmov %vm25937_vm0 }
 0x8b1   : > { %16706 = vmatprep.mubr.msk.f32.mxu1 %vm25941_vm1, %v23686_v58  ;;  %vm25957_vm1 = vmmov %vm25937_vm0 }
 0x8b4   : > { %16707 = vmatmul.mubr.msk.f32.gmra.mrb[52].mxu1 %vm25942_vm8, %v23692_v3  ;;  %vm25958_vm8 = vmmov %vm25937_vm0  ;;  %v11610_v3 = vrot.slane %v23836_v30, 5 }
 0x8b5   : > { %16709 = vmatprep.mubr.msk.f32.mxu1 %vm25943_vm2, %v23698_v19  ;;  %vm25960_vm2 = vcmask 1043456   ;;  %v23841_v19 = vld [vmem:[#allocation3 + $0x68] sm:$0xff] }
 0x8b6   : > { %v11304_v12 = vsel %vm25960_vm2, %v25959_v25, %v11303_v8  ;;  %v11612_v52 = vrot.slane %v23841_v19, 5  ;;  %v23896_v25 = vld [vmem:[#allocation3 + $0xc0] sm:$0xff] }
 0x8b8   : > { %16710 = vmatmul.mubr.msk.f32.gmra.mrb[54].mxu1 %vm25944_vm13, %v10916_v26  ;;  %vm25961_vm13 = vmmov %vm25937_vm0 }
 0x8b9   : > { %16712 = vmatprep.mubr.msk.f32.mxu1 %vm25945_vm15, %v10918_v46  ;;  %vm25962_vm15 = vmmov %vm25960_vm2  ;;  %v11614_v46 = vrot.slane %v23846_v5, 5 }
 0x8ba   : > { %v11306_v35 = vsel %vm25962_vm15, %v11303_v8, %v11305_v53 }
 0x8bc   : > { %16713 = vmatmul.mubr.msk.f32.gmra.mrb[56].mxu1 %vm25946_vm14, %v10920_v20  ;;  %vm25963_vm14 = vmmov %vm25937_vm0  ;;  %v23851_v20 = vld [vmem:[#allocation3 + $0x78] sm:$0xff] }
 0x8bd   : > { %16715 = vmatprep.mubr.msk.f32.mxu1 %vm25947_vm9, %v10922_v49  ;;  %vm25964_vm9 = vcmask 1042432   ;;  %v11616_v16 = vrot.slane %v23851_v20, 5 }
 0x8be   : > { %v11597_v32 = vsel %vm25964_vm9, %v11595_v6, %v11596_v40 }
 0x8c0   : > { %16716 = vmatmul.mubr.msk.f32.gmra.mrb[58].mxu1 %vm25948_vm7, %v10924_v14  ;;  %vm25965_vm7 = vmmov %vm25937_vm0  ;;  %v11618_v14 = vrot.slane %v23856_v11, 5 }
 0x8c1   : > { %16718 = vmatprep.mubr.msk.f32.mxu1 %vm25949_vm5, %v10926_v60  ;;  %vm25966_vm5 = vmmov %vm25964_vm9  ;;  %v23861_v60 = vld [vmem:[#allocation3 + $0x88] sm:$0xff] }
 0x8c2   : > { %v11599_v45 = vsel %vm25966_vm5, %v11596_v40, %v11598_v27  ;;  %v11620_v38 = vrot.slane %v23861_v60, 5  ;;  %v23901_v40 = vld [vmem:[#allocation3 + $0xc8] sm:$0xff] }
 0x8c4   : > { %16719 = vmatmul.mubr.msk.f32.gmra.mrb[60].mxu1 %vm25950_vm6, %v10928_v1  ;;  %vm25967_vm6 = vmmov %vm25937_vm0 }
 0x8c5   : > { %16721 = vmatprep.mubr.msk.f32.mxu1 %vm25951_vm4, %v10930_v9  ;;  %vm25968_vm4 = vmmov %vm25966_vm5  ;;  %v11622_v9 = vrot.slane %v23866_v50, 5 }
 0x8c6   : > { %v11601_v29 = vsel %vm25968_vm4, %v11598_v27, %v11600_v31 }
 0x8c8   : > { %16722 = vmatmul.mubr.msk.f32.gmra.mrb[62].mxu1 %vm25952_vm3, %v10932_v23  ;;  %vm25969_vm3 = vmmov %vm25937_vm0  ;;  %v23871_v23 = vld [vmem:[#allocation3 + $0x98] sm:$0xff] }
 0x8c9   : > { %16724 = vmatprep.mubr.msk.f32.mxu1 %vm25937_vm0, %v10934_v56  ;;  %vm25970_vm0 = vmmov %vm25968_vm4  ;;  %v11624_v22 = vrot.slane %v23871_v23, 5 }
 0x8ca   : > { %v11603_v18 = vsel %vm25970_vm0, %v11600_v31, %v11602_v54  ;;  %vm25976_vm2 = vmmov %vm25970_vm0  ;;  %v11619_v1 = vsel %vm25970_vm0, %v11616_v16, %v11618_v14 }
 0x8cb   : > { %v11609_v51 = vsel %vm25976_vm2, %v11606_v7, %v11608_v55  ;;  %vm25978_vm15 = vmmov %vm25970_vm0 }
 0x8cc   : > { %16725 = vmatmul.mubr.msk.f32.gmra.mrb[64].mxu1 %vm25953_vm10, %v10936_v57  ;;  %vm25971_vm10 = vmmov %vm25957_vm1  ;;  %v11611_v26 = vsel %vm25978_vm15, %v11608_v55, %v11610_v3  ;;  %v11626_v57 = vrot.slane %v23876_v33, 5  ;;  %v23921_v55 = vld [vmem:[#allocation3 + $0xe8] sm:$0xff] }
 0x8cd   : > { %16727 = vmatprep.mubr.msk.f32.mxu1 %vm25954_vm12, %v10938_v0  ;;  %vm25972_vm12 = vmmov %vm25970_vm0 }
 0x8ce   : > { %v11605_v37 = vsel %vm25972_vm12, %v11602_v54, %v11604_v63  ;;  %vm25980_vm9 = vmmov %vm25970_vm0  ;;  %v23911_v54 = vld [vmem:[#allocation3 + $0xd8] sm:$0xff] }
 0x8cf   : > { %v11613_v39 = vsel %vm25980_vm9, %v11610_v3, %v11612_v52  ;;  %vm25982_vm5 = vmmov %vm25970_vm0 }
 0x8d0   : > { %16728 = vmatmul.mubr.msk.f32.gmra.mrb[66].mxu1 %vm25955_vm11, %v10940_v10  ;;  %vm25973_vm11 = vmmov %vm25957_vm1  ;;  %v11615_v49 = vsel %vm25982_vm5, %v11612_v52, %v11614_v46  ;;  %v11628_v10 = vrot.slane %v23881_v48, 5 }
 0x8d1   : > { %16730 = vmatprep.mubr.msk.f32.mxu1 %vm25957_vm1, %v25921_v43  ;;  %vm25974_vm1 = vmmov %vm25970_vm0 }
 0x8d2   : > { %v11607_v58 = vsel %vm25974_vm1, %v11604_v63, %v11606_v7  ;;  %vm25984_vm4 = vmmov %vm25970_vm0 }
 0x8d3   : > { %v11617_v59 = vsel %vm25984_vm4, %v11614_v46, %v11616_v16  ;;  %vm25986_vm12 = vmmov %vm25970_vm0  ;;  %v23931_v46 = vld [vmem:[#allocation3 + $0xf8] sm:$0xff] }
 0x8d4   : > { %16731 = vmatmul.mubr.msk.f32.gmra.mrb[68].mxu1 %vm25958_vm8, %v25923_v15  ;;  %vm25975_vm8 = vmmov %vm25969_vm3  ;;  %v11621_v62 = vsel %vm25986_vm12, %v11618_v14, %v11620_v38 }
 0x8d5   : > { %16733 = vmatprep.mubr.msk.f32.mxu1 %vm25961_vm13, %v11304_v12  ;;  %vm25977_vm13 = vmmov %vm25969_vm3  ;;  %v11634_v12 = vrot.slane %v23896_v25, 5 }
 0x8d6   : > { %vm25988_vm1 = vmmov %vm25970_vm0 }
 0x8d7   : > { %v11623_v56 = vsel %vm25988_vm1, %v11620_v38, %v11622_v9  ;;  %vm25990_vm2 = vmmov %vm25970_vm0  ;;  %v23941_v38 = vld [vmem:[#allocation3 + $0x108] sm:$0xff] }
 0x8d8   : > { %16734 = vmatmul.mubr.msk.f32.gmra.mrb[70].mxu1 %vm25963_vm14, %v11306_v35  ;;  %vm25979_vm14 = vmmov %vm25969_vm3  ;;  %v11625_v0 = vsel %vm25990_vm2, %v11622_v9, %v11624_v22  ;;  %v11636_v35 = vrot.slane %v23901_v40, 5 }
 0x8d9   : > { %16740 = vmatprep.mubr.msk.f32.mxu1 %vm25965_vm7, %v11597_v32  ;;  %vm25981_vm7 = vmmov %vm25969_vm3  ;;  %v23906_v32 = vld [vmem:[#allocation3 + $0xd0] sm:$0xff] }
 0x8da   : > { %vm25992_vm15 = vmmov %vm25970_vm0  ;;  %v11638_v31 = vrot.slane %v23906_v32, 5 }
 0x8db   : > { %v11627_v43 = vsel %vm25992_vm15, %v11624_v22, %v11626_v57  ;;  %vm25994_vm9 = vmmov %vm25970_vm0 }
 0x8dc   : > { %16741 = vmatmul.mubr.msk.f32.vlgmr.msra.gmra.mrb[36].mxu1 %vm25967_vm6, %v11599_v45  ;;  %vm25983_vm6 = vmmov %vm25969_vm3  ;;  %v11629_v15 = vsel %vm25994_vm9, %v11626_v57, %v11628_v10  ;;  %v23951_v57 = vld [vmem:[#allocation3 + $0x118] sm:$0xff] }
 0x8dd   : > { %16743 = vmatprep.mubr.msk.f32.mxu1 %vm25969_vm3, %v11601_v29  ;;  %17067 = vmatpush3.bf16.msra.mxu1 %v17064_v4  ;;  %v23891_v4 = vld [vmem:[#allocation3 + $0xb8] sm:$0xff]  ;;  %vm25996_vm5 = vmmov %vm25970_vm0  ;;  %v11640_v29 = vrot.slane %v23911_v54, 5 }
 0x8de   : > { %v11632_v8 = vrot.slane %v23891_v4, 5  ;;  %v11631_v53 = vsel %vm25996_vm5, %v11628_v10, %v11630_v61  ;;  %vm25998_vm4 = vmmov %vm25970_vm0 }
 0x8df   : > { %vm26000_vm12 = vmmov %vm25970_vm0 }
 0x8e0   : > { %16744 = vmatmul.mubr.msk.f32.gmra.mrb[38].mxu1 %vm25971_vm10, %v11603_v18  ;;  %vm25985_vm10 = vmmov %vm25969_vm3  ;;  %v11633_v6 = vsel %vm25998_vm4, %v11630_v61, %v11632_v8  ;;  %v11635_v27 = vsel %vm25970_vm0, %v11632_v8, %v11634_v12  ;;  %v11637_v45 = vsel %vm26000_vm12, %v11634_v12, %v11636_v35  ;;  %v23916_v18 = vld [vmem:[#allocation3 + $0xe0] sm:$0xff]  ;;  %v26020_v61 = vrot.slane %v23031_v42, 5  ;;  %v26025_v12 = vld [vmem:[#allocation84_spill] sm:$0xff] }
 0x8e1   : > { %16746 = vmatprep.mubr.msk.f32.mxu1 %vm25973_vm11, %v11605_v37  ;;  %vm25987_vm11 = vmmov %vm25969_vm3  ;;  %v11642_v7 = vrot.slane %v23916_v18, 5  ;;  %v26023_v8 = vld [vmem:[#allocation83_spill] sm:$0xff] }
 0x8e2   : > { %vm26002_vm1 = vmmov %vm25970_vm0 }
 0x8e3   : > { %v11639_v63 = vsel %vm26002_vm1, %v11636_v35, %v11638_v31  ;;  %vm26004_vm2 = vmmov %vm25970_vm0  ;;  %v12025_v35 = vrot.slane %v23566_v36, 6  ;;  %v12031_v36 = vrot.slane %v23590_v47, 6 }
 0x8e4   : > { %16747 = vmatmul.mubr.msk.f32.gmra.mrb[40].mxu1 %vm25975_vm8, %v11607_v58  ;;  %vm25989_vm8 = vmmov %vm25969_vm3  ;;  %v11641_v37 = vsel %vm26004_vm2, %v11638_v31, %v11640_v29  ;;  %v11644_v58 = vrot.slane %v23921_v55, 5  ;;  %v26029_v31 = vrot.slane %v25956_v17, 5 }
 0x8e5   : > { %16749 = vmatprep.mubr.msk.f32.mxu1 %vm25977_vm13, %v11609_v51  ;;  %vm25991_vm13 = vmmov %vm25969_vm3  ;;  %v23926_v51 = vld [vmem:[#allocation3 + $0xf0] sm:$0xff] }
 0x8e6   : > { %vm26006_vm15 = vmmov %vm25970_vm0  ;;  %v11646_v52 = vrot.slane %v23926_v51, 5 }
 0x8e7   : > { %v11643_v3 = vsel %vm26006_vm15, %v11640_v29, %v11642_v7  ;;  %vm26008_vm9 = vmmov %vm25970_vm0  ;;  %v12027_v29 = vrot.slane %v23573_v44, 6 }
 0x8e8   : > { %16750 = vmatmul.mubr.msk.f32.gmra.mrb[42].mxu1 %vm25979_vm14, %v11611_v26  ;;  %vm25993_vm14 = vmmov %vm25969_vm3  ;;  %v11645_v26 = vsel %vm26008_vm9, %v11642_v7, %v11644_v58  ;;  %v12029_v7 = vrot.slane %v23580_v2, 6 }
 0x8e9   : > { %16752 = vmatprep.mubr.msk.f32.mxu1 %vm25981_vm7, %v11613_v39  ;;  %vm25995_vm7 = vmmov %vm25969_vm3  ;;  %v11648_v39 = vrot.slane %v23931_v46, 5 }
 0x8ea   : > { %vm26010_vm5 = vmmov %vm25970_vm0 }
 0x8eb   : > { %v11647_v16 = vsel %vm26010_vm5, %v11644_v58, %v11646_v52  ;;  %vm26012_vm4 = vmmov %vm25970_vm0  ;;  %v12033_v58 = vrot.slane %v23598_v41, 6 }
 0x8ec   : > { %16753 = vmatmul.mubr.msk.f32.gmra.mrb[44].mxu1 %vm25983_vm6, %v11615_v49  ;;  %vm25997_vm6 = vmmov %vm25969_vm3  ;;  %v23936_v49 = vld [vmem:[#allocation3 + $0x100] sm:$0xff] }
 0x8ed   : > { %16755 = vmatprep.mubr.msk.f32.mxu1 %vm25969_vm3, %v11617_v59  ;;  %v11650_v14 = vrot.slane %v23936_v49, 5  ;;  %v11649_v59 = vsel %vm26012_vm4, %v11646_v52, %v11648_v39  ;;  %vm26014_vm12 = vmmov %vm25970_vm0  ;;  %v12037_v52 = vrot.slane %v23614_v34, 6 }
 0x8ee   : > { %vm26016_vm1 = vmmov %vm25970_vm0 }
 0x8ef   : > { %v11651_v9 = vsel %vm25970_vm0, %v11648_v39, %v11650_v14  ;;  %vm26018_vm2 = vmmov %vm25970_vm0  ;;  %v12041_v39 = vrot.slane %v23841_v19, 6 }
 0x8f0   : > { %16756 = vmatmul.mubr.msk.f32.gmra.mrb[46].mxu1 %vm25985_vm10, %v11619_v1  ;;  %vm25999_vm10 = vmmov %vm25969_vm3  ;;  %v11652_v1 = vrot.slane %v23941_v38, 5 }
 0x8f1   : > { %16758 = vmatprep.mubr.msk.f32.mxu1 %vm25987_vm11, %v11621_v62  ;;  %vm26001_vm11 = vmmov %vm25969_vm3  ;;  %v23946_v62 = vld [vmem:[#allocation3 + $0x110] sm:$0xff] }
 0x8f2   : > { %v11654_v22 = vrot.slane %v23946_v62, 5  ;;  %vm26021_vm15 = vmmov %vm25970_vm0 }
 0x8f3   : > { %vm26024_vm9 = vmmov %vm25969_vm3 }
 0x8f4   : > { %16759 = vmatmul.mubr.msk.f32.gmra.mrb[48].mxu1 %vm25989_vm8, %v11623_v56  ;;  %vm26003_vm8 = vmmov %vm25969_vm3  ;;  %v11653_v56 = vsel %vm26014_vm12, %v11650_v14, %v11652_v1  ;;  %v11655_v10 = vsel %vm26016_vm1, %v11652_v1, %v11654_v22  ;;  %v12045_v14 = vrot.slane %v23851_v20, 6  ;;  %v12049_v1 = vrot.slane %v23861_v60, 6 }
 0x8f5   : > { %16761 = vmatprep.mubr.msk.f32.mxu1 %vm25991_vm13, %v11625_v0  ;;  %vm26005_vm13 = vmmov %vm25969_vm3  ;;  %v11656_v0 = vrot.slane %v23951_v57, 5 }
 0x8f6   : > { %vm26028_vm5 = vmmov %vm25969_vm3 }
 0x8f7   : > { %vm26031_vm4 = vmmov %vm25969_vm3 }
 0x8f8   : > { %16762 = vmatmul.mubr.msk.f32.gmra.mrb[50].mxu1 %vm25993_vm14, %v11627_v43  ;;  %vm26007_vm14 = vmmov %vm25969_vm3  ;;  %v11657_v43 = vsel %vm26018_vm2, %v11654_v22, %v11656_v0  ;;  %v12053_v22 = vrot.slane %v23871_v23, 6 }
 0x8f9   : > { %16764 = vmatprep.mubr.msk.f32.mxu1 %vm25995_vm7, %v11629_v15  ;;  %vm26009_vm7 = vmmov %vm25969_vm3  ;;  %v11659_v15 = vsel %vm26021_vm15, %v11656_v0, %v26020_v61  ;;  %v12057_v0 = vrot.slane %v23881_v48, 6  ;;  %v12063_v61 = vrot.slane %v23896_v25, 6 }
 0x8fc   : > { %16765 = vmatmul.mubr.msk.f32.gmra.mrb[52].mxu1 %vm25997_vm6, %v11631_v53  ;;  %vm26011_vm6 = vmmov %vm25969_vm3  ;;  %v11666_v53 = vrot.slane %v23802_v24, 5 }
 0x8fd   : > { %16767 = vmatprep.mubr.msk.f32.mxu1 %vm25969_vm3, %v11633_v6  ;;  %v12024_v6 = vrot.slane %v23554_v13, 6 }
 0x900   : > { %16768 = vmatmul.mubr.msk.f32.gmra.mrb[54].mxu1 %vm25999_vm10, %v11635_v27  ;;  %vm26013_vm10 = vmmov %vm25969_vm3  ;;  %v26027_v27 = vld [vmem:[#allocation89_spill] sm:$0xff] }
 0x901   : > { %16770 = vmatprep.mubr.msk.f32.mxu1 %vm26001_vm11, %v11637_v45  ;;  %vm26015_vm11 = vmmov %vm25969_vm3 }
 0x904   : > { %16771 = vmatmul.mubr.msk.f32.gmra.mrb[56].mxu1 %vm26003_vm8, %v11639_v63  ;;  %vm26017_vm8 = vmmov %vm25969_vm3 }
 0x905   : > { %16773 = vmatprep.mubr.msk.f32.mxu1 %vm26005_vm13, %v11641_v37  ;;  %vm26019_vm13 = vmmov %vm25969_vm3 }
 0x908   : > { %16774 = vmatmul.mubr.msk.f32.gmra.mrb[58].mxu1 %vm26007_vm14, %v11643_v3  ;;  %vm26022_vm14 = vmmov %vm25969_vm3  ;;  %v12035_v3 = vrot.slane %v23606_v21, 6 }
 0x909   : > { %16776 = vmatprep.mubr.msk.f32.mxu1 %vm26009_vm7, %v11645_v26  ;;  %vm26026_vm7 = vmmov %vm25969_vm3  ;;  %v12039_v26 = vrot.slane %v23836_v30, 6 }
 0x90c   : > { %16777 = vmatmul.mubr.msk.f32.gmra.mrb[60].mxu1 %vm26011_vm6, %v11647_v16  ;;  %vm26030_vm6 = vmmov %vm25970_vm0  ;;  %v12043_v16 = vrot.slane %v23846_v5, 6 }
 0x90d   : > { %16779 = vmatprep.mubr.msk.f32.mxu1 %vm25969_vm3, %v11649_v59  ;;  %v11667_v45 = vsel %vm26030_vm6, %v26029_v31, %v11666_v53  ;;  %vm26032_vm3 = vcmask 1041408   ;;  %vm26033_vm0 = vmmov %vm26031_vm4  ;;  %v12047_v59 = vrot.slane %v23856_v11, 6  ;;  %v12069_v53 = vrot.slane %v23911_v54, 6 }
 0x90e   : > { %v12026_v63 = vsel %vm26032_vm3, %v12024_v6, %v12025_v35  ;;  %vm26035_vm12 = vmmov %vm26033_vm0  ;;  %v12042_v34 = vsel %vm26032_vm3, %v12039_v26, %v12041_v39  ;;  %v12073_v6 = vrot.slane %v23921_v55, 6  ;;  %v12079_v31 = vrot.slane %v23936_v49, 6 }
 0x90f   : > { %vm26037_vm1 = vmmov %vm26033_vm0 }
 0x910   : > { %16780 = vmatmul.mubr.msk.f32.gmra.mrb[62].mxu1 %vm26013_vm10, %v11651_v9  ;;  %vm26034_vm10 = vmmov %vm26032_vm3  ;;  %v12051_v9 = vrot.slane %v23866_v50, 6 }
 0x911   : > { %16782 = vmatprep.mubr.msk.f32.mxu1 %vm26015_vm11, %v11653_v56  ;;  %v12028_v13 = vsel %vm26034_vm10, %v12025_v35, %v12027_v29  ;;  %vm26036_vm11 = vmmov %vm26032_vm3  ;;  %v12055_v56 = vrot.slane %v23876_v33, 6  ;;  %v12075_v35 = vrot.slane %v23926_v51, 6 }
 0x912   : > { %v12030_v37 = vsel %vm26036_vm11, %v12027_v29, %v12029_v7  ;;  %vm26039_vm2 = vmmov %vm26033_vm0  ;;  %v12083_v29 = vrot.slane %v23946_v62, 6 }
 0x913   : > { %vm26041_vm15 = vmmov %vm26033_vm0  ;;  %v12058_v23 = vsel %vm26032_vm3, %v12055_v56, %v12057_v0 }
 0x914   : > { %16783 = vmatmul.mubr.msk.f32.gmra.mrb[64].mxu1 %vm26017_vm8, %v11655_v10  ;;  %vm26038_vm8 = vmmov %vm26032_vm3  ;;  %v12059_v10 = vrot.slane %v23886_v28, 6 }
 0x915   : > { %16785 = vmatprep.mubr.msk.f32.mxu1 %vm26019_vm13, %v11657_v43  ;;  %v12032_v44 = vsel %vm26038_vm8, %v12029_v7, %v12031_v36  ;;  %vm26040_vm13 = vmmov %vm26032_vm3  ;;  %v12061_v43 = vrot.slane %v23891_v4, 6  ;;  %v26088_v7 = vrot.slane %v23031_v42, 6  ;;  %v24086_v42 = vld [vmem:[%s24463_s6] ss:$0 sm:$0xff] }
 0x916   : > { %v12034_v2 = vsel %vm26040_vm13, %v12031_v36, %v12033_v58  ;;  %vm26046_vm6 = vmmov %vm26032_vm3  ;;  %v26093_v36 = vld [vmem:[#allocation11_spill] sm:$0xff] }
 0x917   : > { %v12040_v21 = vsel %vm26046_vm6, %v12037_v52, %v12039_v26  ;;  %vm26048_vm10 = vmmov %vm26032_vm3 }
 0x918   : > { %16786 = vmatmul.mubr.msk.f32.gmra.mrb[66].mxu1 %vm26022_vm14, %v11659_v15  ;;  %vm26042_vm14 = vmmov %vm26032_vm3  ;;  %v12044_v30 = vsel %vm26048_vm10, %v12041_v39, %v12043_v16  ;;  %v12065_v15 = vrot.slane %v23901_v40, 6 }
 0x919   : > { %16788 = vmatprep.mubr.msk.f32.mxu1 %vm26024_vm9, %v26023_v8  ;;  %v12036_v47 = vsel %vm26042_vm14, %v12033_v58, %v12035_v3  ;;  %vm26043_vm9 = vmmov %vm26033_vm0  ;;  %v12067_v8 = vrot.slane %v23906_v32, 6  ;;  %v26096_v58 = vrot.slane %v25956_v17, 6 }
 0x91a   : > { %vm26050_vm11 = vmmov %vm26032_vm3 }
 0x91b   : > { %v12046_v19 = vsel %vm26050_vm11, %v12043_v16, %v12045_v14  ;;  %vm26052_vm8 = vmmov %vm26032_vm3 }
 0x91c   : > { %16789 = vmatmul.mubr.msk.f32.gmra.mrb[68].mxu1 %vm26026_vm7, %v26025_v12  ;;  %vm26044_vm7 = vmmov %vm26032_vm3  ;;  %v12048_v5 = vsel %vm26052_vm8, %v12045_v14, %v12047_v59  ;;  %v12071_v12 = vrot.slane %v23916_v18, 6  ;;  %v24098_v14 = vpop.permute.xlu1 %12531 }
 0x91d   : > { %16791 = vmatprep.mubr.msk.f32.mxu1 %vm26028_vm5, %v26027_v27  ;;  %v12038_v41 = vsel %vm26044_vm7, %v12035_v3, %v12037_v52  ;;  %vm26045_vm5 = vmmov %vm26033_vm0  ;;  %v12077_v27 = vrot.slane %v23931_v46, 6 }
 0x91e   : > { %vm26054_vm13 = vmmov %vm26032_vm3  ;;  %v12074_v54 = vsel %vm26032_vm3, %v12071_v12, %v12073_v6 }
 0x91f   : > { %v12050_v20 = vsel %vm26054_vm13, %v12047_v59, %v12049_v1  ;;  %vm26056_vm14 = vmmov %vm26032_vm3 }
 0x920   : > { %16792 = vmatmul.mubr.msk.f32.gmra.mrb[70].mxu1 %vm26031_vm4, %v11667_v45  ;;  %vm26047_vm4 = vmmov %vm26033_vm0  ;;  %v12052_v11 = vsel %vm26056_vm14, %v12049_v1, %v12051_v9  ;;  %v12081_v45 = vrot.slane %v23941_v38, 6 }
 0x921   : > { %16798 = vmatprep.mubr.msk.f32.mxu1 %vm26033_vm0, %v12026_v63  ;;  %vm26058_vm7 = vmmov %vm26032_vm3  ;;  %v12085_v63 = vrot.slane %v23951_v57, 6  ;;  %v12095_v57 = vrot.slane %v23802_v24, 6 }
 0x922   : > { %v12054_v60 = vsel %vm26058_vm7, %v12051_v9, %v12053_v22  ;;  %vm26060_vm6 = vmmov %vm26032_vm3 }
 0x923   : > { %v12056_v50 = vsel %vm26060_vm6, %v12053_v22, %v12055_v56  ;;  %vm26062_vm10 = vmmov %vm26032_vm3 }
 0x924   : > { %16799 = vmatmul.mubr.msk.f32.vlgmr.msra.gmra.mrb[36].mxu1 %vm26035_vm12, %v12028_v13  ;;  %vm26049_vm12 = vmmov %vm26033_vm0  ;;  %v12060_v33 = vsel %vm26062_vm10, %v12057_v0, %v12059_v10  ;;  %v26091_v13 = vld [vmem:[#allocation90_spill] sm:$0xff] }
 0x925   : > { %16801 = vmatprep.mubr.msk.f32.mxu1 %vm26037_vm1, %v12030_v37  ;;  %vm26051_vm1 = vmmov %vm26033_vm0  ;;  %v26094_v37 = vld [vmem:[#allocation12_spill] sm:$0xff] }
 0x926   : > { %vm26064_vm11 = vmmov %vm26032_vm3 }
 0x927   : > { %v12062_v48 = vsel %vm26064_vm11, %v12059_v10, %v12061_v43  ;;  %vm26066_vm8 = vmmov %vm26032_vm3 }
 0x928   : > { %16802 = vmatmul.mubr.msk.f32.gmra.mrb[38].mxu1 %vm26039_vm2, %v12032_v44  ;;  %vm26053_vm2 = vmmov %vm26033_vm0  ;;  %v12064_v28 = vsel %vm26066_vm8, %v12061_v43, %v12063_v61 }
 0x929   : > { %16804 = vmatprep.mubr.msk.f32.mxu1 %vm26041_vm15, %v12034_v2  ;;  %vm26055_vm15 = vmmov %vm26033_vm0 }
 0x92a   : > { %vm26068_vm13 = vmmov %vm26032_vm3 }
 0x92b   : > { %v12066_v4 = vsel %vm26068_vm13, %v12063_v61, %v12065_v15  ;;  %vm26070_vm14 = vmmov %vm26032_vm3 }
 0x92c   : > { %16805 = vmatmul.mubr.msk.f32.gmra.mrb[40].mxu1 %vm26043_vm9, %v12036_v47  ;;  %vm26057_vm9 = vmmov %vm26033_vm0  ;;  %v12068_v25 = vsel %vm26070_vm14, %v12065_v15, %v12067_v8 }
 0x92d   : > { %16807 = vmatprep.mubr.msk.f32.mxu1 %vm26045_vm5, %v12038_v41  ;;  %vm26059_vm5 = vmmov %vm26033_vm0 }
 0x92e   : > { %vm26072_vm7 = vmmov %vm26032_vm3 }
 0x92f   : > { %v12070_v40 = vsel %vm26072_vm7, %v12067_v8, %v12069_v53  ;;  %vm26074_vm6 = vmmov %vm26032_vm3 }
 0x930   : > { %16808 = vmatmul.mubr.msk.f32.gmra.mrb[42].mxu1 %vm26047_vm4, %v12040_v21  ;;  %vm26061_vm4 = vmmov %vm26033_vm0  ;;  %v12072_v32 = vsel %vm26074_vm6, %v12069_v53, %v12071_v12 }
 0x931   : > { %16810 = vmatprep.mubr.msk.f32.mxu1 %vm26033_vm0, %v12042_v34  ;;  %vm26076_vm10 = vmmov %vm26032_vm3 }
 0x932   : > { %v12076_v18 = vsel %vm26076_vm10, %v12073_v6, %v12075_v35  ;;  %vm26078_vm11 = vmmov %vm26032_vm3 }
 0x933   : > { %v12078_v55 = vsel %vm26078_vm11, %v12075_v35, %v12077_v27  ;;  %vm26080_vm8 = vmmov %vm26032_vm3 }
 0x934   : > { %16811 = vmatmul.mubr.msk.f32.gmra.mrb[44].mxu1 %vm26049_vm12, %v12044_v30  ;;  %vm26063_vm12 = vmmov %vm26033_vm0  ;;  %v12080_v51 = vsel %vm26080_vm8, %v12077_v27, %v12079_v31  ;;  %v24101_v30 = vpop.permute.xlu0 %12529  ;;  %vm12818_vm8 = vcmask 392192  }
 0x935   : > { %16813 = vmatprep.mubr.msk.f32.mxu1 %vm26051_vm1, %v12046_v19  ;;  %vm26065_vm1 = vmmov %vm26033_vm0 }
 0x936   : > { %vm26082_vm13 = vmmov %vm26032_vm3 }
 0x937   : > { %v12082_v46 = vsel %vm26082_vm13, %v12079_v31, %v12081_v45  ;;  %vm26084_vm14 = vmmov %vm26032_vm3 }
 0x938   : > { %16814 = vmatmul.mubr.msk.f32.gmra.mrb[46].mxu1 %vm26053_vm2, %v12048_v5  ;;  %vm26067_vm2 = vmmov %vm26033_vm0  ;;  %v12084_v49 = vsel %vm26084_vm14, %v12081_v45, %v12083_v29  ;;  %v24111_v56 = vpop.permute.xlu0 %12533 }
 0x939   : > { %16816 = vmatprep.mubr.msk.f32.mxu1 %vm26055_vm15, %v12050_v20  ;;  %vm26069_vm15 = vmmov %vm26033_vm0  ;;  %v24108_v20 = vpop.permute.xlu1 %12535 }
 0x93a   : > { %vm26086_vm7 = vmmov %vm26032_vm3 }
 0x93b   : > { %v12086_v38 = vsel %vm26086_vm7, %v12083_v29, %v12085_v63  ;;  %vm26089_vm6 = vmmov %vm26032_vm3 }
 0x93c   : > { %16817 = vmatmul.mubr.msk.f32.gmra.mrb[48].mxu1 %vm26057_vm9, %v12052_v11  ;;  %vm26071_vm9 = vmmov %vm26033_vm0  ;;  %v12088_v62 = vsel %vm26089_vm6, %v12085_v63, %v26088_v7 }
 0x93d   : > { %16819 = vmatprep.mubr.msk.f32.mxu1 %vm26059_vm5, %v12054_v60  ;;  %vm26073_vm5 = vmmov %vm26033_vm0  ;;  %v24118_v43 = vpop.permute.xlu1 %12539 }
 0x93e   : > { %vm26092_vm3 = vmmov %vm26033_vm0 }
 0x93f   : > { %vm26095_vm10 = vmmov %vm26033_vm0 }
 0x940   : > { %16820 = vmatmul.mubr.msk.f32.gmra.mrb[50].mxu1 %vm26061_vm4, %v12056_v50  ;;  %vm26075_vm4 = vmmov %vm26033_vm0 }
 0x941   : > { %16822 = vmatprep.mubr.msk.f32.mxu1 %vm26033_vm0, %v12058_v23  ;;  %vm26098_vm11 = vmmov %vm26033_vm0 }
 0x944   : > { %16823 = vmatmul.mubr.msk.f32.gmra.mrb[52].mxu1 %vm26063_vm12, %v12060_v33  ;;  %vm26077_vm12 = vmmov %vm26033_vm0  ;;  %v24121_v33 = vpop.permute.xlu0 %12537 }
 0x945   : > { %16825 = vmatprep.mubr.msk.f32.mxu1 %vm26065_vm1, %v12062_v48  ;;  %vm26079_vm1 = vmmov %vm26033_vm0 }
 0x948   : > { %16826 = vmatmul.mubr.msk.f32.gmra.mrb[54].mxu1 %vm26067_vm2, %v12064_v28  ;;  %vm26081_vm2 = vmmov %vm26033_vm0  ;;  %v24131_v12 = vpop.permute.xlu0 %12541 }
 0x949   : > { %16828 = vmatprep.mubr.msk.f32.mxu1 %vm26069_vm15, %v12066_v4  ;;  %vm26083_vm15 = vmmov %vm26033_vm0  ;;  %v24128_v4 = vpop.permute.xlu1 %12543 }
 0x94c   : > { %16829 = vmatmul.mubr.msk.f32.gmra.mrb[56].mxu1 %vm26071_vm9, %v12068_v25  ;;  %vm26085_vm9 = vmmov %vm26033_vm0 }
 0x94d   : > { %16831 = vmatprep.mubr.msk.f32.mxu1 %vm26073_vm5, %v12070_v40  ;;  %vm26087_vm5 = vmmov %vm26033_vm0  ;;  %v24138_v27 = vpop.permute.xlu1 %12547 }
 0x950   : > { %16832 = vmatmul.mubr.msk.f32.gmra.mrb[58].mxu1 %vm26075_vm4, %v12072_v32  ;;  %vm26090_vm4 = vmmov %vm26033_vm0 }
 0x951   : > { %16834 = vmatprep.mubr.msk.f32.mxu1 %vm26033_vm0, %v12074_v54 }
 0x954   : > { %16835 = vmatmul.mubr.msk.f32.gmra.mrb[60].mxu1 %vm26077_vm12, %v12076_v18  ;;  %vm26097_vm12 = vmmov %vm26089_vm6  ;;  %v24141_v18 = vpop.permute.xlu0 %12545 }
 0x955   : > { %16837 = vmatprep.mubr.msk.f32.mxu1 %vm26079_vm1, %v12078_v55  ;;  %v12096_v44 = vsel %vm26097_vm12, %v26096_v58, %v12095_v57  ;;  %vm12781_vm1 = vcmask 261120  }
 0x958   : > { %16838 = vmatmul.mubr.msk.f32.gmra.mrb[62].mxu1 %vm26081_vm2, %v12080_v51  ;;  %vm26102_vm2 = vcmask 523264  }
 0x959   : > { %16840 = vmatprep.mubr.msk.f32.mxu1 %vm26083_vm15, %v12082_v46  ;;  %v24148_v46 = vpop.permute.xlu1 %12551  ;;  %vm26104_vm13 = vmmov %vm26102_vm2 }
 0x95a   : > { %vm26106_vm15 = vmmov %vm26102_vm2 }
 0x95b   : > { %vm26108_vm14 = vmmov %vm26102_vm2 }
 0x95c   : > { %16841 = vmatmul.mubr.msk.f32.gmra.mrb[64].mxu1 %vm26085_vm9, %v12084_v49  ;;  %vm26110_vm9 = vmmov %vm26102_vm2 }
 0x95d   : > { %16843 = vmatprep.mubr.msk.f32.mxu1 %vm26087_vm5, %v12086_v38  ;;  %v24151_v38 = vpop.permute.xlu0 %12549  ;;  %vm26112_vm7 = vmmov %vm26102_vm2 }
 0x95e   : > { %vm26114_vm5 = vmmov %vm26102_vm2 }
 0x95f   : > { %vm26116_vm6 = vmmov %vm26102_vm2 }
 0x960   : > { %16844 = vmatmul.mubr.msk.f32.gmra.mrb[66].mxu1 %vm26090_vm4, %v12088_v62  ;;  %vm26118_vm4 = vmmov %vm26102_vm2 }
 0x961   : > { %16846 = vmatprep.mubr.msk.f32.mxu1 %vm26092_vm3, %v26091_v13  ;;  %v24161_v58 = vpop.permute.xlu0 %12553  ;;  %vm26120_vm3 = vmmov %vm26102_vm2 }
 0x964   : > { %16847 = vmatmul.mubr.msk.f32.gmra.mrb[68].mxu1 %vm26033_vm0, %v26093_v36  ;;  %vm26122_vm0 = vmmov %vm26102_vm2 }
 0x965   : > { %16849 = vmatprep.mubr.msk.f32.mxu1 %vm26095_vm10, %v26094_v37  ;;  %v24158_v37 = vpop.permute.xlu1 %12555  ;;  %vm26124_vm10 = vmmov %vm26122_vm0 }
 0x966   : > { %vm26126_vm12 = vmmov %vm26122_vm0 }
 0x968   : > { %16850 = vmatmul.mubr.msk.f32.gmra.mrb[70].mxu1 %vm26098_vm11, %v12096_v44  ;;  %vm26128_vm11 = vmmov %vm26122_vm0 }
 0x9f7   : > { %v16800_v3 = vpop.f32.mrb[36].mxu1 }
 0x9f8   : > { %v12458_v24 = vadd.f32 %v16800_v3, %v24086_v42  ;;  %v12235_v2 = vpop.f32.mrb[37].mxu1 }
 0x9f9   : > { %v12457_v52 = vadd.f32 %v24086_v42, %v12235_v2 }
 0x9fa   : > { %12675 = vrot.lane.b32.xlu1 %v12458_v24, %s18142_s30 }
 0x9fb   : > { %12673 = vrot.lane.b32.xlu0 %v12457_v52, %s18142_s30  ;;  %v16803_v17 = vpop.f32.mrb[38].mxu1 }
 0x9fc   : > { %v12460_v47 = vadd.f32 %v16803_v17, %v24086_v42  ;;  %v12245_v26 = vpop.f32.mrb[39].mxu1  ;;  %v24168_v17 = vpop.permute.xlu1 %12559 }
 0x9fd   : > { %v12459_v41 = vadd.f32 %v24086_v42, %v12245_v26 }
 0x9fe   : > { %12679 = vrot.lane.b32.xlu1 %v12460_v47, %s18142_s30 }
 0x9ff   : > { %12677 = vrot.lane.b32.xlu0 %v12459_v41, %s18142_s30  ;;  %v16806_v39 = vpop.f32.mrb[40].mxu1  ;;  %v24171_v41 = vpop.permute.xlu0 %12557 }
 0xa00   : > { %v12462_v21 = vadd.f32 %v16806_v39, %v24086_v42  ;;  %v12255_v16 = vpop.f32.mrb[41].mxu1 }
 0xa01   : > { %v12461_v34 = vadd.f32 %v24086_v42, %v12255_v16 }
 0xa02   : > { %12683 = vrot.lane.b32.xlu1 %v12462_v21, %s18142_s30 }
 0xa03   : > { %12681 = vrot.lane.b32.xlu0 %v12461_v34, %s18142_s30  ;;  %v16809_v59 = vpop.f32.mrb[42].mxu1 }
 0xa04   : > { %v12464_v19 = vadd.f32 %v16809_v59, %v24086_v42  ;;  %v12265_v1 = vpop.f32.mrb[43].mxu1 }
 0xa05   : > { %v12463_v5 = vadd.f32 %v24086_v42, %v12265_v1  ;;  %v24181_v1 = vpop.permute.xlu0 %12561 }
 0xa06   : > { %12687 = vrot.lane.b32.xlu1 %v12464_v19, %s18142_s30  ;;  %v24178_v19 = vpop.permute.xlu1 %12563 }
 0xa07   : > { %12685 = vrot.lane.b32.xlu0 %v12463_v5, %s18142_s30  ;;  %v16812_v9 = vpop.f32.mrb[44].mxu1 }
 0xa08   : > { %v12466_v22 = vadd.f32 %v16812_v9, %v24086_v42  ;;  %v12275_v11 = vpop.f32.mrb[45].mxu1 }
 0xa09   : > { %v12465_v60 = vadd.f32 %v24086_v42, %v12275_v11 }
 0xa0a   : > { %12691 = vrot.lane.b32.xlu1 %v12466_v22, %s18142_s30 }
 0xa0b   : > { %12689 = vrot.lane.b32.xlu0 %v12465_v60, %s18142_s30  ;;  %v16815_v0 = vpop.f32.mrb[46].mxu1 }
 0xa0c   : > { %v12468_v50 = vadd.f32 %v16815_v0, %v24086_v42  ;;  %v12285_v10 = vpop.f32.mrb[47].mxu1  ;;  %v24188_v0 = vpop.permute.xlu1 %12567 }
 0xa0d   : > { %v12467_v23 = vadd.f32 %v24086_v42, %v12285_v10 }
 0xa0e   : > { %12695 = vrot.lane.b32.xlu1 %v12468_v50, %s18142_s30 }
 0xa0f   : > { %12693 = vrot.lane.b32.xlu0 %v12467_v23, %s18142_s30  ;;  %v16818_v61 = vpop.f32.mrb[48].mxu1  ;;  %v24191_v23 = vpop.permute.xlu0 %12565 }
 0xa10   : > { %v12470_v48 = vadd.f32 %v16818_v61, %v24086_v42  ;;  %v12295_v15 = vpop.f32.mrb[49].mxu1 }
 0xa11   : > { %v12469_v28 = vadd.f32 %v24086_v42, %v12295_v15 }
 0xa12   : > { %12699 = vrot.lane.b32.xlu1 %v12470_v48, %s18142_s30 }
 0xa13   : > { %12697 = vrot.lane.b32.xlu0 %v12469_v28, %s18142_s30  ;;  %v16821_v8 = vpop.f32.mrb[50].mxu1 }
 0xa14   : > { %v12472_v53 = vadd.f32 %v16821_v8, %v24086_v42  ;;  %v12305_v25 = vpop.f32.mrb[51].mxu1 }
 0xa15   : > { %v12471_v40 = vadd.f32 %v24086_v42, %v12305_v25  ;;  %v24201_v25 = vpop.permute.xlu0 %12569 }
 0xa16   : > { %12703 = vrot.lane.b32.xlu1 %v12472_v53, %s18142_s30  ;;  %v24198_v53 = vpop.permute.xlu1 %12571 }
 0xa17   : > { %12701 = vrot.lane.b32.xlu0 %v12471_v40, %s18142_s30  ;;  %v16824_v6 = vpop.f32.mrb[52].mxu1 }
 0xa18   : > { %v12474_v32 = vadd.f32 %v16824_v6, %v24086_v42  ;;  %v12315_v35 = vpop.f32.mrb[53].mxu1 }
 0xa19   : > { %v12473_v54 = vadd.f32 %v24086_v42, %v12315_v35  ;;  %v24206_v6 = vpop.permute.xlu0 %12573 }
 0xa1a   : > { %12707 = vrot.lane.b32.xlu1 %v12474_v32, %s18142_s30  ;;  %v24204_v40 = vpop.permute.xlu1 %12575 }
 0xa1b   : > { %12705 = vrot.lane.b32.xlu0 %v12473_v54, %s18142_s30  ;;  %v16827_v31 = vpop.f32.mrb[54].mxu1 }
 0xa1c   : > { %v12476_v55 = vadd.f32 %v16827_v31, %v24086_v42  ;;  %v12325_v45 = vpop.f32.mrb[55].mxu1 }
 0xa1d   : > { %v12475_v51 = vadd.f32 %v24086_v42, %v12325_v45  ;;  %v24210_v35 = vpop.permute.xlu0 %12577 }
 0xa1e   : > { %12711 = vrot.lane.b32.xlu1 %v12476_v55, %s18142_s30  ;;  %v24208_v32 = vpop.permute.xlu1 %12579 }
 0xa1f   : > { %12709 = vrot.lane.b32.xlu0 %v12475_v51, %s18142_s30  ;;  %v16830_v29 = vpop.f32.mrb[56].mxu1 }
 0xa20   : > { %v12478_v63 = vadd.f32 %v16830_v29, %v24086_v42  ;;  %v12335_v49 = vpop.f32.mrb[57].mxu1 }
 0xa21   : > { %v12477_v7 = vadd.f32 %v24086_v42, %v12335_v49 }
 0xa22   : > { %12715 = vrot.lane.b32.xlu1 %v12478_v63, %s18142_s30  ;;  %v24212_v54 = vpop.permute.xlu1 %12583 }
 0xa23   : > { %12713 = vrot.lane.b32.xlu0 %v12477_v7, %s18142_s30  ;;  %v16833_v62 = vpop.f32.mrb[58].mxu1 }
 0xa24   : > { %v12480_v13 = vadd.f32 %v16833_v62, %v24086_v42  ;;  %v12345_v57 = vpop.f32.mrb[59].mxu1  ;;  %v26099_v62 = vld [vmem:[#allocation29_spill] sm:$0xff] }
 0xa25   : > { %v12479_v36 = vadd.f32 %v24086_v42, %v12345_v57 }
 0xa26   : > { %12719 = vrot.lane.b32.xlu1 %v12480_v13, %s18142_s30  ;;  %v24216_v31 = vpop.permute.xlu1 %12587  ;;  %v12783_v13 = vsel %vm12781_vm1, %v26099_v62, %v24098_v14 }
 0xa27   : > { %12717 = vrot.lane.b32.xlu0 %v12479_v36, %s18142_s30  ;;  %v16836_v44 = vpop.f32.mrb[60].mxu1  ;;  %v26100_v36 = vld [vmem:[#allocation30_spill] sm:$0xff] }
 0xa28   : > { %v12482_v3 = vadd.f32 %v16836_v44, %v24086_v42  ;;  %v12355_v24 = vpop.f32.mrb[61].mxu1  ;;  %v12782_v44 = vsel %vm12781_vm1, %v26100_v36, %v24101_v30 }
 0xa29   : > { %v12481_v2 = vadd.f32 %v24086_v42, %v12355_v24 }
 0xa2a   : > { %12723 = vrot.lane.b32.xlu1 %v12482_v3, %s18142_s30  ;;  %v24220_v45 = vpop.permute.xlu1 %12591 }
 0xa2b   : > { %12721 = vrot.lane.b32.xlu0 %v12481_v2, %s18142_s30  ;;  %v16839_v52 = vpop.f32.mrb[62].mxu1 }
 0xa2c   : > { %v12484_v47 = vadd.f32 %v16839_v52, %v24086_v42  ;;  %v12365_v26 = vpop.f32.mrb[63].mxu1 }
 0xa2d   : > { %v12483_v39 = vadd.f32 %v24086_v42, %v12365_v26 }
 0xa2e   : > { %12727 = vrot.lane.b32.xlu1 %v12484_v47, %s18142_s30  ;;  %v24224_v29 = vpop.permute.xlu1 %12595  ;;  %v26101_v47 = vld [vmem:[#allocation32_spill] sm:$0xff] }
 0xa2f   : > { %12725 = vrot.lane.b32.xlu0 %v12483_v39, %s18142_s30  ;;  %v16842_v21 = vpop.f32.mrb[64].mxu1  ;;  %v12785_v30 = vsel %vm12781_vm1, %v26101_v47, %v24108_v20  ;;  %v26103_v39 = vld [vmem:[#allocation33_spill] sm:$0xff]  ;;  %v26105_v20 = vld [vmem:[#allocation34_spill] sm:$0xff] }
 0xa30   : > { %v12486_v16 = vadd.f32 %v16842_v21, %v24086_v42  ;;  %v12375_v34 = vpop.f32.mrb[65].mxu1  ;;  %v12784_v21 = vsel %vm12781_vm1, %v26103_v39, %v24111_v56  ;;  %v26107_v56 = vld [vmem:[#allocation35_spill] sm:$0xff] }
 0xa31   : > { %v12485_v59 = vadd.f32 %v24086_v42, %v12375_v34 }
 0xa32   : > { %12731 = vrot.lane.b32.xlu1 %v12486_v16, %s18142_s30  ;;  %v24228_v49 = vpop.permute.xlu1 %12599 }
 0xa33   : > { %12729 = vrot.lane.b32.xlu0 %v12485_v59, %s18142_s30  ;;  %v16845_v5 = vpop.f32.mrb[66].mxu1 }
 0xa34   : > { %v12488_v9 = vadd.f32 %v16845_v5, %v24086_v42  ;;  %v12385_v22 = vpop.f32.mrb[67].mxu1 }
 0xa35   : > { %v12487_v11 = vadd.f32 %v24086_v42, %v12385_v22  ;;  %v12787_v22 = vsel %vm12781_vm1, %v26105_v20, %v24118_v43  ;;  %v26109_v43 = vld [vmem:[#allocation36_spill] sm:$0xff] }
 0xa36   : > { %12735 = vrot.lane.b32.xlu1 %v12488_v9, %s18142_s30 }
 0xa37   : > { %12733 = vrot.lane.b32.xlu0 %v12487_v11, %s18142_s30  ;;  %v16848_v60 = vpop.f32.mrb[68].mxu1 }
 0xa38   : > { %v12490_v50 = vadd.f32 %v16848_v60, %v24086_v42  ;;  %v12395_v10 = vpop.f32.mrb[69].mxu1  ;;  %v12786_v60 = vsel %vm12781_vm1, %v26107_v56, %v24121_v33  ;;  %v26111_v33 = vld [vmem:[#allocation37_spill] sm:$0xff] }
 0xa39   : > { %v12489_v61 = vadd.f32 %v24086_v42, %v12395_v10  ;;  %v12788_v62 = vsel %vm12781_vm1, %v26111_v33, %v24131_v12  ;;  %v26115_v12 = vld [vmem:[#allocation39_spill] sm:$0xff] }
 0xa3a   : > { %12739 = vrot.lane.b32.xlu1 %v12490_v50, %s18142_s30 }
 0xa3b   : > { %12737 = vrot.lane.b32.xlu0 %v12489_v61, %s18142_s30  ;;  %v16851_v48 = vpop.f32.mrb[70].mxu1 }
 0xa3c   : > { %v12492_v15 = vadd.f32 %v16851_v48, %v24086_v42  ;;  %v12405_v28 = vpop.f32.mrb[71].mxu1 }
 0xa3d   : > { %v12491_v8 = vadd.f32 %v24086_v42, %v12405_v28  ;;  %v24214_v42 = vpop.permute.xlu0 %12581  ;;  %v12789_v28 = vsel %vm12781_vm1, %v26109_v43, %v24128_v4  ;;  %v26113_v4 = vld [vmem:[#allocation38_spill] sm:$0xff] }
 0xa3e   : > { %12743 = vrot.lane.b32.xlu1 %v12492_v15, %s18142_s30 }
 0xa3f   : > { %12741 = vrot.lane.b32.xlu0 %v12491_v8, %s18142_s30 }
 0xa41   : > { %v24218_v55 = vpop.permute.xlu0 %12585 }
 0xa45   : > { %v24222_v51 = vpop.permute.xlu0 %12589 }
 0xa49   : > { %v24226_v63 = vpop.permute.xlu0 %12593 }
 0xa4d   : > { %v24230_v7 = vpop.permute.xlu0 %12597 }
 0xa6c   : > { %v12676_v57 = vpop.permute.xlu1 %12675 }
 0xa6d   : > { %v12820_v3 = vsel %vm12818_vm8, %v12783_v13, %v12676_v57  ;;  %v12674_v24 = vpop.permute.xlu0 %12673 }
 0xa6e   : > { %v12856_v2 = vmax.f32 %v12820_v3, 0.0  ;;  %v12819_v52 = vsel %vm12818_vm8, %v12782_v44, %v12674_v24  ;;  %v12791_v24 = vsel %vm12781_vm1, %v26113_v4, %v24138_v27  ;;  %v26117_v27 = vld [vmem:[#allocation40_spill] sm:$0xff] }
 0xa6f   : > { %v12855_v14 = vmax.f32 %v12819_v52, 0.0  ;;  %v12790_v52 = vsel %vm12781_vm1, %v26115_v12, %v24141_v18  ;;  %v26119_v18 = vld [vmem:[#allocation41_spill] sm:$0xff] }
 0xa70   : > { %12892 = vst.msk [vmem:[%s24242_s10 + $0x8] sm:$0xff] %vm26102_vm2, %v12856_v2  ;;  %v12680_v26 = vpop.permute.xlu1 %12679  ;;  %vm26130_vm2 = vmmov %vm26122_vm0 }
 0xa71   : > { %12891 = vst.msk [vmem:[%s24242_s10] sm:$0xff] %vm26104_vm13, %v12855_v14  ;;  %v12822_v16 = vsel %vm12818_vm8, %v12785_v30, %v12680_v26  ;;  %v12678_v34 = vpop.permute.xlu0 %12677  ;;  %vm26132_vm13 = vmmov %vm26122_vm0 }
 0xa72   : > { %v12858_v59 = vmax.f32 %v12822_v16, 0.0  ;;  %v12821_v5 = vsel %vm12818_vm8, %v12784_v21, %v12678_v34  ;;  %v12793_v21 = vsel %vm12781_vm1, %v26117_v27, %v24148_v46  ;;  %v12792_v34 = vsel %vm12781_vm1, %v26119_v18, %v24151_v38  ;;  %v26121_v46 = vld [vmem:[#allocation43_spill] sm:$0xff]  ;;  %v26123_v38 = vld [vmem:[#allocation45_spill] sm:$0xff] }
 0xa73   : > { %v12857_v9 = vmax.f32 %v12821_v5, 0.0 }
 0xa74   : > { %12894 = vst.msk [vmem:[%s24242_s10 + $0x18] sm:$0xff] %vm26106_vm15, %v12858_v59  ;;  %v12684_v11 = vpop.permute.xlu1 %12683  ;;  %vm26134_vm15 = vmmov %vm26122_vm0 }
 0xa75   : > { %12893 = vst.msk [vmem:[%s24242_s10 + $0x10] sm:$0xff] %vm26108_vm14, %v12857_v9  ;;  %v12824_v50 = vsel %vm12818_vm8, %v12787_v22, %v12684_v11  ;;  %v12682_v10 = vpop.permute.xlu0 %12681  ;;  %v12795_v11 = vsel %vm12781_vm1, %v26121_v46, %v24158_v37  ;;  %v26125_v37 = vld [vmem:[#allocation47_spill] sm:$0xff]  ;;  %vm26136_vm14 = vmmov %vm26122_vm0 }
 0xa76   : > { %v12860_v61 = vmax.f32 %v12824_v50, 0.0  ;;  %v12823_v48 = vsel %vm12818_vm8, %v12786_v60, %v12682_v10  ;;  %v12794_v60 = vsel %vm12781_vm1, %v26123_v38, %v24161_v58  ;;  %v12797_v43 = vsel %vm12781_vm1, %v26125_v37, %v24168_v17  ;;  %v26127_v58 = vld [vmem:[#allocation48_spill] sm:$0xff]  ;;  %v26129_v17 = vld [vmem:[#allocation49_spill] sm:$0xff] }
 0xa77   : > { %v12859_v15 = vmax.f32 %v12823_v48, 0.0 }
 0xa78   : > { %12896 = vst.msk [vmem:[%s24242_s10 + $0x28] sm:$0xff] %vm26110_vm9, %v12860_v61  ;;  %v12688_v8 = vpop.permute.xlu1 %12687  ;;  %vm26138_vm9 = vmmov %vm26122_vm0 }
 0xa79   : > { %12895 = vst.msk [vmem:[%s24242_s10 + $0x20] sm:$0xff] %vm26112_vm7, %v12859_v15  ;;  %v12826_v13 = vsel %vm12818_vm8, %v12789_v28, %v12688_v8  ;;  %v12686_v57 = vpop.permute.xlu0 %12685  ;;  %v12796_v8 = vsel %vm12781_vm1, %v26127_v58, %v24171_v41  ;;  %v26131_v41 = vld [vmem:[#allocation50_spill] sm:$0xff]  ;;  %vm26140_vm7 = vmmov %vm26122_vm0 }
 0xa7a   : > { %v12862_v36 = vmax.f32 %v12826_v13, 0.0  ;;  %v12825_v44 = vsel %vm12818_vm8, %v12788_v62, %v12686_v57  ;;  %v12798_v4 = vsel %vm12781_vm1, %v26131_v41, %v24181_v1  ;;  %v26135_v1 = vld [vmem:[#allocation52_spill] sm:$0xff] }
 0xa7b   : > { %v12861_v3 = vmax.f32 %v12825_v44, 0.0  ;;  %v12799_v44 = vsel %vm12781_vm1, %v26129_v17, %v24178_v19  ;;  %v26133_v19 = vld [vmem:[#allocation51_spill] sm:$0xff] }
 0xa7c   : > { %12898 = vst.msk [vmem:[%s24242_s10 + $0x38] sm:$0xff] %vm26114_vm5, %v12862_v36  ;;  %v12692_v2 = vpop.permute.xlu1 %12691  ;;  %vm26142_vm5 = vmmov %vm26122_vm0 }
 0xa7d   : > { %12897 = vst.msk [vmem:[%s24242_s10 + $0x30] sm:$0xff] %vm26116_vm6, %v12861_v3  ;;  %v12828_v14 = vsel %vm12818_vm8, %v12791_v24, %v12692_v2  ;;  %v12690_v47 = vpop.permute.xlu0 %12689  ;;  %vm26144_vm6 = vmmov %vm26122_vm0 }
 0xa7e   : > { %v12864_v30 = vmax.f32 %v12828_v14, 0.0  ;;  %v12827_v26 = vsel %vm12818_vm8, %v12790_v52, %v12690_v47  ;;  %v12801_v47 = vsel %vm12781_vm1, %v26133_v19, %v24188_v0  ;;  %v26137_v0 = vld [vmem:[#allocation53_spill] sm:$0xff] }
 0xa7f   : > { %v12863_v39 = vmax.f32 %v12827_v26, 0.0  ;;  %v12800_v26 = vsel %vm12781_vm1, %v26135_v1, %v24191_v23  ;;  %v26139_v23 = vld [vmem:[#allocation55_spill] sm:$0xff] }
 0xa80   : > { %12900 = vst.msk [vmem:[%s24242_s10 + $0x48] sm:$0xff] %vm26118_vm4, %v12864_v30  ;;  %v12696_v16 = vpop.permute.xlu1 %12695  ;;  %vm26146_vm4 = vmmov %vm26122_vm0 }
 0xa81   : > { %12899 = vst.msk [vmem:[%s24242_s10 + $0x40] sm:$0xff] %vm26120_vm3, %v12863_v39  ;;  %v12830_v59 = vsel %vm12818_vm8, %v12793_v21, %v12696_v16  ;;  %v12694_v5 = vpop.permute.xlu0 %12693  ;;  %vm26148_vm3 = vmmov %vm26122_vm0 }
 0xa82   : > { %v12866_v9 = vmax.f32 %v12830_v59, 0.0  ;;  %v12829_v20 = vsel %vm12818_vm8, %v12792_v34, %v12694_v5  ;;  %v12803_v34 = vsel %vm12781_vm1, %v26137_v0, %v24198_v53  ;;  %v12802_v5 = vsel %vm12781_vm1, %v26139_v23, %v24201_v25  ;;  %v26141_v53 = vld [vmem:[#allocation56_spill] sm:$0xff]  ;;  %v26143_v25 = vld [vmem:[#allocation57_spill] sm:$0xff] }
 0xa83   : > { %v12865_v22 = vmax.f32 %v12829_v20, 0.0 }
 0xa84   : > { %12902 = vst.msk [vmem:[%s24242_s10 + $0x58] sm:$0xff] %vm26122_vm0, %v12866_v9  ;;  %v12700_v56 = vpop.permute.xlu1 %12699 }
 0xa85   : > { %12901 = vst.msk [vmem:[%s24242_s10 + $0x50] sm:$0xff] %vm26124_vm10, %v12865_v22  ;;  %v12832_v50 = vsel %vm12818_vm8, %v12795_v11, %v12700_v56  ;;  %v12698_v10 = vpop.permute.xlu0 %12697  ;;  %v12805_v56 = vsel %vm12781_vm1, %v26141_v53, %v24204_v40  ;;  %v26145_v40 = vld [vmem:[#allocation58_spill] sm:$0xff]  ;;  %vm26151_vm10 = vmmov %vm26122_vm0 }
 0xa86   : > { %v12868_v61 = vmax.f32 %v12832_v50, 0.0  ;;  %v12831_v48 = vsel %vm12818_vm8, %v12794_v60, %v12698_v10  ;;  %v12804_v60 = vsel %vm12781_vm1, %v26143_v25, %v24206_v6  ;;  %v12807_v37 = vsel %vm12781_vm1, %v26145_v40, %v24208_v32  ;;  %v26147_v6 = vld [vmem:[#allocation59_spill] sm:$0xff]  ;;  %v26149_v32 = vld [vmem:[#allocation60_spill] sm:$0xff] }
 0xa87   : > { %v12867_v15 = vmax.f32 %v12831_v48, 0.0 }
 0xa88   : > { %12904 = vst.msk [vmem:[%s24242_s10 + $0x68] sm:$0xff] %vm26126_vm12, %v12868_v61  ;;  %v12704_v28 = vpop.permute.xlu1 %12703  ;;  %vm26153_vm12 = vmmov %vm26122_vm0 }
 0xa89   : > { %12903 = vst.msk [vmem:[%s24242_s10 + $0x60] sm:$0xff] %vm26128_vm11, %v12867_v15  ;;  %v12834_v33 = vsel %vm12818_vm8, %v12797_v43, %v12704_v28  ;;  %v12702_v62 = vpop.permute.xlu0 %12701  ;;  %v12806_v28 = vsel %vm12781_vm1, %v26147_v6, %v24210_v35  ;;  %v26150_v35 = vld [vmem:[#allocation61_spill] sm:$0xff]  ;;  %vm26155_vm11 = vmmov %vm26122_vm0 }
 0xa8a   : > { %v12870_v13 = vmax.f32 %v12834_v33, 0.0  ;;  %v12833_v57 = vsel %vm12818_vm8, %v12796_v8, %v12702_v62  ;;  %v12808_v17 = vsel %vm12781_vm1, %v26150_v35, %v24214_v42  ;;  %v26154_v42 = vld [vmem:[#allocation63_spill] sm:$0xff] }
 0xa8b   : > { %v12869_v36 = vmax.f32 %v12833_v57, 0.0  ;;  %v12809_v57 = vsel %vm12781_vm1, %v26149_v32, %v24212_v54  ;;  %v26152_v54 = vld [vmem:[#allocation62_spill] sm:$0xff] }
 0xa8c   : > { %12906 = vst.msk [vmem:[%s24242_s10 + $0x78] sm:$0xff] %vm26130_vm2, %v12870_v13  ;;  %v12708_v3 = vpop.permute.xlu1 %12707  ;;  %vm26157_vm2 = vmmov %vm26122_vm0 }
 0xa8d   : > { %12905 = vst.msk [vmem:[%s24242_s10 + $0x70] sm:$0xff] %vm26132_vm13, %v12869_v36  ;;  %v12836_v24 = vsel %vm12818_vm8, %v12799_v44, %v12708_v3  ;;  %v12706_v2 = vpop.permute.xlu0 %12705  ;;  %vm26159_vm13 = vmmov %vm26122_vm0 }
 0xa8e   : > { %v12872_v12 = vmax.f32 %v12836_v24, 0.0  ;;  %v12835_v52 = vsel %vm12818_vm8, %v12798_v4, %v12706_v2  ;;  %v12811_v2 = vsel %vm12781_vm1, %v26152_v54, %v24216_v31  ;;  %v26156_v31 = vld [vmem:[#allocation64_spill] sm:$0xff] }
 0xa8f   : > { %v12871_v14 = vmax.f32 %v12835_v52, 0.0  ;;  %v12810_v52 = vsel %vm12781_vm1, %v26154_v42, %v24218_v55  ;;  %v26158_v55 = vld [vmem:[#allocation65_spill] sm:$0xff] }
 0xa90   : > { %12908 = vst.msk [vmem:[%s24242_s10 + $0x88] sm:$0xff] %vm26134_vm15, %v12872_v12  ;;  %v12712_v30 = vpop.permute.xlu1 %12711  ;;  %vm26161_vm15 = vmmov %vm26122_vm0 }
 0xa91   : > { %12907 = vst.msk [vmem:[%s24242_s10 + $0x80] sm:$0xff] %vm26136_vm14, %v12871_v14  ;;  %v12838_v39 = vsel %vm12818_vm8, %v12801_v47, %v12712_v30  ;;  %v12710_v27 = vpop.permute.xlu0 %12709  ;;  %vm26163_vm14 = vmmov %vm26122_vm0 }
 0xa92   : > { %v12874_v21 = vmax.f32 %v12838_v39, 0.0  ;;  %v12837_v16 = vsel %vm12818_vm8, %v12800_v26, %v12710_v27  ;;  %v12813_v26 = vsel %vm12781_vm1, %v26156_v31, %v24220_v45  ;;  %v12812_v27 = vsel %vm12781_vm1, %v26158_v55, %v24222_v51  ;;  %v26160_v45 = vld [vmem:[#allocation67_spill] sm:$0xff]  ;;  %v26162_v51 = vld [vmem:[#allocation68_spill] sm:$0xff] }
 0xa93   : > { %v12873_v18 = vmax.f32 %v12837_v16, 0.0 }
 0xa94   : > { %12910 = vst.msk [vmem:[%s24242_s10 + $0x98] sm:$0xff] %vm26138_vm9, %v12874_v21  ;;  %v12716_v59 = vpop.permute.xlu1 %12715  ;;  %vm26165_vm9 = vmmov %vm26122_vm0 }
 0xa95   : > { %12909 = vst.msk [vmem:[%s24242_s10 + $0x90] sm:$0xff] %vm26140_vm7, %v12873_v18  ;;  %v12840_v9 = vsel %vm12818_vm8, %v12803_v34, %v12716_v59  ;;  %v12714_v20 = vpop.permute.xlu0 %12713  ;;  %v12815_v59 = vsel %vm12781_vm1, %v26160_v45, %v24224_v29  ;;  %v26164_v29 = vld [vmem:[#allocation71_spill] sm:$0xff]  ;;  %vm26167_vm7 = vmmov %vm26122_vm0 }
 0xa96   : > { %v12876_v22 = vmax.f32 %v12840_v9, 0.0  ;;  %v12839_v46 = vsel %vm12818_vm8, %v12802_v5, %v12714_v20  ;;  %v12814_v5 = vsel %vm12781_vm1, %v26162_v51, %v24226_v63  ;;  %v12817_v53 = vsel %vm12781_vm1, %v26164_v29, %v24228_v49  ;;  %v26166_v63 = vld [vmem:[#allocation72_spill] sm:$0xff] }
 0xa97   : > { %v12875_v11 = vmax.f32 %v12839_v46, 0.0 }
 0xa98   : > { %12912 = vst.msk [vmem:[%s24242_s10 + $0xa8] sm:$0xff] %vm26142_vm5, %v12876_v22  ;;  %v12720_v38 = vpop.permute.xlu1 %12719  ;;  %vm26168_vm5 = vmmov %vm26122_vm0 }
 0xa99   : > { %12911 = vst.msk [vmem:[%s24242_s10 + $0xa0] sm:$0xff] %vm26144_vm6, %v12875_v11  ;;  %v12842_v50 = vsel %vm12818_vm8, %v12805_v56, %v12720_v38  ;;  %v12718_v10 = vpop.permute.xlu0 %12717  ;;  %v12816_v38 = vsel %vm12781_vm1, %v26166_v63, %v24230_v7  ;;  %vm26169_vm6 = vmmov %vm26122_vm0 }
 0xa9a   : > { %v12878_v61 = vmax.f32 %v12842_v50, 0.0  ;;  %v12841_v48 = vsel %vm12818_vm8, %v12804_v60, %v12718_v10 }
 0xa9b   : > { %v12877_v15 = vmax.f32 %v12841_v48, 0.0 }
 0xa9c   : > { %12914 = vst.msk [vmem:[%s24242_s10 + $0xb8] sm:$0xff] %vm26146_vm4, %v12878_v61  ;;  %v12724_v43 = vpop.permute.xlu1 %12723 }
 0xa9d   : > { %12913 = vst.msk [vmem:[%s24242_s10 + $0xb0] sm:$0xff] %vm26148_vm3, %v12877_v15  ;;  %v12844_v58 = vsel %vm12818_vm8, %v12807_v37, %v12724_v43  ;;  %v12722_v8 = vpop.permute.xlu0 %12721 }
 0xa9e   : > { %v12880_v33 = vmax.f32 %v12844_v58, 0.0  ;;  %v12843_v62 = vsel %vm12818_vm8, %v12806_v28, %v12722_v8 }
 0xa9f   : > { %v12879_v13 = vmax.f32 %v12843_v62, 0.0 }
 0xaa0   : > { %12916 = vst.msk [vmem:[%s24242_s10 + $0xc8] sm:$0xff] %vm26122_vm0, %v12880_v33  ;;  %v12728_v36 = vpop.permute.xlu1 %12727 }
 0xaa1   : > { %12915 = vst.msk [vmem:[%s24242_s10 + $0xc0] sm:$0xff] %vm26151_vm10, %v12879_v13  ;;  %v12846_v44 = vsel %vm12818_vm8, %v12809_v57, %v12728_v36  ;;  %v12726_v3 = vpop.permute.xlu0 %12725 }
 0xaa2   : > { %v12882_v41 = vmax.f32 %v12846_v44, 0.0  ;;  %v12845_v4 = vsel %vm12818_vm8, %v12808_v17, %v12726_v3 }
 0xaa3   : > { %v12881_v24 = vmax.f32 %v12845_v4, 0.0 }
 0xaa4   : > { %12918 = vst.msk [vmem:[%s24242_s10 + $0xd8] sm:$0xff] %vm26153_vm12, %v12882_v41  ;;  %v12732_v12 = vpop.permute.xlu1 %12731 }
 0xaa5   : > { %12917 = vst.msk [vmem:[%s24242_s10 + $0xd0] sm:$0xff] %vm26155_vm11, %v12881_v24  ;;  %v12848_v14 = vsel %vm12818_vm8, %v12811_v2, %v12732_v12  ;;  %v12730_v19 = vpop.permute.xlu0 %12729 }
 0xaa6   : > { %v12884_v47 = vmax.f32 %v12848_v14, 0.0  ;;  %v12847_v30 = vsel %vm12818_vm8, %v12810_v52, %v12730_v19 }
 0xaa7   : > { %v12883_v1 = vmax.f32 %v12847_v30, 0.0 }
 0xaa8   : > { %12920 = vst.msk [vmem:[%s24242_s10 + $0xe8] sm:$0xff] %vm26157_vm2, %v12884_v47  ;;  %v12736_v39 = vpop.permute.xlu1 %12735 }
 0xaa9   : > { %12919 = vst.msk [vmem:[%s24242_s10 + $0xe0] sm:$0xff] %vm26159_vm13, %v12883_v1  ;;  %v12850_v21 = vsel %vm12818_vm8, %v12813_v26, %v12736_v39  ;;  %v12734_v16 = vpop.permute.xlu0 %12733 }
 0xaaa   : > { %v12886_v18 = vmax.f32 %v12850_v21, 0.0  ;;  %v12849_v0 = vsel %vm12818_vm8, %v12812_v27, %v12734_v16 }
 0xaab   : > { %v12885_v34 = vmax.f32 %v12849_v0, 0.0 }
 0xaac   : > { %12922 = vst.msk [vmem:[%s24242_s10 + $0xf8] sm:$0xff] %vm26161_vm15, %v12886_v18  ;;  %v12740_v23 = vpop.permute.xlu1 %12739 }
 0xaad   : > { %12921 = vst.msk [vmem:[%s24242_s10 + $0xf0] sm:$0xff] %vm26163_vm14, %v12885_v34  ;;  %v12852_v9 = vsel %vm12818_vm8, %v12815_v59, %v12740_v23  ;;  %v12738_v20 = vpop.permute.xlu0 %12737 }
 0xaae   : > { %v12888_v22 = vmax.f32 %v12852_v9, 0.0  ;;  %v12851_v46 = vsel %vm12818_vm8, %v12814_v5, %v12738_v20 }
 0xaaf   : > { %v12887_v11 = vmax.f32 %v12851_v46, 0.0 }
 0xab0   : > { %12924 = vst.msk [vmem:[%s24242_s10 + $0x108] sm:$0xff] %vm26165_vm9, %v12888_v22  ;;  %v12744_v56 = vpop.permute.xlu1 %12743 }
 0xab1   : > { %12923 = vst.msk [vmem:[%s24242_s10 + $0x100] sm:$0xff] %vm26167_vm7, %v12887_v11  ;;  %v12854_v25 = vsel %vm12818_vm8, %v12817_v53, %v12744_v56  ;;  %v12742_v60 = vpop.permute.xlu0 %12741 }
 0xab2   : > { %v12890_v50 = vmax.f32 %v12854_v25, 0.0  ;;  %v12853_v10 = vsel %vm12818_vm8, %v12816_v38, %v12742_v60 }
 0xab3   : > { %v12889_v61 = vmax.f32 %v12853_v10, 0.0 }
 0xab4   : > { %12926 = vst.msk [vmem:[%s24242_s10 + $0x118] sm:$0xff] %vm26168_vm5, %v12890_v50 }
 0xab5   : > { %12925 = vst.msk [vmem:[%s24242_s10 + $0x110] sm:$0xff] %vm26169_vm6, %v12889_v61 }
 0xab6 PF: > { %s17_s24 = sadd.s32 1, %s18136_s24  }
 0xab7   : > { %p14_p4 = scmp.ge.s32.totalorder %s17_s24, 4  }
 0xab9   :  { %16 = sbr.rel (!%p14_p4) target bundleno = 1 (0x1), region = 102 }

</bundles_post_ra>
